<compile_context>
chip_gen: v7x
topology: tpu7x:2x2x1
jax: 0.10.0
libtpu: 0.0.40
codegen_flags: <defaults>
</compile_context>

<pallas_src>
import jax
import jax.numpy as jnp
from jax.scipy.special import erf as _xla_erf
from jax.experimental import pallas as pl
from jax.experimental.pallas import tpu as pltpu

_SQRT_HALF = 0.7071067811865476


# ----------------------------------------------------------------------------- helpers
def _erf_poly(x):
    # Abramowitz & Stegun 7.1.26, |error| <= 1.5e-7 (lax.erf may not lower in Mosaic).
    a1, a2, a3, a4, a5 = 0.254829592, -0.284496736, 1.421413741, -1.453152027, 1.061405429
    p = 0.3275911
    sign = jnp.where(x < 0.0, -1.0, 1.0).astype(jnp.float32)
    ax = jnp.abs(x)
    t = 1.0 / (1.0 + p * ax)
    poly = ((((a5 * t + a4) * t + a3) * t + a2) * t + a1) * t
    return sign * (1.0 - poly * jnp.exp(-ax * ax))


def _gelu_exact(x):
    # Matches PyTorch F.gelu (erf form) to ~1e-7, computed in f32.
    return 0.5 * x * (1.0 + _erf_poly(x * _SQRT_HALF))


def _pick_t_tile(T, target=8):
    # Largest divisor of T that is <= target, preferring >= 2 tiles (megacore / pipelining).
    divs = [d for d in range(1, T + 1) if T % d == 0]
    cands = [d for d in divs if d <= target and T // d >= 2]
    if cands:
        return max(cands)
    cands = [d for d in divs if d <= target]
    return max(cands) if cands else T


# ----------------------------------------------------------------------------- kernel
def _make_ffn_kernel(has_flow):
    def kernel(*refs):
        if has_flow:
            (xp_ref, xm_ref, xn_ref, w1_ref, w2_ref, b1_ref, b2_ref,
             wd1_ref, wd2_ref, bd1_ref, bd2_ref, wo_ref, bo_ref, wf_ref, bf_ref,
             out_ref, flow_ref, y1_ref, y2_ref) = refs
        else:
            (xp_ref, xm_ref, xn_ref, w1_ref, w2_ref, b1_ref, b2_ref,
             wd1_ref, wd2_ref, bd1_ref, bd2_ref, wo_ref, bo_ref,
             out_ref, y1_ref, y2_ref) = refs
            wf_ref = bf_ref = flow_ref = None

        _, tT, H, W, cin = xm_ref.shape
        hid = w1_ref.shape[1]
        tt = pl.program_id(1)
        nT = pl.num_programs(1)

        # Padded scratch: zero it; the 1-element halo stays zero (== conv zero padding)
        # unless overwritten below with a recomputed neighbouring frame.
        y1_ref[...] = jnp.zeros_like(y1_ref)
        y2_ref[...] = jnp.zeros_like(y2_ref)

        def project(x4d):
            # x4d: (f, H, W, cin) in the input dtype -> two f32 (f, H, W, hid) halves.
            f = x4d.shape[0]
            x2 = x4d.reshape(f * H * W, cin)
            a = jnp.dot(x2, w1_ref[...], preferred_element_type=jnp.float32)
            a = a + b1_ref[...].astype(jnp.float32)
            b = jnp.dot(x2, w2_ref[...], preferred_element_type=jnp.float32)
            b = b + b2_ref[...].astype(jnp.float32)
            return a.reshape(f, H, W, hid), b.reshape(f, H, W, hid)

        # Main frames of this T-tile.
        a, b = project(xm_ref[0])
        y1_ref[1:1 + tT, 1:1 + H, 1:1 + W, :] = a
        y2_ref[1:1 + tT, 1:1 + H, 1:1 + W, :] = b

        # Previous-frame halo (recomputed project_in; stays zero at the batch boundary).
        @pl.when(tt > 0)
        def _():
            ap, bp = project(xp_ref[0])
            y1_ref[0:1, 1:1 + H, 1:1 + W, :] = ap
            y2_ref[0:1, 1:1 + H, 1:1 + W, :] = bp

        # Next-frame halo.
        @pl.when(tt < nT - 1)
        def _():
            an, bn = project(xn_ref[0])
            y1_ref[tT + 1:tT + 2, 1:1 + H, 1:1 + W, :] = an
            y2_ref[tT + 1:tT + 2, 1:1 + H, 1:1 + W, :] = bn

        def dwconv(y_ref, w_ref, bias_ref):
            w_all = w_ref[...].astype(jnp.float32)                        # (27, hid), cast once
            bias = bias_ref[...].astype(jnp.float32).reshape(1, 1, 1, hid)
            acc = jnp.zeros((tT, H, W, hid), jnp.float32)
            for dw in range(3):
                # One sublane-shifted slab per W offset (3 relayouts instead of 27).
                slab = y_ref[:, :, dw:dw + W, :]                          # (tT+2, H+2, W, hid) f32
                for dt in range(3):
                    for dh in range(3):
                        tap = dt * 9 + dh * 3 + dw
                        win = slab[dt:dt + tT, dh:dh + H, :, :]           # leading-dim slice only
                        acc = acc + win * w_all[tap:tap + 1, :].reshape(1, 1, 1, hid)
            return acc + bias

        # Gate: gelu(acc1) first, then acc2 and multiply (<= 2 full f32 temps live).
        g = _gelu_exact(dwconv(y1_ref, wd1_ref, bd1_ref))
        g = g * dwconv(y2_ref, wd2_ref, bd2_ref)

        g2 = g.reshape(tT * H * W, hid)
        if wo_ref.dtype != jnp.float32:
            g2 = g2.astype(wo_ref.dtype)            # native low-precision MXU path for bf16 models

        o = jnp.dot(g2, wo_ref[...], preferred_element_type=jnp.float32)
        o = o + bo_ref[...].astype(jnp.float32)
        out_ref[0] = o.reshape(tT, H, W, out_ref.shape[-1]).astype(out_ref.dtype)

        if has_flow:
            fo = jnp.dot(g2, wf_ref[...], preferred_element_type=jnp.float32)
            fo = fo + bf_ref[...].astype(jnp.float32)
            flow_ref[0] = fo.reshape(tT, H, W, flow_ref.shape[-1]).astype(flow_ref.dtype)

    return kernel


# ----------------------------------------------------------------------------- wrapper
@jax.jit
def feed_forward(x, w_in, b_in, w_dw, b_dw, w_out, b_out):
    """FeedForward forward pass.

    x     : (B, dim, T, H, W)
    w_in  : (2*hidden, dim, 1, 1, 1)   b_in : (2*hidden,)     (pass zeros if bias=False)
    w_dw  : (2*hidden, 1, 3, 3, 3)     b_dw : (2*hidden,)
    w_out : (dim+flow, hidden, 1,1,1)  b_out: (dim+flow,)
    Returns (B, dim, T, H, W) if flow_dim == 0 else a ((B,dim,...), (B,flow,...)) tuple.
    """
    B, dim, T, H, W = x.shape
    two_hid = w_in.shape[0]
    hid = two_hid // 2
    co = w_out.shape[0]
    flow = co - dim
    has_flow = flow > 0
    dtype = x.dtype

    tT = _pick_t_tile(T)
    nT = T // tT

    # ---- tiny weight layout conversions (fused by XLA) ----
    w_in2 = w_in.reshape(two_hid, dim).T                 # (dim, 2*hid)
    w1, w2 = w_in2[:, :hid], w_in2[:, hid:]
    b1 = b_in[:hid].reshape(1, hid)
    b2 = b_in[hid:].reshape(1, hid)
    wd = w_dw.reshape(two_hid, 27).T                     # (27, 2*hid)
    wd1, wd2 = wd[:, :hid], wd[:, hid:]
    bd1 = b_dw[:hid].reshape(1, hid)
    bd2 = b_dw[hid:].reshape(1, hid)
    w_o = w_out.reshape(co, hid).T                       # (hid, co)
    wo, bo = w_o[:, :dim], b_out[:dim].reshape(1, dim)

    # ---- channels-last tokens (only the narrow dim-channel tensor is transposed) ----
    xt = jnp.transpose(x, (0, 2, 3, 4, 1))               # (B, T, H, W, dim)

    im_main = lambda b, t: (b, t, 0, 0, 0)
    im_prev = lambda b, t: (b, jnp.maximum(t * tT - 1, 0), 0, 0, 0)
    im_next = lambda b, t: (b, jnp.minimum(t * tT + tT, T - 1), 0, 0, 0)

    def rep(shape):
        zeros = (0,) * len(shape)
        return pl.BlockSpec(shape, lambda b, t: zeros)

    in_specs = [
        pl.BlockSpec((1, 1, H, W, dim), im_prev),        # prev-frame halo view of x
        pl.BlockSpec((1, tT, H, W, dim), im_main),       # main T-tile of x
        pl.BlockSpec((1, 1, H, W, dim), im_next),        # next-frame halo view of x
        rep((dim, hid)), rep((dim, hid)), rep((1, hid)), rep((1, hid)),
        rep((27, hid)), rep((27, hid)), rep((1, hid)), rep((1, hid)),
        rep((hid, dim)), rep((1, dim)),
    ]
    args = [xt, xt, xt, w1, w2, b1, b2, wd1, wd2, bd1, bd2, wo, bo]

    if has_flow:
        wf, bf = w_o[:, dim:], b_out[dim:].reshape(1, flow)
        in_specs += [rep((hid, flow)), rep((1, flow))]
        args += [wf, bf]
        out_shape = (jax.ShapeDtypeStruct((B, T, H, W, dim), dtype),
                     jax.ShapeDtypeStruct((B, T, H, W, flow), dtype))
        out_specs = (pl.BlockSpec((1, tT, H, W, dim), im_main),
                     pl.BlockSpec((1, tT, H, W, flow), im_main))
    else:
        out_shape = jax.ShapeDtypeStruct((B, T, H, W, dim), dtype)
        out_specs = pl.BlockSpec((1, tT, H, W, dim), im_main)

    outs = pl.pallas_call(
        _make_ffn_kernel(has_flow),
        out_shape=out_shape,
        grid=(B, nT),
        in_specs=in_specs,
        out_specs=out_specs,
        scratch_shapes=[pltpu.VMEM((tT + 2, H + 2, W + 2, hid), jnp.float32),
                        pltpu.VMEM((tT + 2, H + 2, W + 2, hid), jnp.float32)],
        compiler_params=pltpu.CompilerParams(
            dimension_semantics=("parallel", "parallel"),
            vmem_limit_bytes=48 * 1024 * 1024),
    )(*args)

    if has_flow:
        out_cl, flow_cl = outs
        return (jnp.transpose(out_cl, (0, 4, 1, 2, 3)),
                jnp.transpose(flow_cl, (0, 4, 1, 2, 3)))
    return jnp.transpose(outs, (0, 4, 1, 2, 3))


# ----------------------------------------------------------------------------- reference
def _reference(x, w_in, b_in, w_dw, b_dw, w_out, b_out):
    B, dim, T, H, W = x.shape
    two_hid = w_in.shape[0]
    hid = two_hid // 2
    co = w_out.shape[0]
    flow = co - dim
    hp = jax.lax.Precision.HIGHEST

    xf = x.astype(jnp.float32)
    y = jnp.einsum('oc,bcthw->bothw', w_in.reshape(two_hid, dim), xf, precision=hp)
    y = y + b_in.reshape(1, two_hid, 1, 1, 1)

    yp = jnp.pad(y, ((0, 0), (0, 0), (1, 1), (1, 1), (1, 1)))
    wd = w_dw.reshape(two_hid, 3, 3, 3)
    z = jnp.zeros_like(y)
    for dt in range(3):
        for dh in range(3):
            for dw in range(3):
                z = z + yp[:, :, dt:dt + T, dh:dh + H, dw:dw + W] * \
                    wd[:, dt, dh, dw].reshape(1, two_hid, 1, 1, 1)
    z = z + b_dw.reshape(1, two_hid, 1, 1, 1)

    z1, z2 = z[:, :hid], z[:, hid:]
    g = 0.5 * z1 * (1.0 + _xla_erf(z1 * _SQRT_HALF)) * z2            # exact (erf) GELU gate

    o = jnp.einsum('oc,bcthw->bothw', w_out.reshape(co, hid), g, precision=hp)
    o = o + b_out.reshape(1, co, 1, 1, 1)
    if flow == 0:
        return o.astype(x.dtype)
    return o[:, :dim].astype(x.dtype), o[:, dim:].astype(x.dtype)


# ----------------------------------------------------------------------------- demo
if __name__ == "__main__":
    B, dim, T, H, W = 2, 16, 4, 8, 8
    ffn_expansion_factor = 2.0
    flow_dim_ratio = 0.5
    hidden = int(dim * ffn_expansion_factor)       # 32
    flow_dim = int(dim * flow_dim_ratio)           # 8
    co = dim + flow_dim                            # 24  (bias=True)

    key = jax.random.PRNGKey(0)
    ks = jax.random.split(key, 7)
    x = jax.random.normal(ks[0], (B, dim, T, H, W), dtype=jnp.float32)
    w_in = jax.random.normal(ks[1], (2 * hidden, dim, 1, 1, 1), jnp.float32) * 0.2
    b_in = jax.random.normal(ks[2], (2 * hidden,), jnp.float32) * 0.1
    w_dw = jax.random.normal(ks[3], (2 * hidden, 1, 3, 3, 3), jnp.float32) * 0.2
    b_dw = jax.random.normal(ks[4], (2 * hidden,), jnp.float32) * 0.1
    w_out = jax.random.normal(ks[5], (co, hidden, 1, 1, 1), jnp.float32) * 0.2
    b_out = jax.random.normal(ks[6], (co,), jnp.float32) * 0.1

    out, flow = feed_forward(x, w_in, b_in, w_dw, b_dw, w_out, b_out)
    out = jax.block_until_ready(out)
    flow = jax.block_until_ready(flow)

    ref_out, ref_flow = _reference(x, w_in, b_in, w_dw, b_dw, w_out, b_out)

    assert out.shape == (B, dim, T, H, W)
    assert flow.shape == (B, flow_dim, T, H, W)
    assert jnp.allclose(out, ref_out, atol=1e-2, rtol=1e-2)
    assert jnp.allclose(flow, ref_flow, atol=1e-2, rtol=1e-2)

    print("KERNEL_OK")
</pallas_src>

<mosaic_0001>
module attributes {stable_mosaic.version = 11 : i64} {
  func.func @kernel(%arg0: i32, %arg1: i32, %arg2: memref<1x1x8x8x16xf32, #tpu.memory_space<vmem>>, %arg3: memref<1x2x8x8x16xf32, #tpu.memory_space<vmem>>, %arg4: memref<1x1x8x8x16xf32, #tpu.memory_space<vmem>>, %arg5: memref<16x32xf32, #tpu.memory_space<vmem>>, %arg6: memref<16x32xf32, #tpu.memory_space<vmem>>, %arg7: memref<1x32xf32, #tpu.memory_space<vmem>>, %arg8: memref<1x32xf32, #tpu.memory_space<vmem>>, %arg9: memref<27x32xf32, #tpu.memory_space<vmem>>, %arg10: memref<27x32xf32, #tpu.memory_space<vmem>>, %arg11: memref<1x32xf32, #tpu.memory_space<vmem>>, %arg12: memref<1x32xf32, #tpu.memory_space<vmem>>, %arg13: memref<32x16xf32, #tpu.memory_space<vmem>>, %arg14: memref<1x16xf32, #tpu.memory_space<vmem>>, %arg15: memref<32x8xf32, #tpu.memory_space<vmem>>, %arg16: memref<1x8xf32, #tpu.memory_space<vmem>>, %arg17: memref<1x2x8x8x16xf32, #tpu.memory_space<vmem>>, %arg18: memref<1x2x8x8x8xf32, #tpu.memory_space<vmem>>, %arg19: memref<4x10x10x32xf32, #tpu.memory_space<vmem>>, %arg20: memref<4x10x10x32xf32, #tpu.memory_space<vmem>>) attributes {dimension_semantics = [#tpu.dimension_semantics<parallel>, #tpu.dimension_semantics<parallel>], iteration_bounds = array<i64: 2, 2>, scalar_prefetch = 0 : i64, scratch_operands = 2 : i64, tpu.core_type = #tpu.core_type<tc>, window_params = [{transform_indices = @transform_0, window_bounds = array<i64: 1, 1, 8, 8, 16>}, {transform_indices = @transform_1, window_bounds = array<i64: 1, 2, 8, 8, 16>}, {transform_indices = @transform_2, window_bounds = array<i64: 1, 1, 8, 8, 16>}, {pipeline_mode = #tpu.pipeline_mode<synchronous>, transform_indices = @transform_3, window_bounds = array<i64: 16, 32>}, {pipeline_mode = #tpu.pipeline_mode<synchronous>, transform_indices = @transform_4, window_bounds = array<i64: 16, 32>}, {pipeline_mode = #tpu.pipeline_mode<synchronous>, transform_indices = @transform_5, window_bounds = array<i64: 1, 32>}, {pipeline_mode = #tpu.pipeline_mode<synchronous>, transform_indices = @transform_6, window_bounds = array<i64: 1, 32>}, {pipeline_mode = #tpu.pipeline_mode<synchronous>, transform_indices = @transform_7, window_bounds = array<i64: 27, 32>}, {pipeline_mode = #tpu.pipeline_mode<synchronous>, transform_indices = @transform_8, window_bounds = array<i64: 27, 32>}, {pipeline_mode = #tpu.pipeline_mode<synchronous>, transform_indices = @transform_9, window_bounds = array<i64: 1, 32>}, {pipeline_mode = #tpu.pipeline_mode<synchronous>, transform_indices = @transform_10, window_bounds = array<i64: 1, 32>}, {pipeline_mode = #tpu.pipeline_mode<synchronous>, transform_indices = @transform_11, window_bounds = array<i64: 32, 16>}, {pipeline_mode = #tpu.pipeline_mode<synchronous>, transform_indices = @transform_12, window_bounds = array<i64: 1, 16>}, {pipeline_mode = #tpu.pipeline_mode<synchronous>, transform_indices = @transform_13, window_bounds = array<i64: 32, 8>}, {pipeline_mode = #tpu.pipeline_mode<synchronous>, transform_indices = @transform_14, window_bounds = array<i64: 1, 8>}, {transform_indices = @transform_15, window_bounds = array<i64: 1, 2, 8, 8, 16>}, {transform_indices = @transform_16, window_bounds = array<i64: 1, 2, 8, 8, 8>}]} {
    %cst = arith.constant 0.000000e+00 : f32
    %0 = vector.broadcast %cst : f32 to vector<4x10x10x32xf32>
    %c0 = arith.constant 0 : index
    %c0_0 = arith.constant 0 : index
    %c0_1 = arith.constant 0 : index
    %c0_2 = arith.constant 0 : index
    %1 = vector.load %arg19[%c0, %c0_0, %c0_1, %c0_2] : memref<4x10x10x32xf32, #tpu.memory_space<vmem>>, vector<4x10x10x32xf32>
    tpu.vector_store %arg19[%c0, %c0_0, %c0_1, %c0_2], %0 {strides = array<i32>} : memref<4x10x10x32xf32, #tpu.memory_space<vmem>>, vector<4x10x10x32xf32>,
    %cst_3 = arith.constant 0.000000e+00 : f32
    %2 = vector.broadcast %cst_3 : f32 to vector<4x10x10x32xf32>
    %c0_4 = arith.constant 0 : index
    %c0_5 = arith.constant 0 : index
    %c0_6 = arith.constant 0 : index
    %c0_7 = arith.constant 0 : index
    %3 = vector.load %arg20[%c0_4, %c0_5, %c0_6, %c0_7] : memref<4x10x10x32xf32, #tpu.memory_space<vmem>>, vector<4x10x10x32xf32>
    tpu.vector_store %arg20[%c0_4, %c0_5, %c0_6, %c0_7], %2 {strides = array<i32>} : memref<4x10x10x32xf32, #tpu.memory_space<vmem>>, vector<4x10x10x32xf32>,
    %c0_8 = arith.constant 0 : index
    %c0_9 = arith.constant 0 : index
    %c0_10 = arith.constant 0 : index
    %c0_11 = arith.constant 0 : index
    %c0_12 = arith.constant 0 : index
    %4 = vector.load %arg3[%c0_8, %c0_9, %c0_10, %c0_11, %c0_12] : memref<1x2x8x8x16xf32, #tpu.memory_space<vmem>>, vector<1x2x8x8x16xf32>
    %5 = vector.shape_cast %4 : vector<1x2x8x8x16xf32> to vector<2x8x8x16xf32>
    %6 = vector.shape_cast %5 : vector<2x8x8x16xf32> to vector<128x16xf32>
    %c0_13 = arith.constant 0 : index
    %c0_14 = arith.constant 0 : index
    %7 = vector.load %arg5[%c0_13, %c0_14] : memref<16x32xf32, #tpu.memory_space<vmem>>, vector<16x32xf32>
    %cst_15 = arith.constant dense<0.000000e+00> : vector<128x32xf32>
    %8 = tpu.matmul %6, %7, %cst_15 {dimension_numbers = #tpu.dot_dimension_numbers<[1], [0], [0], [1], [0, 0, 1, 1], [], []>} : vector<128x16xf32>, vector<16x32xf32>, vector<128x32xf32> -> vector<128x32xf32>
    %c0_16 = arith.constant 0 : index
    %c0_17 = arith.constant 0 : index
    %9 = vector.load %arg7[%c0_16, %c0_17] : memref<1x32xf32, #tpu.memory_space<vmem>>, vector<1x32xf32>
    %10 = vector.broadcast %9 : vector<1x32xf32> to vector<128x32xf32>
    %11 = arith.addf %8, %10 : vector<128x32xf32>
    %c0_18 = arith.constant 0 : index
    %c0_19 = arith.constant 0 : index
    %12 = vector.load %arg6[%c0_18, %c0_19] : memref<16x32xf32, #tpu.memory_space<vmem>>, vector<16x32xf32>
    %cst_20 = arith.constant dense<0.000000e+00> : vector<128x32xf32>
    %13 = tpu.matmul %6, %12, %cst_20 {dimension_numbers = #tpu.dot_dimension_numbers<[1], [0], [0], [1], [0, 0, 1, 1], [], []>} : vector<128x16xf32>, vector<16x32xf32>, vector<128x32xf32> -> vector<128x32xf32>
    %c0_21 = arith.constant 0 : index
    %c0_22 = arith.constant 0 : index
    %14 = vector.load %arg8[%c0_21, %c0_22] : memref<1x32xf32, #tpu.memory_space<vmem>>, vector<1x32xf32>
    %15 = vector.broadcast %14 : vector<1x32xf32> to vector<128x32xf32>
    %16 = arith.addf %13, %15 : vector<128x32xf32>
    %17 = vector.shape_cast %11 : vector<128x32xf32> to vector<2x8x8x32xf32>
    %18 = vector.shape_cast %16 : vector<128x32xf32> to vector<2x8x8x32xf32>
    %c1 = arith.constant 1 : index
    %c1_23 = arith.constant 1 : index
    %c1_24 = arith.constant 1 : index
    %c0_25 = arith.constant 0 : index
    %19 = vector.load %arg19[%c1, %c1_23, %c1_24, %c0_25] : memref<4x10x10x32xf32, #tpu.memory_space<vmem>>, vector<2x8x8x32xf32>
    tpu.vector_store %arg19[%c1, %c1_23, %c1_24, %c0_25], %17 {strides = array<i32>} : memref<4x10x10x32xf32, #tpu.memory_space<vmem>>, vector<2x8x8x32xf32>,
    %c1_26 = arith.constant 1 : index
    %c1_27 = arith.constant 1 : index
    %c1_28 = arith.constant 1 : index
    %c0_29 = arith.constant 0 : index
    %20 = vector.load %arg20[%c1_26, %c1_27, %c1_28, %c0_29] : memref<4x10x10x32xf32, #tpu.memory_space<vmem>>, vector<2x8x8x32xf32>
    tpu.vector_store %arg20[%c1_26, %c1_27, %c1_28, %c0_29], %18 {strides = array<i32>} : memref<4x10x10x32xf32, #tpu.memory_space<vmem>>, vector<2x8x8x32xf32>,
    %c0_i32 = arith.constant 0 : i32
    %21 = arith.cmpi sgt, %arg1, %c0_i32 : i32
    %22 = arith.extui %21 : i1 to i32
    %c0_i32_30 = arith.constant 0 : i32
    %23 = arith.cmpi ne, %22, %c0_i32_30 : i32
    scf.if %23 {
      %c0_101 = arith.constant 0 : index
      %c0_102 = arith.constant 0 : index
      %c0_103 = arith.constant 0 : index
      %c0_104 = arith.constant 0 : index
      %c0_105 = arith.constant 0 : index
      %430 = vector.load %arg2[%c0_101, %c0_102, %c0_103, %c0_104, %c0_105] : memref<1x1x8x8x16xf32, #tpu.memory_space<vmem>>, vector<1x1x8x8x16xf32>
      %431 = vector.shape_cast %430 : vector<1x1x8x8x16xf32> to vector<1x8x8x16xf32>
      %432 = vector.shape_cast %431 : vector<1x8x8x16xf32> to vector<64x16xf32>
      %c0_106 = arith.constant 0 : index
      %c0_107 = arith.constant 0 : index
      %433 = vector.load %arg5[%c0_106, %c0_107] : memref<16x32xf32, #tpu.memory_space<vmem>>, vector<16x32xf32>
      %cst_108 = arith.constant dense<0.000000e+00> : vector<64x32xf32>
      %434 = tpu.matmul %432, %433, %cst_108 {dimension_numbers = #tpu.dot_dimension_numbers<[1], [0], [0], [1], [0, 0, 1, 1], [], []>} : vector<64x16xf32>, vector<16x32xf32>, vector<64x32xf32> -> vector<64x32xf32>
      %c0_109 = arith.constant 0 : index
      %c0_110 = arith.constant 0 : index
      %435 = vector.load %arg7[%c0_109, %c0_110] : memref<1x32xf32, #tpu.memory_space<vmem>>, vector<1x32xf32>
      %436 = vector.broadcast %435 : vector<1x32xf32> to vector<64x32xf32>
      %437 = arith.addf %434, %436 : vector<64x32xf32>
      %c0_111 = arith.constant 0 : index
      %c0_112 = arith.constant 0 : index
      %438 = vector.load %arg6[%c0_111, %c0_112] : memref<16x32xf32, #tpu.memory_space<vmem>>, vector<16x32xf32>
      %cst_113 = arith.constant dense<0.000000e+00> : vector<64x32xf32>
      %439 = tpu.matmul %432, %438, %cst_113 {dimension_numbers = #tpu.dot_dimension_numbers<[1], [0], [0], [1], [0, 0, 1, 1], [], []>} : vector<64x16xf32>, vector<16x32xf32>, vector<64x32xf32> -> vector<64x32xf32>
      %c0_114 = arith.constant 0 : index
      %c0_115 = arith.constant 0 : index
      %440 = vector.load %arg8[%c0_114, %c0_115] : memref<1x32xf32, #tpu.memory_space<vmem>>, vector<1x32xf32>
      %441 = vector.broadcast %440 : vector<1x32xf32> to vector<64x32xf32>
      %442 = arith.addf %439, %441 : vector<64x32xf32>
      %443 = vector.shape_cast %437 : vector<64x32xf32> to vector<1x8x8x32xf32>
      %444 = vector.shape_cast %442 : vector<64x32xf32> to vector<1x8x8x32xf32>
      %c0_116 = arith.constant 0 : index
      %c1_117 = arith.constant 1 : index
      %c1_118 = arith.constant 1 : index
      %c0_119 = arith.constant 0 : index
      %445 = vector.load %arg19[%c0_116, %c1_117, %c1_118, %c0_119] : memref<4x10x10x32xf32, #tpu.memory_space<vmem>>, vector<1x8x8x32xf32>
      tpu.vector_store %arg19[%c0_116, %c1_117, %c1_118, %c0_119], %443 {strides = array<i32>} : memref<4x10x10x32xf32, #tpu.memory_space<vmem>>, vector<1x8x8x32xf32>,
      %c0_120 = arith.constant 0 : index
      %c1_121 = arith.constant 1 : index
      %c1_122 = arith.constant 1 : index
      %c0_123 = arith.constant 0 : index
      %446 = vector.load %arg20[%c0_120, %c1_121, %c1_122, %c0_123] : memref<4x10x10x32xf32, #tpu.memory_space<vmem>>, vector<1x8x8x32xf32>
      tpu.vector_store %arg20[%c0_120, %c1_121, %c1_122, %c0_123], %444 {strides = array<i32>} : memref<4x10x10x32xf32, #tpu.memory_space<vmem>>, vector<1x8x8x32xf32>,
    } else {
    }
    %c1_i32 = arith.constant 1 : i32
    %24 = arith.cmpi slt, %arg1, %c1_i32 : i32
    %25 = arith.extui %24 : i1 to i32
    %c0_i32_31 = arith.constant 0 : i32
    %26 = arith.cmpi ne, %25, %c0_i32_31 : i32
    scf.if %26 {
      %c0_101 = arith.constant 0 : index
      %c0_102 = arith.constant 0 : index
      %c0_103 = arith.constant 0 : index
      %c0_104 = arith.constant 0 : index
      %c0_105 = arith.constant 0 : index
      %430 = vector.load %arg4[%c0_101, %c0_102, %c0_103, %c0_104, %c0_105] : memref<1x1x8x8x16xf32, #tpu.memory_space<vmem>>, vector<1x1x8x8x16xf32>
      %431 = vector.shape_cast %430 : vector<1x1x8x8x16xf32> to vector<1x8x8x16xf32>
      %432 = vector.shape_cast %431 : vector<1x8x8x16xf32> to vector<64x16xf32>
      %c0_106 = arith.constant 0 : index
      %c0_107 = arith.constant 0 : index
      %433 = vector.load %arg5[%c0_106, %c0_107] : memref<16x32xf32, #tpu.memory_space<vmem>>, vector<16x32xf32>
      %cst_108 = arith.constant dense<0.000000e+00> : vector<64x32xf32>
      %434 = tpu.matmul %432, %433, %cst_108 {dimension_numbers = #tpu.dot_dimension_numbers<[1], [0], [0], [1], [0, 0, 1, 1], [], []>} : vector<64x16xf32>, vector<16x32xf32>, vector<64x32xf32> -> vector<64x32xf32>
      %c0_109 = arith.constant 0 : index
      %c0_110 = arith.constant 0 : index
      %435 = vector.load %arg7[%c0_109, %c0_110] : memref<1x32xf32, #tpu.memory_space<vmem>>, vector<1x32xf32>
      %436 = vector.broadcast %435 : vector<1x32xf32> to vector<64x32xf32>
      %437 = arith.addf %434, %436 : vector<64x32xf32>
      %c0_111 = arith.constant 0 : index
      %c0_112 = arith.constant 0 : index
      %438 = vector.load %arg6[%c0_111, %c0_112] : memref<16x32xf32, #tpu.memory_space<vmem>>, vector<16x32xf32>
      %cst_113 = arith.constant dense<0.000000e+00> : vector<64x32xf32>
      %439 = tpu.matmul %432, %438, %cst_113 {dimension_numbers = #tpu.dot_dimension_numbers<[1], [0], [0], [1], [0, 0, 1, 1], [], []>} : vector<64x16xf32>, vector<16x32xf32>, vector<64x32xf32> -> vector<64x32xf32>
      %c0_114 = arith.constant 0 : index
      %c0_115 = arith.constant 0 : index
      %440 = vector.load %arg8[%c0_114, %c0_115] : memref<1x32xf32, #tpu.memory_space<vmem>>, vector<1x32xf32>
      %441 = vector.broadcast %440 : vector<1x32xf32> to vector<64x32xf32>
      %442 = arith.addf %439, %441 : vector<64x32xf32>
      %443 = vector.shape_cast %437 : vector<64x32xf32> to vector<1x8x8x32xf32>
      %444 = vector.shape_cast %442 : vector<64x32xf32> to vector<1x8x8x32xf32>
      %c3 = arith.constant 3 : index
      %c1_116 = arith.constant 1 : index
      %c1_117 = arith.constant 1 : index
      %c0_118 = arith.constant 0 : index
      %445 = vector.load %arg19[%c3, %c1_116, %c1_117, %c0_118] : memref<4x10x10x32xf32, #tpu.memory_space<vmem>>, vector<1x8x8x32xf32>
      tpu.vector_store %arg19[%c3, %c1_116, %c1_117, %c0_118], %443 {strides = array<i32>} : memref<4x10x10x32xf32, #tpu.memory_space<vmem>>, vector<1x8x8x32xf32>,
      %c3_119 = arith.constant 3 : index
      %c1_120 = arith.constant 1 : index
      %c1_121 = arith.constant 1 : index
      %c0_122 = arith.constant 0 : index
      %446 = vector.load %arg20[%c3_119, %c1_120, %c1_121, %c0_122] : memref<4x10x10x32xf32, #tpu.memory_space<vmem>>, vector<1x8x8x32xf32>
      tpu.vector_store %arg20[%c3_119, %c1_120, %c1_121, %c0_122], %444 {strides = array<i32>} : memref<4x10x10x32xf32, #tpu.memory_space<vmem>>, vector<1x8x8x32xf32>,
    } else {
    }
    %c0_32 = arith.constant 0 : index
    %c0_33 = arith.constant 0 : index
    %27 = vector.load %arg9[%c0_32, %c0_33] : memref<27x32xf32, #tpu.memory_space<vmem>>, vector<27x32xf32>
    %c0_34 = arith.constant 0 : index
    %c0_35 = arith.constant 0 : index
    %28 = vector.load %arg11[%c0_34, %c0_35] : memref<1x32xf32, #tpu.memory_space<vmem>>, vector<1x32xf32>
    %29 = vector.shape_cast %28 : vector<1x32xf32> to vector<1x1x1x32xf32>
    %cst_36 = arith.constant 0.000000e+00 : f32
    %30 = vector.broadcast %cst_36 : f32 to vector<2x8x8x32xf32>
    %c0_37 = arith.constant 0 : index
    %c0_38 = arith.constant 0 : index
    %c0_39 = arith.constant 0 : index
    %c0_40 = arith.constant 0 : index
    %31 = vector.load %arg19[%c0_37, %c0_38, %c0_39, %c0_40] : memref<4x10x10x32xf32, #tpu.memory_space<vmem>>, vector<4x10x8x32xf32>
    %32 = vector.extract_strided_slice %31 {offsets = [0, 0, 0, 0], sizes = [2, 8, 8, 32], strides = [1, 1, 1, 1]} : vector<4x10x8x32xf32> to vector<2x8x8x32xf32>
    %33 = vector.extract_strided_slice %27 {offsets = [0, 0], sizes = [1, 32], strides = [1, 1]} : vector<27x32xf32> to vector<1x32xf32>
    %34 = vector.shape_cast %33 : vector<1x32xf32> to vector<1x1x1x32xf32>
    %35 = vector.broadcast %34 : vector<1x1x1x32xf32> to vector<2x8x8x32xf32>
    %36 = arith.mulf %32, %35 : vector<2x8x8x32xf32>
    %37 = arith.addf %30, %36 : vector<2x8x8x32xf32>
    %38 = vector.extract_strided_slice %31 {offsets = [0, 1, 0, 0], sizes = [2, 8, 8, 32], strides = [1, 1, 1, 1]} : vector<4x10x8x32xf32> to vector<2x8x8x32xf32>
    %39 = vector.extract_strided_slice %27 {offsets = [3, 0], sizes = [1, 32], strides = [1, 1]} : vector<27x32xf32> to vector<1x32xf32>
    %40 = vector.shape_cast %39 : vector<1x32xf32> to vector<1x1x1x32xf32>
    %41 = vector.broadcast %40 : vector<1x1x1x32xf32> to vector<2x8x8x32xf32>
    %42 = arith.mulf %38, %41 : vector<2x8x8x32xf32>
    %43 = arith.addf %37, %42 : vector<2x8x8x32xf32>
    %44 = vector.extract_strided_slice %31 {offsets = [0, 2, 0, 0], sizes = [2, 8, 8, 32], strides = [1, 1, 1, 1]} : vector<4x10x8x32xf32> to vector<2x8x8x32xf32>
    %45 = vector.extract_strided_slice %27 {offsets = [6, 0], sizes = [1, 32], strides = [1, 1]} : vector<27x32xf32> to vector<1x32xf32>
    %46 = vector.shape_cast %45 : vector<1x32xf32> to vector<1x1x1x32xf32>
    %47 = vector.broadcast %46 : vector<1x1x1x32xf32> to vector<2x8x8x32xf32>
    %48 = arith.mulf %44, %47 : vector<2x8x8x32xf32>
    %49 = arith.addf %43, %48 : vector<2x8x8x32xf32>
    %50 = vector.extract_strided_slice %31 {offsets = [1, 0, 0, 0], sizes = [2, 8, 8, 32], strides = [1, 1, 1, 1]} : vector<4x10x8x32xf32> to vector<2x8x8x32xf32>
    %51 = vector.extract_strided_slice %27 {offsets = [9, 0], sizes = [1, 32], strides = [1, 1]} : vector<27x32xf32> to vector<1x32xf32>
    %52 = vector.shape_cast %51 : vector<1x32xf32> to vector<1x1x1x32xf32>
    %53 = vector.broadcast %52 : vector<1x1x1x32xf32> to vector<2x8x8x32xf32>
    %54 = arith.mulf %50, %53 : vector<2x8x8x32xf32>
    %55 = arith.addf %49, %54 : vector<2x8x8x32xf32>
    %56 = vector.extract_strided_slice %31 {offsets = [1, 1, 0, 0], sizes = [2, 8, 8, 32], strides = [1, 1, 1, 1]} : vector<4x10x8x32xf32> to vector<2x8x8x32xf32>
    %57 = vector.extract_strided_slice %27 {offsets = [12, 0], sizes = [1, 32], strides = [1, 1]} : vector<27x32xf32> to vector<1x32xf32>
    %58 = vector.shape_cast %57 : vector<1x32xf32> to vector<1x1x1x32xf32>
    %59 = vector.broadcast %58 : vector<1x1x1x32xf32> to vector<2x8x8x32xf32>
    %60 = arith.mulf %56, %59 : vector<2x8x8x32xf32>
    %61 = arith.addf %55, %60 : vector<2x8x8x32xf32>
    %62 = vector.extract_strided_slice %31 {offsets = [1, 2, 0, 0], sizes = [2, 8, 8, 32], strides = [1, 1, 1, 1]} : vector<4x10x8x32xf32> to vector<2x8x8x32xf32>
    %63 = vector.extract_strided_slice %27 {offsets = [15, 0], sizes = [1, 32], strides = [1, 1]} : vector<27x32xf32> to vector<1x32xf32>
    %64 = vector.shape_cast %63 : vector<1x32xf32> to vector<1x1x1x32xf32>
    %65 = vector.broadcast %64 : vector<1x1x1x32xf32> to vector<2x8x8x32xf32>
    %66 = arith.mulf %62, %65 : vector<2x8x8x32xf32>
    %67 = arith.addf %61, %66 : vector<2x8x8x32xf32>
    %68 = vector.extract_strided_slice %31 {offsets = [2, 0, 0, 0], sizes = [2, 8, 8, 32], strides = [1, 1, 1, 1]} : vector<4x10x8x32xf32> to vector<2x8x8x32xf32>
    %69 = vector.extract_strided_slice %27 {offsets = [18, 0], sizes = [1, 32], strides = [1, 1]} : vector<27x32xf32> to vector<1x32xf32>
    %70 = vector.shape_cast %69 : vector<1x32xf32> to vector<1x1x1x32xf32>
    %71 = vector.broadcast %70 : vector<1x1x1x32xf32> to vector<2x8x8x32xf32>
    %72 = arith.mulf %68, %71 : vector<2x8x8x32xf32>
    %73 = arith.addf %67, %72 : vector<2x8x8x32xf32>
    %74 = vector.extract_strided_slice %31 {offsets = [2, 1, 0, 0], sizes = [2, 8, 8, 32], strides = [1, 1, 1, 1]} : vector<4x10x8x32xf32> to vector<2x8x8x32xf32>
    %75 = vector.extract_strided_slice %27 {offsets = [21, 0], sizes = [1, 32], strides = [1, 1]} : vector<27x32xf32> to vector<1x32xf32>
    %76 = vector.shape_cast %75 : vector<1x32xf32> to vector<1x1x1x32xf32>
    %77 = vector.broadcast %76 : vector<1x1x1x32xf32> to vector<2x8x8x32xf32>
    %78 = arith.mulf %74, %77 : vector<2x8x8x32xf32>
    %79 = arith.addf %73, %78 : vector<2x8x8x32xf32>
    %80 = vector.extract_strided_slice %31 {offsets = [2, 2, 0, 0], sizes = [2, 8, 8, 32], strides = [1, 1, 1, 1]} : vector<4x10x8x32xf32> to vector<2x8x8x32xf32>
    %81 = vector.extract_strided_slice %27 {offsets = [24, 0], sizes = [1, 32], strides = [1, 1]} : vector<27x32xf32> to vector<1x32xf32>
    %82 = vector.shape_cast %81 : vector<1x32xf32> to vector<1x1x1x32xf32>
    %83 = vector.broadcast %82 : vector<1x1x1x32xf32> to vector<2x8x8x32xf32>
    %84 = arith.mulf %80, %83 : vector<2x8x8x32xf32>
    %85 = arith.addf %79, %84 : vector<2x8x8x32xf32>
    %c0_41 = arith.constant 0 : index
    %c0_42 = arith.constant 0 : index
    %c1_43 = arith.constant 1 : index
    %c0_44 = arith.constant 0 : index
    %86 = vector.load %arg19[%c0_41, %c0_42, %c1_43, %c0_44] : memref<4x10x10x32xf32, #tpu.memory_space<vmem>>, vector<4x10x8x32xf32>
    %87 = vector.extract_strided_slice %86 {offsets = [0, 0, 0, 0], sizes = [2, 8, 8, 32], strides = [1, 1, 1, 1]} : vector<4x10x8x32xf32> to vector<2x8x8x32xf32>
    %88 = vector.extract_strided_slice %27 {offsets = [1, 0], sizes = [1, 32], strides = [1, 1]} : vector<27x32xf32> to vector<1x32xf32>
    %89 = vector.shape_cast %88 : vector<1x32xf32> to vector<1x1x1x32xf32>
    %90 = vector.broadcast %89 : vector<1x1x1x32xf32> to vector<2x8x8x32xf32>
    %91 = arith.mulf %87, %90 : vector<2x8x8x32xf32>
    %92 = arith.addf %85, %91 : vector<2x8x8x32xf32>
    %93 = vector.extract_strided_slice %86 {offsets = [0, 1, 0, 0], sizes = [2, 8, 8, 32], strides = [1, 1, 1, 1]} : vector<4x10x8x32xf32> to vector<2x8x8x32xf32>
    %94 = vector.extract_strided_slice %27 {offsets = [4, 0], sizes = [1, 32], strides = [1, 1]} : vector<27x32xf32> to vector<1x32xf32>
    %95 = vector.shape_cast %94 : vector<1x32xf32> to vector<1x1x1x32xf32>
    %96 = vector.broadcast %95 : vector<1x1x1x32xf32> to vector<2x8x8x32xf32>
    %97 = arith.mulf %93, %96 : vector<2x8x8x32xf32>
    %98 = arith.addf %92, %97 : vector<2x8x8x32xf32>
    %99 = vector.extract_strided_slice %86 {offsets = [0, 2, 0, 0], sizes = [2, 8, 8, 32], strides = [1, 1, 1, 1]} : vector<4x10x8x32xf32> to vector<2x8x8x32xf32>
    %100 = vector.extract_strided_slice %27 {offsets = [7, 0], sizes = [1, 32], strides = [1, 1]} : vector<27x32xf32> to vector<1x32xf32>
    %101 = vector.shape_cast %100 : vector<1x32xf32> to vector<1x1x1x32xf32>
    %102 = vector.broadcast %101 : vector<1x1x1x32xf32> to vector<2x8x8x32xf32>
    %103 = arith.mulf %99, %102 : vector<2x8x8x32xf32>
    %104 = arith.addf %98, %103 : vector<2x8x8x32xf32>
    %105 = vector.extract_strided_slice %86 {offsets = [1, 0, 0, 0], sizes = [2, 8, 8, 32], strides = [1, 1, 1, 1]} : vector<4x10x8x32xf32> to vector<2x8x8x32xf32>
    %106 = vector.extract_strided_slice %27 {offsets = [10, 0], sizes = [1, 32], strides = [1, 1]} : vector<27x32xf32> to vector<1x32xf32>
    %107 = vector.shape_cast %106 : vector<1x32xf32> to vector<1x1x1x32xf32>
    %108 = vector.broadcast %107 : vector<1x1x1x32xf32> to vector<2x8x8x32xf32>
    %109 = arith.mulf %105, %108 : vector<2x8x8x32xf32>
    %110 = arith.addf %104, %109 : vector<2x8x8x32xf32>
    %111 = vector.extract_strided_slice %86 {offsets = [1, 1, 0, 0], sizes = [2, 8, 8, 32], strides = [1, 1, 1, 1]} : vector<4x10x8x32xf32> to vector<2x8x8x32xf32>
    %112 = vector.extract_strided_slice %27 {offsets = [13, 0], sizes = [1, 32], strides = [1, 1]} : vector<27x32xf32> to vector<1x32xf32>
    %113 = vector.shape_cast %112 : vector<1x32xf32> to vector<1x1x1x32xf32>
    %114 = vector.broadcast %113 : vector<1x1x1x32xf32> to vector<2x8x8x32xf32>
    %115 = arith.mulf %111, %114 : vector<2x8x8x32xf32>
    %116 = arith.addf %110, %115 : vector<2x8x8x32xf32>
    %117 = vector.extract_strided_slice %86 {offsets = [1, 2, 0, 0], sizes = [2, 8, 8, 32], strides = [1, 1, 1, 1]} : vector<4x10x8x32xf32> to vector<2x8x8x32xf32>
    %118 = vector.extract_strided_slice %27 {offsets = [16, 0], sizes = [1, 32], strides = [1, 1]} : vector<27x32xf32> to vector<1x32xf32>
    %119 = vector.shape_cast %118 : vector<1x32xf32> to vector<1x1x1x32xf32>
    %120 = vector.broadcast %119 : vector<1x1x1x32xf32> to vector<2x8x8x32xf32>
    %121 = arith.mulf %117, %120 : vector<2x8x8x32xf32>
    %122 = arith.addf %116, %121 : vector<2x8x8x32xf32>
    %123 = vector.extract_strided_slice %86 {offsets = [2, 0, 0, 0], sizes = [2, 8, 8, 32], strides = [1, 1, 1, 1]} : vector<4x10x8x32xf32> to vector<2x8x8x32xf32>
    %124 = vector.extract_strided_slice %27 {offsets = [19, 0], sizes = [1, 32], strides = [1, 1]} : vector<27x32xf32> to vector<1x32xf32>
    %125 = vector.shape_cast %124 : vector<1x32xf32> to vector<1x1x1x32xf32>
    %126 = vector.broadcast %125 : vector<1x1x1x32xf32> to vector<2x8x8x32xf32>
    %127 = arith.mulf %123, %126 : vector<2x8x8x32xf32>
    %128 = arith.addf %122, %127 : vector<2x8x8x32xf32>
    %129 = vector.extract_strided_slice %86 {offsets = [2, 1, 0, 0], sizes = [2, 8, 8, 32], strides = [1, 1, 1, 1]} : vector<4x10x8x32xf32> to vector<2x8x8x32xf32>
    %130 = vector.extract_strided_slice %27 {offsets = [22, 0], sizes = [1, 32], strides = [1, 1]} : vector<27x32xf32> to vector<1x32xf32>
    %131 = vector.shape_cast %130 : vector<1x32xf32> to vector<1x1x1x32xf32>
    %132 = vector.broadcast %131 : vector<1x1x1x32xf32> to vector<2x8x8x32xf32>
    %133 = arith.mulf %129, %132 : vector<2x8x8x32xf32>
    %134 = arith.addf %128, %133 : vector<2x8x8x32xf32>
    %135 = vector.extract_strided_slice %86 {offsets = [2, 2, 0, 0], sizes = [2, 8, 8, 32], strides = [1, 1, 1, 1]} : vector<4x10x8x32xf32> to vector<2x8x8x32xf32>
    %136 = vector.extract_strided_slice %27 {offsets = [25, 0], sizes = [1, 32], strides = [1, 1]} : vector<27x32xf32> to vector<1x32xf32>
    %137 = vector.shape_cast %136 : vector<1x32xf32> to vector<1x1x1x32xf32>
    %138 = vector.broadcast %137 : vector<1x1x1x32xf32> to vector<2x8x8x32xf32>
    %139 = arith.mulf %135, %138 : vector<2x8x8x32xf32>
    %140 = arith.addf %134, %139 : vector<2x8x8x32xf32>
    %c0_45 = arith.constant 0 : index
    %c0_46 = arith.constant 0 : index
    %c2 = arith.constant 2 : index
    %c0_47 = arith.constant 0 : index
    %141 = vector.load %arg19[%c0_45, %c0_46, %c2, %c0_47] : memref<4x10x10x32xf32, #tpu.memory_space<vmem>>, vector<4x10x8x32xf32>
    %142 = vector.extract_strided_slice %141 {offsets = [0, 0, 0, 0], sizes = [2, 8, 8, 32], strides = [1, 1, 1, 1]} : vector<4x10x8x32xf32> to vector<2x8x8x32xf32>
    %143 = vector.extract_strided_slice %27 {offsets = [2, 0], sizes = [1, 32], strides = [1, 1]} : vector<27x32xf32> to vector<1x32xf32>
    %144 = vector.shape_cast %143 : vector<1x32xf32> to vector<1x1x1x32xf32>
    %145 = vector.broadcast %144 : vector<1x1x1x32xf32> to vector<2x8x8x32xf32>
    %146 = arith.mulf %142, %145 : vector<2x8x8x32xf32>
    %147 = arith.addf %140, %146 : vector<2x8x8x32xf32>
    %148 = vector.extract_strided_slice %141 {offsets = [0, 1, 0, 0], sizes = [2, 8, 8, 32], strides = [1, 1, 1, 1]} : vector<4x10x8x32xf32> to vector<2x8x8x32xf32>
    %149 = vector.extract_strided_slice %27 {offsets = [5, 0], sizes = [1, 32], strides = [1, 1]} : vector<27x32xf32> to vector<1x32xf32>
    %150 = vector.shape_cast %149 : vector<1x32xf32> to vector<1x1x1x32xf32>
    %151 = vector.broadcast %150 : vector<1x1x1x32xf32> to vector<2x8x8x32xf32>
    %152 = arith.mulf %148, %151 : vector<2x8x8x32xf32>
    %153 = arith.addf %147, %152 : vector<2x8x8x32xf32>
    %154 = vector.extract_strided_slice %141 {offsets = [0, 2, 0, 0], sizes = [2, 8, 8, 32], strides = [1, 1, 1, 1]} : vector<4x10x8x32xf32> to vector<2x8x8x32xf32>
    %155 = vector.extract_strided_slice %27 {offsets = [8, 0], sizes = [1, 32], strides = [1, 1]} : vector<27x32xf32> to vector<1x32xf32>
    %156 = vector.shape_cast %155 : vector<1x32xf32> to vector<1x1x1x32xf32>
    %157 = vector.broadcast %156 : vector<1x1x1x32xf32> to vector<2x8x8x32xf32>
    %158 = arith.mulf %154, %157 : vector<2x8x8x32xf32>
    %159 = arith.addf %153, %158 : vector<2x8x8x32xf32>
    %160 = vector.extract_strided_slice %141 {offsets = [1, 0, 0, 0], sizes = [2, 8, 8, 32], strides = [1, 1, 1, 1]} : vector<4x10x8x32xf32> to vector<2x8x8x32xf32>
    %161 = vector.extract_strided_slice %27 {offsets = [11, 0], sizes = [1, 32], strides = [1, 1]} : vector<27x32xf32> to vector<1x32xf32>
    %162 = vector.shape_cast %161 : vector<1x32xf32> to vector<1x1x1x32xf32>
    %163 = vector.broadcast %162 : vector<1x1x1x32xf32> to vector<2x8x8x32xf32>
    %164 = arith.mulf %160, %163 : vector<2x8x8x32xf32>
    %165 = arith.addf %159, %164 : vector<2x8x8x32xf32>
    %166 = vector.extract_strided_slice %141 {offsets = [1, 1, 0, 0], sizes = [2, 8, 8, 32], strides = [1, 1, 1, 1]} : vector<4x10x8x32xf32> to vector<2x8x8x32xf32>
    %167 = vector.extract_strided_slice %27 {offsets = [14, 0], sizes = [1, 32], strides = [1, 1]} : vector<27x32xf32> to vector<1x32xf32>
    %168 = vector.shape_cast %167 : vector<1x32xf32> to vector<1x1x1x32xf32>
    %169 = vector.broadcast %168 : vector<1x1x1x32xf32> to vector<2x8x8x32xf32>
    %170 = arith.mulf %166, %169 : vector<2x8x8x32xf32>
    %171 = arith.addf %165, %170 : vector<2x8x8x32xf32>
    %172 = vector.extract_strided_slice %141 {offsets = [1, 2, 0, 0], sizes = [2, 8, 8, 32], strides = [1, 1, 1, 1]} : vector<4x10x8x32xf32> to vector<2x8x8x32xf32>
    %173 = vector.extract_strided_slice %27 {offsets = [17, 0], sizes = [1, 32], strides = [1, 1]} : vector<27x32xf32> to vector<1x32xf32>
    %174 = vector.shape_cast %173 : vector<1x32xf32> to vector<1x1x1x32xf32>
    %175 = vector.broadcast %174 : vector<1x1x1x32xf32> to vector<2x8x8x32xf32>
    %176 = arith.mulf %172, %175 : vector<2x8x8x32xf32>
    %177 = arith.addf %171, %176 : vector<2x8x8x32xf32>
    %178 = vector.extract_strided_slice %141 {offsets = [2, 0, 0, 0], sizes = [2, 8, 8, 32], strides = [1, 1, 1, 1]} : vector<4x10x8x32xf32> to vector<2x8x8x32xf32>
    %179 = vector.extract_strided_slice %27 {offsets = [20, 0], sizes = [1, 32], strides = [1, 1]} : vector<27x32xf32> to vector<1x32xf32>
    %180 = vector.shape_cast %179 : vector<1x32xf32> to vector<1x1x1x32xf32>
    %181 = vector.broadcast %180 : vector<1x1x1x32xf32> to vector<2x8x8x32xf32>
    %182 = arith.mulf %178, %181 : vector<2x8x8x32xf32>
    %183 = arith.addf %177, %182 : vector<2x8x8x32xf32>
    %184 = vector.extract_strided_slice %141 {offsets = [2, 1, 0, 0], sizes = [2, 8, 8, 32], strides = [1, 1, 1, 1]} : vector<4x10x8x32xf32> to vector<2x8x8x32xf32>
    %185 = vector.extract_strided_slice %27 {offsets = [23, 0], sizes = [1, 32], strides = [1, 1]} : vector<27x32xf32> to vector<1x32xf32>
    %186 = vector.shape_cast %185 : vector<1x32xf32> to vector<1x1x1x32xf32>
    %187 = vector.broadcast %186 : vector<1x1x1x32xf32> to vector<2x8x8x32xf32>
    %188 = arith.mulf %184, %187 : vector<2x8x8x32xf32>
    %189 = arith.addf %183, %188 : vector<2x8x8x32xf32>
    %190 = vector.extract_strided_slice %141 {offsets = [2, 2, 0, 0], sizes = [2, 8, 8, 32], strides = [1, 1, 1, 1]} : vector<4x10x8x32xf32> to vector<2x8x8x32xf32>
    %191 = vector.extract_strided_slice %27 {offsets = [26, 0], sizes = [1, 32], strides = [1, 1]} : vector<27x32xf32> to vector<1x32xf32>
    %192 = vector.shape_cast %191 : vector<1x32xf32> to vector<1x1x1x32xf32>
    %193 = vector.broadcast %192 : vector<1x1x1x32xf32> to vector<2x8x8x32xf32>
    %194 = arith.mulf %190, %193 : vector<2x8x8x32xf32>
    %195 = arith.addf %189, %194 : vector<2x8x8x32xf32>
    %196 = vector.broadcast %29 : vector<1x1x1x32xf32> to vector<2x8x8x32xf32>
    %197 = arith.addf %195, %196 : vector<2x8x8x32xf32>
    %cst_48 = arith.constant 5.000000e-01 : f32
    %198 = vector.broadcast %cst_48 : f32 to vector<2x8x8x32xf32>
    %199 = arith.mulf %198, %197 : vector<2x8x8x32xf32>
    %cst_49 = arith.constant 0.707106769 : f32
    %200 = vector.broadcast %cst_49 : f32 to vector<2x8x8x32xf32>
    %201 = arith.mulf %197, %200 : vector<2x8x8x32xf32>
    %cst_50 = arith.constant 0.000000e+00 : f32
    %202 = vector.broadcast %cst_50 : f32 to vector<2x8x8x32xf32>
    %203 = arith.cmpf olt, %201, %202 : vector<2x8x8x32xf32>
    %cst_51 = arith.constant -1.000000e+00 : f32
    %cst_52 = arith.constant 1.000000e+00 : f32
    %204 = vector.broadcast %cst_51 : f32 to vector<2x8x8x32xf32>
    %205 = vector.broadcast %cst_52 : f32 to vector<2x8x8x32xf32>
    %206 = arith.select %203, %204, %205 : vector<2x8x8x32xi1>, vector<2x8x8x32xf32>
    %207 = math.absf %201 : vector<2x8x8x32xf32>
    %cst_53 = arith.constant 0.327591091 : f32
    %208 = vector.broadcast %cst_53 : f32 to vector<2x8x8x32xf32>
    %209 = arith.mulf %208, %207 : vector<2x8x8x32xf32>
    %cst_54 = arith.constant 1.000000e+00 : f32
    %210 = vector.broadcast %cst_54 : f32 to vector<2x8x8x32xf32>
    %211 = arith.addf %210, %209 : vector<2x8x8x32xf32>
    %cst_55 = arith.constant 1.000000e+00 : f32
    %212 = vector.broadcast %cst_55 : f32 to vector<2x8x8x32xf32>
    %213 = arith.divf %212, %211 : vector<2x8x8x32xf32>
    %cst_56 = arith.constant 1.06140542 : f32
    %214 = vector.broadcast %cst_56 : f32 to vector<2x8x8x32xf32>
    %215 = arith.mulf %214, %213 : vector<2x8x8x32xf32>
    %cst_57 = arith.constant -1.45315206 : f32
    %216 = vector.broadcast %cst_57 : f32 to vector<2x8x8x32xf32>
    %217 = arith.addf %215, %216 : vector<2x8x8x32xf32>
    %218 = arith.mulf %217, %213 : vector<2x8x8x32xf32>
    %cst_58 = arith.constant 1.42141378 : f32
    %219 = vector.broadcast %cst_58 : f32 to vector<2x8x8x32xf32>
    %220 = arith.addf %218, %219 : vector<2x8x8x32xf32>
    %221 = arith.mulf %220, %213 : vector<2x8x8x32xf32>
    %cst_59 = arith.constant -0.284496725 : f32
    %222 = vector.broadcast %cst_59 : f32 to vector<2x8x8x32xf32>
    %223 = arith.addf %221, %222 : vector<2x8x8x32xf32>
    %224 = arith.mulf %223, %213 : vector<2x8x8x32xf32>
    %cst_60 = arith.constant 0.254829586 : f32
    %225 = vector.broadcast %cst_60 : f32 to vector<2x8x8x32xf32>
    %226 = arith.addf %224, %225 : vector<2x8x8x32xf32>
    %227 = arith.mulf %226, %213 : vector<2x8x8x32xf32>
    %cst_61 = arith.constant 0.000000e+00 : f32
    %228 = vector.broadcast %cst_61 : f32 to vector<2x8x8x32xf32>
    %229 = arith.subf %228, %207 : vector<2x8x8x32xf32>
    %230 = arith.mulf %229, %207 : vector<2x8x8x32xf32>
    %231 = math.exp %230 : vector<2x8x8x32xf32>
    %232 = arith.mulf %227, %231 : vector<2x8x8x32xf32>
    %cst_62 = arith.constant 1.000000e+00 : f32
    %233 = vector.broadcast %cst_62 : f32 to vector<2x8x8x32xf32>
    %234 = arith.subf %233, %232 : vector<2x8x8x32xf32>
    %235 = arith.mulf %206, %234 : vector<2x8x8x32xf32>
    %cst_63 = arith.constant 1.000000e+00 : f32
    %236 = vector.broadcast %cst_63 : f32 to vector<2x8x8x32xf32>
    %237 = arith.addf %236, %235 : vector<2x8x8x32xf32>
    %238 = arith.mulf %199, %237 : vector<2x8x8x32xf32>
    %c0_64 = arith.constant 0 : index
    %c0_65 = arith.constant 0 : index
    %239 = vector.load %arg10[%c0_64, %c0_65] : memref<27x32xf32, #tpu.memory_space<vmem>>, vector<27x32xf32>
    %c0_66 = arith.constant 0 : index
    %c0_67 = arith.constant 0 : index
    %240 = vector.load %arg12[%c0_66, %c0_67] : memref<1x32xf32, #tpu.memory_space<vmem>>, vector<1x32xf32>
    %241 = vector.shape_cast %240 : vector<1x32xf32> to vector<1x1x1x32xf32>
    %cst_68 = arith.constant 0.000000e+00 : f32
    %242 = vector.broadcast %cst_68 : f32 to vector<2x8x8x32xf32>
    %c0_69 = arith.constant 0 : index
    %c0_70 = arith.constant 0 : index
    %c0_71 = arith.constant 0 : index
    %c0_72 = arith.constant 0 : index
    %243 = vector.load %arg20[%c0_69, %c0_70, %c0_71, %c0_72] : memref<4x10x10x32xf32, #tpu.memory_space<vmem>>, vector<4x10x8x32xf32>
    %244 = vector.extract_strided_slice %243 {offsets = [0, 0, 0, 0], sizes = [2, 8, 8, 32], strides = [1, 1, 1, 1]} : vector<4x10x8x32xf32> to vector<2x8x8x32xf32>
    %245 = vector.extract_strided_slice %239 {offsets = [0, 0], sizes = [1, 32], strides = [1, 1]} : vector<27x32xf32> to vector<1x32xf32>
    %246 = vector.shape_cast %245 : vector<1x32xf32> to vector<1x1x1x32xf32>
    %247 = vector.broadcast %246 : vector<1x1x1x32xf32> to vector<2x8x8x32xf32>
    %248 = arith.mulf %244, %247 : vector<2x8x8x32xf32>
    %249 = arith.addf %242, %248 : vector<2x8x8x32xf32>
    %250 = vector.extract_strided_slice %243 {offsets = [0, 1, 0, 0], sizes = [2, 8, 8, 32], strides = [1, 1, 1, 1]} : vector<4x10x8x32xf32> to vector<2x8x8x32xf32>
    %251 = vector.extract_strided_slice %239 {offsets = [3, 0], sizes = [1, 32], strides = [1, 1]} : vector<27x32xf32> to vector<1x32xf32>
    %252 = vector.shape_cast %251 : vector<1x32xf32> to vector<1x1x1x32xf32>
    %253 = vector.broadcast %252 : vector<1x1x1x32xf32> to vector<2x8x8x32xf32>
    %254 = arith.mulf %250, %253 : vector<2x8x8x32xf32>
    %255 = arith.addf %249, %254 : vector<2x8x8x32xf32>
    %256 = vector.extract_strided_slice %243 {offsets = [0, 2, 0, 0], sizes = [2, 8, 8, 32], strides = [1, 1, 1, 1]} : vector<4x10x8x32xf32> to vector<2x8x8x32xf32>
    %257 = vector.extract_strided_slice %239 {offsets = [6, 0], sizes = [1, 32], strides = [1, 1]} : vector<27x32xf32> to vector<1x32xf32>
    %258 = vector.shape_cast %257 : vector<1x32xf32> to vector<1x1x1x32xf32>
    %259 = vector.broadcast %258 : vector<1x1x1x32xf32> to vector<2x8x8x32xf32>
    %260 = arith.mulf %256, %259 : vector<2x8x8x32xf32>
    %261 = arith.addf %255, %260 : vector<2x8x8x32xf32>
    %262 = vector.extract_strided_slice %243 {offsets = [1, 0, 0, 0], sizes = [2, 8, 8, 32], strides = [1, 1, 1, 1]} : vector<4x10x8x32xf32> to vector<2x8x8x32xf32>
    %263 = vector.extract_strided_slice %239 {offsets = [9, 0], sizes = [1, 32], strides = [1, 1]} : vector<27x32xf32> to vector<1x32xf32>
    %264 = vector.shape_cast %263 : vector<1x32xf32> to vector<1x1x1x32xf32>
    %265 = vector.broadcast %264 : vector<1x1x1x32xf32> to vector<2x8x8x32xf32>
    %266 = arith.mulf %262, %265 : vector<2x8x8x32xf32>
    %267 = arith.addf %261, %266 : vector<2x8x8x32xf32>
    %268 = vector.extract_strided_slice %243 {offsets = [1, 1, 0, 0], sizes = [2, 8, 8, 32], strides = [1, 1, 1, 1]} : vector<4x10x8x32xf32> to vector<2x8x8x32xf32>
    %269 = vector.extract_strided_slice %239 {offsets = [12, 0], sizes = [1, 32], strides = [1, 1]} : vector<27x32xf32> to vector<1x32xf32>
    %270 = vector.shape_cast %269 : vector<1x32xf32> to vector<1x1x1x32xf32>
    %271 = vector.broadcast %270 : vector<1x1x1x32xf32> to vector<2x8x8x32xf32>
    %272 = arith.mulf %268, %271 : vector<2x8x8x32xf32>
    %273 = arith.addf %267, %272 : vector<2x8x8x32xf32>
    %274 = vector.extract_strided_slice %243 {offsets = [1, 2, 0, 0], sizes = [2, 8, 8, 32], strides = [1, 1, 1, 1]} : vector<4x10x8x32xf32> to vector<2x8x8x32xf32>
    %275 = vector.extract_strided_slice %239 {offsets = [15, 0], sizes = [1, 32], strides = [1, 1]} : vector<27x32xf32> to vector<1x32xf32>
    %276 = vector.shape_cast %275 : vector<1x32xf32> to vector<1x1x1x32xf32>
    %277 = vector.broadcast %276 : vector<1x1x1x32xf32> to vector<2x8x8x32xf32>
    %278 = arith.mulf %274, %277 : vector<2x8x8x32xf32>
    %279 = arith.addf %273, %278 : vector<2x8x8x32xf32>
    %280 = vector.extract_strided_slice %243 {offsets = [2, 0, 0, 0], sizes = [2, 8, 8, 32], strides = [1, 1, 1, 1]} : vector<4x10x8x32xf32> to vector<2x8x8x32xf32>
    %281 = vector.extract_strided_slice %239 {offsets = [18, 0], sizes = [1, 32], strides = [1, 1]} : vector<27x32xf32> to vector<1x32xf32>
    %282 = vector.shape_cast %281 : vector<1x32xf32> to vector<1x1x1x32xf32>
    %283 = vector.broadcast %282 : vector<1x1x1x32xf32> to vector<2x8x8x32xf32>
    %284 = arith.mulf %280, %283 : vector<2x8x8x32xf32>
    %285 = arith.addf %279, %284 : vector<2x8x8x32xf32>
    %286 = vector.extract_strided_slice %243 {offsets = [2, 1, 0, 0], sizes = [2, 8, 8, 32], strides = [1, 1, 1, 1]} : vector<4x10x8x32xf32> to vector<2x8x8x32xf32>
    %287 = vector.extract_strided_slice %239 {offsets = [21, 0], sizes = [1, 32], strides = [1, 1]} : vector<27x32xf32> to vector<1x32xf32>
    %288 = vector.shape_cast %287 : vector<1x32xf32> to vector<1x1x1x32xf32>
    %289 = vector.broadcast %288 : vector<1x1x1x32xf32> to vector<2x8x8x32xf32>
    %290 = arith.mulf %286, %289 : vector<2x8x8x32xf32>
    %291 = arith.addf %285, %290 : vector<2x8x8x32xf32>
    %292 = vector.extract_strided_slice %243 {offsets = [2, 2, 0, 0], sizes = [2, 8, 8, 32], strides = [1, 1, 1, 1]} : vector<4x10x8x32xf32> to vector<2x8x8x32xf32>
    %293 = vector.extract_strided_slice %239 {offsets = [24, 0], sizes = [1, 32], strides = [1, 1]} : vector<27x32xf32> to vector<1x32xf32>
    %294 = vector.shape_cast %293 : vector<1x32xf32> to vector<1x1x1x32xf32>
    %295 = vector.broadcast %294 : vector<1x1x1x32xf32> to vector<2x8x8x32xf32>
    %296 = arith.mulf %292, %295 : vector<2x8x8x32xf32>
    %297 = arith.addf %291, %296 : vector<2x8x8x32xf32>
    %c0_73 = arith.constant 0 : index
    %c0_74 = arith.constant 0 : index
    %c1_75 = arith.constant 1 : index
    %c0_76 = arith.constant 0 : index
    %298 = vector.load %arg20[%c0_73, %c0_74, %c1_75, %c0_76] : memref<4x10x10x32xf32, #tpu.memory_space<vmem>>, vector<4x10x8x32xf32>
    %299 = vector.extract_strided_slice %298 {offsets = [0, 0, 0, 0], sizes = [2, 8, 8, 32], strides = [1, 1, 1, 1]} : vector<4x10x8x32xf32> to vector<2x8x8x32xf32>
    %300 = vector.extract_strided_slice %239 {offsets = [1, 0], sizes = [1, 32], strides = [1, 1]} : vector<27x32xf32> to vector<1x32xf32>
    %301 = vector.shape_cast %300 : vector<1x32xf32> to vector<1x1x1x32xf32>
    %302 = vector.broadcast %301 : vector<1x1x1x32xf32> to vector<2x8x8x32xf32>
    %303 = arith.mulf %299, %302 : vector<2x8x8x32xf32>
    %304 = arith.addf %297, %303 : vector<2x8x8x32xf32>
    %305 = vector.extract_strided_slice %298 {offsets = [0, 1, 0, 0], sizes = [2, 8, 8, 32], strides = [1, 1, 1, 1]} : vector<4x10x8x32xf32> to vector<2x8x8x32xf32>
    %306 = vector.extract_strided_slice %239 {offsets = [4, 0], sizes = [1, 32], strides = [1, 1]} : vector<27x32xf32> to vector<1x32xf32>
    %307 = vector.shape_cast %306 : vector<1x32xf32> to vector<1x1x1x32xf32>
    %308 = vector.broadcast %307 : vector<1x1x1x32xf32> to vector<2x8x8x32xf32>
    %309 = arith.mulf %305, %308 : vector<2x8x8x32xf32>
    %310 = arith.addf %304, %309 : vector<2x8x8x32xf32>
    %311 = vector.extract_strided_slice %298 {offsets = [0, 2, 0, 0], sizes = [2, 8, 8, 32], strides = [1, 1, 1, 1]} : vector<4x10x8x32xf32> to vector<2x8x8x32xf32>
    %312 = vector.extract_strided_slice %239 {offsets = [7, 0], sizes = [1, 32], strides = [1, 1]} : vector<27x32xf32> to vector<1x32xf32>
    %313 = vector.shape_cast %312 : vector<1x32xf32> to vector<1x1x1x32xf32>
    %314 = vector.broadcast %313 : vector<1x1x1x32xf32> to vector<2x8x8x32xf32>
    %315 = arith.mulf %311, %314 : vector<2x8x8x32xf32>
    %316 = arith.addf %310, %315 : vector<2x8x8x32xf32>
    %317 = vector.extract_strided_slice %298 {offsets = [1, 0, 0, 0], sizes = [2, 8, 8, 32], strides = [1, 1, 1, 1]} : vector<4x10x8x32xf32> to vector<2x8x8x32xf32>
    %318 = vector.extract_strided_slice %239 {offsets = [10, 0], sizes = [1, 32], strides = [1, 1]} : vector<27x32xf32> to vector<1x32xf32>
    %319 = vector.shape_cast %318 : vector<1x32xf32> to vector<1x1x1x32xf32>
    %320 = vector.broadcast %319 : vector<1x1x1x32xf32> to vector<2x8x8x32xf32>
    %321 = arith.mulf %317, %320 : vector<2x8x8x32xf32>
    %322 = arith.addf %316, %321 : vector<2x8x8x32xf32>
    %323 = vector.extract_strided_slice %298 {offsets = [1, 1, 0, 0], sizes = [2, 8, 8, 32], strides = [1, 1, 1, 1]} : vector<4x10x8x32xf32> to vector<2x8x8x32xf32>
    %324 = vector.extract_strided_slice %239 {offsets = [13, 0], sizes = [1, 32], strides = [1, 1]} : vector<27x32xf32> to vector<1x32xf32>
    %325 = vector.shape_cast %324 : vector<1x32xf32> to vector<1x1x1x32xf32>
    %326 = vector.broadcast %325 : vector<1x1x1x32xf32> to vector<2x8x8x32xf32>
    %327 = arith.mulf %323, %326 : vector<2x8x8x32xf32>
    %328 = arith.addf %322, %327 : vector<2x8x8x32xf32>
    %329 = vector.extract_strided_slice %298 {offsets = [1, 2, 0, 0], sizes = [2, 8, 8, 32], strides = [1, 1, 1, 1]} : vector<4x10x8x32xf32> to vector<2x8x8x32xf32>
    %330 = vector.extract_strided_slice %239 {offsets = [16, 0], sizes = [1, 32], strides = [1, 1]} : vector<27x32xf32> to vector<1x32xf32>
    %331 = vector.shape_cast %330 : vector<1x32xf32> to vector<1x1x1x32xf32>
    %332 = vector.broadcast %331 : vector<1x1x1x32xf32> to vector<2x8x8x32xf32>
    %333 = arith.mulf %329, %332 : vector<2x8x8x32xf32>
    %334 = arith.addf %328, %333 : vector<2x8x8x32xf32>
    %335 = vector.extract_strided_slice %298 {offsets = [2, 0, 0, 0], sizes = [2, 8, 8, 32], strides = [1, 1, 1, 1]} : vector<4x10x8x32xf32> to vector<2x8x8x32xf32>
    %336 = vector.extract_strided_slice %239 {offsets = [19, 0], sizes = [1, 32], strides = [1, 1]} : vector<27x32xf32> to vector<1x32xf32>
    %337 = vector.shape_cast %336 : vector<1x32xf32> to vector<1x1x1x32xf32>
    %338 = vector.broadcast %337 : vector<1x1x1x32xf32> to vector<2x8x8x32xf32>
    %339 = arith.mulf %335, %338 : vector<2x8x8x32xf32>
    %340 = arith.addf %334, %339 : vector<2x8x8x32xf32>
    %341 = vector.extract_strided_slice %298 {offsets = [2, 1, 0, 0], sizes = [2, 8, 8, 32], strides = [1, 1, 1, 1]} : vector<4x10x8x32xf32> to vector<2x8x8x32xf32>
    %342 = vector.extract_strided_slice %239 {offsets = [22, 0], sizes = [1, 32], strides = [1, 1]} : vector<27x32xf32> to vector<1x32xf32>
    %343 = vector.shape_cast %342 : vector<1x32xf32> to vector<1x1x1x32xf32>
    %344 = vector.broadcast %343 : vector<1x1x1x32xf32> to vector<2x8x8x32xf32>
    %345 = arith.mulf %341, %344 : vector<2x8x8x32xf32>
    %346 = arith.addf %340, %345 : vector<2x8x8x32xf32>
    %347 = vector.extract_strided_slice %298 {offsets = [2, 2, 0, 0], sizes = [2, 8, 8, 32], strides = [1, 1, 1, 1]} : vector<4x10x8x32xf32> to vector<2x8x8x32xf32>
    %348 = vector.extract_strided_slice %239 {offsets = [25, 0], sizes = [1, 32], strides = [1, 1]} : vector<27x32xf32> to vector<1x32xf32>
    %349 = vector.shape_cast %348 : vector<1x32xf32> to vector<1x1x1x32xf32>
    %350 = vector.broadcast %349 : vector<1x1x1x32xf32> to vector<2x8x8x32xf32>
    %351 = arith.mulf %347, %350 : vector<2x8x8x32xf32>
    %352 = arith.addf %346, %351 : vector<2x8x8x32xf32>
    %c0_77 = arith.constant 0 : index
    %c0_78 = arith.constant 0 : index
    %c2_79 = arith.constant 2 : index
    %c0_80 = arith.constant 0 : index
    %353 = vector.load %arg20[%c0_77, %c0_78, %c2_79, %c0_80] : memref<4x10x10x32xf32, #tpu.memory_space<vmem>>, vector<4x10x8x32xf32>
    %354 = vector.extract_strided_slice %353 {offsets = [0, 0, 0, 0], sizes = [2, 8, 8, 32], strides = [1, 1, 1, 1]} : vector<4x10x8x32xf32> to vector<2x8x8x32xf32>
    %355 = vector.extract_strided_slice %239 {offsets = [2, 0], sizes = [1, 32], strides = [1, 1]} : vector<27x32xf32> to vector<1x32xf32>
    %356 = vector.shape_cast %355 : vector<1x32xf32> to vector<1x1x1x32xf32>
    %357 = vector.broadcast %356 : vector<1x1x1x32xf32> to vector<2x8x8x32xf32>
    %358 = arith.mulf %354, %357 : vector<2x8x8x32xf32>
    %359 = arith.addf %352, %358 : vector<2x8x8x32xf32>
    %360 = vector.extract_strided_slice %353 {offsets = [0, 1, 0, 0], sizes = [2, 8, 8, 32], strides = [1, 1, 1, 1]} : vector<4x10x8x32xf32> to vector<2x8x8x32xf32>
    %361 = vector.extract_strided_slice %239 {offsets = [5, 0], sizes = [1, 32], strides = [1, 1]} : vector<27x32xf32> to vector<1x32xf32>
    %362 = vector.shape_cast %361 : vector<1x32xf32> to vector<1x1x1x32xf32>
    %363 = vector.broadcast %362 : vector<1x1x1x32xf32> to vector<2x8x8x32xf32>
    %364 = arith.mulf %360, %363 : vector<2x8x8x32xf32>
    %365 = arith.addf %359, %364 : vector<2x8x8x32xf32>
    %366 = vector.extract_strided_slice %353 {offsets = [0, 2, 0, 0], sizes = [2, 8, 8, 32], strides = [1, 1, 1, 1]} : vector<4x10x8x32xf32> to vector<2x8x8x32xf32>
    %367 = vector.extract_strided_slice %239 {offsets = [8, 0], sizes = [1, 32], strides = [1, 1]} : vector<27x32xf32> to vector<1x32xf32>
    %368 = vector.shape_cast %367 : vector<1x32xf32> to vector<1x1x1x32xf32>
    %369 = vector.broadcast %368 : vector<1x1x1x32xf32> to vector<2x8x8x32xf32>
    %370 = arith.mulf %366, %369 : vector<2x8x8x32xf32>
    %371 = arith.addf %365, %370 : vector<2x8x8x32xf32>
    %372 = vector.extract_strided_slice %353 {offsets = [1, 0, 0, 0], sizes = [2, 8, 8, 32], strides = [1, 1, 1, 1]} : vector<4x10x8x32xf32> to vector<2x8x8x32xf32>
    %373 = vector.extract_strided_slice %239 {offsets = [11, 0], sizes = [1, 32], strides = [1, 1]} : vector<27x32xf32> to vector<1x32xf32>
    %374 = vector.shape_cast %373 : vector<1x32xf32> to vector<1x1x1x32xf32>
    %375 = vector.broadcast %374 : vector<1x1x1x32xf32> to vector<2x8x8x32xf32>
    %376 = arith.mulf %372, %375 : vector<2x8x8x32xf32>
    %377 = arith.addf %371, %376 : vector<2x8x8x32xf32>
    %378 = vector.extract_strided_slice %353 {offsets = [1, 1, 0, 0], sizes = [2, 8, 8, 32], strides = [1, 1, 1, 1]} : vector<4x10x8x32xf32> to vector<2x8x8x32xf32>
    %379 = vector.extract_strided_slice %239 {offsets = [14, 0], sizes = [1, 32], strides = [1, 1]} : vector<27x32xf32> to vector<1x32xf32>
    %380 = vector.shape_cast %379 : vector<1x32xf32> to vector<1x1x1x32xf32>
    %381 = vector.broadcast %380 : vector<1x1x1x32xf32> to vector<2x8x8x32xf32>
    %382 = arith.mulf %378, %381 : vector<2x8x8x32xf32>
    %383 = arith.addf %377, %382 : vector<2x8x8x32xf32>
    %384 = vector.extract_strided_slice %353 {offsets = [1, 2, 0, 0], sizes = [2, 8, 8, 32], strides = [1, 1, 1, 1]} : vector<4x10x8x32xf32> to vector<2x8x8x32xf32>
    %385 = vector.extract_strided_slice %239 {offsets = [17, 0], sizes = [1, 32], strides = [1, 1]} : vector<27x32xf32> to vector<1x32xf32>
    %386 = vector.shape_cast %385 : vector<1x32xf32> to vector<1x1x1x32xf32>
    %387 = vector.broadcast %386 : vector<1x1x1x32xf32> to vector<2x8x8x32xf32>
    %388 = arith.mulf %384, %387 : vector<2x8x8x32xf32>
    %389 = arith.addf %383, %388 : vector<2x8x8x32xf32>
    %390 = vector.extract_strided_slice %353 {offsets = [2, 0, 0, 0], sizes = [2, 8, 8, 32], strides = [1, 1, 1, 1]} : vector<4x10x8x32xf32> to vector<2x8x8x32xf32>
    %391 = vector.extract_strided_slice %239 {offsets = [20, 0], sizes = [1, 32], strides = [1, 1]} : vector<27x32xf32> to vector<1x32xf32>
    %392 = vector.shape_cast %391 : vector<1x32xf32> to vector<1x1x1x32xf32>
    %393 = vector.broadcast %392 : vector<1x1x1x32xf32> to vector<2x8x8x32xf32>
    %394 = arith.mulf %390, %393 : vector<2x8x8x32xf32>
    %395 = arith.addf %389, %394 : vector<2x8x8x32xf32>
    %396 = vector.extract_strided_slice %353 {offsets = [2, 1, 0, 0], sizes = [2, 8, 8, 32], strides = [1, 1, 1, 1]} : vector<4x10x8x32xf32> to vector<2x8x8x32xf32>
    %397 = vector.extract_strided_slice %239 {offsets = [23, 0], sizes = [1, 32], strides = [1, 1]} : vector<27x32xf32> to vector<1x32xf32>
    %398 = vector.shape_cast %397 : vector<1x32xf32> to vector<1x1x1x32xf32>
    %399 = vector.broadcast %398 : vector<1x1x1x32xf32> to vector<2x8x8x32xf32>
    %400 = arith.mulf %396, %399 : vector<2x8x8x32xf32>
    %401 = arith.addf %395, %400 : vector<2x8x8x32xf32>
    %402 = vector.extract_strided_slice %353 {offsets = [2, 2, 0, 0], sizes = [2, 8, 8, 32], strides = [1, 1, 1, 1]} : vector<4x10x8x32xf32> to vector<2x8x8x32xf32>
    %403 = vector.extract_strided_slice %239 {offsets = [26, 0], sizes = [1, 32], strides = [1, 1]} : vector<27x32xf32> to vector<1x32xf32>
    %404 = vector.shape_cast %403 : vector<1x32xf32> to vector<1x1x1x32xf32>
    %405 = vector.broadcast %404 : vector<1x1x1x32xf32> to vector<2x8x8x32xf32>
    %406 = arith.mulf %402, %405 : vector<2x8x8x32xf32>
    %407 = arith.addf %401, %406 : vector<2x8x8x32xf32>
    %408 = vector.broadcast %241 : vector<1x1x1x32xf32> to vector<2x8x8x32xf32>
    %409 = arith.addf %407, %408 : vector<2x8x8x32xf32>
    %410 = arith.mulf %238, %409 : vector<2x8x8x32xf32>
    %411 = vector.shape_cast %410 : vector<2x8x8x32xf32> to vector<128x32xf32>
    %c0_81 = arith.constant 0 : index
    %c0_82 = arith.constant 0 : index
    %412 = vector.load %arg13[%c0_81, %c0_82] : memref<32x16xf32, #tpu.memory_space<vmem>>, vector<32x16xf32>
    %cst_83 = arith.constant dense<0.000000e+00> : vector<128x16xf32>
    %413 = tpu.matmul %411, %412, %cst_83 {dimension_numbers = #tpu.dot_dimension_numbers<[1], [0], [0], [1], [0, 0, 1, 1], [], []>} : vector<128x32xf32>, vector<32x16xf32>, vector<128x16xf32> -> vector<128x16xf32>
    %c0_84 = arith.constant 0 : index
    %c0_85 = arith.constant 0 : index
    %414 = vector.load %arg14[%c0_84, %c0_85] : memref<1x16xf32, #tpu.memory_space<vmem>>, vector<1x16xf32>
    %415 = vector.broadcast %414 : vector<1x16xf32> to vector<128x16xf32>
    %416 = arith.addf %413, %415 : vector<128x16xf32>
    %417 = vector.shape_cast %416 : vector<128x16xf32> to vector<2x8x8x16xf32>
    %c0_86 = arith.constant 0 : index
    %c0_87 = arith.constant 0 : index
    %c0_88 = arith.constant 0 : index
    %c0_89 = arith.constant 0 : index
    %c0_90 = arith.constant 0 : index
    %418 = vector.load %arg17[%c0_86, %c0_87, %c0_88, %c0_89, %c0_90] : memref<1x2x8x8x16xf32, #tpu.memory_space<vmem>>, vector<1x2x8x8x16xf32>
    %419 = vector.shape_cast %418 : vector<1x2x8x8x16xf32> to vector<2x8x8x16xf32>
    %420 = vector.shape_cast %417 : vector<2x8x8x16xf32> to vector<1x2x8x8x16xf32>
    tpu.vector_store %arg17[%c0_86, %c0_87, %c0_88, %c0_89, %c0_90], %420 {strides = array<i32>} : memref<1x2x8x8x16xf32, #tpu.memory_space<vmem>>, vector<1x2x8x8x16xf32>,
    %c0_91 = arith.constant 0 : index
    %c0_92 = arith.constant 0 : index
    %421 = vector.load %arg15[%c0_91, %c0_92] : memref<32x8xf32, #tpu.memory_space<vmem>>, vector<32x8xf32>
    %cst_93 = arith.constant dense<0.000000e+00> : vector<128x8xf32>
    %422 = tpu.matmul %411, %421, %cst_93 {dimension_numbers = #tpu.dot_dimension_numbers<[1], [0], [0], [1], [0, 0, 1, 1], [], []>} : vector<128x32xf32>, vector<32x8xf32>, vector<128x8xf32> -> vector<128x8xf32>
    %c0_94 = arith.constant 0 : index
    %c0_95 = arith.constant 0 : index
    %423 = vector.load %arg16[%c0_94, %c0_95] : memref<1x8xf32, #tpu.memory_space<vmem>>, vector<1x8xf32>
    %424 = vector.broadcast %423 : vector<1x8xf32> to vector<128x8xf32>
    %425 = arith.addf %422, %424 : vector<128x8xf32>
    %426 = vector.shape_cast %425 : vector<128x8xf32> to vector<2x8x8x8xf32>
    %c0_96 = arith.constant 0 : index
    %c0_97 = arith.constant 0 : index
    %c0_98 = arith.constant 0 : index
    %c0_99 = arith.constant 0 : index
    %c0_100 = arith.constant 0 : index
    %427 = vector.load %arg18[%c0_96, %c0_97, %c0_98, %c0_99, %c0_100] : memref<1x2x8x8x8xf32, #tpu.memory_space<vmem>>, vector<1x2x8x8x8xf32>
    %428 = vector.shape_cast %427 : vector<1x2x8x8x8xf32> to vector<2x8x8x8xf32>
    %429 = vector.shape_cast %426 : vector<2x8x8x8xf32> to vector<1x2x8x8x8xf32>
    tpu.vector_store %arg18[%c0_96, %c0_97, %c0_98, %c0_99, %c0_100], %429 {strides = array<i32>} : memref<1x2x8x8x8xf32, #tpu.memory_space<vmem>>, vector<1x2x8x8x8xf32>,
    return
  }
  func.func @transform_0(%arg0: i32, %arg1: i32) -> (i32, i32, i32, i32, i32) {
    %c2_i32 = arith.constant 2 : i32
    %0 = arith.muli %arg1, %c2_i32 : i32
    %c1_i32 = arith.constant 1 : i32
    %1 = arith.subi %0, %c1_i32 : i32
    %c0_i32 = arith.constant 0 : i32
    %2 = arith.maxsi %1, %c0_i32 : i32
    %c0_i32_0 = arith.constant 0 : i32
    %c0_i32_1 = arith.constant 0 : i32
    %c0_i32_2 = arith.constant 0 : i32
    %c0_i32_3 = arith.constant 0 : i32
    return %arg0, %2, %c0_i32_0, %c0_i32_1, %c0_i32_2 : i32, i32, i32, i32, i32
  }
  func.func @transform_1(%arg0: i32, %arg1: i32) -> (i32, i32, i32, i32, i32) {
    %c0_i32 = arith.constant 0 : i32
    %c0_i32_0 = arith.constant 0 : i32
    %c0_i32_1 = arith.constant 0 : i32
    %c0_i32_2 = arith.constant 0 : i32
    return %arg0, %arg1, %c0_i32, %c0_i32_0, %c0_i32_1 : i32, i32, i32, i32, i32
  }
  func.func @transform_2(%arg0: i32, %arg1: i32) -> (i32, i32, i32, i32, i32) {
    %c2_i32 = arith.constant 2 : i32
    %0 = arith.muli %arg1, %c2_i32 : i32
    %c2_i32_0 = arith.constant 2 : i32
    %1 = arith.addi %0, %c2_i32_0 : i32
    %c3_i32 = arith.constant 3 : i32
    %2 = arith.minsi %1, %c3_i32 : i32
    %c0_i32 = arith.constant 0 : i32
    %c0_i32_1 = arith.constant 0 : i32
    %c0_i32_2 = arith.constant 0 : i32
    %c0_i32_3 = arith.constant 0 : i32
    return %arg0, %2, %c0_i32, %c0_i32_1, %c0_i32_2 : i32, i32, i32, i32, i32
  }
  func.func @transform_3(%arg0: i32, %arg1: i32) -> (i32, i32) {
    %c0_i32 = arith.constant 0 : i32
    %c0_i32_0 = arith.constant 0 : i32
    %c0_i32_1 = arith.constant 0 : i32
    return %c0_i32, %c0_i32_0 : i32, i32
  }
  func.func @transform_4(%arg0: i32, %arg1: i32) -> (i32, i32) {
    %c0_i32 = arith.constant 0 : i32
    %c0_i32_0 = arith.constant 0 : i32
    %c0_i32_1 = arith.constant 0 : i32
    return %c0_i32, %c0_i32_0 : i32, i32
  }
  func.func @transform_5(%arg0: i32, %arg1: i32) -> (i32, i32) {
    %c0_i32 = arith.constant 0 : i32
    %c0_i32_0 = arith.constant 0 : i32
    %c0_i32_1 = arith.constant 0 : i32
    return %c0_i32, %c0_i32_0 : i32, i32
  }
  func.func @transform_6(%arg0: i32, %arg1: i32) -> (i32, i32) {
    %c0_i32 = arith.constant 0 : i32
    %c0_i32_0 = arith.constant 0 : i32
    %c0_i32_1 = arith.constant 0 : i32
    return %c0_i32, %c0_i32_0 : i32, i32
  }
  func.func @transform_7(%arg0: i32, %arg1: i32) -> (i32, i32) {
    %c0_i32 = arith.constant 0 : i32
    %c0_i32_0 = arith.constant 0 : i32
    %c0_i32_1 = arith.constant 0 : i32
    return %c0_i32, %c0_i32_0 : i32, i32
  }
  func.func @transform_8(%arg0: i32, %arg1: i32) -> (i32, i32) {
    %c0_i32 = arith.constant 0 : i32
    %c0_i32_0 = arith.constant 0 : i32
    %c0_i32_1 = arith.constant 0 : i32
    return %c0_i32, %c0_i32_0 : i32, i32
  }
  func.func @transform_9(%arg0: i32, %arg1: i32) -> (i32, i32) {
    %c0_i32 = arith.constant 0 : i32
    %c0_i32_0 = arith.constant 0 : i32
    %c0_i32_1 = arith.constant 0 : i32
    return %c0_i32, %c0_i32_0 : i32, i32
  }
  func.func @transform_10(%arg0: i32, %arg1: i32) -> (i32, i32) {
    %c0_i32 = arith.constant 0 : i32
    %c0_i32_0 = arith.constant 0 : i32
    %c0_i32_1 = arith.constant 0 : i32
    return %c0_i32, %c0_i32_0 : i32, i32
  }
  func.func @transform_11(%arg0: i32, %arg1: i32) -> (i32, i32) {
    %c0_i32 = arith.constant 0 : i32
    %c0_i32_0 = arith.constant 0 : i32
    %c0_i32_1 = arith.constant 0 : i32
    return %c0_i32, %c0_i32_0 : i32, i32
  }
  func.func @transform_12(%arg0: i32, %arg1: i32) -> (i32, i32) {
    %c0_i32 = arith.constant 0 : i32
    %c0_i32_0 = arith.constant 0 : i32
    %c0_i32_1 = arith.constant 0 : i32
    return %c0_i32, %c0_i32_0 : i32, i32
  }
  func.func @transform_13(%arg0: i32, %arg1: i32) -> (i32, i32) {
    %c0_i32 = arith.constant 0 : i32
    %c0_i32_0 = arith.constant 0 : i32
    %c0_i32_1 = arith.constant 0 : i32
    return %c0_i32, %c0_i32_0 : i32, i32
  }
  func.func @transform_14(%arg0: i32, %arg1: i32) -> (i32, i32) {
    %c0_i32 = arith.constant 0 : i32
    %c0_i32_0 = arith.constant 0 : i32
    %c0_i32_1 = arith.constant 0 : i32
    return %c0_i32, %c0_i32_0 : i32, i32
  }
  func.func @transform_15(%arg0: i32, %arg1: i32) -> (i32, i32, i32, i32, i32) {
    %c0_i32 = arith.constant 0 : i32
    %c0_i32_0 = arith.constant 0 : i32
    %c0_i32_1 = arith.constant 0 : i32
    %c0_i32_2 = arith.constant 0 : i32
    return %arg0, %arg1, %c0_i32, %c0_i32_0, %c0_i32_1 : i32, i32, i32, i32, i32
  }
  func.func @transform_16(%arg0: i32, %arg1: i32) -> (i32, i32, i32, i32, i32) {
    %c0_i32 = arith.constant 0 : i32
    %c0_i32_0 = arith.constant 0 : i32
    %c0_i32_1 = arith.constant 0 : i32
    %c0_i32_2 = arith.constant 0 : i32
    return %arg0, %arg1, %c0_i32, %c0_i32_0, %c0_i32_1 : i32, i32, i32, i32, i32
  }
}

</mosaic_0001>

<bundles_post_ra>
// kernel: feed_forward.1
= control target key start
LH: loop header
LB: loop body
LE: loop exit
PB: predicated region body
PF: predicated region fallthrough
CT: control target
= control target key end

     0   :  { %s10846_s0 = inlined_call_operand.hbm [shape: f32[2,4,8,8,16], index: 0, kind: input, shape index: {}, may-alias: {0,1,2}]   ;;  %s10847_s1 = inlined_call_operand.hbm [shape: f32[2,4,8,8,16], index: 1, kind: input, shape index: {}, may-alias: {0,1,2}]   ;;  %s10848_s2 = inlined_call_operand.hbm [shape: f32[2,4,8,8,16], index: 2, kind: input, shape index: {}, may-alias: {0,1,2}]   ;;  %s10849_s3 = inlined_call_operand.vmem [shape: f32[16,32], index: 3, kind: input, shape index: {}]   ;;  %s10850_s4 = inlined_call_operand.vmem [shape: f32[16,32], index: 4, kind: input, shape index: {}]   ;;  %s10851_s5 = inlined_call_operand.vmem [shape: f32[1,32], index: 5, kind: input, shape index: {}]   ;;  %s10852_s6 = inlined_call_operand.vmem [shape: f32[1,32], index: 6, kind: input, shape index: {}]   ;;  %s10853_s7 = inlined_call_operand.vmem [shape: f32[27,32], index: 7, kind: input, shape index: {}]   ;;  %s10854_s8 = inlined_call_operand.vmem [shape: f32[27,32], index: 8, kind: input, shape index: {}]   ;;  %s10855_s9 = inlined_call_operand.vmem [shape: f32[1,32], index: 9, kind: input, shape index: {}]   ;;  %s10856_s10 = inlined_call_operand.vmem [shape: f32[1,32], index: 10, kind: input, shape index: {}]   ;;  %s10857_s11 = inlined_call_operand.vmem [shape: f32[32,16], index: 11, kind: input, shape index: {}]   ;;  %s10858_s12 = inlined_call_operand.vmem [shape: f32[1,16], index: 12, kind: input, shape index: {}]   ;;  %s10859_s13 = inlined_call_operand.vmem [shape: f32[32,8], index: 13, kind: input, shape index: {}]   ;;  %s10860_s14 = inlined_call_operand.vmem [shape: f32[1,8], index: 14, kind: input, shape index: {}]   ;;  %s10861_s15 = inlined_call_operand.hbm [shape: f32[2,4,8,8,16], index: 15, kind: output, shape index: {0}]   ;;  %s10862_s16 = inlined_call_operand.vmem [shape: f32[2,4,8,8,8], index: 16, kind: output, shape index: {1}]  }
   0x1   :  { %11474 = sst [smem:[#allocation137_spill]] %s10846_s0 }
   0x2   :  { %11475 = sst [smem:[#allocation138_spill]] %s10847_s1 }
   0x3   :  { %11476 = sst [smem:[#allocation139_spill]] %s10849_s3 }
   0x4   :  { %11477 = sst [smem:[#allocation140_spill]] %s10850_s4 }
   0x5   :  { %11478 = sst [smem:[#allocation141_spill]] %s10851_s5 }
   0x6   :  { %11479 = sst [smem:[#allocation142_spill]] %s10852_s6 }
   0x7   :  { %11480 = sst [smem:[#allocation143_spill]] %s10853_s7 }
   0x8   :  { %11481 = sst [smem:[#allocation144_spill]] %s10854_s8 }
   0x9   :  { %11482 = sst [smem:[#allocation145_spill]] %s10855_s9 }
   0xa   :  { %11483 = sst [smem:[#allocation146_spill]] %s10856_s10 }
   0xb   :  { %11484 = sst [smem:[#allocation147_spill]] %s10857_s11 }
   0xc   :  { %11485 = sst [smem:[#allocation148_spill]] %s10858_s12 }
   0xd   :  { %11486 = sst [smem:[#allocation149_spill]] %s10859_s13 }
   0xe   :  { %11487 = sst [smem:[#allocation150_spill]] %s10860_s14 }
   0xf   :  { %11488 = sst [smem:[#allocation151_spill]] %s10861_s15 }
  0x10   :  { %11489 = sst [smem:[#allocation152_spill]] %s10862_s16 }
  0x11   :  { %22 = vsyncpa [#allocation5], 0 }
  0x12   :  { %24 = vsyncpa [#allocation5 + $0x1], 0 }
  0x13   :  { %25 = vsyncpa [#allocation8], 0 }
  0x14   :  { %27 = vsyncpa [#allocation8 + $0x1], 0 }
  0x15   :  { %28 = vsyncpa [#allocation6], 0 }
  0x16   :  { %30 = vsyncpa [#allocation6 + $0x1], 0  ;;  %s6265_s21 = smov 0   ;;  %s6267_s22 = smov 0  }
  0x17   :  { %s6269_s23 = smov 0   ;;  %s6271_s24 = smov 0  }
  0x18   :  { %s6273_s25 = smov 0   ;;  %s6275_s26 = smov 0  }
  0x19   :  { %s6277_s27 = smov 0   ;;  %s6279_s28 = smov 0  }
  0x1a   :  { %s6281_s29 = smov 0   ;;  %s6283_s30 = smov 0  }
  0x1b   :  { %s6285_s0 = smov 0   ;;  %s6287_s17 = smov 0  }
  0x1c   :  { %s6289_s18 = smov 0   ;;  %s6291_s19 = smov 0  }
  0x1d LB: > { %11490 = sst [smem:[#allocation15_spill]] %s6128_s24  ;;  %s6336_s20 = sadd.s32 4294967295, %s6168_s19   ;;  %s6168_s19 = sphi %s6291_s19, %s36_s19   ;;  %s6164_s18 = sphi %s6289_s18, %s12759_s18   ;;  %s6160_s17 = sphi %s6287_s17, %s12758_s17   ;;  %s6156_s0 = sphi %s6285_s0, %s12768_s0   ;;  %s6152_s30 = sphi %s6283_s30, %s12756_s30   ;;  %s6148_s29 = sphi %s6281_s29, %s12767_s29   ;;  %s6144_s28 = sphi %s6279_s28, %s12766_s28   ;;  %s6140_s27 = sphi %s6277_s27, %s12754_s27   ;;  %s6136_s26 = sphi %s6275_s26, %s12765_s26   ;;  %s6132_s25 = sphi %s6273_s25, %s12764_s25   ;;  %s6128_s24 = sphi %s6271_s24, %s12753_s24   ;;  %s6124_s23 = sphi %s6269_s23, %s12763_s23   ;;  %s6120_s22 = sphi %s6267_s22, %s12762_s22   ;;  %s6116_s21 = sphi %s6265_s21, %s12761_s21  }
  0x1e   : > { %11491 = sst [smem:[#allocation16_spill]] %s6132_s25  ;;  %s5129_s15 = sadd.s32 4294967294, %s6168_s19  }
  0x1f   : > { %11492 = sst [smem:[#allocation17_spill]] %s6144_s28  ;;  %s45_s14 = sadd.s32 1, %s6160_s17 }
  0x20   : > { %11493 = sst [smem:[#allocation18_spill]] %s6152_s30  ;;  %s48_s12 = sadd.s32 1, %s6164_s18 }
  0x21   : > { %11494 = sst [smem:[#allocation19_spill]] %s6156_s0  ;;  %p46_p0 = scmp.ge.s32.totalorder %s45_s14, 2 }
  0x22   : > { %11495 = sst [smem:[#allocation20_spill]] %s6160_s17  ;;  %p10884_p1 = scmp.eq.s32.totalorder %s6168_s19, 0 }
  0x23   : > { %11496 = sst [smem:[#allocation21_spill]] %s6164_s18  ;;  %p10883_p2 = scmp.eq.s32.totalorder %s6336_s20, 0 }
  0x24   : > { %s12770_s14 = smov (%p46_p0, %s45_s14), 0  ;;  %s12772_s12 = smov (!%p46_p0, %s48_s12), %s6164_s18 }
  0x25   : > { %11497 = sst [smem:[#allocation22_spill]] %s12770_s14  ;;  %p100_p3 = scmp.ne.s32.totalorder %s6136_s26, %s6132_s25 }
  0x26   : > { %p106_p4 = scmp.ne.s32.totalorder %s6132_s25, %s6128_s24  ;;  %p420_p5 = scmp.eq.s32.totalorder %s6336_s20, 3 }
  0x27   : > { %p6358_p6 = por %p100_p3, %p10884_p1  ;;  %p426_p7 = scmp.eq.s32.totalorder %s5129_s15, 3 }
  0x28   : > { %p6364_p8 = por %p106_p4, %p10883_p2  ;;  %p6368_p9 = por %p420_p5, %p100_p3 }
  0x29   : > { %p6372_p10 = por %p426_p7, %p106_p4  ;;  %p10882_p11 = scmp.lt.s32.totalorder %s6168_s19, 4 }
  0x2a   : > { %s11499_s10 = scalar_select %p6364_p8, 1, 0 }
  0x2b   : > { %s11501_s7 = scalar_select %p6368_p9, 1, 0 }
  0x2c   : > { %11500 = sst [smem:[#allocation23_spill]] %s11499_s10  ;;  %s6378_s24 = sshll.u32 %s6164_s18, 5 }
  0x2d   : > { %11502 = sst [smem:[#allocation24_spill]] %s11501_s7  ;;  %s537_s15 = sand.u32 1, %s6168_s19  }
  0x2e   : > { %s11503_s9 = scalar_select %p6372_p10, 1, 0 }
  0x2f   : > { %s539_s13 = sand.u32 1, %s6136_s26   ;;  %s5278_s6 = sshll.u32 %s6160_s17, 4 }
  0x30   : > { %11504 = sst [smem:[#allocation25_spill]] %s11503_s9  ;;  %s5144_s11 = sshll.u32 %s539_s13, 7 }
  0x31   : > { %s548_s5 = sadd.s32 %s5278_s6, %s6378_s24  ;;  %s541_s16 = scalar_lea.vmem [#allocation7], %s5144_s11 }
  0x32   : > { %s551_s4 = sshll.u32 %s541_s16, 4  ;;  %s5148_s3 = sshll.u32 %s548_s5, 7  ;;  %s6384_s4 = int_to_ptr.vmem [resolvable:$true] %s551_s4 }
  0x33   : > { %s11505_s1 = sld [smem:[#allocation138_spill]]  ;;  %p6395_p12 = pnand %p10882_p11, %p6358_p6 }
  0x34   : > { %s6401_s5 = scalar_lea.sflag [#allocation8], %s537_s15 }
  0x35   : > { %p5926_p4 = pneg %p6395_p12 }
  0x39   : > { %s6389_s30 = scalar_lea.hbm %s11505_s1, %s5148_s3  ;;  %s5929_s8 = scalar_lea.hbm %s11505_s1, 8192 }
  0x3a   : > { %s5924_s6 = scalar_lea.hbm %s6389_s30, 2048  ;;  %p5930_p6 = scmp.lt.u32.totalorder %s6389_s30, %s11505_s1 }
  0x3b   : > { %p5925_p3 = scmp.ne.s32.totalorder %s6389_s30, %s5924_s6  ;;  %p5931_p11 = scmp.lt.u32.totalorder %s5929_s8, %s5924_s6 }
  0x3c   : > { %p5933_p1 = scmp.lt.u32.totalorder %s5924_s6, %s6389_s30 }
  0x3d   : > { %p5927_p5 = pnand %p5926_p4, %p5925_p3  ;;  %p5932_p2 = por %p5931_p11, %p5930_p6 }
  0x3f   : > { %p5928_p7 = pneg %p5927_p5  ;;  %p5934_p13 = por %p5933_p1, %p5932_p2 }
  0x41   : > { %p5935_p0 = pnand %p5934_p13, %p5928_p7 }
  0x43   : > { %5938 = shalt.err (!%p5935_p0)
}
  0x44   : > { %s5939_s0 = scalar_lea.vmem %s6384_s4, 2048  ;;  %s6170_s15 = smov [#allocation7]  }
  0x45   : > { %p5940_p3 = scmp.ne.s32.totalorder %s6384_s4, %s5939_s0  ;;  %s5944_s3 = sshll.u32 %s6170_s15, 4  ;;  %s5945_s3 = int_to_ptr.vmem [resolvable:$false] %s5944_s3 }
  0x46   : > { %s5946_s7 = scalar_lea.vmem %s5945_s3, 4096  ;;  %p5947_p9 = scmp.lt.s32.totalorder %s6384_s4, %s5945_s3 }
  0x47   : > { %p5942_p5 = pnand %p5940_p3, %p5926_p4  ;;  %p5948_p11 = scmp.lt.s32.totalorder %s5946_s7, %s5939_s0 }
  0x49   : > { %p5943_p10 = pneg %p5942_p5  ;;  %p5949_p6 = por %p5948_p11, %p5947_p9 }
  0x4b   : > { %p5950_p1 = pnand %p5949_p6, %p5943_p10 }
  0x4d   : > { %5953 = shalt.err (!%p5950_p1)
}
  0x4e   : > { %s10886_s6 = smov 128   ;;  %s10888_s8 = smov 8  }
  0x4f   : > { %5634 = dma.hbm_to_vmem [thread:$0]  (!%p6395_p12), %s6389_s30, 2048, %s6384_s4, %s6401_s5, %s10886_s6, %s10886_s6, %s10888_s8  }
  0x50   : > { %p11507_p2 = scmp.lt.s32.totalorder %s6168_s19, 5  ;;  %p11508_p9 = scmp.ge.s32.totalorder %s6168_s19, 1 }
  0x51   : > { %p50_p13 = scmp.ge.s32.totalorder %s12772_s12, 2  ;;  %s5130_s16 = sshll.u32 %s6160_s17, 1 }
  0x52   : > { %p6436_p10 = pnand %p11508_p9, %p11507_p2  ;;  %s5131_s0 = sadd.s32 4294967295, %s5130_s16 }
  0x53   : > { %s5132_s15 = sshll.u32 %s12770_s14, 1  ;;  %s12774_s12 = smov (%p50_p13, %s12772_s12), 0 }
  0x54   : > { %11510 = sst [smem:[#allocation26_spill]] %s12774_s12  ;;  %p54_p12 = scmp.gt.s32.totalorder %s5131_s0, 0 }
  0x55   : > { %s5133_s4 = sadd.s32 4294967295, %s5132_s15  ;;  %s6448_s30 = ssub.s32 %s6164_s18, %s12774_s12 }
  0x56   : > { %p58_p0 = scmp.gt.s32.totalorder %s5133_s4, 0  ;;  %s12776_s0 = smov (!%p54_p12, %s5131_s0), 0 }
  0x57   : > { %s65_s13 = sadd.s32 1, %s6148_s29  ;;  %p72_p4 = scmp.ne.s32.totalorder %s6148_s29, %s6144_s28 }
  0x58   : > { %s12778_s4 = smov (!%p58_p0, %s5133_s4), 0  ;;  %p78_p7 = scmp.ne.s32.totalorder %s6144_s28, %s6140_s27 }
  0x59   : > { %s61_s3 = ssub.s32 %s12776_s0, %s12778_s4  ;;  %p11511_p3 = scmp.eq.s32.totalorder %s6168_s19, 0 }
  0x5a   : > { %s62_s7 = sor.u32 %s61_s3, %s6448_s30  ;;  %p11513_p6 = scmp.eq.s32.totalorder %s6336_s20, 0 }
  0x5b   : > { %p6458_p5 = por %p11511_p3, %p72_p4  ;;  %p63_p11 = scmp.eq.s32.totalorder %s62_s7, 0 }
  0x5c   : > { %p6464_p1 = por %p11513_p6, %p78_p7  ;;  %s11516_s1 = ssub.s32 %s6160_s17, %s12770_s14 }
  0x5d   : > { %s90_s12 = sor.u32 %s11516_s1, %s6448_s30  ;;  %s6472_s18 = sadd.s32 2, %s5130_s16 }
  0x5e   : > { %s11514_s8 = scalar_select %p6464_p1, 1, 0 }
  0x5f   : > { %s6475_s27 = scalar_select %p63_p11, %s6148_s29, %s65_s13  }
  0x60   : > { %11515 = sst [smem:[#allocation27_spill]] %s11514_s8  ;;  %p91_p2 = scmp.eq.s32.totalorder %s90_s12, 0 }
  0x61   : > { %11517 = sst [smem:[#allocation28_spill]] %s6475_s27  ;;  %s6478_s4 = sadd.s32 2, %s5132_s15 }
  0x62   : > { %s510_s3 = sand.u32 1, %s6148_s29   ;;  %s11518_s7 = sadd.s32 1, %s6136_s26 }
  0x63   : > { %s6484_s9 = scalar_select %p91_p2, %s6136_s26, %s11518_s7  }
  0x64   : > { %s5138_s10 = sshll.u32 %s510_s3, 6  ;;  %s5141_s14 = sshll.u32 %s12776_s0, 3 }
  0x65   : > { %s524_s1 = sadd.s32 %s6378_s24, %s5141_s14  ;;  %s514_s17 = scalar_lea.vmem [#allocation4], %s5138_s10 }
  0x66   : > { %s5143_s16 = sshll.u32 %s524_s1, 7  ;;  %s527_s25 = sshll.u32 %s514_s17, 4  ;;  %s6493_s25 = int_to_ptr.vmem [resolvable:$true] %s527_s25 }
  0x67   : > { %s11519_s13 = sld [smem:[#allocation137_spill]]  ;;  %p11520_p12 = scmp.lt.s32.totalorder %s6168_s19, 4 }
  0x68   : > { %s6503_s10 = scalar_lea.sflag [#allocation5], %s510_s3 }
  0x69   : > { %p6499_p0 = pnand %p11520_p12, %p6458_p5 }
  0x6b   : > { %p5956_p7 = pneg %p6499_p0 }
  0x6d   : > { %s6491_s27 = scalar_lea.hbm %s11519_s13, %s5143_s16  ;;  %s5959_s6 = scalar_lea.hbm %s11519_s13, 8192 }
  0x6e   : > { %s5954_s14 = scalar_lea.hbm %s6491_s27, 1024  ;;  %p5960_p5 = scmp.lt.u32.totalorder %s6491_s27, %s11519_s13 }
  0x6f   : > { %p5955_p4 = scmp.ne.s32.totalorder %s6491_s27, %s5954_s14  ;;  %p5961_p6 = scmp.lt.u32.totalorder %s5959_s6, %s5954_s14 }
  0x70   : > { %p5963_p12 = scmp.lt.u32.totalorder %s5954_s14, %s6491_s27 }
  0x71   : > { %p5957_p3 = pnand %p5956_p7, %p5955_p4  ;;  %p5962_p2 = por %p5961_p6, %p5960_p5 }
  0x73   : > { %p5958_p11 = pneg %p5957_p3  ;;  %p5964_p13 = por %p5963_p12, %p5962_p2 }
  0x75   : > { %p5965_p9 = pnand %p5964_p13, %p5958_p11 }
  0x77   : > { %5968 = shalt.err (!%p5965_p9)
}
  0x78   : > { %s5969_s15 = scalar_lea.vmem %s6493_s25, 1024  ;;  %s6173_s3 = smov [#allocation4]  }
  0x79   : > { %p5970_p4 = scmp.ne.s32.totalorder %s6493_s25, %s5969_s15  ;;  %s5974_s7 = sshll.u32 %s6173_s3, 4  ;;  %s5975_s7 = int_to_ptr.vmem [resolvable:$false] %s5974_s7 }
  0x7a   : > { %s5976_s1 = scalar_lea.vmem %s5975_s7, 2048  ;;  %p5977_p1 = scmp.lt.s32.totalorder %s6493_s25, %s5975_s7 }
  0x7b   : > { %p5972_p3 = pnand %p5970_p4, %p5956_p7  ;;  %p5978_p5 = scmp.lt.s32.totalorder %s5976_s1, %s5969_s15 }
  0x7d   : > { %p5973_p8 = pneg %p5972_p3  ;;  %p5979_p6 = por %p5978_p5, %p5977_p1 }
  0x7f   : > { %p5980_p2 = pnand %p5979_p6, %p5973_p8 }
  0x81   : > { %5983 = shalt.err (!%p5980_p2)
}
  0x82   : > { %s11522_s16 = smov 8   ;;  %s11523_s14 = smov 128  }
  0x83   : > { %5631 = dma.hbm_to_vmem [thread:$0]  (!%p6499_p0), %s6491_s27, 1024, %s6493_s25, %s6503_s10, %s11523_s14, %s11523_s14, %s11522_s16  }
  0x84   : > { %p11524_p8 = scmp.lt.s32.totalorder %s6472_s18, 3  ;;  %p11525_p1 = scmp.lt.s32.totalorder %s6478_s4, 3 }
  0x85   : > { %s129_s12 = sadd.s32 1, %s6124_s23  ;;  %p136_p9 = scmp.ne.s32.totalorder %s6124_s23, %s6120_s22 }
  0x86   : > { %s12780_s18 = smov (!%p11524_p8, %s6472_s18), 3  ;;  %s12782_s4 = smov (!%p11525_p1, %s6478_s4), 3 }
  0x87   : > { %s125_s28 = ssub.s32 %s12780_s18, %s12782_s4  ;;  %p142_p13 = scmp.ne.s32.totalorder %s6120_s22, %s6116_s21 }
  0x88   : > { %s126_s17 = sor.u32 %s125_s28, %s6448_s30  ;;  %p11526_p7 = scmp.eq.s32.totalorder %s6168_s19, 0 }
  0x89   : > { %p127_p12 = scmp.eq.s32.totalorder %s126_s17, 0  ;;  %p11528_p4 = scmp.eq.s32.totalorder %s6336_s20, 0 }
  0x8a   : > { %p6548_p11 = por %p136_p9, %p11526_p7  ;;  %s563_s27 = sand.u32 1, %s6124_s23  }
  0x8b   : > { %p6554_p3 = por %p142_p13, %p11528_p4  ;;  %s5151_s10 = sshll.u32 %s12780_s18, 3 }
  0x8c   : > { %s6560_s8 = scalar_select %p127_p12, %s6124_s23, %s129_s12  }
  0x8d   : > { %s11529_s25 = scalar_select %p6554_p3, 1, 0 }
  0x8e   : > { %s5149_s4 = sshll.u32 %s563_s27, 6  ;;  %s575_s0 = sadd.s32 %s5151_s10, %s6378_s24 }
  0x8f   : > { %s5153_s21 = sshll.u32 %s575_s0, 7  ;;  %s565_s7 = scalar_lea.vmem [#allocation9], %s5149_s4 }
  0x90   : > { %s6566_s3 = scalar_lea.hbm %s10848_s2, %s5153_s21  ;;  %s578_s1 = sshll.u32 %s565_s7, 4  ;;  %s6568_s1 = int_to_ptr.vmem [resolvable:$true] %s578_s1 }
  0x91   : > { %p11530_p0 = scmp.lt.s32.totalorder %s6168_s19, 4  ;;  %s5984_s24 = scalar_lea.hbm %s6566_s3, 1024 }
  0x92   : > { %p5985_p6 = scmp.ne.s32.totalorder %s6566_s3, %s5984_s24  ;;  %s5989_s17 = scalar_lea.hbm %s10848_s2, 8192 }
  0x93   : > { %p6574_p5 = pnand %p11530_p0, %p6548_p11  ;;  %p5990_p9 = scmp.lt.u32.totalorder %s6566_s3, %s10848_s2 }
  0x94   : > { %p5991_p13 = scmp.lt.u32.totalorder %s5989_s17, %s5984_s24  ;;  %p5993_p11 = scmp.lt.u32.totalorder %s5984_s24, %s6566_s3 }
  0x95   : > { %p5986_p2 = pneg %p6574_p5 }
  0x96   : > { %p5992_p7 = por %p5991_p13, %p5990_p9 }
  0x97   : > { %p5987_p8 = pnand %p5986_p2, %p5985_p6 }
  0x98   : > { %p5994_p12 = por %p5993_p11, %p5992_p7 }
  0x99   : > { %p5988_p1 = pneg %p5987_p8 }
  0x9b   : > { %p5995_p4 = pnand %p5994_p12, %p5988_p1 }
  0x9d   : > { %5998 = shalt.err (!%p5995_p4)
}
  0x9e   : > { %s5999_s10 = scalar_lea.vmem %s6568_s1, 1024  ;;  %s6174_s4 = smov [#allocation9]  }
  0x9f   : > { %p6000_p0 = scmp.ne.s32.totalorder %s6568_s1, %s5999_s10  ;;  %s6004_s0 = sshll.u32 %s6174_s4, 4  ;;  %s6005_s0 = int_to_ptr.vmem [resolvable:$false] %s6004_s0 }
  0xa0   : > { %s6006_s21 = scalar_lea.vmem %s6005_s0, 2048  ;;  %p6007_p3 = scmp.lt.s32.totalorder %s6568_s1, %s6005_s0 }
  0xa1   : > { %p6002_p6 = pnand %p6000_p0, %p5986_p2  ;;  %p6008_p9 = scmp.lt.s32.totalorder %s6006_s21, %s5999_s10 }
  0xa3   : > { %p6003_p8 = pneg %p6002_p6  ;;  %p6009_p13 = por %p6008_p9, %p6007_p3 }
  0xa5   : > { %p6010_p7 = pnand %p6009_p13, %p6003_p8 }
  0xa7   : > { %6013 = shalt.err (!%p6010_p7)
}
  0xa8   : > { %5637 = dma.hbm_to_vmem [thread:$0]  (!%p6574_p5), %s6566_s3, 1024, %s6568_s1, %s6401_s5, %s11523_s14, %s11523_s14, %s11522_s16  }
  0xa9   : > { %590 = sbr.rel (%p6436_p10) target bundleno = 1823 (0x71f), region = 80 }
  0xb0   : > { %s11532_s30 = sld [smem:[#allocation17_spill]]  ;;  %s11533_s15 = sld [smem:[#allocation27_spill]] }
  0xb6   : > { %s592_s7 = sand.u32 1, %s11532_s30   ;;  %p11534_p3 = scmp.ne.s32.totalorder %s11533_s15, 0 }
  0xb7   : > { %s5155_s24 = sshll.u32 %s592_s7, 6  ;;  %s593_s12 = scalar_lea.sflag [#allocation5], %s592_s7 }
  0xb8   : > { %s6610_s28 = scalar_lea.vmem [#allocation4], %s5155_s24 }
  0xb9   : > { %6099 = dma.done.wait (%p11534_p3), %s593_s12, 1024  }
  0xba   : > { %6101 = vsyncadd (%p11534_p3), %s593_s12, 4294966272  ;;  %s11535_s18 = sld [smem:[#allocation16_spill]]  ;;  %s11536_s17 = sld [smem:[#allocation23_spill]] }
  0xbb   : > { %s601_s5 = sand.u32 1, %s6336_s20  }
  0xbc   : > { %s602_s14 = scalar_lea.sflag [#allocation8], %s601_s5 }
  0xc0   : > { %s603_s16 = sand.u32 1, %s11535_s18   ;;  %p11537_p10 = scmp.ne.s32.totalorder %s11536_s17, 0 }
  0xc1   : > { %s6620_s11 = sshll.u32 %s603_s16, 7 }
  0xc2   : > { %s6623_s3 = scalar_lea.vmem [#allocation7], %s6620_s11 }
  0xc3   : > { %6103 = dma.done.wait (%p11537_p10), %s602_s14, 2048  }
  0xc4   : > { %6105 = vsyncadd (%p11537_p10), %s602_s14, 4294965248  ;;  %s612_s1 = sand.u32 1, %s6120_s22   ;;  %p11538_p5 = scmp.ne.s32.totalorder %s11529_s25, 0 }
  0xc5   : > { %s5157_s6 = sshll.u32 %s612_s1, 6 }
  0xc6   : > { %s6630_s27 = scalar_lea.vmem [#allocation9], %s5157_s6 }
  0xc7   : > { %6107 = dma.done.wait (%p11538_p5), %s602_s14, 1024  }
  0xc8   : > { %6109 = vsyncadd (%p11538_p5), %s602_s14, 4294966272  ;;  %s11539_s20 = sld [smem:[#allocation18_spill]]  ;;  %vm704_vm0 = vcmask 261120   ;;  %vm706_vm1 = vcmask 254976   ;;  %v6175_v0 = vmov 0.0   ;;  %s11540_s25 = sld [smem:[#allocation19_spill]] }
  0xc9   : > { %705 = vst.msk [vmem:[#allocation2] sm:$0xff] %vm704_vm0, %v6175_v0  ;;  %708 = vst.msk [vmem:[#allocation2 + $0x10] sm:$0xff] %vm704_vm0, %v6175_v0  ;;  %vm891_vm2 = vcmask 130048   ;;  %s11541_s7 = sld [smem:[#allocation139_spill]]  ;;  %s11542_s5 = sld [smem:[#allocation140_spill]]  ;;  %v866_v6 = vld [vmem:[%s6623_s3] sm:$0xff] }
  0xca   : > { %707 = vst.msk [vmem:[#allocation2 + $0x8] sm:$0x3] %vm706_vm1, %v6175_v0  ;;  %709 = vst.msk [vmem:[#allocation2 + $0x18] sm:$0x3] %vm706_vm1, %v6175_v0  ;;  %5400 = vmatprep.mubr.msk.f32.mxu0 %vm891_vm2, %v866_v6  ;;  %5428 = vmatprep.mubr.msk.f32.mxu1 %vm891_vm2, %v866_v6  ;;  %v867_v8 = vld [vmem:[%s6623_s3 + $0x8] sm:$0xff]  ;;  %v868_v9 = vld [vmem:[%s6623_s3 + $0x10] sm:$0xff] }
  0xcb   : > { %710 = vst.msk [vmem:[#allocation2 + $0x20] sm:$0xff] %vm704_vm0, %v6175_v0  ;;  %712 = vst.msk [vmem:[#allocation2 + $0x30] sm:$0xff] %vm704_vm0, %v6175_v0  ;;  %v869_v10 = vld [vmem:[%s6623_s3 + $0x18] sm:$0xff]  ;;  %v870_v11 = vld [vmem:[%s6623_s3 + $0x20] sm:$0xff]  ;;  %s11544_s15 = sld [smem:[#allocation141_spill]]  ;;  %s11545_s12 = sld [smem:[#allocation142_spill]] }
  0xcc   : > { %711 = vst.msk [vmem:[#allocation2 + $0x28] sm:$0x3] %vm706_vm1, %v6175_v0  ;;  %713 = vst.msk [vmem:[#allocation2 + $0x38] sm:$0x3] %vm706_vm1, %v6175_v0  ;;  %v871_v12 = vld [vmem:[%s6623_s3 + $0x28] sm:$0xff]  ;;  %v872_v13 = vld [vmem:[%s6623_s3 + $0x30] sm:$0xff] }
  0xcd   : > { %714 = vst.msk [vmem:[#allocation2 + $0x40] sm:$0xff] %vm704_vm0, %v6175_v0  ;;  %716 = vst.msk [vmem:[#allocation2 + $0x50] sm:$0xff] %vm704_vm0, %v6175_v0  ;;  %v873_v14 = vld [vmem:[%s6623_s3 + $0x38] sm:$0xff]  ;;  %v874_v15 = vld [vmem:[%s6623_s3 + $0x40] sm:$0xff] }
  0xce   : > { %s5159_s10 = sshll.u32 %s11539_s20, 1  ;;  %715 = vst.msk [vmem:[#allocation2 + $0x48] sm:$0x3] %vm706_vm1, %v6175_v0  ;;  %717 = vst.msk [vmem:[#allocation2 + $0x58] sm:$0x3] %vm706_vm1, %v6175_v0  ;;  %p694_p2 = scmp.lt.s32.totalorder %s11540_s25, 1 }
  0xcf   : > { %718 = vst.msk [vmem:[#allocation2 + $0x60] sm:$0xff] %vm704_vm0, %v6175_v0  ;;  %720 = vst.msk [vmem:[#allocation2 + $0x70] sm:$0xff] %vm704_vm0, %v6175_v0  ;;  %p696_p1 = scmp.lt.s32.totalorder %s5159_s10, 3  ;;  %v882_v1 = vld [vmem:[%s11541_s7] sm:$0xff]  ;;  %v883_v2 = vld [vmem:[%s11541_s7 + $0x8] sm:$0xff]  ;;  %p5197_p11 = scmp.le.s32.totalorder %s11539_s20, 0 }
  0xd0   : > { %719 = vst.msk [vmem:[#allocation2 + $0x68] sm:$0x3] %vm706_vm1, %v6175_v0  ;;  %721 = vst.msk [vmem:[#allocation2 + $0x78] sm:$0x3] %vm706_vm1, %v6175_v0  ;;  %s12784_s25 = smov (!%p694_p2, %s11540_s25), 1  ;;  %v1085_v3 = vld [vmem:[%s11542_s5] sm:$0xff]  ;;  %v5580_v4 = vpack.c.bf16 %v883_v2, %v882_v1 }
  0xd1   : > { %722 = vst.msk [vmem:[#allocation2 + $0x80] sm:$0xff] %vm704_vm0, %v6175_v0  ;;  %724 = vst.msk [vmem:[#allocation2 + $0x90] sm:$0xff] %vm704_vm0, %v6175_v0  ;;  %s12786_s10 = smov (!%p696_p1, %s5159_s10), 3  ;;  %s5161_s4 = sshll.u32 %s12784_s25, 5  ;;  %v1086_v5 = vld [vmem:[%s11542_s5 + $0x8] sm:$0xff]  ;;  %v876_v17 = vld [vmem:[%s6623_s3 + $0x50] sm:$0xff] }
  0xd2   : > { %723 = vst.msk [vmem:[#allocation2 + $0x88] sm:$0x3] %vm706_vm1, %v6175_v0  ;;  %725 = vst.msk [vmem:[#allocation2 + $0x98] sm:$0x3] %vm706_vm1, %v6175_v0  ;;  %s5160_s0 = sshll.u32 %s12786_s10, 3  ;;  %v5584_v7 = vpack.c.bf16 %v1086_v5, %v1085_v3  ;;  %5581 = vmatprep.subr.bf16.mxu0 %v5580_v4  ;;  %v875_v16 = vld [vmem:[%s6623_s3 + $0x48] sm:$0xff] }
  0xd3   : > { %726 = vst.msk [vmem:[#allocation2 + $0xa0] sm:$0xff] %vm704_vm0, %v6175_v0  ;;  %744 = vst.msk [vmem:[#allocation2 + $0x130] sm:$0xff] %vm704_vm0, %v6175_v0  ;;  %s700_s21 = sadd.s32 %s5161_s4, %s5160_s0  ;;  %s11543_s4 = sld [smem:[#allocation152_spill]]  ;;  %5583 = vmatpush3.bf16.msra.mxu0 %v5580_v4  ;;  %v877_v18 = vld [vmem:[%s6623_s3 + $0x58] sm:$0xff]  ;;  %v878_v19 = vld [vmem:[%s6623_s3 + $0x60] sm:$0xff] }
  0xd4   : > { %727 = vst.msk [vmem:[#allocation2 + $0xa8] sm:$0x3] %vm706_vm1, %v6175_v0  ;;  %745 = vst.msk [vmem:[#allocation2 + $0x138] sm:$0x3] %vm706_vm1, %v6175_v0  ;;  %s5162_s14 = sshll.u32 %s700_s21, 3  ;;  %5585 = vmatprep.subr.bf16.mxu1 %v5584_v7  ;;  %v879_v20 = vld [vmem:[%s6623_s3 + $0x68] sm:$0xff] }
  0xd5   : > { %746 = vst.msk [vmem:[#allocation2 + $0x140] sm:$0xff] %vm704_vm0, %v6175_v0  ;;  %764 = vst.msk [vmem:[#allocation2 + $0x1d0] sm:$0xff] %vm704_vm0, %v6175_v0  ;;  %5587 = vmatpush3.bf16.msra.mxu1 %v5584_v7  ;;  %v880_v21 = vld [vmem:[%s6623_s3 + $0x70] sm:$0xff]  ;;  %v881_v22 = vld [vmem:[%s6623_s3 + $0x78] sm:$0xff]  ;;  %s7103_s3 = scalar_lea.vmem [#allocation10], %s6620_s11  ;;  %s11546_s5 = sld [smem:[#allocation139_spill]] (!%p5197_p11) }
  0xd6   : > { %747 = vst.msk [vmem:[#allocation2 + $0x148] sm:$0x3] %vm706_vm1, %v6175_v0  ;;  %765 = vst.msk [vmem:[#allocation2 + $0x1d8] sm:$0x3] %vm706_vm1, %v6175_v0  ;;  %5401 = vmatmul.mubr.msk.f32.vlgmr.msra.gmra.mrb[0].mxu0 %vm891_vm2, %v867_v8  ;;  %v7031_v23 = vld [vmem:[%s11544_s15] ss:$0 sm:$0xff] }
  0xd7   : > { %766 = vst.msk [vmem:[#allocation2 + $0x1e0] sm:$0xff] %vm704_vm0, %v6175_v0  ;;  %768 = vst.msk [vmem:[#allocation2 + $0x1f0] sm:$0xff] %vm704_vm0, %v6175_v0  ;;  %5403 = vmatprep.mubr.msk.f32.mxu0 %vm891_vm2, %v868_v9  ;;  %v7036_v24 = vld [vmem:[%s11545_s12] ss:$0 sm:$0xff]  ;;  %s11547_s25 = sld [smem:[#allocation140_spill]] (!%p5197_p11)  ;;  %s11548_s30 = sld [smem:[#allocation141_spill]] (!%p5197_p11) }
  0xd8   : > { %767 = vst.msk [vmem:[#allocation2 + $0x1e8] sm:$0x3] %vm706_vm1, %v6175_v0  ;;  %769 = vst.msk [vmem:[#allocation2 + $0x1f8] sm:$0x3] %vm706_vm1, %v6175_v0  ;;  %5429 = vmatmul.mubr.msk.f32.vlgmr.msra.gmra.mrb[0].mxu1 %vm891_vm2, %v867_v8  ;;  %s11549_s24 = sld [smem:[#allocation142_spill]] (!%p5197_p11) }
  0xd9   : > { %770 = vst.msk [vmem:[#allocation2 + $0x200] sm:$0xff] %vm704_vm0, %v6175_v0  ;;  %772 = vst.msk [vmem:[#allocation2 + $0x210] sm:$0xff] %vm704_vm0, %v6175_v0  ;;  %s6979_s0 = scalar_lea.vmem %s11543_s4, %s5162_s14  ;;  %5431 = vmatprep.mubr.msk.f32.mxu1 %vm891_vm2, %v868_v9 }
  0xda   : > { %771 = vst.msk [vmem:[#allocation2 + $0x208] sm:$0x3] %vm706_vm1, %v6175_v0  ;;  %773 = vst.msk [vmem:[#allocation2 + $0x218] sm:$0x3] %vm706_vm1, %v6175_v0  ;;  %5404 = vmatmul.mubr.msk.f32.gmra.mrb[2].mxu0 %vm891_vm2, %v869_v10 }
  0xdb   : > { %774 = vst.msk [vmem:[#allocation2 + $0x220] sm:$0xff] %vm704_vm0, %v6175_v0  ;;  %776 = vst.msk [vmem:[#allocation2 + $0x230] sm:$0xff] %vm704_vm0, %v6175_v0  ;;  %5406 = vmatprep.mubr.msk.f32.mxu0 %vm891_vm2, %v870_v11 }
  0xdc   : > { %775 = vst.msk [vmem:[#allocation2 + $0x228] sm:$0x3] %vm706_vm1, %v6175_v0  ;;  %777 = vst.msk [vmem:[#allocation2 + $0x238] sm:$0x3] %vm706_vm1, %v6175_v0  ;;  %5432 = vmatmul.mubr.msk.f32.gmra.mrb[2].mxu1 %vm891_vm2, %v869_v10 }
  0xdd   : > { %778 = vst.msk [vmem:[#allocation2 + $0x240] sm:$0xff] %vm704_vm0, %v6175_v0  ;;  %780 = vst.msk [vmem:[#allocation2 + $0x250] sm:$0xff] %vm704_vm0, %v6175_v0  ;;  %5434 = vmatprep.mubr.msk.f32.mxu1 %vm891_vm2, %v870_v11 }
  0xde   : > { %779 = vst.msk [vmem:[#allocation2 + $0x248] sm:$0x3] %vm706_vm1, %v6175_v0  ;;  %781 = vst.msk [vmem:[#allocation2 + $0x258] sm:$0x3] %vm706_vm1, %v6175_v0  ;;  %5407 = vmatmul.mubr.msk.f32.gmra.mrb[4].mxu0 %vm891_vm2, %v871_v12 }
  0xdf   : > { %782 = vst.msk [vmem:[#allocation2 + $0x260] sm:$0xff] %vm704_vm0, %v6175_v0  ;;  %784 = vst.msk [vmem:[#allocation2 + $0x270] sm:$0xff] %vm704_vm0, %v6175_v0  ;;  %5409 = vmatprep.mubr.msk.f32.mxu0 %vm891_vm2, %v872_v13 }
  0xe0   : > { %783 = vst.msk [vmem:[#allocation2 + $0x268] sm:$0x3] %vm706_vm1, %v6175_v0  ;;  %785 = vst.msk [vmem:[#allocation2 + $0x278] sm:$0x3] %vm706_vm1, %v6175_v0  ;;  %5435 = vmatmul.mubr.msk.f32.gmra.mrb[4].mxu1 %vm891_vm2, %v871_v12 }
  0xe1   : > { %786 = vst.msk [vmem:[#allocation3] sm:$0xff] %vm704_vm0, %v6175_v0  ;;  %788 = vst.msk [vmem:[#allocation3 + $0x10] sm:$0xff] %vm704_vm0, %v6175_v0  ;;  %5437 = vmatprep.mubr.msk.f32.mxu1 %vm891_vm2, %v872_v13 }
  0xe2   : > { %787 = vst.msk [vmem:[#allocation3 + $0x8] sm:$0x3] %vm706_vm1, %v6175_v0  ;;  %789 = vst.msk [vmem:[#allocation3 + $0x18] sm:$0x3] %vm706_vm1, %v6175_v0  ;;  %5410 = vmatmul.mubr.msk.f32.gmra.mrb[6].mxu0 %vm891_vm2, %v873_v14 }
  0xe3   : > { %790 = vst.msk [vmem:[#allocation3 + $0x20] sm:$0xff] %vm704_vm0, %v6175_v0  ;;  %792 = vst.msk [vmem:[#allocation3 + $0x30] sm:$0xff] %vm704_vm0, %v6175_v0  ;;  %5412 = vmatprep.mubr.msk.f32.mxu0 %vm891_vm2, %v874_v15 }
  0xe4   : > { %791 = vst.msk [vmem:[#allocation3 + $0x28] sm:$0x3] %vm706_vm1, %v6175_v0  ;;  %793 = vst.msk [vmem:[#allocation3 + $0x38] sm:$0x3] %vm706_vm1, %v6175_v0  ;;  %5438 = vmatmul.mubr.msk.f32.gmra.mrb[6].mxu1 %vm891_vm2, %v873_v14 }
  0xe5   : > { %794 = vst.msk [vmem:[#allocation3 + $0x40] sm:$0xff] %vm704_vm0, %v6175_v0  ;;  %796 = vst.msk [vmem:[#allocation3 + $0x50] sm:$0xff] %vm704_vm0, %v6175_v0  ;;  %5440 = vmatprep.mubr.msk.f32.mxu1 %vm891_vm2, %v874_v15 }
  0xe6   : > { %795 = vst.msk [vmem:[#allocation3 + $0x48] sm:$0x3] %vm706_vm1, %v6175_v0  ;;  %797 = vst.msk [vmem:[#allocation3 + $0x58] sm:$0x3] %vm706_vm1, %v6175_v0  ;;  %5413 = vmatmul.mubr.msk.f32.gmra.mrb[8].mxu0 %vm891_vm2, %v875_v16 }
  0xe7   : > { %798 = vst.msk [vmem:[#allocation3 + $0x60] sm:$0xff] %vm704_vm0, %v6175_v0  ;;  %800 = vst.msk [vmem:[#allocation3 + $0x70] sm:$0xff] %vm704_vm0, %v6175_v0  ;;  %5415 = vmatprep.mubr.msk.f32.mxu0 %vm891_vm2, %v876_v17 }
  0xe8   : > { %799 = vst.msk [vmem:[#allocation3 + $0x68] sm:$0x3] %vm706_vm1, %v6175_v0  ;;  %801 = vst.msk [vmem:[#allocation3 + $0x78] sm:$0x3] %vm706_vm1, %v6175_v0  ;;  %5441 = vmatmul.mubr.msk.f32.gmra.mrb[8].mxu1 %vm891_vm2, %v875_v16 }
  0xe9   : > { %802 = vst.msk [vmem:[#allocation3 + $0x80] sm:$0xff] %vm704_vm0, %v6175_v0  ;;  %804 = vst.msk [vmem:[#allocation3 + $0x90] sm:$0xff] %vm704_vm0, %v6175_v0  ;;  %5443 = vmatprep.mubr.msk.f32.mxu1 %vm891_vm2, %v876_v17 }
  0xea   : > { %803 = vst.msk [vmem:[#allocation3 + $0x88] sm:$0x3] %vm706_vm1, %v6175_v0  ;;  %805 = vst.msk [vmem:[#allocation3 + $0x98] sm:$0x3] %vm706_vm1, %v6175_v0  ;;  %5416 = vmatmul.mubr.msk.f32.gmra.mrb[10].mxu0 %vm891_vm2, %v877_v18 }
  0xeb   : > { %806 = vst.msk [vmem:[#allocation3 + $0xa0] sm:$0xff] %vm704_vm0, %v6175_v0  ;;  %824 = vst.msk [vmem:[#allocation3 + $0x130] sm:$0xff] %vm704_vm0, %v6175_v0  ;;  %5418 = vmatprep.mubr.msk.f32.mxu0 %vm891_vm2, %v878_v19 }
  0xec   : > { %807 = vst.msk [vmem:[#allocation3 + $0xa8] sm:$0x3] %vm706_vm1, %v6175_v0  ;;  %825 = vst.msk [vmem:[#allocation3 + $0x138] sm:$0x3] %vm706_vm1, %v6175_v0  ;;  %5444 = vmatmul.mubr.msk.f32.gmra.mrb[10].mxu1 %vm891_vm2, %v877_v18 }
  0xed   : > { %826 = vst.msk [vmem:[#allocation3 + $0x140] sm:$0xff] %vm704_vm0, %v6175_v0  ;;  %844 = vst.msk [vmem:[#allocation3 + $0x1d0] sm:$0xff] %vm704_vm0, %v6175_v0  ;;  %5446 = vmatprep.mubr.msk.f32.mxu1 %vm891_vm2, %v878_v19 }
  0xee   : > { %827 = vst.msk [vmem:[#allocation3 + $0x148] sm:$0x3] %vm706_vm1, %v6175_v0  ;;  %845 = vst.msk [vmem:[#allocation3 + $0x1d8] sm:$0x3] %vm706_vm1, %v6175_v0  ;;  %5419 = vmatmul.mubr.msk.f32.gmra.mrb[12].mxu0 %vm891_vm2, %v879_v20 }
  0xef   : > { %846 = vst.msk [vmem:[#allocation3 + $0x1e0] sm:$0xff] %vm704_vm0, %v6175_v0  ;;  %848 = vst.msk [vmem:[#allocation3 + $0x1f0] sm:$0xff] %vm704_vm0, %v6175_v0  ;;  %5421 = vmatprep.mubr.msk.f32.mxu0 %vm891_vm2, %v880_v21 }
  0xf0   : > { %847 = vst.msk [vmem:[#allocation3 + $0x1e8] sm:$0x3] %vm706_vm1, %v6175_v0  ;;  %849 = vst.msk [vmem:[#allocation3 + $0x1f8] sm:$0x3] %vm706_vm1, %v6175_v0  ;;  %5447 = vmatmul.mubr.msk.f32.gmra.mrb[12].mxu1 %vm891_vm2, %v879_v20 }
  0xf1   : > { %850 = vst.msk [vmem:[#allocation3 + $0x200] sm:$0xff] %vm704_vm0, %v6175_v0  ;;  %852 = vst.msk [vmem:[#allocation3 + $0x210] sm:$0xff] %vm704_vm0, %v6175_v0  ;;  %5449 = vmatprep.mubr.msk.f32.mxu1 %vm891_vm2, %v880_v21 }
  0xf2   : > { %851 = vst.msk [vmem:[#allocation3 + $0x208] sm:$0x3] %vm706_vm1, %v6175_v0  ;;  %853 = vst.msk [vmem:[#allocation3 + $0x218] sm:$0x3] %vm706_vm1, %v6175_v0  ;;  %5422 = vmatmul.mubr.msk.f32.gmra.mrb[14].mxu0 %vm891_vm2, %v881_v22 }
  0xf3   : > { %854 = vst.msk [vmem:[#allocation3 + $0x220] sm:$0xff] %vm704_vm0, %v6175_v0  ;;  %856 = vst.msk [vmem:[#allocation3 + $0x230] sm:$0xff] %vm704_vm0, %v6175_v0 }
  0xf4   : > { %855 = vst.msk [vmem:[#allocation3 + $0x228] sm:$0x3] %vm706_vm1, %v6175_v0  ;;  %857 = vst.msk [vmem:[#allocation3 + $0x238] sm:$0x3] %vm706_vm1, %v6175_v0  ;;  %5450 = vmatmul.mubr.msk.f32.gmra.mrb[14].mxu1 %vm891_vm2, %v881_v22 }
  0xf5   : > { %858 = vst.msk [vmem:[#allocation3 + $0x240] sm:$0xff] %vm704_vm0, %v6175_v0  ;;  %860 = vst.msk [vmem:[#allocation3 + $0x250] sm:$0xff] %vm704_vm0, %v6175_v0 }
  0xf6   : > { %859 = vst.msk [vmem:[#allocation3 + $0x248] sm:$0x3] %vm706_vm1, %v6175_v0  ;;  %861 = vst.msk [vmem:[#allocation3 + $0x258] sm:$0x3] %vm706_vm1, %v6175_v0 }
  0xf7   : > { %862 = vst.msk [vmem:[#allocation3 + $0x260] sm:$0xff] %vm704_vm0, %v6175_v0  ;;  %864 = vst.msk [vmem:[#allocation3 + $0x270] sm:$0xff] %vm704_vm0, %v6175_v0 }
  0xf8   : > { %863 = vst.msk [vmem:[#allocation3 + $0x268] sm:$0x3] %vm706_vm1, %v6175_v0  ;;  %865 = vst.msk [vmem:[#allocation3 + $0x278] sm:$0x3] %vm706_vm1, %v6175_v0 }
  0xf9   : > { %728 = vst.msk [vmem:[#allocation2 + $0xb0] sm:$0xff] %vm704_vm0, %v6175_v0  ;;  %730 = vst.msk [vmem:[#allocation2 + $0xc0] sm:$0xff] %vm704_vm0, %v6175_v0 }
  0xfa   : > { %729 = vst.msk [vmem:[#allocation2 + $0xb8] sm:$0x3] %vm706_vm1, %v6175_v0  ;;  %731 = vst.msk [vmem:[#allocation2 + $0xc8] sm:$0x3] %vm706_vm1, %v6175_v0 }
  0xfb   : > { %732 = vst.msk [vmem:[#allocation2 + $0xd0] sm:$0xff] %vm704_vm0, %v6175_v0  ;;  %734 = vst.msk [vmem:[#allocation2 + $0xe0] sm:$0xff] %vm704_vm0, %v6175_v0 }
  0xfc   : > { %733 = vst.msk [vmem:[#allocation2 + $0xd8] sm:$0x3] %vm706_vm1, %v6175_v0  ;;  %735 = vst.msk [vmem:[#allocation2 + $0xe8] sm:$0x3] %vm706_vm1, %v6175_v0 }
  0xfd   : > { %736 = vst.msk [vmem:[#allocation2 + $0xf0] sm:$0xff] %vm704_vm0, %v6175_v0  ;;  %738 = vst.msk [vmem:[#allocation2 + $0x100] sm:$0xff] %vm704_vm0, %v6175_v0 }
  0xfe   : > { %737 = vst.msk [vmem:[#allocation2 + $0xf8] sm:$0x3] %vm706_vm1, %v6175_v0  ;;  %739 = vst.msk [vmem:[#allocation2 + $0x108] sm:$0x3] %vm706_vm1, %v6175_v0 }
  0xff   : > { %740 = vst.msk [vmem:[#allocation2 + $0x110] sm:$0xff] %vm704_vm0, %v6175_v0  ;;  %742 = vst.msk [vmem:[#allocation2 + $0x120] sm:$0xff] %vm704_vm0, %v6175_v0 }
 0x100   : > { %741 = vst.msk [vmem:[#allocation2 + $0x118] sm:$0x3] %vm706_vm1, %v6175_v0  ;;  %743 = vst.msk [vmem:[#allocation2 + $0x128] sm:$0x3] %vm706_vm1, %v6175_v0 }
 0x101   : > { %748 = vst.msk [vmem:[#allocation2 + $0x150] sm:$0xff] %vm704_vm0, %v6175_v0  ;;  %750 = vst.msk [vmem:[#allocation2 + $0x160] sm:$0xff] %vm704_vm0, %v6175_v0 }
 0x102   : > { %749 = vst.msk [vmem:[#allocation2 + $0x158] sm:$0x3] %vm706_vm1, %v6175_v0  ;;  %751 = vst.msk [vmem:[#allocation2 + $0x168] sm:$0x3] %vm706_vm1, %v6175_v0 }
 0x103   : > { %752 = vst.msk [vmem:[#allocation2 + $0x170] sm:$0xff] %vm704_vm0, %v6175_v0  ;;  %754 = vst.msk [vmem:[#allocation2 + $0x180] sm:$0xff] %vm704_vm0, %v6175_v0 }
 0x104   : > { %753 = vst.msk [vmem:[#allocation2 + $0x178] sm:$0x3] %vm706_vm1, %v6175_v0  ;;  %755 = vst.msk [vmem:[#allocation2 + $0x188] sm:$0x3] %vm706_vm1, %v6175_v0 }
 0x105   : > { %756 = vst.msk [vmem:[#allocation2 + $0x190] sm:$0xff] %vm704_vm0, %v6175_v0  ;;  %758 = vst.msk [vmem:[#allocation2 + $0x1a0] sm:$0xff] %vm704_vm0, %v6175_v0 }
 0x106   : > { %757 = vst.msk [vmem:[#allocation2 + $0x198] sm:$0x3] %vm706_vm1, %v6175_v0  ;;  %759 = vst.msk [vmem:[#allocation2 + $0x1a8] sm:$0x3] %vm706_vm1, %v6175_v0 }
 0x107   : > { %760 = vst.msk [vmem:[#allocation2 + $0x1b0] sm:$0xff] %vm704_vm0, %v6175_v0  ;;  %762 = vst.msk [vmem:[#allocation2 + $0x1c0] sm:$0xff] %vm704_vm0, %v6175_v0 }
 0x108   : > { %761 = vst.msk [vmem:[#allocation2 + $0x1b8] sm:$0x3] %vm706_vm1, %v6175_v0  ;;  %763 = vst.msk [vmem:[#allocation2 + $0x1c8] sm:$0x3] %vm706_vm1, %v6175_v0 }
 0x109   : > { %808 = vst.msk [vmem:[#allocation3 + $0xb0] sm:$0xff] %vm704_vm0, %v6175_v0  ;;  %810 = vst.msk [vmem:[#allocation3 + $0xc0] sm:$0xff] %vm704_vm0, %v6175_v0 }
 0x10a   : > { %809 = vst.msk [vmem:[#allocation3 + $0xb8] sm:$0x3] %vm706_vm1, %v6175_v0  ;;  %811 = vst.msk [vmem:[#allocation3 + $0xc8] sm:$0x3] %vm706_vm1, %v6175_v0 }
 0x10b   : > { %812 = vst.msk [vmem:[#allocation3 + $0xd0] sm:$0xff] %vm704_vm0, %v6175_v0  ;;  %814 = vst.msk [vmem:[#allocation3 + $0xe0] sm:$0xff] %vm704_vm0, %v6175_v0 }
 0x10c   : > { %813 = vst.msk [vmem:[#allocation3 + $0xd8] sm:$0x3] %vm706_vm1, %v6175_v0  ;;  %815 = vst.msk [vmem:[#allocation3 + $0xe8] sm:$0x3] %vm706_vm1, %v6175_v0 }
 0x10d   : > { %816 = vst.msk [vmem:[#allocation3 + $0xf0] sm:$0xff] %vm704_vm0, %v6175_v0  ;;  %818 = vst.msk [vmem:[#allocation3 + $0x100] sm:$0xff] %vm704_vm0, %v6175_v0 }
 0x10e   : > { %817 = vst.msk [vmem:[#allocation3 + $0xf8] sm:$0x3] %vm706_vm1, %v6175_v0  ;;  %819 = vst.msk [vmem:[#allocation3 + $0x108] sm:$0x3] %vm706_vm1, %v6175_v0 }
 0x10f   : > { %820 = vst.msk [vmem:[#allocation3 + $0x110] sm:$0xff] %vm704_vm0, %v6175_v0  ;;  %822 = vst.msk [vmem:[#allocation3 + $0x120] sm:$0xff] %vm704_vm0, %v6175_v0 }
 0x110   : > { %821 = vst.msk [vmem:[#allocation3 + $0x118] sm:$0x3] %vm706_vm1, %v6175_v0  ;;  %823 = vst.msk [vmem:[#allocation3 + $0x128] sm:$0x3] %vm706_vm1, %v6175_v0 }
 0x111   : > { %828 = vst.msk [vmem:[#allocation3 + $0x150] sm:$0xff] %vm704_vm0, %v6175_v0  ;;  %830 = vst.msk [vmem:[#allocation3 + $0x160] sm:$0xff] %vm704_vm0, %v6175_v0 }
 0x112   : > { %829 = vst.msk [vmem:[#allocation3 + $0x158] sm:$0x3] %vm706_vm1, %v6175_v0  ;;  %831 = vst.msk [vmem:[#allocation3 + $0x168] sm:$0x3] %vm706_vm1, %v6175_v0 }
 0x113   : > { %832 = vst.msk [vmem:[#allocation3 + $0x170] sm:$0xff] %vm704_vm0, %v6175_v0  ;;  %834 = vst.msk [vmem:[#allocation3 + $0x180] sm:$0xff] %vm704_vm0, %v6175_v0 }
 0x114   : > { %833 = vst.msk [vmem:[#allocation3 + $0x178] sm:$0x3] %vm706_vm1, %v6175_v0  ;;  %835 = vst.msk [vmem:[#allocation3 + $0x188] sm:$0x3] %vm706_vm1, %v6175_v0 }
 0x115   : > { %836 = vst.msk [vmem:[#allocation3 + $0x190] sm:$0xff] %vm704_vm0, %v6175_v0  ;;  %838 = vst.msk [vmem:[#allocation3 + $0x1a0] sm:$0xff] %vm704_vm0, %v6175_v0 }
 0x116   : > { %837 = vst.msk [vmem:[#allocation3 + $0x198] sm:$0x3] %vm706_vm1, %v6175_v0  ;;  %839 = vst.msk [vmem:[#allocation3 + $0x1a8] sm:$0x3] %vm706_vm1, %v6175_v0 }
 0x117   : > { %840 = vst.msk [vmem:[#allocation3 + $0x1b0] sm:$0xff] %vm704_vm0, %v6175_v0  ;;  %842 = vst.msk [vmem:[#allocation3 + $0x1c0] sm:$0xff] %vm704_vm0, %v6175_v0 }
 0x118   : > { %841 = vst.msk [vmem:[#allocation3 + $0x1b8] sm:$0x3] %vm706_vm1, %v6175_v0  ;;  %843 = vst.msk [vmem:[#allocation3 + $0x1c8] sm:$0x3] %vm706_vm1, %v6175_v0 }
 0x1a9   : > { %v5402_v25 = vpop.f32.mrb[0].mxu0 }
 0x1aa   : > { %v1012_v26 = vadd.f32 %v5402_v25, %v7031_v23  ;;  %v1006_v28 = vpop.f32.mrb[1].mxu0 }
 0x1ab   : > { %v5430_v27 = vpop.f32.mrb[0].mxu1  ;;  %v1007_v30 = vadd.f32 %v7031_v23, %v1006_v28 }
 0x1ac   : > { %v1166_v29 = vadd.f32 %v5430_v27, %v7036_v24  ;;  %v1160_v31 = vpop.f32.mrb[1].mxu1  ;;  %1241 = vst.msk [vmem:[#allocation2 + $0xc1] sm:$0xff] %vm704_vm0, %v1012_v26  ;;  %v1423_v27 = vld [vmem:[%s11547_s25] sm:$0xff] (!%p5197_p11) }
 0x1ad   : > { %v1161_v32 = vadd.f32 %v7036_v24, %v1160_v31  ;;  %1240 = vst.msk [vmem:[#allocation2 + $0xb1] sm:$0xff] %vm704_vm0, %v1007_v30  ;;  %v5405_v33 = vpop.f32.mrb[2].mxu0  ;;  %v1277_v30 = vld [vmem:[%s6610_s28] sm:$0xff] (!%p5197_p11) }
 0x1ae   : > { %1258 = vst.msk [vmem:[#allocation3 + $0xc1] sm:$0xff] %vm704_vm0, %v1166_v29  ;;  %v1022_v34 = vadd.f32 %v5405_v33, %v7031_v23  ;;  %v1016_v36 = vpop.f32.mrb[3].mxu0  ;;  %v1424_v29 = vld [vmem:[%s11547_s25 + $0x8] sm:$0xff] (!%p5197_p11)  ;;  %5456 = vmatprep.mubr.msk.f32.mxu0 (!%p5197_p11), %vm891_vm2, %v1277_v30  ;;  %5472 = vmatprep.mubr.msk.f32.mxu1 (!%p5197_p11), %vm891_vm2, %v1277_v30  ;;  %v1279_v33 = vld [vmem:[%s6610_s28 + $0x10] sm:$0xff] (!%p5197_p11) }
 0x1af   : > { %1257 = vst.msk [vmem:[#allocation3 + $0xb1] sm:$0xff] %vm704_vm0, %v1161_v32  ;;  %v5433_v35 = vpop.f32.mrb[2].mxu1  ;;  %v1017_v38 = vadd.f32 %v7031_v23, %v1016_v36  ;;  %v5592_v31 = vpack.c.bf16 (!%p5197_p11), %v1424_v29, %v1423_v27  ;;  %v1278_v32 = vld [vmem:[%s6610_s28 + $0x8] sm:$0xff] (!%p5197_p11) }
 0x1b0   : > { %v1176_v37 = vadd.f32 %v5433_v35, %v7036_v24  ;;  %v1170_v39 = vpop.f32.mrb[3].mxu1  ;;  %1243 = vst.msk [vmem:[#allocation2 + $0xe1] sm:$0xff] %vm704_vm0, %v1022_v34  ;;  %v1280_v34 = vld [vmem:[%s6610_s28 + $0x18] sm:$0xff] (!%p5197_p11)  ;;  %v1281_v35 = vld [vmem:[%s6610_s28 + $0x20] sm:$0xff] (!%p5197_p11)  ;;  %v1282_v36 = vld [vmem:[%s6610_s28 + $0x28] sm:$0xff] (!%p5197_p11) }
 0x1b1   : > { %v1171_v40 = vadd.f32 %v7036_v24, %v1170_v39  ;;  %1242 = vst.msk [vmem:[#allocation2 + $0xd1] sm:$0xff] %vm704_vm0, %v1017_v38  ;;  %v5408_v41 = vpop.f32.mrb[4].mxu0  ;;  %5593 = vmatprep.subr.bf16.mxu1 (!%p5197_p11), %v5592_v31  ;;  %v1284_v38 = vld [vmem:[%s6610_s28 + $0x38] sm:$0xff] (!%p5197_p11)  ;;  %v5198_v39 = vld [vmem:[%s11548_s30] ss:$0 sm:$0xff] (!%p5197_p11) }
 0x1b2   : > { %1260 = vst.msk [vmem:[#allocation3 + $0xe1] sm:$0xff] %vm704_vm0, %v1176_v37  ;;  %v1032_v42 = vadd.f32 %v5408_v41, %v7031_v23  ;;  %v1026_v44 = vpop.f32.mrb[5].mxu0  ;;  %5595 = vmatpush3.bf16.msra.mxu1 (!%p5197_p11), %v5592_v31  ;;  %v1283_v37 = vld [vmem:[%s6610_s28 + $0x30] sm:$0xff] (!%p5197_p11) }
 0x1b3   : > { %1259 = vst.msk [vmem:[#allocation3 + $0xd1] sm:$0xff] %vm704_vm0, %v1171_v40  ;;  %v5436_v43 = vpop.f32.mrb[4].mxu1  ;;  %v1027_v46 = vadd.f32 %v7031_v23, %v1026_v44  ;;  %v5207_v40 = vld [vmem:[%s11549_s24] ss:$0 sm:$0xff] (!%p5197_p11) }
 0x1b4   : > { %v1186_v45 = vadd.f32 %v5436_v43, %v7036_v24  ;;  %v1180_v47 = vpop.f32.mrb[5].mxu1  ;;  %1245 = vst.msk [vmem:[#allocation2 + $0x101] sm:$0xff] %vm704_vm0, %v1032_v42 }
 0x1b5   : > { %v1181_v48 = vadd.f32 %v7036_v24, %v1180_v47  ;;  %1244 = vst.msk [vmem:[#allocation2 + $0xf1] sm:$0xff] %vm704_vm0, %v1027_v46  ;;  %v5411_v49 = vpop.f32.mrb[6].mxu0  ;;  %5473 = vmatmul.mubr.msk.f32.vlgmr.msra.gmra.mrb[0].mxu1 (!%p5197_p11), %vm891_vm2, %v1278_v32 }
 0x1b6   : > { %1262 = vst.msk [vmem:[#allocation3 + $0x101] sm:$0xff] %vm704_vm0, %v1186_v45  ;;  %v1042_v50 = vadd.f32 %v5411_v49, %v7031_v23  ;;  %v1036_v52 = vpop.f32.mrb[7].mxu0  ;;  %5475 = vmatprep.mubr.msk.f32.mxu1 (!%p5197_p11), %vm891_vm2, %v1279_v33 }
 0x1b7   : > { %1261 = vst.msk [vmem:[#allocation3 + $0xf1] sm:$0xff] %vm704_vm0, %v1181_v48  ;;  %v5439_v51 = vpop.f32.mrb[6].mxu1  ;;  %v1037_v54 = vadd.f32 %v7031_v23, %v1036_v52 }
 0x1b8   : > { %v1196_v53 = vadd.f32 %v5439_v51, %v7036_v24  ;;  %v1190_v55 = vpop.f32.mrb[7].mxu1  ;;  %1247 = vst.msk [vmem:[#allocation2 + $0x121] sm:$0xff] %vm704_vm0, %v1042_v50 }
 0x1b9   : > { %v1191_v56 = vadd.f32 %v7036_v24, %v1190_v55  ;;  %1246 = vst.msk [vmem:[#allocation2 + $0x111] sm:$0xff] %vm704_vm0, %v1037_v54  ;;  %v5414_v57 = vpop.f32.mrb[8].mxu0  ;;  %5476 = vmatmul.mubr.msk.f32.gmra.mrb[2].mxu1 (!%p5197_p11), %vm891_vm2, %v1280_v34 }
 0x1ba   : > { %1264 = vst.msk [vmem:[#allocation3 + $0x121] sm:$0xff] %vm704_vm0, %v1196_v53  ;;  %v1052_v58 = vadd.f32 %v5414_v57, %v7031_v23  ;;  %v1046_v60 = vpop.f32.mrb[9].mxu0  ;;  %5478 = vmatprep.mubr.msk.f32.mxu1 (!%p5197_p11), %vm891_vm2, %v1281_v35 }
 0x1bb   : > { %1263 = vst.msk [vmem:[#allocation3 + $0x111] sm:$0xff] %vm704_vm0, %v1191_v56  ;;  %v5442_v59 = vpop.f32.mrb[8].mxu1  ;;  %v1047_v62 = vadd.f32 %v7031_v23, %v1046_v60 }
 0x1bc   : > { %v1206_v61 = vadd.f32 %v5442_v59, %v7036_v24  ;;  %v1200_v63 = vpop.f32.mrb[9].mxu1  ;;  %1249 = vst.msk [vmem:[#allocation2 + $0x161] sm:$0xff] %vm704_vm0, %v1052_v58 }
 0x1bd   : > { %v1201_v0 = vadd.f32 %v7036_v24, %v1200_v63  ;;  %1248 = vst.msk [vmem:[#allocation2 + $0x151] sm:$0xff] %vm704_vm0, %v1047_v62  ;;  %v5417_v1 = vpop.f32.mrb[10].mxu0  ;;  %5479 = vmatmul.mubr.msk.f32.gmra.mrb[4].mxu1 (!%p5197_p11), %vm891_vm2, %v1282_v36 }
 0x1be   : > { %1266 = vst.msk [vmem:[#allocation3 + $0x161] sm:$0xff] %vm704_vm0, %v1206_v61  ;;  %v1062_v2 = vadd.f32 %v5417_v1, %v7031_v23  ;;  %v1056_v4 = vpop.f32.mrb[11].mxu0  ;;  %5481 = vmatprep.mubr.msk.f32.mxu1 (!%p5197_p11), %vm891_vm2, %v1283_v37 }
 0x1bf   : > { %1265 = vst.msk [vmem:[#allocation3 + $0x151] sm:$0xff] %vm704_vm0, %v1201_v0  ;;  %v5445_v3 = vpop.f32.mrb[10].mxu1  ;;  %v1057_v6 = vadd.f32 %v7031_v23, %v1056_v4 }
 0x1c0   : > { %v1216_v5 = vadd.f32 %v5445_v3, %v7036_v24  ;;  %v1210_v7 = vpop.f32.mrb[11].mxu1  ;;  %1251 = vst.msk [vmem:[#allocation2 + $0x181] sm:$0xff] %vm704_vm0, %v1062_v2 }
 0x1c1   : > { %v1211_v8 = vadd.f32 %v7036_v24, %v1210_v7  ;;  %1250 = vst.msk [vmem:[#allocation2 + $0x171] sm:$0xff] %vm704_vm0, %v1057_v6  ;;  %v5420_v9 = vpop.f32.mrb[12].mxu0  ;;  %5482 = vmatmul.mubr.msk.f32.gmra.mrb[6].mxu1 (!%p5197_p11), %vm891_vm2, %v1284_v38 }
 0x1c2   : > { %1268 = vst.msk [vmem:[#allocation3 + $0x181] sm:$0xff] %vm704_vm0, %v1216_v5  ;;  %v1072_v10 = vadd.f32 %v5420_v9, %v7031_v23  ;;  %v1066_v12 = vpop.f32.mrb[13].mxu0 }
 0x1c3   : > { %1267 = vst.msk [vmem:[#allocation3 + $0x171] sm:$0xff] %vm704_vm0, %v1211_v8  ;;  %v5448_v11 = vpop.f32.mrb[12].mxu1  ;;  %v1067_v14 = vadd.f32 %v7031_v23, %v1066_v12 }
 0x1c4   : > { %v1226_v13 = vadd.f32 %v5448_v11, %v7036_v24  ;;  %v1220_v15 = vpop.f32.mrb[13].mxu1  ;;  %1253 = vst.msk [vmem:[#allocation2 + $0x1a1] sm:$0xff] %vm704_vm0, %v1072_v10 }
 0x1c5   : > { %v1221_v16 = vadd.f32 %v7036_v24, %v1220_v15  ;;  %1252 = vst.msk [vmem:[#allocation2 + $0x191] sm:$0xff] %vm704_vm0, %v1067_v14  ;;  %v5423_v17 = vpop.f32.mrb[14].mxu0  ;;  %1276 = sbr.rel (%p5197_p11) target bundleno = 692 (0x2b4), region = 96 }
 0x1c6   : > { %1270 = vst.msk [vmem:[#allocation3 + $0x1a1] sm:$0xff] %vm704_vm0, %v1226_v13  ;;  %v1082_v18 = vadd.f32 %v5423_v17, %v7031_v23  ;;  %v1076_v20 = vpop.f32.mrb[15].mxu0 }
 0x1c7   : > { %1269 = vst.msk [vmem:[#allocation3 + $0x191] sm:$0xff] %vm704_vm0, %v1221_v16  ;;  %v5451_v19 = vpop.f32.mrb[14].mxu1  ;;  %v1077_v22 = vadd.f32 %v7031_v23, %v1076_v20  ;;  %v1285_v23 = vld [vmem:[%s11546_s5] sm:$0xff] (!%p5197_p11) }
 0x1c8   : > { %v1236_v21 = vadd.f32 %v5451_v19, %v7036_v24  ;;  %v1230_v25 = vpop.f32.mrb[15].mxu1  ;;  %1255 = vst.msk [vmem:[#allocation2 + $0x1c1] sm:$0xff] %vm704_vm0, %v1082_v18 }
 0x1c9   : > { %v1231_v26 = vadd.f32 %v7036_v24, %v1230_v25  ;;  %1254 = vst.msk [vmem:[#allocation2 + $0x1b1] sm:$0xff] %vm704_vm0, %v1077_v22  ;;  %v1286_v24 = vld [vmem:[%s11546_s5 + $0x8] sm:$0xff] (!%p5197_p11) }
 0x1ca   : > { %1272 = vst.msk [vmem:[#allocation3 + $0x1c1] sm:$0xff] %vm704_vm0, %v1236_v21  ;;  %v5588_v28 = vpack.c.bf16 (!%p5197_p11), %v1286_v24, %v1285_v23 }
 0x1cb   : > { %1271 = vst.msk [vmem:[#allocation3 + $0x1b1] sm:$0xff] %vm704_vm0, %v1231_v26 }
 0x1cc   : > { %5589 = vmatprep.subr.bf16.mxu0 %v5588_v28 }
 0x1cd   : > { %5591 = vmatpush3.bf16.msra.mxu0 %v5588_v28 }
 0x1d0   : > { %5457 = vmatmul.mubr.msk.f32.vlgmr.msra.gmra.mrb[0].mxu0 %vm891_vm2, %v1278_v32 }
 0x1d1   : > { %5459 = vmatprep.mubr.msk.f32.mxu0 %vm891_vm2, %v1279_v33 }
 0x1d4   : > { %5460 = vmatmul.mubr.msk.f32.gmra.mrb[2].mxu0 %vm891_vm2, %v1280_v34 }
 0x1d5   : > { %5462 = vmatprep.mubr.msk.f32.mxu0 %vm891_vm2, %v1281_v35 }
 0x1d8   : > { %5463 = vmatmul.mubr.msk.f32.gmra.mrb[4].mxu0 %vm891_vm2, %v1282_v36 }
 0x1d9   : > { %5465 = vmatprep.mubr.msk.f32.mxu0 %vm891_vm2, %v1283_v37 }
 0x1dc   : > { %5466 = vmatmul.mubr.msk.f32.gmra.mrb[6].mxu0 %vm891_vm2, %v1284_v38 }
 0x288   : > { %v5474_v43 = vpop.f32.mrb[0].mxu1 }
 0x289   : > { %v1504_v45 = vadd.f32 %v5474_v43, %v5207_v40  ;;  %v1498_v47 = vpop.f32.mrb[1].mxu1 }
 0x28a   : > { %v1499_v48 = vadd.f32 %v5207_v40, %v1498_v47 }
 0x28b   : > { %1548 = vst.msk [vmem:[#allocation3 + $0x21] sm:$0xff] %vm704_vm0, %v1504_v45 }
 0x28c   : > { %1547 = vst.msk [vmem:[#allocation3 + $0x11] sm:$0xff] %vm704_vm0, %v1499_v48  ;;  %v5477_v51 = vpop.f32.mrb[2].mxu1 }
 0x28d   : > { %v1514_v53 = vadd.f32 %v5477_v51, %v5207_v40  ;;  %v1508_v55 = vpop.f32.mrb[3].mxu1 }
 0x28e   : > { %v1509_v56 = vadd.f32 %v5207_v40, %v1508_v55 }
 0x28f   : > { %1550 = vst.msk [vmem:[#allocation3 + $0x41] sm:$0xff] %vm704_vm0, %v1514_v53 }
 0x290   : > { %1549 = vst.msk [vmem:[#allocation3 + $0x31] sm:$0xff] %vm704_vm0, %v1509_v56  ;;  %v5480_v59 = vpop.f32.mrb[4].mxu1 }
 0x291   : > { %v1524_v61 = vadd.f32 %v5480_v59, %v5207_v40  ;;  %v1518_v63 = vpop.f32.mrb[5].mxu1 }
 0x292   : > { %v1519_v0 = vadd.f32 %v5207_v40, %v1518_v63 }
 0x293   : > { %1552 = vst.msk [vmem:[#allocation3 + $0x61] sm:$0xff] %vm704_vm0, %v1524_v61 }
 0x294   : > { %1551 = vst.msk [vmem:[#allocation3 + $0x51] sm:$0xff] %vm704_vm0, %v1519_v0  ;;  %v5483_v3 = vpop.f32.mrb[6].mxu1 }
 0x295   : > { %v1534_v5 = vadd.f32 %v5483_v3, %v5207_v40  ;;  %v1528_v7 = vpop.f32.mrb[7].mxu1 }
 0x296   : > { %v1529_v8 = vadd.f32 %v5207_v40, %v1528_v7 }
 0x297   : > { %1554 = vst.msk [vmem:[#allocation3 + $0x81] sm:$0xff] %vm704_vm0, %v1534_v5 }
 0x298   : > { %1553 = vst.msk [vmem:[#allocation3 + $0x71] sm:$0xff] %vm704_vm0, %v1529_v8 }
 0x2a3   : > { %v5458_v41 = vpop.f32.mrb[0].mxu0 }
 0x2a4   : > { %v1390_v42 = vadd.f32 %v5458_v41, %v5198_v39  ;;  %v1384_v44 = vpop.f32.mrb[1].mxu0 }
 0x2a5   : > { %v1385_v46 = vadd.f32 %v5198_v39, %v1384_v44 }
 0x2a6   : > { %1539 = vst.msk [vmem:[#allocation2 + $0x21] sm:$0xff] %vm704_vm0, %v1390_v42 }
 0x2a7   : > { %1538 = vst.msk [vmem:[#allocation2 + $0x11] sm:$0xff] %vm704_vm0, %v1385_v46  ;;  %v5461_v49 = vpop.f32.mrb[2].mxu0 }
 0x2a8   : > { %v1400_v50 = vadd.f32 %v5461_v49, %v5198_v39  ;;  %v1394_v52 = vpop.f32.mrb[3].mxu0 }
 0x2a9   : > { %v1395_v54 = vadd.f32 %v5198_v39, %v1394_v52 }
 0x2aa   : > { %1541 = vst.msk [vmem:[#allocation2 + $0x41] sm:$0xff] %vm704_vm0, %v1400_v50 }
 0x2ab   : > { %1540 = vst.msk [vmem:[#allocation2 + $0x31] sm:$0xff] %vm704_vm0, %v1395_v54  ;;  %v5464_v57 = vpop.f32.mrb[4].mxu0 }
 0x2ac   : > { %v1410_v58 = vadd.f32 %v5464_v57, %v5198_v39  ;;  %v1404_v60 = vpop.f32.mrb[5].mxu0 }
 0x2ad   : > { %v1405_v62 = vadd.f32 %v5198_v39, %v1404_v60 }
 0x2ae   : > { %1543 = vst.msk [vmem:[#allocation2 + $0x61] sm:$0xff] %vm704_vm0, %v1410_v58 }
 0x2af   : > { %1542 = vst.msk [vmem:[#allocation2 + $0x51] sm:$0xff] %vm704_vm0, %v1405_v62  ;;  %v5467_v1 = vpop.f32.mrb[6].mxu0 }
 0x2b0   : > { %v1420_v2 = vadd.f32 %v5467_v1, %v5198_v39  ;;  %v1414_v4 = vpop.f32.mrb[7].mxu0 }
 0x2b1   : > { %v1415_v6 = vadd.f32 %v5198_v39, %v1414_v4 }
 0x2b2   : > { %1545 = vst.msk [vmem:[#allocation2 + $0x81] sm:$0xff] %vm704_vm0, %v1420_v2 }
 0x2b3   : > { %1544 = vst.msk [vmem:[#allocation2 + $0x71] sm:$0xff] %vm704_vm0, %v1415_v6 }
 0x2b4 PF: > { %s11550_s28 = sld [smem:[#allocation18_spill]] }
 0x2ba   : > { %p5216_p12 = scmp.ge.s32.totalorder %s11550_s28, 1 }
 0x2bb   : > { %s11551_s17 = sld [smem:[#allocation139_spill]] (!%p5216_p12)  ;;  %s11552_s10 = sld [smem:[#allocation140_spill]] (!%p5216_p12)  ;;  %v1559_v14 = vld [vmem:[%s6630_s27] sm:$0xff] (!%p5216_p12)  ;;  %v1560_v16 = vld [vmem:[%s6630_s27 + $0x8] sm:$0xff] (!%p5216_p12)  ;;  %v1561_v17 = vld [vmem:[%s6630_s27 + $0x10] sm:$0xff] (!%p5216_p12) }
 0x2bc   : > { %1558 = sbr.rel (%p5216_p12) target bundleno = 941 (0x3ad), region = 100  ;;  %5488 = vmatprep.mubr.msk.f32.mxu0 (!%p5216_p12), %vm891_vm2, %v1559_v14  ;;  %5504 = vmatprep.mubr.msk.f32.mxu1 (!%p5216_p12), %vm891_vm2, %v1559_v14  ;;  %v1562_v18 = vld [vmem:[%s6630_s27 + $0x18] sm:$0xff] (!%p5216_p12)  ;;  %v1563_v19 = vld [vmem:[%s6630_s27 + $0x20] sm:$0xff] (!%p5216_p12)  ;;  %v1564_v20 = vld [vmem:[%s6630_s27 + $0x28] sm:$0xff] (!%p5216_p12)  ;;  %s11553_s21 = sld [smem:[#allocation141_spill]] (!%p5216_p12) }
 0x2bd   : > { %v1565_v21 = vld [vmem:[%s6630_s27 + $0x30] sm:$0xff] (!%p5216_p12)  ;;  %v1566_v22 = vld [vmem:[%s6630_s27 + $0x38] sm:$0xff] (!%p5216_p12)  ;;  %s11554_s7 = sld [smem:[#allocation142_spill]] (!%p5216_p12) }
 0x2c1   : > { %v1567_v9 = vld [vmem:[%s11551_s17] sm:$0xff] (!%p5216_p12)  ;;  %v1568_v10 = vld [vmem:[%s11551_s17 + $0x8] sm:$0xff] (!%p5216_p12) }
 0x2c2   : > { %v1705_v11 = vld [vmem:[%s11552_s10] sm:$0xff] (!%p5216_p12)  ;;  %v5596_v12 = vpack.c.bf16 (!%p5216_p12), %v1568_v10, %v1567_v9  ;;  %v1706_v13 = vld [vmem:[%s11552_s10 + $0x8] sm:$0xff] (!%p5216_p12) }
 0x2c3   : > { %v5600_v15 = vpack.c.bf16 %v1706_v13, %v1705_v11  ;;  %v5217_v25 = vld [vmem:[%s11553_s21] ss:$0 sm:$0xff] }
 0x2c4   : > { %5597 = vmatprep.subr.bf16.mxu0 %v5596_v12  ;;  %v5226_v26 = vld [vmem:[%s11554_s7] ss:$0 sm:$0xff] }
 0x2c5   : > { %5601 = vmatprep.subr.bf16.mxu1 %v5600_v15  ;;  %5599 = vmatpush3.bf16.msra.mxu0 %v5596_v12 }
 0x2c6   : > { %5603 = vmatpush3.bf16.msra.mxu1 %v5600_v15 }
 0x2c8   : > { %5489 = vmatmul.mubr.msk.f32.vlgmr.msra.gmra.mrb[0].mxu0 %vm891_vm2, %v1560_v16 }
 0x2c9   : > { %5505 = vmatmul.mubr.msk.f32.vlgmr.msra.gmra.mrb[0].mxu1 %vm891_vm2, %v1560_v16  ;;  %5491 = vmatprep.mubr.msk.f32.mxu0 %vm891_vm2, %v1561_v17 }
 0x2ca   : > { %5507 = vmatprep.mubr.msk.f32.mxu1 %vm891_vm2, %v1561_v17 }
 0x2cc   : > { %5492 = vmatmul.mubr.msk.f32.gmra.mrb[2].mxu0 %vm891_vm2, %v1562_v18 }
 0x2cd   : > { %5508 = vmatmul.mubr.msk.f32.gmra.mrb[2].mxu1 %vm891_vm2, %v1562_v18  ;;  %5494 = vmatprep.mubr.msk.f32.mxu0 %vm891_vm2, %v1563_v19 }
 0x2ce   : > { %5510 = vmatprep.mubr.msk.f32.mxu1 %vm891_vm2, %v1563_v19 }
 0x2d0   : > { %5495 = vmatmul.mubr.msk.f32.gmra.mrb[4].mxu0 %vm891_vm2, %v1564_v20 }
 0x2d1   : > { %5511 = vmatmul.mubr.msk.f32.gmra.mrb[4].mxu1 %vm891_vm2, %v1564_v20  ;;  %5497 = vmatprep.mubr.msk.f32.mxu0 %vm891_vm2, %v1565_v21 }
 0x2d2   : > { %5513 = vmatprep.mubr.msk.f32.mxu1 %vm891_vm2, %v1565_v21 }
 0x2d4   : > { %5498 = vmatmul.mubr.msk.f32.gmra.mrb[6].mxu0 %vm891_vm2, %v1566_v22 }
 0x2d5   : > { %5514 = vmatmul.mubr.msk.f32.gmra.mrb[6].mxu1 %vm891_vm2, %v1566_v22 }
 0x39b   : > { %v5490_v23 = vpop.f32.mrb[0].mxu0 }
 0x39c   : > { %v1672_v24 = vadd.f32 %v5490_v23, %v5217_v25  ;;  %v5506_v27 = vpop.f32.mrb[0].mxu1  ;;  %v1666_v28 = vpop.f32.mrb[1].mxu0 }
 0x39d   : > { %v1786_v29 = vadd.f32 %v5506_v27, %v5226_v26  ;;  %v1667_v30 = vadd.f32 %v5217_v25, %v1666_v28  ;;  %v1780_v31 = vpop.f32.mrb[1].mxu1 }
 0x39e   : > { %1821 = vst.msk [vmem:[#allocation2 + $0x201] sm:$0xff] %vm704_vm0, %v1672_v24  ;;  %v1781_v32 = vadd.f32 %v5226_v26, %v1780_v31 }
 0x39f   : > { %1830 = vst.msk [vmem:[#allocation3 + $0x201] sm:$0xff] %vm704_vm0, %v1786_v29  ;;  %1820 = vst.msk [vmem:[#allocation2 + $0x1f1] sm:$0xff] %vm704_vm0, %v1667_v30  ;;  %v5493_v33 = vpop.f32.mrb[2].mxu0 }
 0x3a0   : > { %1829 = vst.msk [vmem:[#allocation3 + $0x1f1] sm:$0xff] %vm704_vm0, %v1781_v32  ;;  %v1682_v34 = vadd.f32 %v5493_v33, %v5217_v25  ;;  %v5509_v35 = vpop.f32.mrb[2].mxu1  ;;  %v1676_v36 = vpop.f32.mrb[3].mxu0 }
 0x3a1   : > { %v1796_v37 = vadd.f32 %v5509_v35, %v5226_v26  ;;  %v1677_v38 = vadd.f32 %v5217_v25, %v1676_v36  ;;  %v1790_v39 = vpop.f32.mrb[3].mxu1 }
 0x3a2   : > { %1823 = vst.msk [vmem:[#allocation2 + $0x221] sm:$0xff] %vm704_vm0, %v1682_v34  ;;  %v1791_v40 = vadd.f32 %v5226_v26, %v1790_v39 }
 0x3a3   : > { %1832 = vst.msk [vmem:[#allocation3 + $0x221] sm:$0xff] %vm704_vm0, %v1796_v37  ;;  %1822 = vst.msk [vmem:[#allocation2 + $0x211] sm:$0xff] %vm704_vm0, %v1677_v38  ;;  %v5496_v41 = vpop.f32.mrb[4].mxu0 }
 0x3a4   : > { %1831 = vst.msk [vmem:[#allocation3 + $0x211] sm:$0xff] %vm704_vm0, %v1791_v40  ;;  %v1692_v42 = vadd.f32 %v5496_v41, %v5217_v25  ;;  %v5512_v43 = vpop.f32.mrb[4].mxu1  ;;  %v1686_v44 = vpop.f32.mrb[5].mxu0 }
 0x3a5   : > { %v1806_v45 = vadd.f32 %v5512_v43, %v5226_v26  ;;  %v1687_v46 = vadd.f32 %v5217_v25, %v1686_v44  ;;  %v1800_v47 = vpop.f32.mrb[5].mxu1 }
 0x3a6   : > { %1825 = vst.msk [vmem:[#allocation2 + $0x241] sm:$0xff] %vm704_vm0, %v1692_v42  ;;  %v1801_v48 = vadd.f32 %v5226_v26, %v1800_v47 }
 0x3a7   : > { %1834 = vst.msk [vmem:[#allocation3 + $0x241] sm:$0xff] %vm704_vm0, %v1806_v45  ;;  %1824 = vst.msk [vmem:[#allocation2 + $0x231] sm:$0xff] %vm704_vm0, %v1687_v46  ;;  %v5499_v49 = vpop.f32.mrb[6].mxu0 }
 0x3a8   : > { %1833 = vst.msk [vmem:[#allocation3 + $0x231] sm:$0xff] %vm704_vm0, %v1801_v48  ;;  %v1702_v50 = vadd.f32 %v5499_v49, %v5217_v25  ;;  %v5515_v51 = vpop.f32.mrb[6].mxu1  ;;  %v1696_v52 = vpop.f32.mrb[7].mxu0 }
 0x3a9   : > { %v1816_v53 = vadd.f32 %v5515_v51, %v5226_v26  ;;  %v1697_v54 = vadd.f32 %v5217_v25, %v1696_v52  ;;  %v1810_v55 = vpop.f32.mrb[7].mxu1 }
 0x3aa   : > { %1827 = vst.msk [vmem:[#allocation2 + $0x261] sm:$0xff] %vm704_vm0, %v1702_v50  ;;  %v1811_v56 = vadd.f32 %v5226_v26, %v1810_v55 }
 0x3ab   : > { %1836 = vst.msk [vmem:[#allocation3 + $0x261] sm:$0xff] %vm704_vm0, %v1816_v53  ;;  %1826 = vst.msk [vmem:[#allocation2 + $0x251] sm:$0xff] %vm704_vm0, %v1697_v54 }
 0x3ac   : > { %1835 = vst.msk [vmem:[#allocation3 + $0x251] sm:$0xff] %vm704_vm0, %v1811_v56 }
 0x3ad PF: > { %s11555_s28 = sld [smem:[#allocation147_spill]]  ;;  %s11557_s1 = sld [smem:[#allocation149_spill]]  ;;  %v1882_v60 = vlaneseq  ;;  %v1842_v11 = vld [vmem:[#allocation2] sm:$0xff]  ;;  %v7267_v15 = vld [vmem:[#allocation2 + $0x10] sm:$0xff] }
 0x3ae   : > { %v7269_v16 = vld [vmem:[#allocation2 + $0x20] sm:$0xff]  ;;  %v7289_v25 = vld [vmem:[#allocation2 + $0xb0] sm:$0xff]  ;;  %s11591_s4 = sld [smem:[#allocation144_spill]]  ;;  %s11625_s17 = sld [smem:[#allocation145_spill]] }
 0x3af   : > { %v1883_v5 = vshrl.u32 %v1882_v60, 7  ;;  %11560 = vst [vmem:[#allocation29_spill] sm:$0xff] %v7269_v16  ;;  %v1852_v19 = vld [vmem:[#allocation2 + $0xa0] sm:$0xff]  ;;  %v7322_v41 = vld [vmem:[#allocation2 + $0x150] sm:$0xff]  ;;  %s11734_s25 = sld [smem:[#allocation146_spill]]  ;;  %s12698_s21 = sld [smem:[#allocation148_spill]] }
 0x3b0   : > { %v7291_v26 = vld [vmem:[#allocation2 + $0xc0] sm:$0xff]  ;;  %v7347_v55 = vld [vmem:[#allocation2 + $0x1f0] sm:$0xff]  ;;  %s12706_s7 = sld [smem:[#allocation150_spill]]  ;;  %s12743_s27 = sld [smem:[#allocation18_spill]] }
 0x3b1   : > { %v7257_v9 = vsub.s32 0, %v1883_v5  ;;  %v7259_v10 = vsub.s32 3, %v1883_v5  ;;  %v7261_v12 = vsub.s32 6, %v1883_v5  ;;  %v7263_v13 = vsub.s32 1, %v1883_v5  ;;  %11565 = vst [vmem:[#allocation34_spill] sm:$0xff] %v7291_v26  ;;  %v1862_v34 = vld [vmem:[#allocation2 + $0x140] sm:$0xff] }
 0x3b2   : > { %v7265_v14 = vsub.s32 4, %v1883_v5  ;;  %v7287_v22 = vsub.s32 7, %v1883_v5  ;;  %v7299_v28 = vsub.s32 2, %v1883_v5  ;;  %v7315_v36 = vsub.s32 5, %v1883_v5  ;;  %v7337_v48 = vld [vmem:[#allocation2 + $0x160] sm:$0xff]  ;;  %s12744_s24 = sld [smem:[#allocation19_spill]] }
 0x3b3   : > { %s11556_s12 = smov %s11555_s28  ;;  %v4523_v57 = vld [vmem:[%s11555_s28] sm:$0xff]  ;;  %v4744_v62 = vld [vmem:[%s11557_s1 + $0x8] sm:$0xff]  ;;  %v4745_v3 = vld [vmem:[%s11557_s1 + $0x10] sm:$0xff]  ;;  %s11558_s28 = sld [smem:[#allocation143_spill]]  ;;  %11569 = vst [vmem:[#allocation38_spill] sm:$0xff] %v7337_v48 }
 0x3b4   : > { %v4524_v58 = vld [vmem:[%s11556_s12 + $0x8] sm:$0xff]  ;;  %v4743_v59 = vld [vmem:[%s11557_s1] sm:$0xff]  ;;  %v4525_v63 = vld [vmem:[%s11556_s12 + $0x10] sm:$0xff]  ;;  %s11626_s14 = smov %s11625_s17  ;;  %s12746_s20 = sld [smem:[#allocation24_spill]] }
 0x3b5   : > { %v5604_v61 = vpack.c.bf16 %v4524_v58, %v4523_v57  ;;  %v4526_v0 = vld [vmem:[%s11556_s12 + $0x18] sm:$0xff]  ;;  %v5612_v1 = vpack.c.bf16 %v4744_v62, %v4743_v59  ;;  %v1872_v49 = vld [vmem:[#allocation2 + $0x1e0] sm:$0xff]  ;;  %s11735_s11 = smov %s11734_s25  ;;  %s12747_s15 = sld [smem:[#allocation151_spill]] }
 0x3b6   : > { %v5608_v2 = vpack.c.bf16 %v4526_v0, %v4525_v63  ;;  %v4746_v4 = vld [vmem:[%s11557_s1 + $0x18] sm:$0xff] }
 0x3b7   : > { %5605 = vmatprep.subr.bf16.mxu0 %v5604_v61  ;;  %v5616_v6 = vpack.c.bf16 %v4746_v4, %v4745_v3  ;;  %5613 = vmatprep.subr.bf16.mxu1 %v5612_v1  ;;  %v2206_v4 = vld [vmem:[#allocation2 + $0x1] sm:$0xff] }
 0x3b8   : > { %5607 = vmatpush3.bf16.msra.mxu0 %v5604_v61  ;;  %5615 = vmatpush3.bf16.msra.mxu1 %v5612_v1  ;;  %v7355_v61 = vld [vmem:[#allocation2 + $0x200] sm:$0xff]  ;;  %s5274_s18 = sshll.u32 %s12744_s24, 5 }
 0x3b9   : > { %s11559_s5 = smov %s11558_s28  ;;  %v7250_v7 = vld [vmem:[%s11558_s28] sm:$0xff]  ;;  %5609 = vmatprep.subr.bf16.mxu0 %v5608_v2  ;;  %5617 = vmatprep.subr.bf16.mxu1 %v5616_v6  ;;  %s5279_s28 = sshll.u32 %s12743_s27, 4 }
 0x3ba   : > { %v7255_v8 = vld [vmem:[%s11559_s5 + $0x8] sm:$0xff]  ;;  %v7273_v17 = vrot.slane %v7250_v7, %v7257_v9  ;;  %v7277_v18 = vrot.slane %v7250_v7, %v7259_v10  ;;  %v7281_v20 = vrot.slane %v7250_v7, %v7261_v12  ;;  %v7312_v33 = vld [vmem:[%s11559_s5 + $0x10] sm:$0xff]  ;;  %v7329_v43 = vld [vmem:[%s11559_s5 + $0x18] sm:$0x7]  ;;  %v7359_v62 = vrot.slane %v7250_v7, %v7263_v13  ;;  %s10770_s27 = scalar_lea.sflag [#allocation6], %s603_s16  ;;  %p12748_p0 = scmp.ne.s32.totalorder %s12746_s20, 0 }
 0x3bb   : > { %v7285_v21 = vrot.slane %v7255_v8, %v7263_v13  ;;  %v7297_v27 = vrot.slane %v7255_v8, %v7265_v14  ;;  %v7320_v40 = vrot.slane %v7255_v8, %v7287_v22  ;;  %v7335_v47 = vrot.slane %v7312_v33, %v7299_v28 }
 0x3bc   : > { %11561 = vst [vmem:[#allocation30_spill] sm:$0xff] %v7273_v17  ;;  %11562 = vst [vmem:[#allocation31_spill] sm:$0xff] %v7277_v18  ;;  %5611 = vmatpush3.bf16.msra.mxu0 %v5608_v2  ;;  %v1886_v23 = vmul.f32 %v7273_v17, %v1842_v11  ;;  %v1894_v24 = vmul.f32 %v7273_v17, %v1852_v19  ;;  %5619 = vmatpush3.bf16.msra.mxu1 %v5616_v6 }
 0x3bd   : > { %11563 = vst [vmem:[#allocation32_spill] sm:$0xff] %v7281_v20  ;;  %11564 = vst [vmem:[#allocation33_spill] sm:$0xff] %v7285_v21  ;;  %v1922_v29 = vmul.f32 %v7277_v18, %v7267_v15  ;;  %v1930_v30 = vmul.f32 %v7277_v18, %v7289_v25  ;;  %v1958_v31 = vmul.f32 %v7281_v20, %v7269_v16  ;;  %v7523_v18 = vld [vmem:[#allocation2 + $0xc2] sm:$0xff] }
 0x3be   : > { %11566 = vst [vmem:[#allocation35_spill] sm:$0xff] %v7297_v27  ;;  %v1966_v32 = vmul.f32 %v7281_v20, %v7291_v26  ;;  %v1994_v35 = vmul.f32 %v7285_v21, %v1852_v19  ;;  %v2002_v39 = vmul.f32 %v7285_v21, %v1862_v34  ;;  %11567 = vst [vmem:[#allocation36_spill] sm:$0xff] %v7320_v40  ;;  %v7509_v20 = vld [vmem:[#allocation3 + $0x20] sm:$0xff] }
 0x3bf   : > { %v1938_v37 = vadd.f32 %v1922_v29, %v1886_v23  ;;  %v1946_v38 = vadd.f32 %v1930_v30, %v1894_v24  ;;  %v2030_v42 = vmul.f32 %v7297_v27, %v7289_v25  ;;  %v2038_v46 = vmul.f32 %v7297_v27, %v7322_v41  ;;  %11568 = vst [vmem:[#allocation37_spill] sm:$0xff] %v7335_v47  ;;  %v7373_v23 = vld [vmem:[#allocation2 + $0x11] sm:$0xff]  ;;  %v2216_v24 = vld [vmem:[#allocation2 + $0xa1] sm:$0xff] }
 0x3c0   : > { %v7341_v50 = vrot.slane %v7312_v33, %v7315_v36  ;;  %v2066_v53 = vmul.f32 %v7320_v40, %v7291_v26  ;;  %v2074_v54 = vmul.f32 %v7320_v40, %v7337_v48  ;;  %v7351_v56 = vrot.slane %v7329_v43, %v7257_v9  ;;  %11572 = vst [vmem:[#allocation41_spill] sm:$0xff] %v7359_v62  ;;  %v7499_v27 = vld [vmem:[#allocation3 + $0x10] sm:$0xff] }
 0x3c1   : > { %v1974_v44 = vadd.f32 %v1958_v31, %v1938_v37  ;;  %v1982_v45 = vadd.f32 %v1966_v32, %v1946_v38  ;;  %v2102_v59 = vmul.f32 %v7335_v47, %v1862_v34  ;;  %v2110_v60 = vmul.f32 %v7335_v47, %v1872_v49  ;;  %v7379_v32 = vld [vmem:[#allocation2 + $0x21] sm:$0xff]  ;;  %v7383_v37 = vld [vmem:[#allocation2 + $0xb1] sm:$0xff]  ;;  %11598 = vst [vmem:[#allocation66_spill] sm:$0xff] %v7499_v27 }
 0x3c2   : > { %11570 = vst [vmem:[#allocation39_spill] sm:$0xff] %v7341_v50  ;;  %11571 = vst [vmem:[#allocation40_spill] sm:$0xff] %v7351_v56  ;;  %v2138_v1 = vmul.f32 %v7341_v50, %v7322_v41  ;;  %v2146_v2 = vmul.f32 %v7341_v50, %v7347_v55  ;;  %v2174_v3 = vmul.f32 %v7351_v56, %v7337_v48  ;;  %v7397_v49 = vld [vmem:[#allocation2 + $0xc1] sm:$0xff] }
 0x3c3   : > { %v2010_v51 = vadd.f32 %v1994_v35, %v1974_v44  ;;  %v2018_v52 = vadd.f32 %v2002_v39, %v1982_v45  ;;  %v2182_v11 = vmul.f32 %v7351_v56, %v7355_v61  ;;  %v7371_v19 = vrot.slane %v7250_v7, %v7265_v14  ;;  %11575 = vst [vmem:[#allocation44_spill] sm:$0xff] %v7379_v32 }
 0x3c4   : > { %v7377_v29 = vrot.slane %v7250_v7, %v7287_v22  ;;  %v2250_v34 = vmul.f32 %v7359_v62, %v2206_v4  ;;  %v2258_v35 = vmul.f32 %v7359_v62, %v2216_v24  ;;  %11576 = vst [vmem:[#allocation45_spill] sm:$0xff] %v7383_v37  ;;  %v7387_v38 = vrot.slane %v7255_v8, %v7299_v28 }
 0x3c5   : > { %v2046_v57 = vadd.f32 %v2030_v42, %v2010_v51  ;;  %v2054_v58 = vadd.f32 %v2038_v46, %v2018_v52  ;;  %11573 = vst [vmem:[#allocation42_spill] sm:$0xff] %v7371_v19  ;;  %v7391_v39 = vrot.slane %v7255_v8, %v7315_v36  ;;  %v2286_v45 = vmul.f32 %v7371_v19, %v7373_v23 }
 0x3c6   : > { %11574 = vst [vmem:[#allocation43_spill] sm:$0xff] %v7377_v29  ;;  %11577 = vst [vmem:[#allocation46_spill] sm:$0xff] %v7387_v38  ;;  %v2294_v46 = vmul.f32 %v7371_v19, %v7383_v37  ;;  %v2322_v51 = vmul.f32 %v7377_v29, %v7379_v32  ;;  %v7403_v52 = vrot.slane %v7312_v33, %v7257_v9 }
 0x3c7   : > { %v2082_v63 = vadd.f32 %v2066_v53, %v2046_v57  ;;  %v2090_v0 = vadd.f32 %v2074_v54, %v2054_v58  ;;  %11578 = vst [vmem:[#allocation47_spill] sm:$0xff] %v7391_v39  ;;  %11579 = vst [vmem:[#allocation48_spill] sm:$0xff] %v7397_v49  ;;  %v7407_v53 = vrot.slane %v7312_v33, %v7259_v10  ;;  %v2226_v54 = vld [vmem:[#allocation2 + $0x141] sm:$0xff] }
 0x3c8   : > { %11580 = vst [vmem:[#allocation49_spill] sm:$0xff] %v7403_v52  ;;  %v7423_v4 = vrot.slane %v7329_v43, %v7263_v13  ;;  %v7444_v19 = vrot.slane %v7250_v7, %v7315_v36  ;;  %v7497_v40 = vrot.slane %v7312_v33, %v7263_v13  ;;  %v7507_v26 = vrot.slane %v7312_v33, %v7265_v14 }
 0x3c9   : > { %v2118_v5 = vadd.f32 %v2102_v59, %v2082_v63  ;;  %v2126_v6 = vadd.f32 %v2110_v60, %v2090_v0  ;;  %11581 = vst [vmem:[#allocation50_spill] sm:$0xff] %v7407_v53  ;;  %v2330_v59 = vmul.f32 %v7377_v29, %v7397_v49  ;;  %v7413_v60 = vrot.slane %v7312_v33, %v7261_v12  ;;  %v7415_v63 = vld [vmem:[#allocation2 + $0x151] sm:$0xff]  ;;  %v7417_v0 = vld [vmem:[#allocation2 + $0x161] sm:$0xff] }
 0x3ca   : > { %11583 = vst [vmem:[#allocation52_spill] sm:$0xff] %v7415_v63  ;;  %11584 = vst [vmem:[#allocation53_spill] sm:$0xff] %v7417_v0  ;;  %v2466_v29 = vmul.f32 %v7407_v53, %v2226_v54 }
 0x3cb   : > { %v2154_v30 = vadd.f32 %v2138_v1, %v2118_v5  ;;  %v2162_v31 = vadd.f32 %v2146_v2, %v2126_v6  ;;  %11582 = vst [vmem:[#allocation51_spill] sm:$0xff] %v7413_v60  ;;  %v2236_v1 = vld [vmem:[#allocation2 + $0x1e1] sm:$0xff]  ;;  %v2358_v2 = vmul.f32 %v7387_v38, %v2216_v24  ;;  %11585 = vst [vmem:[#allocation54_spill] sm:$0xff] %v7423_v4  ;;  %v7429_v6 = vld [vmem:[#allocation2 + $0x1f1] sm:$0xff] }
 0x3cc   : > { %v7427_v5 = vrot.slane %v7250_v7, %v7299_v28  ;;  %11587 = vst [vmem:[#allocation56_spill] sm:$0xff] %v7429_v6  ;;  %v2402_v24 = vmul.f32 %v7391_v39, %v7415_v63  ;;  %11589 = vst [vmem:[#allocation58_spill] sm:$0xff] %v7444_v19  ;;  %v2580_v7 = vld [vmem:[#allocation2 + $0xa2] sm:$0xff] }
 0x3cd   : > { %v2190_v42 = vadd.f32 %v2174_v3, %v2154_v30  ;;  %v2198_v44 = vadd.f32 %v2182_v11, %v2162_v31  ;;  %v2366_v3 = vmul.f32 %v7387_v38, %v2226_v54  ;;  %v7431_v11 = vld [vmem:[#allocation2 + $0x201] sm:$0xff]  ;;  %11597 = vst [vmem:[#allocation65_spill] sm:$0xff] %v7497_v40  ;;  %11600 = vst [vmem:[#allocation68_spill] sm:$0xff] %v7507_v26 }
 0x3ce   : > { %11586 = vst [vmem:[#allocation55_spill] sm:$0xff] %v7427_v5  ;;  %11588 = vst [vmem:[#allocation57_spill] sm:$0xff] %v7431_v11  ;;  %v2546_v54 = vmul.f32 %v7423_v4, %v7431_v11 }
 0x3cf   : > { %v2266_v57 = vadd.f32 %v2250_v34, %v2190_v42  ;;  %v2274_v58 = vadd.f32 %v2258_v35, %v2198_v44  ;;  %v2394_v34 = vmul.f32 %v7391_v39, %v7383_v37  ;;  %v2570_v35 = vld [vmem:[#allocation2 + $0x2] sm:$0xff]  ;;  %v2430_v42 = vmul.f32 %v7403_v52, %v7397_v49  ;;  %v7449_v39 = vld [vmem:[#allocation2 + $0x12] sm:$0xff]  ;;  %11601 = vst [vmem:[#allocation69_spill] sm:$0xff] %v7509_v20 }
 0x3d0   : > { %v2438_v44 = vmul.f32 %v7403_v52, %v7417_v0  ;;  %11590 = vst [vmem:[#allocation59_spill] sm:$0xff] %v7449_v39  ;;  %v2510_v49 = vmul.f32 %v7413_v60, %v7429_v6  ;;  %v2538_v52 = vmul.f32 %v7423_v4, %v7417_v0  ;;  %v7470_v0 = vrot.slane %v7255_v8, %v7257_v9  ;;  %v7477_v4 = vld [vmem:[#allocation2 + $0x22] sm:$0xff]  ;;  %v7533_v6 = vld [vmem:[#allocation3 + $0xb0] sm:$0xff] }
 0x3d1   : > { %v2302_v30 = vadd.f32 %v2286_v45, %v2266_v57  ;;  %v2310_v31 = vadd.f32 %v2294_v46, %v2274_v58  ;;  %v2474_v57 = vmul.f32 %v7407_v53, %v2236_v1  ;;  %v2502_v58 = vmul.f32 %v7413_v60, %v7415_v63  ;;  %11594 = vst [vmem:[#allocation62_spill] sm:$0xff] %v7477_v4 }
 0x3d2   : > { %v2622_v60 = vmul.f32 %v7427_v5, %v2580_v7  ;;  %11593 = vst [vmem:[#allocation61_spill] sm:$0xff] %v7470_v0  ;;  %v7481_v56 = vmul.f32 %v7444_v19, %v7449_v39  ;;  %11605 = vst [vmem:[#allocation73_spill] sm:$0xff] %v7523_v18  ;;  %v2686_v16 = vmul.f32 %v7470_v0, %v7477_v4 }
 0x3d3   : > { %v2338_v45 = vadd.f32 %v2322_v51, %v2302_v30  ;;  %v2346_v46 = vadd.f32 %v2330_v59, %v2310_v31  ;;  %v7458_v51 = vmul.f32 %v7427_v5, %v2570_v35  ;;  %v7463_v59 = vld [vmem:[%s11591_s4] sm:$0xff]  ;;  %v7465_v31 = vld [vmem:[#allocation2 + $0xb2] sm:$0xff]  ;;  %v7475_v35 = vld [vmem:[%s11591_s4 + $0x8] sm:$0xff]  ;;  %v2694_v11 = vmul.f32 %v7470_v0, %v7523_v18 }
 0x3d4   : > { %11592 = vst [vmem:[#allocation60_spill] sm:$0xff] %v7465_v31  ;;  %v3403_v5 = vld [vmem:[#allocation3 + $0xa0] sm:$0xff] }
 0x3d5   : > { %v2374_v1 = vadd.f32 %v2358_v2, %v2338_v45  ;;  %v2382_v30 = vadd.f32 %v2366_v3, %v2346_v46  ;;  %v7485_v2 = vmul.f32 %v7444_v19, %v7465_v31  ;;  %v7489_v3 = vrot.slane %v7255_v8, %v7259_v10  ;;  %v3393_v46 = vld [vmem:[#allocation3] sm:$0xff] }
 0x3d6   : > { %v7493_v45 = vrot.slane %v7255_v8, %v7261_v12  ;;  %v7503_v19 = vrot.slane %v7463_v59, %v7257_v9  ;;  %v7513_v8 = vrot.slane %v7463_v59, %v7259_v10  ;;  %v7545_v0 = vld [vmem:[#allocation3 + $0xc0] sm:$0xff] }
 0x3d7   : > { %11595 = vst [vmem:[#allocation63_spill] sm:$0xff] %v7489_v3  ;;  %v2410_v50 = vadd.f32 %v2394_v34, %v2374_v1  ;;  %v2418_v48 = vadd.f32 %v2402_v24, %v2382_v30  ;;  %v7517_v34 = vrot.slane %v7463_v59, %v7261_v12  ;;  %v7521_v24 = vrot.slane %v7475_v35, %v7263_v13 }
 0x3d8   : > { %11596 = vst [vmem:[#allocation64_spill] sm:$0xff] %v7493_v45  ;;  %11599 = vst [vmem:[#allocation67_spill] sm:$0xff] %v7503_v19  ;;  %v3437_v39 = vmul.f32 %v7503_v19, %v3393_v46  ;;  %v7531_v53 = vmul.f32 %v7489_v3, %v2580_v7  ;;  %v3445_v38 = vmul.f32 %v7503_v19, %v3403_v5  ;;  %v7543_v46 = vld [vmem:[%s11591_s4 + $0x10] sm:$0xff] }
 0x3d9   : > { %11602 = vst [vmem:[#allocation70_spill] sm:$0xff] %v7513_v8  ;;  %11603 = vst [vmem:[#allocation71_spill] sm:$0xff] %v7517_v34  ;;  %v2446_v1 = vadd.f32 %v2430_v42, %v2410_v50  ;;  %v2454_v30 = vadd.f32 %v2438_v44, %v2418_v48  ;;  %v3473_v48 = vmul.f32 %v7513_v8, %v7499_v27  ;;  %v7538_v44 = vld [vmem:[#allocation2 + $0x142] sm:$0xff] }
 0x3da   : > { %11604 = vst [vmem:[#allocation72_spill] sm:$0xff] %v7521_v24  ;;  %11606 = vst [vmem:[#allocation74_spill] sm:$0xff] %v7545_v0  ;;  %v3481_v7 = vmul.f32 %v7513_v8, %v7533_v6  ;;  %v3509_v19 = vmul.f32 %v7517_v34, %v7509_v20  ;;  %v2730_v27 = vmul.f32 %v7489_v3, %v7538_v44 }
 0x3db   : > { %v2482_v50 = vadd.f32 %v2466_v29, %v2446_v1  ;;  %v2490_v42 = vadd.f32 %v2474_v57, %v2454_v30  ;;  %v3413_v29 = vld [vmem:[#allocation3 + $0x140] sm:$0xff]  ;;  %v3489_v57 = vadd.f32 %v3473_v48, %v3437_v39  ;;  %v3517_v1 = vmul.f32 %v7517_v34, %v7545_v0 }
 0x3dc   : > { %v3545_v30 = vmul.f32 %v7521_v24, %v3403_v5  ;;  %v3497_v37 = vadd.f32 %v3481_v7, %v3445_v38  ;;  %v3553_v32 = vmul.f32 %v7521_v24, %v3413_v29  ;;  %v7559_v8 = vrot.slane %v7475_v35, %v7265_v14 }
 0x3dd   : > { %v2518_v4 = vadd.f32 %v2502_v58, %v2482_v50  ;;  %v2526_v63 = vadd.f32 %v2510_v49, %v2490_v42  ;;  %v3525_v62 = vadd.f32 %v3509_v19, %v3489_v57  ;;  %v7563_v20 = vrot.slane %v7475_v35, %v7287_v22  ;;  %v7569_v58 = vld [vmem:[#allocation3 + $0x150] sm:$0xff]  ;;  %v7575_v49 = vld [vmem:[#allocation3 + $0x160] sm:$0xff] }
 0x3de   : > { %11607 = vst [vmem:[#allocation75_spill] sm:$0xff] %v7559_v8  ;;  %v7567_v39 = vrot.slane %v7543_v46, %v7299_v28  ;;  %v3533_v38 = vadd.f32 %v3517_v1, %v3497_v37  ;;  %v7573_v19 = vrot.slane %v7543_v46, %v7315_v36  ;;  %11611 = vst [vmem:[#allocation79_spill] sm:$0xff] %v7575_v49  ;;  %v3423_v50 = vld [vmem:[#allocation3 + $0x1e0] sm:$0xff] }
 0x3df   : > { %11608 = vst [vmem:[#allocation76_spill] sm:$0xff] %v7563_v20  ;;  %v2554_v48 = vadd.f32 %v2538_v52, %v2518_v4  ;;  %v2562_v5 = vadd.f32 %v2546_v54, %v2526_v63  ;;  %v3561_v42 = vadd.f32 %v3545_v30, %v3525_v62  ;;  %v3581_v7 = vmul.f32 %v7559_v8, %v7533_v6  ;;  %v7587_v4 = vld [vmem:[%s11591_s4 + $0x18] sm:$0x7]  ;;  %v7589_v54 = vld [vmem:[#allocation3 + $0x1f0] sm:$0xff] }
 0x3e0   : > { %11609 = vst [vmem:[#allocation77_spill] sm:$0xff] %v7567_v39  ;;  %11610 = vst [vmem:[#allocation78_spill] sm:$0xff] %v7573_v19  ;;  %v3589_v57 = vmul.f32 %v7559_v8, %v7569_v58  ;;  %v3617_v52 = vmul.f32 %v7563_v20, %v7545_v0  ;;  %v3569_v62 = vadd.f32 %v3553_v32, %v3533_v38  ;;  %v7601_v32 = vld [vmem:[#allocation3 + $0x200] sm:$0xff] }
 0x3e1   : > { %v2630_v63 = vadd.f32 %v7458_v51, %v2554_v48  ;;  %v2638_v37 = vadd.f32 %v2622_v60, %v2562_v5  ;;  %v3625_v1 = vmul.f32 %v7563_v20, %v7575_v49  ;;  %v2758_v30 = vmul.f32 %v7493_v45, %v7465_v31 }
 0x3e2   : > { %v2794_v8 = vmul.f32 %v7497_v40, %v7523_v18  ;;  %v3597_v0 = vadd.f32 %v3581_v7, %v3561_v42  ;;  %v3653_v60 = vmul.f32 %v7567_v39, %v3413_v29  ;;  %v3605_v5 = vadd.f32 %v3589_v57, %v3569_v62 }
 0x3e3   : > { %v2666_v51 = vadd.f32 %v7481_v56, %v2630_v63  ;;  %v2674_v48 = vadd.f32 %v7485_v2, %v2638_v37  ;;  %v3661_v34 = vmul.f32 %v7567_v39, %v3423_v50  ;;  %v3689_v20 = vmul.f32 %v7573_v19, %v7569_v58  ;;  %v3757_v2 = vld [vmem:[#allocation3 + $0x1] sm:$0xff] }
 0x3e4   : > { %v3633_v38 = vadd.f32 %v3617_v52, %v3597_v0  ;;  %v3697_v24 = vmul.f32 %v7573_v19, %v7589_v54  ;;  %v7609_v42 = vrot.slane %v7587_v4, %v7257_v9  ;;  %v3641_v7 = vadd.f32 %v3625_v1, %v3605_v5  ;;  %v7630_v1 = vld [vmem:[#allocation3 + $0x11] sm:$0xff]  ;;  %v4131_v19 = vld [vmem:[#allocation3 + $0xa2] sm:$0xff] }
 0x3e5   : > { %v2702_v29 = vadd.f32 %v2686_v16, %v2666_v51  ;;  %v2710_v56 = vadd.f32 %v2694_v11, %v2674_v48  ;;  %v7613_v50 = vrot.slane %v7463_v59, %v7263_v13  ;;  %v7617_v0 = vrot.slane %v7312_v33, %v7287_v22  ;;  %v7632_v33 = vld [vmem:[#allocation2 + $0x152] sm:$0xff]  ;;  %v3767_v48 = vld [vmem:[#allocation3 + $0xa1] sm:$0xff] }
 0x3e6   : > { %11612 = vst [vmem:[#allocation80_spill] sm:$0xff] %v7609_v42  ;;  %v3669_v57 = vadd.f32 %v3653_v60, %v3633_v38  ;;  %v3725_v52 = vmul.f32 %v7609_v42, %v7575_v49  ;;  %v7623_v63 = vrot.slane %v7463_v59, %v7265_v14  ;;  %v3677_v37 = vadd.f32 %v3661_v34, %v3641_v7  ;;  %v7641_v34 = vld [vmem:[#allocation3 + $0x21] sm:$0xff] }
 0x3e7   : > { %11613 = vst [vmem:[#allocation81_spill] sm:$0xff] %v7613_v50  ;;  %11614 = vst [vmem:[#allocation82_spill] sm:$0xff] %v7617_v0  ;;  %v2738_v16 = vadd.f32 %v7531_v53, %v2702_v29  ;;  %v7626_v11 = vadd.f32 %v2730_v27, %v2710_v56  ;;  %v3733_v62 = vmul.f32 %v7609_v42, %v7601_v32  ;;  %v7644_v56 = vld [vmem:[#allocation2 + $0x162] sm:$0xff]  ;;  %v7773_v42 = vld [vmem:[#allocation3 + $0x12] sm:$0xff] }
 0x3e8   : > { %11615 = vst [vmem:[#allocation83_spill] sm:$0xff] %v7623_v63  ;;  %11617 = vst [vmem:[#allocation85_spill] sm:$0xff] %v7632_v33  ;;  %v2830_v60 = vmul.f32 %v7507_v26, %v7538_v44  ;;  %v3705_v51 = vadd.f32 %v3689_v20, %v3669_v57  ;;  %v3801_v5 = vmul.f32 %v7613_v50, %v3757_v2 }
 0x3e9   : > { %11616 = vst [vmem:[#allocation84_spill] sm:$0xff] %v7626_v11  ;;  %v2774_v38 = vadd.f32 %v2758_v30, %v2738_v16  ;;  %v7639_v27 = vrot.slane %v7329_v43, %v7299_v28  ;;  %v3713_v53 = vadd.f32 %v3697_v24, %v3677_v37  ;;  %v3809_v29 = vmul.f32 %v7613_v50, %v3767_v48  ;;  %v7646_v11 = vld [vmem:[#allocation3 + $0xb1] sm:$0xff] }
 0x3ea   : > { %11619 = vst [vmem:[#allocation87_spill] sm:$0xff] %v7644_v56  ;;  %v3741_v7 = vadd.f32 %v3725_v52, %v3705_v51  ;;  %v3837_v20 = vmul.f32 %v7623_v63, %v7630_v1  ;;  %v7652_v44 = vrot.slane %v7463_v59, %v7287_v22  ;;  %v7656_v43 = vrot.slane %v7475_v35, %v7299_v28  ;;  %v7662_v52 = vld [vmem:[#allocation3 + $0xc1] sm:$0xff] }
 0x3eb   : > { %11618 = vst [vmem:[#allocation86_spill] sm:$0xff] %v7639_v27  ;;  %v2810_v24 = vadd.f32 %v2794_v8, %v2774_v38  ;;  %v2866_v30 = vmul.f32 %v7617_v0, %v7632_v33  ;;  %v3749_v2 = vadd.f32 %v3733_v62, %v3713_v53  ;;  %v3845_v57 = vmul.f32 %v7623_v63, %v7646_v11  ;;  %v3777_v53 = vld [vmem:[#allocation3 + $0x141] sm:$0xff] }
 0x3ec   : > { %11620 = vst [vmem:[#allocation88_spill] sm:$0xff] %v7652_v44  ;;  %11621 = vst [vmem:[#allocation89_spill] sm:$0xff] %v7656_v43  ;;  %v3817_v16 = vadd.f32 %v3801_v5, %v3741_v7  ;;  %v3873_v37 = vmul.f32 %v7652_v44, %v7641_v34  ;;  %v7668_v51 = vrot.slane %v7475_v35, %v7315_v36 }
 0x3ed   : > { %11622 = vst [vmem:[#allocation90_spill] sm:$0xff] %v7662_v52  ;;  %v2846_v26 = vadd.f32 %v2830_v60, %v2810_v24  ;;  %v2902_v8 = vmul.f32 %v7639_v27, %v7644_v56  ;;  %v3825_v38 = vadd.f32 %v3809_v29, %v3749_v2  ;;  %v3881_v62 = vmul.f32 %v7652_v44, %v7662_v52  ;;  %v7683_v60 = vld [vmem:[%s11625_s17] ss:$0 sm:$0xff]  ;;  %v7685_v29 = vld [vmem:[#allocation3 + $0x151] sm:$0xff]  ;;  %s4940_s17 = sadd.s32 %s5279_s28, %s5274_s18  ;;  %s6177_s28 = smov [#allocation10]  }
 0x3ee   : > { %11623 = vst [vmem:[#allocation91_spill] sm:$0xff] %v7668_v51  ;;  %v3853_v0 = vadd.f32 %v3837_v20, %v3817_v16  ;;  %v3909_v40 = vmul.f32 %v7656_v43, %v3767_v48  ;;  %v7677_v5 = vrot.slane %v7543_v46, %v7257_v9  ;;  %v3917_v18 = vmul.f32 %v7656_v43, %v3777_v53  ;;  %v7699_v16 = vld [vmem:[#allocation3 + $0x161] sm:$0xff]  ;;  %s5275_s6 = sshll.u32 %s4940_s17, 7  ;;  %s6018_s18 = sshll.u32 %s6177_s28, 4  ;;  %s6019_s18 = int_to_ptr.vmem [resolvable:$false] %s6018_s18 }
 0x3ef   : > { %v2882_v7 = vadd.f32 %v2866_v30, %v2846_v26  ;;  %v3861_v63 = vadd.f32 %v3845_v57, %v3825_v38  ;;  %11627 = vst [vmem:[#allocation93_spill] sm:$0xff] %v7683_v60  ;;  %v3945_v20 = vmul.f32 %v7668_v51, %v7646_v11  ;;  %v7691_v48 = vrot.slane %v7543_v46, %v7259_v10  ;;  %v3787_v38 = vld [vmem:[#allocation3 + $0x1e1] sm:$0xff]  ;;  %s6020_s17 = scalar_lea.vmem %s6019_s18, 4096 }
 0x3f0   : > { %11624 = vst [vmem:[#allocation92_spill] sm:$0xff] %v7677_v5  ;;  %v3889_v24 = vadd.f32 %v3873_v37, %v3853_v0  ;;  %v3953_v30 = vmul.f32 %v7668_v51, %v7685_v29  ;;  %v7697_v57 = vmul.f32 %v7273_v17, %v7267_v15  ;;  %11629 = vst [vmem:[#allocation95_spill] sm:$0xff] %v7699_v16  ;;  %v11642_v56 = vld [vmem:[#allocation45_spill] sm:$0xff] }
 0x3f1   : > { %11628 = vst [vmem:[#allocation94_spill] sm:$0xff] %v7691_v48  ;;  %v2918_v2 = vadd.f32 %v2902_v8, %v2882_v7  ;;  %v3897_v26 = vadd.f32 %v3881_v62, %v3861_v63  ;;  %v3981_v37 = vmul.f32 %v7677_v5, %v7662_v52  ;;  %v7705_v27 = vrot.slane %v7543_v46, %v7261_v12  ;;  %v7720_v7 = vld [vmem:[#allocation3 + $0x1f1] sm:$0xff] }
 0x3f2   : > { %v3925_v0 = vadd.f32 %v3909_v40, %v3889_v24  ;;  %v7709_v63 = vmul.f32 %v7273_v17, %v7289_v25  ;;  %v3989_v62 = vmul.f32 %v7677_v5, %v7699_v16  ;;  %v7718_v40 = vmul.f32 %v7285_v21, %v7322_v41  ;;  %v11648_v17 = vld [vmem:[#allocation50_spill] sm:$0xff] }
 0x3f3   : > { %11630 = vst [vmem:[#allocation96_spill] sm:$0xff] %v7705_v27  ;;  %v7712_v8 = vadd.f32 %v7683_v60, %v2918_v2  ;;  %v3933_v15 = vadd.f32 %v3917_v18, %v3897_v26  ;;  %v4017_v51 = vmul.f32 %v7691_v48, %v3777_v53  ;;  %v7725_v52 = vrot.slane %v7587_v4, %v7263_v13 }
 0x3f4   : > { %11631 = vst [vmem:[#allocation97_spill] sm:$0xff] %v7709_v63  ;;  %11632 = vst [vmem:[#allocation98_spill] sm:$0xff] %v7718_v40  ;;  %v3961_v24 = vadd.f32 %v3945_v20, %v3925_v0  ;;  %v7729_v2 = vmul.f32 %v7335_v47, %v7347_v55  ;;  %v4025_v63 = vmul.f32 %v7691_v48, %v3787_v38  ;;  %v7739_v20 = vld [vmem:[#allocation3 + $0x201] sm:$0xff] }
 0x3f5   : > { %11633 = vst [vmem:[#allocation99_spill] sm:$0xff] %v7725_v52  ;;  %v7732_v18 = vmul.f32 0.70710677, %v7712_v8  ;;  %v3969_v26 = vadd.f32 %v3953_v30, %v3933_v15  ;;  %v7737_v40 = vmul.f32 %v7335_v47, %v7355_v61  ;;  %v4053_v0 = vmul.f32 %v7705_v27, %v7685_v29  ;;  %v4121_v15 = vld [vmem:[#allocation3 + $0x2] sm:$0xff] }
 0x3f6   : > { %11634 = vst [vmem:[#allocation100_spill] sm:$0xff] %v7729_v2  ;;  %v3997_v53 = vadd.f32 %v3981_v37, %v3961_v24  ;;  %v7745_v55 = vrot.slane %v7463_v59, %v7299_v28  ;;  %v11637_v2 = vld [vmem:[#allocation41_spill] sm:$0xff]  ;;  %v4061_v61 = vmul.f32 %v7705_v27, %v7720_v7  ;;  %v11639_v37 = vld [vmem:[#allocation44_spill] sm:$0xff]  ;;  %v4089_v5 = vmul.f32 %v7725_v52, %v7699_v16 }
 0x3f7   : > { %11635 = vst [vmem:[#allocation101_spill] sm:$0xff] %v7737_v40  ;;  %v7749_v60 = vmul.f32 %v11637_v2, %v7373_v23  ;;  %v7752_v30 = vand.u32 2147483647, %v7732_v18  ;;  %v4005_v38 = vadd.f32 %v3989_v62, %v3969_v26  ;;  %v7758_v24 = vmul.f32 %v11637_v2, %v11639_v37  ;;  %v11647_v16 = vld [vmem:[#allocation56_spill] sm:$0xff] }
 0x3f8   : > { %11636 = vst [vmem:[#allocation102_spill] sm:$0xff] %v7745_v55  ;;  %v4033_v40 = vadd.f32 %v4017_v51, %v3997_v53  ;;  %v7764_v23 = vrot.slane %v7463_v59, %v7315_v36  ;;  %v7768_v44 = vmul.f32 %v11637_v2, %v11642_v56  ;;  %v4097_v27 = vmul.f32 %v7725_v52, %v7739_v20  ;;  %v11644_v51 = vld [vmem:[#allocation52_spill] sm:$0xff]  ;;  %v11645_v53 = vld [vmem:[#allocation46_spill] sm:$0xff]  ;;  %v11651_v52 = vld [vmem:[#allocation57_spill] sm:$0xff] }
 0x3f9   : > { %11638 = vst [vmem:[#allocation103_spill] sm:$0xff] %v7749_v60  ;;  %11640 = vst [vmem:[#allocation44_spill] sm:$0xff] %v7758_v24  ;;  %v3036_v62 = vmul.f32 0.3275911, %v7752_v30  ;;  %v4041_v26 = vadd.f32 %v4025_v63, %v4005_v38  ;;  %v7777_v24 = vmul.f32 %v11645_v53, %v11644_v51  ;;  %v7781_v36 = vmul.f32 %v11648_v17, %v11647_v16  ;;  %v11654_v60 = vld [vmem:[#allocation55_spill] sm:$0xff] }
 0x3fa   : > { %11641 = vst [vmem:[#allocation104_spill] sm:$0xff] %v7764_v23  ;;  %11643 = vst [vmem:[#allocation45_spill] sm:$0xff] %v7768_v44  ;;  %v4069_v59 = vadd.f32 %v4053_v0, %v4033_v40  ;;  %v4165_v44 = vmul.f32 %v7745_v55, %v4121_v15  ;;  %v4173_v63 = vmul.f32 %v7745_v55, %v4131_v19  ;;  %v7797_v0 = vld [vmem:[#allocation3 + $0x22] sm:$0xff]  ;;  %v7799_v15 = vld [vmem:[#allocation3 + $0xb2] sm:$0xff]  ;;  %vm2988_vm3 = vcmp.lt.f32.partialorder %v7732_v18, 0.0 }
 0x3fb   : > { %11646 = vst [vmem:[#allocation105_spill] sm:$0xff] %v7777_v24  ;;  %11649 = vst [vmem:[#allocation56_spill] sm:$0xff] %v7781_v36  ;;  %v3052_v2 = vadd.f32 1.0, %v3036_v62  ;;  %v4077_v49 = vadd.f32 %v4061_v61, %v4041_v26  ;;  %v7787_v38 = vrot.slane %v7475_v35, %v7257_v9  ;;  %v7791_v51 = vmul.f32 %v11648_v17, %v11651_v52  ;;  %v11653_v24 = vld [vmem:[#allocation59_spill] sm:$0xff]  ;;  %v11658_v62 = vld [vmem:[#allocation62_spill] sm:$0xff] }
 0x3fc   : > { %v7795_v16 = vmul.f32 %v11654_v60, %v11653_v24  ;;  %v4105_v40 = vadd.f32 %v4089_v5, %v4069_v59  ;;  %11656 = vst [vmem:[#allocation107_spill] sm:$0xff] %v7797_v0  ;;  %11657 = vst [vmem:[#allocation108_spill] sm:$0xff] %v7799_v15  ;;  %v4201_v61 = vmul.f32 %v7764_v23, %v7773_v42  ;;  %v7823_v36 = vld [vmem:[#allocation3 + $0xc2] sm:$0xff] }
 0x3fd   : > { %11650 = vst [vmem:[#allocation106_spill] sm:$0xff] %v7787_v38  ;;  %11652 = vst [vmem:[#allocation57_spill] sm:$0xff] %v7791_v51  ;;  %v7805_v9 = vmul.f32 %v11654_v60, %v11658_v62  ;;  %5762 = vrcp.f32 %v3052_v2  ;;  %v4113_v26 = vadd.f32 %v4097_v27, %v4077_v49  ;;  %v4209_v52 = vmul.f32 %v7764_v23, %v7799_v15  ;;  %v7809_v51 = vld [vmem:[#allocation2 + $0x30] sm:$0xff] }
 0x3fe   : > { %11655 = vst [vmem:[#allocation59_spill] sm:$0xff] %v7795_v16  ;;  %v7813_v5 = vmul.f32 %v11654_v60, %v7465_v31  ;;  %v7817_v24 = vmul.f32 %v7489_v3, %v7632_v33  ;;  %v7821_v59 = vmul.f32 %v7493_v45, %v7632_v33  ;;  %11663 = vst [vmem:[#allocation113_spill] sm:$0xff] %v7823_v36  ;;  %v11665_v60 = vld [vmem:[#allocation66_spill] sm:$0xff]  ;;  %v11667_v33 = vld [vmem:[#allocation29_spill] sm:$0xff] }
 0x3ff   : > { %11659 = vst [vmem:[#allocation109_spill] sm:$0xff] %v7805_v9  ;;  %v4181_v49 = vadd.f32 %v4165_v44, %v4105_v40  ;;  %v4189_v27 = vadd.f32 %v4173_v63, %v4113_v26  ;;  %v4237_v2 = vmul.f32 %v7787_v38, %v7797_v0  ;;  %v4245_v9 = vmul.f32 %v7787_v38, %v7823_v36  ;;  %v7835_v16 = vld [vmem:[#allocation3 + $0x142] sm:$0xff]  ;;  %v11668_v45 = vld [vmem:[#allocation31_spill] sm:$0xff]  ;;  %v11669_v63 = vld [vmem:[#allocation32_spill] sm:$0xff] }
 0x400   : > { %11660 = vst [vmem:[#allocation110_spill] sm:$0xff] %v7813_v5  ;;  %11661 = vst [vmem:[#allocation111_spill] sm:$0xff] %v7817_v24  ;;  %v7831_v5 = vrot.slane %v7475_v35, %v7259_v10  ;;  %v11666_v24 = vld [vmem:[#allocation67_spill] sm:$0xff]  ;;  %v1923_v44 = vmul.f32 %v11668_v45, %v11667_v33  ;;  %v1959_v40 = vmul.f32 %v11669_v63, %v7809_v51  ;;  %v3244_v26 = vsub.f32 0.0, %v7752_v30 }
 0x401   : > { %11662 = vst [vmem:[#allocation112_spill] sm:$0xff] %v7821_v59  ;;  %v3438_v23 = vmul.f32 %v11666_v24, %v11665_v60  ;;  %v4217_v59 = vadd.f32 %v4201_v61, %v4181_v49  ;;  %v7844_v38 = vmul.f32 %v11666_v24, %v7533_v6  ;;  %v4225_v10 = vadd.f32 %v4209_v52, %v4189_v27  ;;  %v11671_v60 = vld [vmem:[#allocation72_spill] sm:$0xff] }
 0x402   : > { %11664 = vst [vmem:[#allocation114_spill] sm:$0xff] %v7831_v5  ;;  %v4281_v0 = vmul.f32 %v7831_v5, %v7835_v16  ;;  %v7850_v3 = vmul.f32 %v11671_v60, %v7569_v58  ;;  %v7854_v61 = vmul.f32 %v7567_v39, %v7589_v54  ;;  %v1939_v49 = vadd.f32 %v1923_v44, %v7697_v57 }
 0x403   : > { %11670 = vst [vmem:[#allocation66_spill] sm:$0xff] %v7844_v38  ;;  %v1995_v31 = vmul.f32 %v7285_v21, %v7289_v25  ;;  %v4253_v62 = vadd.f32 %v4237_v2, %v4217_v59  ;;  %v4261_v24 = vadd.f32 %v4245_v9, %v4225_v10  ;;  %v4273_v52 = vmul.f32 %v7831_v5, %v4131_v19  ;;  %v7864_v38 = vld [vmem:[#allocation2 + $0xd0] sm:$0xff]  ;;  %v11676_v25 = vld [vmem:[#allocation34_spill] sm:$0xff] }
 0x404   : > { %11672 = vst [vmem:[#allocation29_spill] sm:$0xff] %v7850_v3  ;;  %11673 = vst [vmem:[#allocation115_spill] sm:$0xff] %v7854_v61  ;;  %v7862_v27 = vrot.slane %v7475_v35, %v7261_v12  ;;  %v7868_v3 = vmul.f32 %v7567_v39, %v7601_v32  ;;  %v7872_v54 = vmul.f32 %v7613_v50, %v7630_v1  ;;  %v11677_v59 = vld [vmem:[#allocation35_spill] sm:$0xff]  ;;  %v11692_v61 = vld [vmem:[#allocation70_spill] sm:$0xff] }
 0x405   : > { %v1975_v57 = vadd.f32 %v1959_v40, %v1939_v49  ;;  %v2031_v9 = vmul.f32 %v11677_v59, %v11676_v25  ;;  %v3260_v19 = vmul.f32 %v3244_v26, %v7752_v30  ;;  %v7879_v12 = vmul.f32 %v7613_v50, %v7641_v34  ;;  %v11683_v30 = vld [vmem:[#allocation36_spill] sm:$0xff] }
 0x406   : > { %11674 = vst [vmem:[#allocation116_spill] sm:$0xff] %v7862_v27  ;;  %11675 = vst [vmem:[#allocation117_spill] sm:$0xff] %v7868_v3  ;;  %v7881_v35 = vadd.f32 %v4281_v0, %v4261_v24  ;;  %v7885_v32 = vrot.slane %v7543_v46, %v7263_v13  ;;  %v7889_v1 = vmul.f32 %v7613_v50, %v7646_v11 }
 0x407   : > { %11678 = vst [vmem:[#allocation34_spill] sm:$0xff] %v7879_v12  ;;  %v7893_v2 = vmul.f32 %v7656_v43, %v7685_v29  ;;  %v2011_v44 = vadd.f32 %v1995_v31, %v1975_v57  ;;  %v2067_v40 = vmul.f32 %v11683_v30, %v7864_v38  ;;  %v7897_v26 = vpop.eup %5762  ;;  %v7901_v0 = vmul.f32 %v7691_v48, %v7720_v7  ;;  %v7914_v57 = vld [vmem:[#allocation2 + $0x170] sm:$0xff] }
 0x408   : > { %11679 = vst [vmem:[#allocation118_spill] sm:$0xff] %v7881_v35  ;;  %11680 = vst [vmem:[#allocation119_spill] sm:$0xff] %v7885_v32  ;;  %v7905_v13 = vmul.f32 %v7691_v48, %v7739_v20  ;;  %v4289_v24 = vadd.f32 %v4273_v52, %v4253_v62  ;;  %v4309_v10 = vmul.f32 %v7862_v27, %v7799_v15  ;;  %v3100_v49 = vmul.f32 1.0614054, %v7897_v26  ;;  %v11695_v12 = vld [vmem:[#allocation71_spill] sm:$0xff] }
 0x409   : > { %11681 = vst [vmem:[#allocation120_spill] sm:$0xff] %v7889_v1  ;;  %11682 = vst [vmem:[#allocation121_spill] sm:$0xff] %v7893_v2  ;;  %v7912_v31 = vmul.f32 %v7745_v55, %v7773_v42  ;;  %v2047_v3 = vadd.f32 %v2031_v9, %v2011_v44  ;;  %v2103_v7 = vmul.f32 %v7335_v47, %v7322_v41  ;;  %v3276_v20 = vmul.f32 1.442695, %v3260_v19  ;;  %v11689_v2 = vld [vmem:[#allocation38_spill] sm:$0xff]  ;;  %v11690_v1 = vld [vmem:[#allocation39_spill] sm:$0xff] }
 0x40a   : > { %11684 = vst [vmem:[#allocation122_spill] sm:$0xff] %v7901_v0  ;;  %11685 = vst [vmem:[#allocation123_spill] sm:$0xff] %v7905_v13  ;;  %v7918_v0 = vld [vmem:[#allocation3 + $0x30] sm:$0xff]  ;;  %v4345_v62 = vmul.f32 %v7885_v32, %v7823_v36  ;;  %v7925_v52 = vrot.slane %v7543_v46, %v7265_v14  ;;  %v3116_v42 = vadd.f32 -1.4531521, %v3100_v49  ;;  %v2139_v9 = vmul.f32 %v11690_v1, %v11689_v2  ;;  %v11691_v44 = vld [vmem:[#allocation69_spill] sm:$0xff] }
 0x40b   : > { %11686 = vst [vmem:[#allocation124_spill] sm:$0xff] %v7912_v31  ;;  %11687 = vst [vmem:[#allocation125_spill] sm:$0xff] %v7918_v0  ;;  %v2083_v13 = vadd.f32 %v2067_v40, %v2047_v3  ;;  %v3474_v41 = vmul.f32 %v11692_v61, %v11691_v44  ;;  %v4325_v35 = vadd.f32 %v4309_v10, %v4289_v24  ;;  %v11694_v19 = vld [vmem:[#allocation40_spill] sm:$0xff]  ;;  %v7945_v24 = vmul.f32 0.5, %v7712_v8  ;;  %v11701_v27 = vld [vmem:[#allocation75_spill] sm:$0xff] }
 0x40c   : > { %11688 = vst [vmem:[#allocation126_spill] sm:$0xff] %v7925_v52  ;;  %v7933_v50 = vrot.slane %v7543_v46, %v7287_v22  ;;  %v2175_v55 = vmul.f32 %v11694_v19, %v7914_v57  ;;  %v3510_v14 = vmul.f32 %v11695_v12, %v7918_v0  ;;  %v3132_v49 = vmul.f32 %v7897_v26, %v3116_v42  ;;  %v7940_v3 = vld [vmem:[#allocation3 + $0x152] sm:$0xff] }
 0x40d   : > { %11696 = vst [vmem:[#allocation69_spill] sm:$0xff] %v7940_v3  ;;  %v2119_v40 = vadd.f32 %v2103_v7, %v2083_v13  ;;  %v3490_v31 = vadd.f32 %v3474_v41, %v3438_v23  ;;  %v3546_v32 = vmul.f32 %v11671_v60, %v7533_v6  ;;  %v11042_v22 = vmov 1.0   ;;  %v7956_v42 = vld [vmem:[#allocation3 + $0xd0] sm:$0xff]  ;;  %v7958_v13 = vld [vmem:[#allocation3 + $0x162] sm:$0xff] }
 0x40e   : > { %11693 = vst [vmem:[#allocation38_spill] sm:$0xff] %v7933_v50  ;;  %v7950_v46 = vsel %vm2988_vm3, -1.0, %v11042_v22  ;;  %5764 = vpow2.f32 %v3276_v20  ;;  %v7954_v10 = vrot.slane %v7587_v4, %v7299_v28  ;;  %11698 = vst [vmem:[#allocation128_spill] sm:$0xff] %v7956_v42  ;;  %v3148_v23 = vadd.f32 1.4214138, %v3132_v49  ;;  %v7960_v7 = vld [vmem:[#allocation2 + $0x31] sm:$0xff] }
 0x40f   : > { %11699 = vst [vmem:[#allocation129_spill] sm:$0xff] %v7958_v13  ;;  %v2155_v6 = vadd.f32 %v2139_v9, %v2119_v40  ;;  %v3526_v8 = vadd.f32 %v3510_v14, %v3490_v31  ;;  %v11700_v41 = vld [vmem:[#allocation74_spill] sm:$0xff]  ;;  %v4361_v18 = vadd.f32 %v4345_v62, %v4325_v35  ;;  %v4381_v20 = vmul.f32 %v7925_v52, %v7835_v16  ;;  %v7971_v9 = vld [vmem:[#allocation2 + $0xd1] sm:$0xff] }
 0x410   : > { %11697 = vst [vmem:[#allocation127_spill] sm:$0xff] %v7954_v10  ;;  %v3582_v36 = vmul.f32 %v11701_v27, %v11700_v41  ;;  %v4417_v28 = vmul.f32 %v7933_v50, %v7940_v3  ;;  %v11702_v4 = vld [vmem:[#allocation42_spill] sm:$0xff]  ;;  %v3164_v49 = vmul.f32 %v7897_v26, %v3148_v23  ;;  %11703 = vst [vmem:[#allocation74_spill] sm:$0xff] %v7971_v9  ;;  %v11704_v31 = vld [vmem:[#allocation76_spill] sm:$0xff]  ;;  %vm4899_vm3 = vcmask 64512  }
 0x411   : > { %v2287_v22 = vmul.f32 %v11702_v4, %v11639_v37  ;;  %v2191_v5 = vadd.f32 %v2175_v55, %v2155_v6  ;;  %v3562_v40 = vadd.f32 %v3546_v32, %v3526_v8  ;;  %v3618_v14 = vmul.f32 %v11704_v31, %v7956_v42  ;;  %v11705_v16 = vld [vmem:[#allocation43_spill] sm:$0xff]  ;;  %v11706_v52 = vld [vmem:[#allocation48_spill] sm:$0xff]  ;;  %v7988_v31 = vld [vmem:[#allocation2 + $0x40] sm:$0xff] }
 0x412   : > { %v4453_v35 = vmul.f32 %v7954_v10, %v7958_v13  ;;  %v2323_v62 = vmul.f32 %v11705_v16, %v7960_v7  ;;  %v2359_v50 = vmul.f32 %v11645_v53, %v11642_v56  ;;  %v11707_v37 = vld [vmem:[#allocation47_spill] sm:$0xff]  ;;  %v3180_v23 = vadd.f32 -0.28449672, %v3164_v49  ;;  %v11710_v13 = vld [vmem:[#allocation49_spill] sm:$0xff]  ;;  %v11711_v27 = vld [vmem:[#allocation52_spill] sm:$0xff] }
 0x413   : > { %v2395_v3 = vmul.f32 %v11707_v37, %v11706_v52  ;;  %v7983_v55 = vld [vmem:[#allocation2 + $0x171] sm:$0xff]  ;;  %v3598_v8 = vadd.f32 %v3582_v36, %v3562_v40  ;;  %v3654_v15 = vmul.f32 %v7567_v39, %v7569_v58  ;;  %v4397_v10 = vadd.f32 %v4381_v20, %v4361_v18  ;;  %v11712_v53 = vld [vmem:[#allocation53_spill] sm:$0xff]  ;;  %v11716_v58 = vld [vmem:[#allocation78_spill] sm:$0xff] }
 0x414   : > { %11708 = vst [vmem:[#allocation130_spill] sm:$0xff] %v7983_v55  ;;  %v11709_v6 = vld [vmem:[#allocation103_spill] sm:$0xff]  ;;  %v2431_v16 = vmul.f32 %v11710_v13, %v7971_v9  ;;  %v2467_v56 = vmul.f32 %v11648_v17, %v11711_v27  ;;  %v11717_v18 = vld [vmem:[#allocation54_spill] sm:$0xff] }
 0x415   : > { %v2267_v32 = vadd.f32 %v11709_v6, %v2191_v5  ;;  %v11713_v37 = vld [vmem:[#allocation51_spill] sm:$0xff]  ;;  %v3196_v5 = vmul.f32 %v7897_v26, %v3180_v23  ;;  %v3634_v40 = vadd.f32 %v3618_v14, %v3598_v8  ;;  %v8003_v20 = vmul.f32 %v11717_v18, %v7983_v55  ;;  %v11719_v27 = vld [vmem:[#allocation30_spill] sm:$0xff]  ;;  %v11720_v8 = vld [vmem:[#allocation80_spill] sm:$0xff] }
 0x416   : > { %v2503_v49 = vmul.f32 %v11713_v37, %v11712_v53  ;;  %v7996_v52 = vld [vmem:[#allocation3 + $0x170] sm:$0xff]  ;;  %v1888_v17 = vmul.f32 %v11719_v27, %v11667_v33  ;;  %v1924_v37 = vmul.f32 %v11668_v45, %v7809_v51  ;;  %v1960_v23 = vmul.f32 %v11669_v63, %v7988_v31  ;;  %v11721_v55 = vld [vmem:[#allocation62_spill] sm:$0xff] }
 0x417   : > { %11714 = vst [vmem:[#allocation103_spill] sm:$0xff] %v7996_v52  ;;  %v2303_v36 = vadd.f32 %v2287_v22, %v2267_v32  ;;  %v11715_v6 = vld [vmem:[#allocation79_spill] sm:$0xff]  ;;  %v3212_v22 = vadd.f32 0.2548296, %v3196_v5  ;;  %v3670_v32 = vadd.f32 %v3654_v15, %v3634_v40  ;;  %v3726_v53 = vmul.f32 %v11720_v8, %v7996_v52  ;;  %v11722_v9 = vld [vmem:[#allocation58_spill] sm:$0xff]  ;;  %v11724_v15 = vld [vmem:[#allocation61_spill] sm:$0xff] }
 0x418   : > { %v3690_v39 = vmul.f32 %v11716_v58, %v11715_v6  ;;  %v8005_v13 = vld [vmem:[#allocation2 + $0x32] sm:$0xff]  ;;  %v5765_v58 = vpop.eup %5764  ;;  %v4433_v18 = vadd.f32 %v4417_v28, %v4397_v10  ;;  %v8017_v6 = vmul.f32 %v11722_v9, %v11721_v55  ;;  %v1940_v42 = vadd.f32 %v1924_v37, %v1888_v17  ;;  %v11728_v17 = vld [vmem:[#allocation73_spill] sm:$0xff] }
 0x419   : > { %11718 = vst [vmem:[#allocation52_spill] sm:$0xff] %v8005_v13  ;;  %v2339_v14 = vadd.f32 %v2323_v62, %v2303_v36  ;;  %v1996_v33 = vmul.f32 %v7285_v21, %v11676_v25  ;;  %v3228_v45 = vmul.f32 %v7897_v26, %v3212_v22  ;;  %v8022_v63 = vld [vmem:[#allocation2 + $0xd2] sm:$0xff]  ;;  %v8026_v62 = vmul.f32 %v11724_v15, %v8005_v13  ;;  %v8028_v36 = vld [vmem:[#allocation2 + $0xe0] sm:$0xff] }
 0x41a   : > { %11723 = vst [vmem:[#allocation62_spill] sm:$0xff] %v8022_v63  ;;  %v3706_v5 = vadd.f32 %v3690_v39, %v3670_v32  ;;  %11725 = vst [vmem:[#allocation131_spill] sm:$0xff] %v8028_v36  ;;  %v11726_v10 = vld [vmem:[#allocation60_spill] sm:$0xff]  ;;  %v11727_v28 = vld [vmem:[#allocation63_spill] sm:$0xff]  ;;  %v2032_v26 = vmul.f32 %v11677_v59, %v7864_v38  ;;  %v4469_v9 = vadd.f32 %v4453_v35, %v4433_v18 }
 0x41b   : > { %v2375_v27 = vadd.f32 %v2359_v50, %v2339_v14  ;;  %v8032_v55 = vmul.f32 %v11727_v28, %v11726_v10  ;;  %v11729_v37 = vld [vmem:[#allocation64_spill] sm:$0xff]  ;;  %v1976_v50 = vadd.f32 %v1960_v23, %v1940_v42  ;;  %v3308_v22 = vmul.f32 %v5765_v58, %v3228_v45  ;;  %v11730_v39 = vld [vmem:[#allocation83_spill] sm:$0xff]  ;;  %v11731_v10 = vld [vmem:[#allocation65_spill] sm:$0xff] }
 0x41c   : > { %v8036_v40 = vmul.f32 %v11729_v37, %v11728_v17  ;;  %v8038_v25 = vld [vmem:[#allocation3 + $0x31] sm:$0xff]  ;;  %v3742_v15 = vadd.f32 %v3726_v53, %v3706_v5  ;;  %v3838_v32 = vmul.f32 %v11730_v39, %v7641_v34  ;;  %v8046_v28 = vmul.f32 %v11731_v10, %v8022_v63  ;;  %v8058_v34 = vld [vmem:[%s11734_s25] ss:$0 sm:$0xff]  ;;  %v11742_v63 = vld [vmem:[#allocation90_spill] sm:$0xff]  ;;  %s4943_s25 = sshll.u32 %s7103_s3, 4  ;;  %s10756_s25 = int_to_ptr.vmem [resolvable:$true] %s4943_s25 }
 0x41d   : > { %v2411_v14 = vadd.f32 %v2395_v3, %v2375_v27  ;;  %v2012_v13 = vadd.f32 %v1996_v33, %v1976_v50  ;;  %v2068_v37 = vmul.f32 %v11683_v30, %v8028_v36  ;;  %v3324_v17 = vsub.f32 1.0, %v3308_v22  ;;  %v8050_v23 = vld [vmem:[#allocation3 + $0xd1] sm:$0xff]  ;;  %11736 = vst [vmem:[#allocation132_spill] sm:$0xff] %v8058_v34  ;;  %v11737_v35 = vld [vmem:[#allocation85_spill] sm:$0xff]  ;;  %v11740_v33 = vld [vmem:[#allocation82_spill] sm:$0xff]  ;;  %s6014_s24 = scalar_lea.vmem %s10756_s25, 2048  ;;  %p6021_p9 = scmp.lt.s32.totalorder %s10756_s25, %s6019_s18 }
 0x41e   : > { %11732 = vst [vmem:[#allocation60_spill] sm:$0xff] %v8050_v23  ;;  %v3818_v45 = vadd.f32 %v7872_v54, %v3742_v15  ;;  %v11733_v53 = vld [vmem:[#allocation88_spill] sm:$0xff]  ;;  %v11739_v27 = vld [vmem:[#allocation87_spill] sm:$0xff]  ;;  %v2104_v54 = vmul.f32 %v7335_v47, %v11689_v2  ;;  %v8073_v10 = vld [vmem:[#allocation2 + $0x180] sm:$0xff]  ;;  %p6015_p4 = scmp.ne.s32.totalorder %s10756_s25, %s6014_s24  ;;  %p6022_p13 = scmp.lt.s32.totalorder %s6020_s17, %s6014_s24 }
 0x41f   : > { %v2447_v42 = vadd.f32 %v2431_v16, %v2411_v14  ;;  %v3874_v3 = vmul.f32 %v11733_v53, %v8038_v25  ;;  %v11738_v58 = vld [vmem:[#allocation68_spill] sm:$0xff]  ;;  %v8066_v5 = vmul.f32 %v11740_v33, %v11739_v27  ;;  %v2048_v16 = vadd.f32 %v2032_v26, %v2012_v13  ;;  %11741 = vst [vmem:[#allocation85_spill] sm:$0xff] %v8073_v10  ;;  %v8081_v2 = vld [vmem:[#allocation3 + $0x40] sm:$0xff] }
 0x420   : > { %v8062_v18 = vmul.f32 %v11738_v58, %v11737_v35  ;;  %v3340_v15 = vmul.f32 %v3324_v17, %v7950_v46  ;;  %v3854_v22 = vadd.f32 %v3838_v32, %v3818_v45  ;;  %v3910_v14 = vmul.f32 %v7656_v43, %v7646_v11  ;;  %v11743_v35 = vld [vmem:[#allocation91_spill] sm:$0xff]  ;;  %v11744_v30 = vld [vmem:[#allocation92_spill] sm:$0xff]  ;;  %11745 = vst [vmem:[#allocation90_spill] sm:$0xff] %v8081_v2  ;;  %p6016_p6 = pnand %p6015_p4, %p12748_p0  ;;  %p6023_p7 = por %p6022_p13, %p6021_p9 }
 0x421   : > { %v2483_v50 = vadd.f32 %v2467_v56, %v2447_v42  ;;  %v3946_v58 = vmul.f32 %v11743_v35, %v11742_v63  ;;  %v3982_v33 = vmul.f32 %v11744_v30, %v8050_v23  ;;  %v2084_v27 = vadd.f32 %v2068_v37, %v2048_v16  ;;  %v8084_v26 = vld [vmem:[#allocation2 + $0x172] sm:$0xff] }
 0x422   : > { %v2140_v13 = vmul.f32 %v11690_v1, %v7914_v57  ;;  %v3356_v46 = vadd.f32 1.0, %v3340_v15  ;;  %v4491_v56 = vadd.f32 %v8058_v34, %v4469_v9  ;;  %11746 = vst [vmem:[#allocation133_spill] sm:$0xff] %v8084_v26  ;;  %v3890_v11 = vadd.f32 %v3874_v3, %v3854_v22  ;;  %v11747_v45 = vld [vmem:[#allocation67_spill] sm:$0xff]  ;;  %p6017_p8 = pneg %p6016_p6 }
 0x423   : > { %v2519_v17 = vadd.f32 %v2503_v49, %v2483_v50  ;;  %v2120_v32 = vadd.f32 %v2104_v54, %v2084_v27  ;;  %v2176_v42 = vmul.f32 %v11694_v19, %v8073_v10  ;;  %v3439_v30 = vmul.f32 %v11747_v45, %v11691_v44  ;;  %v11748_v49 = vld [vmem:[#allocation86_spill] sm:$0xff]  ;;  %v11749_v22 = vld [vmem:[#allocation59_spill] sm:$0xff] }
 0x424   : > { %v3475_v37 = vmul.f32 %v11692_v61, %v7918_v0  ;;  %v3372_v16 = vmul.f32 %v3356_v46, %v7945_v24  ;;  %v3926_v1 = vadd.f32 %v3910_v14, %v3890_v11  ;;  %v3511_v9 = vmul.f32 %v11695_v12, %v8081_v2  ;;  %v8107_v14 = vld [vmem:[#allocation3 + $0xe0] sm:$0xff]  ;;  %v8109_v46 = vld [vmem:[#allocation3 + $0x171] sm:$0xff]  ;;  %p6024_p3 = pnand %p6023_p7, %p6017_p8 }
 0x425   : > { %v2555_v15 = vadd.f32 %v8003_v20, %v2519_v17  ;;  %v8098_v3 = vmul.f32 %v11748_v49, %v8084_v26  ;;  %v2156_v27 = vadd.f32 %v2140_v13, %v2120_v32  ;;  %v3547_v44 = vmul.f32 %v11671_v60, %v11700_v41  ;;  %v8105_v20 = vld [vmem:[#allocation2 + $0x41] sm:$0xff]  ;;  %11751 = vst [vmem:[#allocation134_spill] sm:$0xff] %v8107_v14  ;;  %v11753_v11 = vld [vmem:[#allocation128_spill] sm:$0xff]  ;;  %v11754_v41 = vld [vmem:[#allocation75_spill] sm:$0xff] }
 0x426   : > { %v3491_v54 = vadd.f32 %v3475_v37, %v3439_v30  ;;  %v4507_v50 = vmul.f32 %v4491_v56, %v3372_v16  ;;  %v3962_v61 = vadd.f32 %v3946_v58, %v3926_v1  ;;  %v4018_v24 = vmul.f32 %v7691_v48, %v7685_v29  ;;  %11750 = vst [vmem:[#allocation59_spill] sm:$0xff] %v8105_v20  ;;  %v11755_v58 = vld [vmem:[#allocation95_spill] sm:$0xff]  ;;  %v11756_v32 = vld [vmem:[#allocation96_spill] sm:$0xff] }
 0x427   : > { %v2631_v34 = vadd.f32 %v11749_v22, %v2555_v15  ;;  %11752 = vst [vmem:[#allocation135_spill] sm:$0xff] %v8109_v46  ;;  %v2192_v17 = vadd.f32 %v2176_v42, %v2156_v27  ;;  %v2288_v30 = vmul.f32 %v11702_v4, %v7960_v7  ;;  %v3583_v56 = vmul.f32 %v11754_v41, %v11753_v11  ;;  %v8120_v16 = vld [vmem:[#allocation3 + $0x32] sm:$0xff]  ;;  %v11780_v4 = vld [vmem:[#allocation49_spill] sm:$0xff] }
 0x428   : > { %v3527_v13 = vadd.f32 %v3511_v9, %v3491_v54  ;;  %5524 = vmatprep.mubr.msk.f32.mxu0 %vm704_vm0, %v4507_v50  ;;  %5556 = vmatprep.mubr.msk.f32.mxu1 %vm704_vm0, %v4507_v50  ;;  %v3998_v1 = vadd.f32 %v3982_v33, %v3962_v61  ;;  %v4054_v37 = vmul.f32 %v11756_v32, %v11755_v58  ;;  %v11758_v42 = vld [vmem:[#allocation44_spill] sm:$0xff]  ;;  %v11759_v27 = vld [vmem:[#allocation43_spill] sm:$0xff] }
 0x429   : > { %v2667_v29 = vadd.f32 %v8017_v6, %v2631_v34  ;;  %11757 = vst [vmem:[#allocation95_spill] sm:$0xff] %v8120_v16  ;;  %v2268_v15 = vadd.f32 %v11758_v42, %v2192_v17  ;;  %v2324_v9 = vmul.f32 %v11759_v27, %v8105_v20  ;;  %v11760_v22 = vld [vmem:[#allocation76_spill] sm:$0xff]  ;;  %v11761_v6 = vld [vmem:[#allocation99_spill] sm:$0xff]  ;;  %v11766_v42 = vld [vmem:[#allocation46_spill] sm:$0xff] }
 0x42a   : > { %v3563_v54 = vadd.f32 %v3547_v44, %v3527_v13  ;;  %v3619_v41 = vmul.f32 %v11760_v22, %v8107_v14  ;;  %v4034_v50 = vadd.f32 %v4018_v24, %v3998_v1  ;;  %v4090_v61 = vmul.f32 %v11761_v6, %v8109_v46  ;;  %v11762_v34 = vld [vmem:[#allocation107_spill] sm:$0xff]  ;;  %v11763_v33 = vld [vmem:[#allocation104_spill] sm:$0xff]  ;;  %v11768_v13 = vld [vmem:[#allocation77_spill] sm:$0xff] }
 0x42b   : > { %v2703_v60 = vadd.f32 %v8026_v62, %v2667_v29  ;;  %v4202_v11 = vmul.f32 %v11763_v33, %v11762_v34  ;;  %v8132_v12 = vld [vmem:[#allocation3 + $0xd2] sm:$0xff]  ;;  %v2304_v2 = vadd.f32 %v2288_v30, %v2268_v15  ;;  %v11769_v24 = vld [vmem:[#allocation106_spill] sm:$0xff]  ;;  %v8145_v27 = vld [vmem:[#allocation3 + $0x180] sm:$0xff] }
 0x42c   : > { %11764 = vst [vmem:[#allocation44_spill] sm:$0xff] %v8132_v12  ;;  %v11765_v17 = vld [vmem:[#allocation48_spill] sm:$0xff]  ;;  %v3599_v0 = vadd.f32 %v3583_v56, %v3563_v54  ;;  %v11767_v44 = vld [vmem:[#allocation79_spill] sm:$0xff]  ;;  %v4070_v62 = vadd.f32 %v4054_v37, %v4034_v50  ;;  %v4238_v29 = vmul.f32 %v11769_v24, %v8120_v16  ;;  %v11771_v14 = vld [vmem:[#allocation114_spill] sm:$0xff] }
 0x42d   : > { %v2360_v45 = vmul.f32 %v11766_v42, %v11765_v17  ;;  %v3655_v49 = vmul.f32 %v11768_v13, %v11767_v44  ;;  %v2739_v22 = vadd.f32 %v8032_v55, %v2703_v60  ;;  %v11770_v1 = vld [vmem:[#allocation108_spill] sm:$0xff]  ;;  %v8143_v33 = vld [vmem:[#allocation2 + $0xe1] sm:$0xff]  ;;  %11773 = vst [vmem:[#allocation48_spill] sm:$0xff] %v8145_v27  ;;  %v2340_v30 = vadd.f32 %v2324_v9, %v2304_v2  ;;  %v11775_v17 = vld [vmem:[#allocation47_spill] sm:$0xff] }
 0x42e   : > { %v4274_v26 = vmul.f32 %v11771_v14, %v11770_v1  ;;  %11772 = vst [vmem:[#allocation107_spill] sm:$0xff] %v8143_v33  ;;  %v11774_v15 = vld [vmem:[#allocation74_spill] sm:$0xff]  ;;  %v3635_v54 = vadd.f32 %v3619_v41, %v3599_v0  ;;  %v4106_v55 = vadd.f32 %v4090_v61, %v4070_v62  ;;  %v11777_v37 = vld [vmem:[#allocation113_spill] sm:$0xff]  ;;  %v11778_v50 = vld [vmem:[#allocation116_spill] sm:$0xff]  ;;  %v2432_v2 = vmul.f32 %v11780_v4, %v8143_v33 }
 0x42f   : > { %v2396_v56 = vmul.f32 %v11775_v17, %v11774_v15  ;;  %v11776_v44 = vld [vmem:[#allocation78_spill] sm:$0xff]  ;;  %v2775_v60 = vadd.f32 %v8036_v40, %v2739_v22  ;;  %v4310_v24 = vmul.f32 %v11778_v50, %v11777_v37  ;;  %v11779_v16 = vld [vmem:[#allocation119_spill] sm:$0xff]  ;;  %v2376_v14 = vadd.f32 %v2360_v45, %v2340_v30  ;;  %v11782_v40 = vld [vmem:[#allocation124_spill] sm:$0xff] }
 0x430   : > { %v3691_v13 = vmul.f32 %v11776_v44, %v7996_v52  ;;  %v4346_v42 = vmul.f32 %v11779_v16, %v8132_v12  ;;  %v3671_v9 = vadd.f32 %v3655_v49, %v3635_v54  ;;  %v3727_v0 = vmul.f32 %v11720_v8, %v8145_v27  ;;  %v8160_v41 = vld [vmem:[#allocation2 + $0x50] sm:$0xff]  ;;  %v11783_v61 = vld [vmem:[#allocation53_spill] sm:$0xff]  ;;  %v11784_v62 = vld [vmem:[#allocation50_spill] sm:$0xff] }
 0x431   : > { %11781 = vst [vmem:[#allocation79_spill] sm:$0xff] %v8160_v41  ;;  %v2811_v44 = vadd.f32 %v8046_v28, %v2775_v60  ;;  %v4182_v22 = vadd.f32 %v11782_v40, %v4106_v55  ;;  %v2468_v52 = vmul.f32 %v11784_v62, %v11783_v61  ;;  %v11785_v37 = vld [vmem:[#allocation130_spill] sm:$0xff]  ;;  %v11786_v17 = vld [vmem:[#allocation51_spill] sm:$0xff]  ;;  %v2412_v30 = vadd.f32 %v2396_v56, %v2376_v14  ;;  %v11789_v61 = vld [vmem:[#allocation32_spill] sm:$0xff] }
 0x432   : > { %v2504_v16 = vmul.f32 %v11786_v17, %v11785_v37  ;;  %v8168_v45 = vld [vmem:[#allocation2 + $0x181] sm:$0xff]  ;;  %v3707_v12 = vadd.f32 %v3691_v13, %v3671_v9  ;;  %v11788_v27 = vld [vmem:[#allocation31_spill] sm:$0xff]  ;;  %v3839_v40 = vmul.f32 %v11730_v39, %v8038_v25  ;;  %v1961_v17 = vmul.f32 %v11789_v61, %v8160_v41  ;;  %v11844_v41 = vld [vmem:[#allocation72_spill] sm:$0xff] }
 0x433   : > { %v8170_v49 = vld [vmem:[#allocation3 + $0x41] sm:$0xff]  ;;  %v1925_v28 = vmul.f32 %v11788_v27, %v7988_v31  ;;  %v2847_v60 = vadd.f32 %v8062_v18, %v2811_v44  ;;  %v4218_v55 = vadd.f32 %v4202_v11, %v4182_v22  ;;  %v2448_v62 = vadd.f32 %v2432_v2, %v2412_v30  ;;  %v8188_v11 = vld [vmem:[#allocation2 + $0xf0] sm:$0xff] }
 0x434   : > { %v11787_v54 = vld [vmem:[#allocation30_spill] sm:$0xff]  ;;  %v3743_v14 = vadd.f32 %v3727_v0, %v3707_v12  ;;  %v1997_v56 = vmul.f32 %v7285_v21, %v7864_v38  ;;  %v3875_v18 = vmul.f32 %v11733_v53, %v8170_v49  ;;  %11791 = vst [vmem:[#allocation108_spill] sm:$0xff] %v8188_v11  ;;  %v2033_v12 = vmul.f32 %v11677_v59, %v8028_v36  ;;  %v11834_v21 = vld [vmem:[#allocation67_spill] sm:$0xff] }
 0x435   : > { %v1889_v8 = vmul.f32 %v11787_v54, %v7809_v51  ;;  %v2883_v51 = vadd.f32 %v8066_v5, %v2847_v60  ;;  %v4254_v9 = vadd.f32 %v4238_v29, %v4218_v55  ;;  %v11790_v27 = vld [vmem:[#allocation54_spill] sm:$0xff]  ;;  %v2484_v44 = vadd.f32 %v2468_v52, %v2448_v62  ;;  %v11793_v5 = vld [vmem:[#allocation69_spill] sm:$0xff] }
 0x436   : > { %v2540_v54 = vmul.f32 %v11790_v27, %v8168_v45  ;;  %v11792_v22 = vld [vmem:[#allocation34_spill] sm:$0xff]  ;;  %v3911_v30 = vmul.f32 %v7656_v43, %v11742_v63  ;;  %v3947_v63 = vmul.f32 %v11743_v35, %v8050_v23 }
 0x437   : > { %v1941_v13 = vadd.f32 %v1925_v28, %v1889_v8  ;;  %v3819_v61 = vadd.f32 %v11792_v22, %v3743_v14  ;;  %v2919_v38 = vadd.f32 %v8098_v3, %v2883_v51  ;;  %v4290_v8 = vadd.f32 %v4274_v26, %v4254_v9  ;;  %v11794_v29 = vld [vmem:[#allocation126_spill] sm:$0xff]  ;;  %v11799_v3 = vld [vmem:[#allocation52_spill] sm:$0xff] }
 0x438   : > { %v4382_v0 = vmul.f32 %v11794_v29, %v11793_v5  ;;  %v2520_v28 = vadd.f32 %v2504_v16, %v2484_v44  ;;  %v8198_v60 = vld [vmem:[#allocation2 + $0x42] sm:$0xff] }
 0x439   : > { %v1977_v2 = vadd.f32 %v1961_v17, %v1941_v13  ;;  %11795 = vst [vmem:[#allocation74_spill] sm:$0xff] %v8198_v60  ;;  %v8200_v55 = vld [vmem:[#allocation3 + $0xe1] sm:$0xff]  ;;  %v3855_v52 = vadd.f32 %v3839_v40, %v3819_v61  ;;  %v11797_v17 = vld [vmem:[#allocation36_spill] sm:$0xff]  ;;  %v4326_v26 = vadd.f32 %v4310_v24, %v4290_v8  ;;  %v2105_v40 = vmul.f32 %v7335_v47, %v7914_v57 }
 0x43a   : > { %11796 = vst [vmem:[#allocation124_spill] sm:$0xff] %v8200_v55  ;;  %v2069_v14 = vmul.f32 %v11797_v17, %v8188_v11  ;;  %v11798_v13 = vld [vmem:[#allocation93_spill] sm:$0xff]  ;;  %v11800_v51 = vld [vmem:[#allocation58_spill] sm:$0xff]  ;;  %v2556_v16 = vadd.f32 %v2540_v54, %v2520_v28  ;;  %v11802_v24 = vld [vmem:[#allocation92_spill] sm:$0xff]  ;;  %v4019_v47 = vmul.f32 %v7691_v48, %v11755_v58  ;;  %v4055_v58 = vmul.f32 %v11756_v32, %v8109_v46 }
 0x43b   : > { %v2013_v62 = vadd.f32 %v1997_v56, %v1977_v2  ;;  %v8205_v22 = vadd.f32 %v11798_v13, %v2919_v38  ;;  %v2652_v9 = vmul.f32 %v11800_v51, %v11799_v3  ;;  %v3891_v44 = vadd.f32 %v3875_v18, %v3855_v52  ;;  %v11801_v2 = vld [vmem:[#allocation61_spill] sm:$0xff]  ;;  %v8220_v17 = vld [vmem:[#allocation2 + $0x190] sm:$0xff]  ;;  %v11831_v46 = vld [vmem:[#allocation86_spill] sm:$0xff] }
 0x43c   : > { %v4362_v56 = vadd.f32 %v4346_v42, %v4326_v26  ;;  %v2688_v38 = vmul.f32 %v11801_v2, %v8198_v60  ;;  %v3983_v8 = vmul.f32 %v11802_v24, %v8200_v55  ;;  %11803 = vst [vmem:[#allocation53_spill] sm:$0xff] %v8220_v17  ;;  %v11804_v11 = vld [vmem:[#allocation109_spill] sm:$0xff]  ;;  %v8257_v48 = vld [vmem:[#allocation2 + $0x51] sm:$0xff]  ;;  %v11835_v43 = vld [vmem:[#allocation90_spill] sm:$0xff] }
 0x43d   : > { %v2049_v59 = vadd.f32 %v2033_v12, %v2013_v62  ;;  %v8214_v61 = vmul.f32 0.70710677, %v8205_v22  ;;  %v2632_v35 = vadd.f32 %v11804_v11, %v2556_v16  ;;  %v3927_v54 = vadd.f32 %v3911_v30, %v3891_v44  ;;  %v11805_v12 = vld [vmem:[#allocation39_spill] sm:$0xff]  ;;  %v11806_v42 = vld [vmem:[#allocation73_spill] sm:$0xff]  ;;  %v11810_v16 = vld [vmem:[#allocation102_spill] sm:$0xff]  ;;  %11816 = vst [vmem:[#allocation93_spill] sm:$0xff] %v8257_v48 }
 0x43e   : > { %v2141_v28 = vmul.f32 %v11805_v12, %v8073_v10  ;;  %v8228_v52 = vadd.f32 %v4382_v0, %v4362_v56  ;;  %v11807_v62 = vld [vmem:[#allocation63_spill] sm:$0xff]  ;;  %v8234_v24 = vld [vmem:[#allocation2 + $0xe2] sm:$0xff]  ;;  %v4167_v0 = vmul.f32 %v11810_v16, %v11762_v34 }
 0x43f   : > { %v2085_v18 = vadd.f32 %v2069_v14, %v2049_v59  ;;  %v8226_v57 = vand.u32 2147483647, %v8214_v61  ;;  %v2724_v26 = vmul.f32 %v11807_v62, %v11806_v42  ;;  %11808 = vst [vmem:[#allocation130_spill] sm:$0xff] %v8234_v24  ;;  %v2668_v55 = vadd.f32 %v2652_v9, %v2632_v35  ;;  %v8236_v11 = vld [vmem:[#allocation3 + $0x181] sm:$0xff]  ;;  %v11812_v42 = vld [vmem:[#allocation64_spill] sm:$0xff] }
 0x440   : > { %11809 = vst [vmem:[#allocation34_spill] sm:$0xff] %v8236_v11  ;;  %v3963_v59 = vadd.f32 %v3947_v63, %v3927_v54  ;;  %v2177_v14 = vmul.f32 %v11694_v19, %v8220_v17  ;;  %v11811_v56 = vld [vmem:[#allocation62_spill] sm:$0xff]  ;;  %v11813_v63 = vld [vmem:[#allocation41_spill] sm:$0xff]  ;;  %v8251_v54 = vmul.f32 %v11810_v16, %v11770_v1  ;;  %v4091_v17 = vmul.f32 %v11761_v6, %v8236_v11  ;;  %v8259_v32 = vld [vmem:[#allocation3 + $0x172] sm:$0xff] }
 0x441   : > { %v2121_v30 = vadd.f32 %v2105_v40, %v2085_v18  ;;  %v3037_v44 = vmul.f32 0.3275911, %v8226_v57  ;;  %v2760_v12 = vmul.f32 %v11812_v42, %v11811_v56  ;;  %v2704_v10 = vadd.f32 %v2688_v38, %v2668_v55  ;;  %v11815_v34 = vld [vmem:[#allocation65_spill] sm:$0xff]  ;;  %11817 = vst [vmem:[#allocation52_spill] sm:$0xff] %v8259_v32 }
 0x442   : > { %v3999_v35 = vadd.f32 %v3983_v8, %v3963_v59  ;;  %v2253_v40 = vmul.f32 %v11813_v63, %v7960_v7  ;;  %11814 = vst [vmem:[#allocation69_spill] sm:$0xff] %v8251_v54  ;;  %v2796_v19 = vmul.f32 %v11815_v34, %v8234_v24  ;;  %v8261_v55 = vld [vmem:[#allocation2 + $0x182] sm:$0xff]  ;;  %v11823_v54 = vld [vmem:[#allocation87_spill] sm:$0xff]  ;;  %v11824_v63 = vld [vmem:[#allocation68_spill] sm:$0xff]  ;;  %vm2989_vm4 = vcmp.lt.f32.partialorder %v8214_v61, 0.0 }
 0x443   : > { %v2157_v9 = vadd.f32 %v2141_v28, %v2121_v30  ;;  %v3053_v18 = vadd.f32 1.0, %v3037_v44  ;;  %11818 = vst [vmem:[#allocation109_spill] sm:$0xff] %v8261_v55  ;;  %v2740_v38 = vadd.f32 %v2724_v26, %v2704_v10  ;;  %v11819_v28 = vld [vmem:[#allocation42_spill] sm:$0xff]  ;;  %v8271_v44 = vmul.f32 %v11778_v50, %v11793_v5 }
 0x444   : > { %v4035_v8 = vadd.f32 %v4019_v47, %v3999_v35  ;;  %v2289_v1 = vmul.f32 %v11819_v28, %v8105_v20  ;;  %v11820_v59 = vld [vmem:[#allocation114_spill] sm:$0xff]  ;;  %v2832_v16 = vmul.f32 %v11824_v63, %v11823_v54  ;;  %v11825_v47 = vld [vmem:[#allocation43_spill] sm:$0xff]  ;;  %v11826_v35 = vld [vmem:[#allocation129_spill] sm:$0xff]  ;;  %v2904_v54 = vmul.f32 %v11831_v46, %v8261_v55 }
 0x445   : > { %v2193_v7 = vadd.f32 %v2177_v14, %v2157_v9  ;;  %v8267_v30 = vmul.f32 %v11820_v59, %v11793_v5  ;;  %11822 = vst [vmem:[#allocation62_spill] sm:$0xff] %v8271_v44  ;;  %5766 = vrcp.f32 %v3053_v18  ;;  %v2776_v6 = vadd.f32 %v2760_v12, %v2740_v38  ;;  %v8277_v14 = vld [vmem:[#allocation3 + $0x50] sm:$0xff]  ;;  %v11827_v9 = vld [vmem:[#allocation38_spill] sm:$0xff]  ;;  %v11829_v5 = vld [vmem:[#allocation133_spill] sm:$0xff] }
 0x446   : > { %v4071_v11 = vadd.f32 %v4055_v58, %v4035_v8  ;;  %v2325_v26 = vmul.f32 %v11825_v47, %v8257_v48  ;;  %v4418_v28 = vmul.f32 %v11827_v9, %v11826_v35  ;;  %v11830_v44 = vld [vmem:[#allocation82_spill] sm:$0xff]  ;;  %v3245_v47 = vsub.f32 0.0, %v8226_v57  ;;  %v8292_v48 = vld [vmem:[#allocation2 + $0xf1] sm:$0xff]  ;;  %v11833_v63 = vld [vmem:[#allocation125_spill] sm:$0xff] }
 0x447   : > { %11821 = vst [vmem:[#allocation73_spill] sm:$0xff] %v8267_v30  ;;  %v2269_v10 = vadd.f32 %v2253_v40, %v2193_v7  ;;  %v11828_v30 = vld [vmem:[#allocation127_spill] sm:$0xff]  ;;  %v2868_v18 = vmul.f32 %v11830_v44, %v11829_v5  ;;  %v2812_v12 = vadd.f32 %v2796_v19, %v2776_v6  ;;  %v8287_v40 = vld [vmem:[#allocation3 + $0x42] sm:$0xff]  ;;  %v3440_v36 = vmul.f32 %v11834_v21, %v11833_v63  ;;  %v11841_v55 = vld [vmem:[#allocation104_spill] sm:$0xff] }
 0x448   : > { %v4454_v20 = vmul.f32 %v11828_v30, %v8259_v32  ;;  %v4107_v58 = vadd.f32 %v4091_v17, %v4071_v11  ;;  %v11832_v8 = vld [vmem:[#allocation46_spill] sm:$0xff]  ;;  %v11837_v46 = vld [vmem:[#allocation71_spill] sm:$0xff] }
 0x449   : > { %v2305_v38 = vadd.f32 %v2289_v1, %v2269_v10  ;;  %v2361_v7 = vmul.f32 %v11832_v8, %v11774_v15  ;;  %v11836_v44 = vld [vmem:[#allocation70_spill] sm:$0xff]  ;;  %v3512_v19 = vmul.f32 %v11837_v46, %v8277_v14  ;;  %v2848_v6 = vadd.f32 %v2832_v16, %v2812_v12  ;;  %v11838_v1 = vld [vmem:[#allocation47_spill] sm:$0xff] }
 0x44a   : > { %v3476_v5 = vmul.f32 %v11836_v44, %v11835_v43  ;;  %v8300_v17 = vadd.f32 %v4167_v0, %v4107_v58  ;;  %v2397_v15 = vmul.f32 %v11838_v1, %v8143_v33  ;;  %v8304_v10 = vld [vmem:[#allocation3 + $0xe2] sm:$0xff]  ;;  %v11840_v8 = vld [vmem:[#allocation95_spill] sm:$0xff]  ;;  %v11843_v43 = vld [vmem:[#allocation128_spill] sm:$0xff]  ;;  %v2433_v58 = vmul.f32 %v11780_v4, %v8292_v48 }
 0x44b   : > { %v2341_v11 = vadd.f32 %v2325_v26, %v2305_v38  ;;  %11839 = vst [vmem:[#allocation87_spill] sm:$0xff] %v8304_v10  ;;  %v4203_v23 = vmul.f32 %v11841_v55, %v11840_v8  ;;  %v11842_v63 = vld [vmem:[#allocation106_spill] sm:$0xff]  ;;  %v3548_v46 = vmul.f32 %v11844_v41, %v11843_v43  ;;  %v2884_v16 = vadd.f32 %v2868_v18, %v2848_v6  ;;  %v11845_v0 = vld [vmem:[#allocation113_spill] sm:$0xff]  ;;  %v8320_v38 = vld [vmem:[#allocation3 + $0xf0] sm:$0xff] }
 0x44c   : > { %v8310_v21 = vmul.f32 %v11842_v63, %v8287_v40  ;;  %v3492_v44 = vadd.f32 %v3476_v5, %v3440_v36  ;;  %v8316_v26 = vmul.f32 %v11820_v59, %v11845_v0  ;;  %11846 = vst [vmem:[#allocation129_spill] sm:$0xff] %v8320_v38  ;;  %v3261_v1 = vmul.f32 %v3245_v47, %v8226_v57  ;;  %v11847_v33 = vld [vmem:[#allocation44_spill] sm:$0xff]  ;;  %v11848_v5 = vld [vmem:[#allocation134_spill] sm:$0xff]  ;;  %v11849_v43 = vld [vmem:[#allocation75_spill] sm:$0xff] }
 0x44d   : > { %v2377_v12 = vadd.f32 %v2361_v7, %v2341_v11  ;;  %v8325_v63 = vmul.f32 %v11778_v50, %v11847_v33  ;;  %v3584_v18 = vmul.f32 %v11849_v43, %v11848_v5  ;;  %v2920_v6 = vadd.f32 %v2904_v54, %v2884_v16  ;;  %v11850_v0 = vld [vmem:[#allocation119_spill] sm:$0xff]  ;;  %v8339_v57 = vld [vmem:[#allocation3 + $0x182] sm:$0xff]  ;;  %v11854_v16 = vld [vmem:[#allocation76_spill] sm:$0xff] }
 0x44e   : > { %v3528_v36 = vadd.f32 %v3512_v19, %v3492_v44  ;;  %v8331_v59 = vmul.f32 %v11850_v0, %v8304_v10  ;;  %v8335_v7 = vmul.f32 %v11794_v29, %v11826_v35  ;;  %11851 = vst [vmem:[#allocation125_spill] sm:$0xff] %v8339_v57  ;;  %v8343_v44 = vmul.f32 %v11827_v9, %v8259_v32  ;;  %v11853_v47 = vld [vmem:[#allocation50_spill] sm:$0xff]  ;;  %v11856_v9 = vld [vmem:[#allocation51_spill] sm:$0xff] }
 0x44f   : > { %v2413_v11 = vadd.f32 %v2397_v15, %v2377_v12  ;;  %v8337_v4 = vpop.eup %5766  ;;  %v2469_v54 = vmul.f32 %v11853_v47, %v11785_v37  ;;  %v3620_v0 = vmul.f32 %v11854_v16, %v8320_v38  ;;  %v4434_v35 = vadd.f32 %v4418_v28, %v8228_v52  ;;  %v8354_v12 = vld [vmem:[#allocation2 + $0x191] sm:$0xff] }
 0x450   : > { %11852 = vst [vmem:[#allocation95_spill] sm:$0xff] %v8343_v44  ;;  %v3564_v19 = vadd.f32 %v3548_v46, %v3528_v36  ;;  %v3101_v50 = vmul.f32 1.0614054, %v8337_v4  ;;  %v8352_v15 = vadd.f32 %v11798_v13, %v2920_v6  ;;  %11855 = vst [vmem:[#allocation128_spill] sm:$0xff] %v8354_v12  ;;  %v3278_v10 = vmul.f32 1.442695, %v3261_v1 }
 0x451   : > { %v2449_v29 = vadd.f32 %v2433_v58, %v2413_v11  ;;  %v2505_v32 = vmul.f32 %v11856_v9, %v8168_v45  ;;  %v11857_v37 = vld [vmem:[#allocation103_spill] sm:$0xff]  ;;  %v11858_v46 = vld [vmem:[#allocation77_spill] sm:$0xff]  ;;  %v8366_v13 = vmul.f32 %v11828_v30, %v8339_v57  ;;  %v2541_v1 = vmul.f32 %v11790_v27, %v8354_v12  ;;  %v11862_v6 = vld [vmem:[#allocation78_spill] sm:$0xff] }
 0x452   : > { %v3600_v33 = vadd.f32 %v3584_v18, %v3564_v19  ;;  %v3656_v36 = vmul.f32 %v11858_v46, %v11857_v37  ;;  %v3117_v47 = vadd.f32 -1.4531521, %v3101_v50  ;;  %v8362_v44 = vmul.f32 0.70710677, %v8352_v15  ;;  %v8368_v52 = vld [vmem:[#allocation3 + $0x190] sm:$0xff]  ;;  %v11861_v18 = vld [vmem:[#allocation48_spill] sm:$0xff] }
 0x453   : > { %11859 = vst [vmem:[#allocation113_spill] sm:$0xff] %v8366_v13  ;;  %11860 = vst [vmem:[#allocation134_spill] sm:$0xff] %v8368_v52  ;;  %v2485_v28 = vadd.f32 %v2469_v54, %v2449_v29  ;;  %v3692_v11 = vmul.f32 %v11862_v6, %v11861_v18  ;;  %v4470_v50 = vadd.f32 %v4454_v20, %v4434_v35  ;;  %v11863_v9 = vld [vmem:[#allocation55_spill] sm:$0xff]  ;;  %5768 = vpow2.f32 %v3278_v10  ;;  %v11865_v54 = vld [vmem:[#allocation80_spill] sm:$0xff] }
 0x454   : > { %v3636_v58 = vadd.f32 %v3620_v0, %v3600_v33  ;;  %v3133_v19 = vmul.f32 %v8337_v4, %v3117_v47  ;;  %v8376_v37 = vand.u32 2147483647, %v8362_v44  ;;  %v2617_v30 = vmul.f32 %v11863_v9, %v11799_v3  ;;  %v8380_v13 = vld [vmem:[#allocation2 + $0x52] sm:$0xff] }
 0x455   : > { %v2521_v57 = vadd.f32 %v2505_v32, %v2485_v28  ;;  %11864 = vst [vmem:[#allocation103_spill] sm:$0xff] %v8380_v13  ;;  %v3728_v33 = vmul.f32 %v11865_v54, %v8368_v52  ;;  %v8385_v0 = vmul.f32 0.5, %v8205_v22  ;;  %v11866_v27 = vmov 1.0   ;;  %v8401_v54 = vld [vmem:[#allocation3 + $0x51] sm:$0xff] }
 0x456   : > { %v3672_v29 = vadd.f32 %v3656_v36, %v3636_v58  ;;  %v8390_v20 = vsel %vm2989_vm4, -1.0, %v11866_v27  ;;  %v3149_v47 = vadd.f32 1.4214138, %v3133_v19  ;;  %v3038_v35 = vmul.f32 0.3275911, %v8376_v37  ;;  %v11867_v36 = vld [vmem:[#allocation81_spill] sm:$0xff] }
 0x457   : > { %v2557_v3 = vadd.f32 %v2541_v1, %v2521_v57  ;;  %v2653_v32 = vmul.f32 %v11800_v51, %v8198_v60  ;;  %v3804_v28 = vmul.f32 %v11867_v36, %v8038_v25  ;;  %v4219_v9 = vadd.f32 %v4203_v23, %v8300_v17  ;;  %11868 = vst [vmem:[#allocation48_spill] sm:$0xff] %v8401_v54  ;;  %v11869_v19 = vld [vmem:[#allocation132_spill] sm:$0xff] }
 0x458   : > { %v3708_v10 = vadd.f32 %v3692_v11, %v3672_v29  ;;  %v3165_v58 = vmul.f32 %v8337_v4, %v3149_v47  ;;  %v3054_v22 = vadd.f32 1.0, %v3038_v35  ;;  %v2689_v61 = vmul.f32 %v11801_v2, %v8380_v13  ;;  %v8406_v57 = vld [vmem:[#allocation2 + $0xf2] sm:$0xff]  ;;  %v8414_v47 = vld [vmem:[#allocation2 + $0x60] sm:$0xff] }
 0x459   : > { %v8404_v12 = vadd.f32 %v11869_v19, %v4470_v50  ;;  %11870 = vst [vmem:[#allocation132_spill] sm:$0xff] %v8406_v57  ;;  %v2633_v1 = vadd.f32 %v2617_v30, %v2557_v3  ;;  %v3840_v25 = vmul.f32 %v11730_v39, %v8170_v49  ;;  %v2725_v23 = vmul.f32 %v11807_v62, %v11811_v56  ;;  %v11872_v30 = vld [vmem:[#allocation30_spill] sm:$0xff] }
 0x45a   : > { %v3744_v11 = vadd.f32 %v3728_v33, %v3708_v10  ;;  %v3181_v29 = vadd.f32 -0.28449672, %v3165_v58  ;;  %5770 = vrcp.f32 %v3054_v22  ;;  %v2761_v17 = vmul.f32 %v11812_v42, %v8234_v24  ;;  %11871 = vst [vmem:[#allocation136_spill] sm:$0xff] %v8414_v47  ;;  %v11873_v58 = vld [vmem:[#allocation79_spill] sm:$0xff] }
 0x45b   : > { %v2669_v35 = vadd.f32 %v2653_v32, %v2633_v1  ;;  %v3876_v2 = vmul.f32 %v11733_v53, %v8401_v54  ;;  %v1890_v33 = vmul.f32 %v11872_v30, %v7988_v31  ;;  %v4255_v10 = vadd.f32 %v8310_v21, %v4219_v9  ;;  %v11874_v22 = vld [vmem:[#allocation31_spill] sm:$0xff]  ;;  %v11875_v32 = vld [vmem:[#allocation60_spill] sm:$0xff]  ;;  %v11879_v30 = vld [vmem:[#allocation33_spill] sm:$0xff] }
 0x45c   : > { %v3820_v50 = vadd.f32 %v3804_v28, %v3744_v11  ;;  %v3197_v3 = vmul.f32 %v8337_v4, %v3181_v29  ;;  %v2797_v56 = vmul.f32 %v11815_v34, %v8406_v57  ;;  %v1926_v42 = vmul.f32 %v11874_v22, %v11873_v58  ;;  %v11876_v28 = vld [vmem:[#allocation89_spill] sm:$0xff]  ;;  %v11877_v11 = vld [vmem:[#allocation32_spill] sm:$0xff]  ;;  %v11878_v9 = vld [vmem:[#allocation131_spill] sm:$0xff] }
 0x45d   : > { %v2705_v62 = vadd.f32 %v2689_v61, %v2669_v35  ;;  %v3912_v1 = vmul.f32 %v11876_v28, %v11875_v32  ;;  %v1962_v53 = vmul.f32 %v11877_v11, %v8414_v47  ;;  %v3246_v31 = vsub.f32 0.0, %v8376_v37  ;;  %v8431_v29 = vld [vmem:[#allocation3 + $0xf1] sm:$0xff]  ;;  %v5769_v57 = vpop.eup %5768  ;;  %v11880_v22 = vld [vmem:[#allocation133_spill] sm:$0xff] }
 0x45e   : > { %v3856_v24 = vadd.f32 %v3840_v25, %v3820_v50  ;;  %v3213_v39 = vadd.f32 0.2548296, %v3197_v3  ;;  %v1942_v21 = vadd.f32 %v1926_v42, %v1890_v33  ;;  %v1998_v34 = vmul.f32 %v11879_v30, %v11878_v9  ;;  %v11881_v61 = vld [vmem:[#allocation68_spill] sm:$0xff]  ;;  %v11883_v32 = vld [vmem:[#allocation91_spill] sm:$0xff]  ;;  %v8439_v28 = vld [vmem:[#allocation2 + $0x100] sm:$0xff] }
 0x45f   : > { %v2741_v54 = vadd.f32 %v2725_v23, %v2705_v62  ;;  %v2833_v25 = vmul.f32 %v11881_v61, %v11880_v22  ;;  %v11882_v50 = vld [vmem:[#allocation124_spill] sm:$0xff]  ;;  %11884 = vst [vmem:[#allocation60_spill] sm:$0xff] %v8439_v28  ;;  %v11886_v47 = vld [vmem:[#allocation109_spill] sm:$0xff]  ;;  %v11887_v42 = vld [vmem:[#allocation82_spill] sm:$0xff]  ;;  %v4291_v23 = vadd.f32 %v8316_v26, %v4255_v10  ;;  %vm2990_vm5 = vcmp.lt.f32.partialorder %v8362_v44, 0.0 }
 0x460   : > { %v3892_v35 = vadd.f32 %v3876_v2, %v3856_v24  ;;  %v3948_v58 = vmul.f32 %v11883_v32, %v11882_v50  ;;  %v3229_v3 = vmul.f32 %v8337_v4, %v3213_v39  ;;  %v8442_v11 = vld [vmem:[#allocation2 + $0x192] sm:$0xff]  ;;  %v2869_v33 = vmul.f32 %v11887_v42, %v11886_v47 }
 0x461   : > { %11885 = vst [vmem:[#allocation131_spill] sm:$0xff] %v8442_v11  ;;  %v1978_v51 = vadd.f32 %v1962_v53, %v1942_v21  ;;  %v11888_v9 = vld [vmem:[#allocation108_spill] sm:$0xff]  ;;  %v11889_v30 = vld [vmem:[#allocation35_spill] sm:$0xff]  ;;  %v2777_v22 = vadd.f32 %v2761_v17, %v2741_v54  ;;  %v3262_v50 = vmul.f32 %v3246_v31, %v8376_v37  ;;  %v11892_v53 = vld [vmem:[#allocation86_spill] sm:$0xff] }
 0x462   : > { %v2034_v62 = vmul.f32 %v11889_v30, %v11888_v9  ;;  %v3928_v2 = vadd.f32 %v3912_v1, %v3892_v35  ;;  %v11890_v24 = vld [vmem:[#allocation92_spill] sm:$0xff]  ;;  %v3309_v32 = vmul.f32 %v5769_v57, %v3229_v3  ;;  %v2905_v21 = vmul.f32 %v11892_v53, %v8442_v11  ;;  %v11893_v47 = vld [vmem:[#allocation135_spill] sm:$0xff]  ;;  %v11894_v30 = vld [vmem:[#allocation94_spill] sm:$0xff] }
 0x463   : > { %v3984_v61 = vmul.f32 %v11890_v24, %v8431_v29  ;;  %v2014_v4 = vadd.f32 %v1998_v34, %v1978_v51  ;;  %v11891_v39 = vld [vmem:[#allocation36_spill] sm:$0xff]  ;;  %v2813_v60 = vadd.f32 %v2797_v56, %v2777_v22  ;;  %v4020_v26 = vmul.f32 %v11894_v30, %v11893_v47  ;;  %v11895_v57 = vld [vmem:[#allocation34_spill] sm:$0xff]  ;;  %v11897_v34 = vld [vmem:[#allocation85_spill] sm:$0xff] }
 0x464   : > { %v2070_v13 = vmul.f32 %v11891_v39, %v8439_v28  ;;  %v3964_v42 = vadd.f32 %v3948_v58, %v3928_v2  ;;  %v8458_v54 = vpop.eup %5770  ;;  %v3325_v17 = vsub.f32 1.0, %v3309_v32  ;;  %v8460_v10 = vld [vmem:[#allocation3 + $0x191] sm:$0xff]  ;;  %v11898_v31 = vld [vmem:[#allocation37_spill] sm:$0xff]  ;;  %v4327_v3 = vadd.f32 %v8325_v63, %v4291_v23  ;;  %v11902_v63 = vld [vmem:[#allocation102_spill] sm:$0xff] }
 0x465   : > { %v11896_v1 = vld [vmem:[#allocation96_spill] sm:$0xff]  ;;  %v2050_v51 = vadd.f32 %v2034_v62, %v2014_v4  ;;  %v2106_v35 = vmul.f32 %v11898_v31, %v11897_v34  ;;  %v3102_v56 = vmul.f32 1.0614054, %v8458_v54  ;;  %v2849_v58 = vadd.f32 %v2833_v25, %v2813_v60  ;;  %v8468_v2 = vld [vmem:[#allocation2 + $0x1a0] sm:$0xff]  ;;  %v11900_v30 = vld [vmem:[#allocation39_spill] sm:$0xff] }
 0x466   : > { %v4056_v37 = vmul.f32 %v11896_v1, %v11895_v57  ;;  %v4000_v22 = vadd.f32 %v3984_v61, %v3964_v42  ;;  %v3341_v47 = vmul.f32 %v3325_v17, %v8390_v20  ;;  %v3280_v32 = vmul.f32 1.442695, %v3262_v50  ;;  %v11899_v11 = vld [vmem:[#allocation53_spill] sm:$0xff]  ;;  %v11901_v34 = vld [vmem:[#allocation99_spill] sm:$0xff]  ;;  %v11903_v25 = vld [vmem:[#allocation40_spill] sm:$0xff] }
 0x467   : > { %v2086_v53 = vadd.f32 %v2070_v13, %v2050_v51  ;;  %v2142_v39 = vmul.f32 %v11900_v30, %v11899_v11  ;;  %v3118_v1 = vadd.f32 -1.4531521, %v3102_v56  ;;  %v2885_v62 = vadd.f32 %v2869_v33, %v2849_v58  ;;  %v8481_v17 = vld [vmem:[#allocation3 + $0x60] sm:$0xff]  ;;  %v11906_v56 = vld [vmem:[#allocation59_spill] sm:$0xff] }
 0x468   : > { %v4036_v4 = vadd.f32 %v4020_v26, %v4000_v22  ;;  %v4092_v31 = vmul.f32 %v11901_v34, %v8460_v10  ;;  %v3357_v57 = vadd.f32 1.0, %v3341_v47  ;;  %v4168_v60 = vmul.f32 %v11902_v63, %v11840_v8  ;;  %11904 = vst [vmem:[#allocation133_spill] sm:$0xff] %v8481_v17  ;;  %v8484_v51 = vld [vmem:[#allocation2 + $0x61] sm:$0xff] }
 0x469   : > { %v2122_v61 = vadd.f32 %v2106_v35, %v2086_v53  ;;  %v2178_v42 = vmul.f32 %v11903_v25, %v8468_v2  ;;  %v3134_v20 = vmul.f32 %v8458_v54, %v3118_v1  ;;  %v4363_v13 = vadd.f32 %v8331_v59, %v4327_v3  ;;  %11905 = vst [vmem:[#allocation108_spill] sm:$0xff] %v8484_v51  ;;  %v11907_v8 = vld [vmem:[#allocation41_spill] sm:$0xff]  ;;  %v11913_v47 = vld [vmem:[#allocation70_spill] sm:$0xff] }
 0x46a   : > { %v2921_v50 = vadd.f32 %v2905_v21, %v2885_v62  ;;  %v4072_v23 = vadd.f32 %v4056_v37, %v4036_v4  ;;  %v3373_v33 = vmul.f32 %v3357_v57, %v8385_v0  ;;  %5772 = vpow2.f32 %v3280_v32  ;;  %v8491_v1 = vld [vmem:[%s11626_s14] ss:$0 sm:$0xff]  ;;  %v11910_v37 = vld [vmem:[#allocation42_spill] sm:$0xff]  ;;  %v11912_v57 = vld [vmem:[#allocation67_spill] sm:$0xff] }
 0x46b   : > { %v2158_v26 = vadd.f32 %v2142_v39, %v2122_v61  ;;  %v2254_v53 = vmul.f32 %v11907_v8, %v11906_v56  ;;  %v3150_v35 = vadd.f32 1.4214138, %v3134_v20  ;;  %11908 = vst [vmem:[#allocation135_spill] sm:$0xff] %v8491_v1  ;;  %v11909_v21 = vld [vmem:[#allocation93_spill] sm:$0xff]  ;;  %v11911_v0 = vld [vmem:[#allocation90_spill] sm:$0xff]  ;;  %v3477_v32 = vmul.f32 %v11913_v47, %v8277_v14  ;;  %v11914_v62 = vld [vmem:[#allocation71_spill] sm:$0xff] }
 0x46c   : > { %v8494_v59 = vadd.f32 %v8491_v1, %v2921_v50  ;;  %v2290_v3 = vmul.f32 %v11910_v37, %v11909_v21  ;;  %v3441_v39 = vmul.f32 %v11912_v57, %v11911_v0  ;;  %v4508_v58 = vmul.f32 %v8404_v12, %v3373_v33  ;;  %v11915_v56 = vld [vmem:[#allocation43_spill] sm:$0xff]  ;;  %v11922_v47 = vld [vmem:[#allocation49_spill] sm:$0xff] }
 0x46d   : > { %v2194_v22 = vadd.f32 %v2178_v42, %v2158_v26  ;;  %v3513_v4 = vmul.f32 %v11914_v62, %v8481_v17  ;;  %v3166_v61 = vmul.f32 %v8458_v54, %v3150_v35  ;;  %v4108_v50 = vadd.f32 %v4092_v31, %v4072_v23  ;;  %v8524_v37 = vld [vmem:[#allocation3 + $0x52] sm:$0xff] }
 0x46e   : > { %v8507_v20 = vmul.f32 0.70710677, %v8494_v59  ;;  %v2326_v1 = vmul.f32 %v11915_v56, %v8484_v51  ;;  %5525 = vmatmul.mubr.msk.f32.vlgmr.msra.gmra.mrb[0].mxu0 %vm704_vm0, %v4508_v58  ;;  %5557 = vmatmul.mubr.msk.f32.vlgmr.msra.gmra.mrb[0].mxu1 %vm704_vm0, %v4508_v58  ;;  %v8514_v12 = vmul.f32 0.5, %v8352_v15  ;;  %v3493_v33 = vadd.f32 %v3477_v32, %v3441_v39  ;;  %v8522_v56 = vld [vmem:[#allocation3 + $0x100] sm:$0xff]  ;;  %v11916_v15 = vld [vmem:[#allocation107_spill] sm:$0xff]  ;;  %v11917_v51 = vld [vmem:[#allocation46_spill] sm:$0xff] }
 0x46f   : > { %v2270_v42 = vadd.f32 %v2254_v53, %v2194_v22  ;;  %v3549_v26 = vmul.f32 %v11844_v41, %v11848_v5  ;;  %v3182_v35 = vadd.f32 -0.28449672, %v3166_v61  ;;  %v4399_v0 = vadd.f32 %v8335_v7, %v4363_v13  ;;  %v8532_v22 = vld [vmem:[#allocation2 + $0x101] sm:$0xff]  ;;  %v11919_v32 = vld [vmem:[#allocation47_spill] sm:$0xff] }
 0x470   : > { %v3023_v31 = vand.u32 2147483647, %v8507_v20  ;;  %v4204_v23 = vmul.f32 %v11841_v55, %v8287_v40  ;;  %v2362_v53 = vmul.f32 %v11917_v51, %v11916_v15  ;;  %v3529_v39 = vadd.f32 %v3513_v4, %v3493_v33  ;;  %11918 = vst [vmem:[#allocation85_spill] sm:$0xff] %v8532_v22  ;;  %v11920_v33 = vld [vmem:[#allocation95_spill] sm:$0xff] }
 0x471   : > { %v2306_v58 = vadd.f32 %v2290_v3, %v2270_v42  ;;  %v3585_v5 = vmul.f32 %v11849_v43, %v8320_v38  ;;  %v3198_v7 = vmul.f32 %v8458_v54, %v3182_v35  ;;  %v2398_v61 = vmul.f32 %v11919_v32, %v8292_v48  ;;  %v11921_v43 = vld [vmem:[#allocation106_spill] sm:$0xff] }
 0x472   : > { %v3039_v13 = vmul.f32 0.3275911, %v3023_v31  ;;  %v4184_v41 = vadd.f32 %v4168_v60, %v4108_v50  ;;  %v3565_v3 = vadd.f32 %v3549_v26, %v3529_v39  ;;  %v3621_v42 = vmul.f32 %v11854_v16, %v8522_v56  ;;  %v11923_v26 = vld [vmem:[#allocation50_spill] sm:$0xff] }
 0x473   : > { %v2342_v55 = vadd.f32 %v2326_v1, %v2306_v58  ;;  %v3214_v4 = vadd.f32 0.2548296, %v3198_v7  ;;  %v4435_v15 = vadd.f32 %v11920_v33, %v4399_v0  ;;  %v4240_v38 = vmul.f32 %v11921_v43, %v8524_v37  ;;  %v8551_v58 = vld [vmem:[#allocation3 + $0x1a0] sm:$0xff] }
 0x474   : > { %v3055_v51 = vadd.f32 1.0, %v3039_v13  ;;  %v5773_v35 = vpop.eup %5772  ;;  %v2434_v17 = vmul.f32 %v11922_v47, %v8532_v22  ;;  %v3601_v63 = vadd.f32 %v3585_v5, %v3565_v3  ;;  %v3657_v60 = vmul.f32 %v11858_v46, %v11861_v18  ;;  %11924 = vst [vmem:[#allocation53_spill] sm:$0xff] %v8551_v58  ;;  %v8555_v39 = vld [vmem:[#allocation2 + $0x1a1] sm:$0xff]  ;;  %v11931_v47 = vld [vmem:[#allocation51_spill] sm:$0xff] }
 0x475   : > { %v2378_v62 = vadd.f32 %v2362_v53, %v2342_v55  ;;  %v3006_v1 = vsel %vm2990_vm5, -1.0, %v11866_v27  ;;  %v3230_v50 = vmul.f32 %v8458_v54, %v3214_v4  ;;  %v2470_v0 = vmul.f32 %v11923_v26, %v8168_v45  ;;  %v8553_v55 = vld [vmem:[#allocation3 + $0xf2] sm:$0xff]  ;;  %11926 = vst [vmem:[#allocation93_spill] sm:$0xff] %v8555_v39  ;;  %v11927_v13 = vld [vmem:[#allocation113_spill] sm:$0xff]  ;;  %v11929_v4 = vld [vmem:[#allocation114_spill] sm:$0xff] }
 0x476   : > { %5774 = vrcp.f32 %v3055_v51  ;;  %11925 = vst [vmem:[#allocation59_spill] sm:$0xff] %v8553_v55  ;;  %v4220_v53 = vadd.f32 %v4204_v23, %v4184_v41  ;;  %v3637_v7 = vadd.f32 %v3621_v42, %v3601_v63  ;;  %v3693_v18 = vmul.f32 %v11862_v6, %v8368_v52  ;;  %v11928_v51 = vld [vmem:[#allocation44_spill] sm:$0xff]  ;;  %v11933_v63 = vld [vmem:[#allocation87_spill] sm:$0xff]  ;;  %v8581_v52 = vld [vmem:[#allocation3 + $0x61] sm:$0xff] }
 0x477   : > { %v2414_v5 = vadd.f32 %v2398_v61, %v2378_v62  ;;  %v3310_v44 = vmul.f32 %v5773_v35, %v3230_v50  ;;  %v4471_v3 = vadd.f32 %v11927_v13, %v4435_v15  ;;  %v3247_v54 = vsub.f32 0.0, %v3023_v31  ;;  %v11930_v26 = vld [vmem:[#allocation128_spill] sm:$0xff]  ;;  %v11935_v35 = vld [vmem:[#allocation119_spill] sm:$0xff]  ;;  %v11936_v15 = vld [vmem:[#allocation54_spill] sm:$0xff]  ;;  %11940 = vst [vmem:[#allocation107_spill] sm:$0xff] %v8581_v52 }
 0x478   : > { %v4276_v33 = vmul.f32 %v11929_v4, %v11928_v51  ;;  %v2506_v46 = vmul.f32 %v11931_v47, %v11930_v26  ;;  %v3673_v32 = vadd.f32 %v3657_v60, %v3637_v7  ;;  %v11932_v41 = vld [vmem:[#allocation80_spill] sm:$0xff]  ;;  %v8570_v50 = vmul.f32 %v11935_v35, %v8553_v55  ;;  %v11938_v26 = vld [vmem:[#allocation74_spill] sm:$0xff]  ;;  %v11939_v6 = vld [vmem:[#allocation55_spill] sm:$0xff] }
 0x479   : > { %v2450_v45 = vadd.f32 %v2434_v17, %v2414_v5  ;;  %v3729_v23 = vmul.f32 %v11932_v41, %v8551_v58  ;;  %v3326_v62 = vsub.f32 1.0, %v3310_v44  ;;  %v11934_v61 = vld [vmem:[#allocation116_spill] sm:$0xff]  ;;  %v2542_v13 = vmul.f32 %v11936_v15, %v8555_v39  ;;  %v8574_v5 = vld [vmem:[#allocation2 + $0x62] sm:$0xff]  ;;  %v11941_v35 = vld [vmem:[#allocation103_spill] sm:$0xff] }
 0x47a   : > { %v4312_v42 = vmul.f32 %v11934_v61, %v11933_v63  ;;  %v4256_v51 = vadd.f32 %v4240_v38, %v4220_v53  ;;  %11937 = vst [vmem:[#allocation90_spill] sm:$0xff] %v8574_v5  ;;  %v3709_v47 = vadd.f32 %v3693_v18, %v3673_v32  ;;  %v3805_v60 = vmul.f32 %v11867_v36, %v8170_v49  ;;  %v11942_v15 = vld [vmem:[#allocation58_spill] sm:$0xff]  ;;  %v11943_v53 = vld [vmem:[#allocation48_spill] sm:$0xff]  ;;  %v11945_v49 = vld [vmem:[#allocation61_spill] sm:$0xff] }
 0x47b   : > { %v2486_v17 = vadd.f32 %v2470_v0, %v2450_v45  ;;  %v3342_v7 = vmul.f32 %v3326_v62, %v3006_v1  ;;  %v4493_v44 = vadd.f32 %v11869_v19, %v4471_v3  ;;  %v3263_v41 = vmul.f32 %v3247_v54, %v3023_v31  ;;  %v11944_v45 = vld [vmem:[#allocation83_spill] sm:$0xff]  ;;  %v11946_v62 = vld [vmem:[#allocation130_spill] sm:$0xff]  ;;  %v11948_v3 = vld [vmem:[#allocation132_spill] sm:$0xff] }
 0x47c   : > { %v2618_v58 = vmul.f32 %v11939_v6, %v11938_v26  ;;  %v2654_v38 = vmul.f32 %v11942_v15, %v11941_v35  ;;  %v3745_v0 = vadd.f32 %v3729_v23, %v3709_v47  ;;  %v3841_v32 = vmul.f32 %v11944_v45, %v11943_v53  ;;  %v11947_v19 = vld [vmem:[#allocation63_spill] sm:$0xff]  ;;  %v11949_v54 = vld [vmem:[#allocation64_spill] sm:$0xff] }
 0x47d   : > { %v2522_v22 = vadd.f32 %v2506_v46, %v2486_v17  ;;  %v3358_v18 = vadd.f32 1.0, %v3342_v7  ;;  %v2690_v1 = vmul.f32 %v11945_v49, %v8574_v5  ;;  %v2726_v31 = vmul.f32 %v11947_v19, %v11946_v62  ;;  %v11950_v17 = vld [vmem:[#allocation88_spill] sm:$0xff]  ;;  %v8595_v47 = vld [vmem:[#allocation2 + $0x70] sm:$0xff]  ;;  %v11953_v5 = vld [vmem:[#allocation89_spill] sm:$0xff] }
 0x47e   : > { %v2762_v26 = vmul.f32 %v11949_v54, %v11948_v3  ;;  %v4292_v6 = vadd.f32 %v4276_v33, %v4256_v51  ;;  %v3821_v46 = vadd.f32 %v3805_v60, %v3745_v0  ;;  %v3877_v15 = vmul.f32 %v11950_v17, %v8581_v52  ;;  %11951 = vst [vmem:[#allocation95_spill] sm:$0xff] %v8595_v47  ;;  %v11952_v49 = vld [vmem:[#allocation124_spill] sm:$0xff]  ;;  %v11954_v62 = vld [vmem:[#allocation79_spill] sm:$0xff]  ;;  %v11955_v19 = vld [vmem:[#allocation30_spill] sm:$0xff] }
 0x47f   : > { %v2558_v36 = vadd.f32 %v2542_v13, %v2522_v22  ;;  %v3374_v7 = vmul.f32 %v3358_v18, %v8514_v12  ;;  %v3282_v45 = vmul.f32 1.442695, %v3263_v41  ;;  %v3913_v35 = vmul.f32 %v11953_v5, %v11952_v49  ;;  %v8605_v13 = vld [vmem:[#allocation3 + $0x101] sm:$0xff]  ;;  %v11957_v60 = vld [vmem:[#allocation136_spill] sm:$0xff]  ;;  %v11958_v0 = vld [vmem:[#allocation31_spill] sm:$0xff] }
 0x480   : > { %v8597_v23 = vpop.eup %5774  ;;  %v1891_v53 = vmul.f32 %v11955_v19, %v11954_v62  ;;  %11956 = vst [vmem:[#allocation113_spill] sm:$0xff] %v8605_v13  ;;  %v3857_v51 = vadd.f32 %v3841_v32, %v3821_v46  ;;  %v1927_v54 = vmul.f32 %v11958_v0, %v11957_v60  ;;  %v11959_v3 = vld [vmem:[#allocation91_spill] sm:$0xff]  ;;  %v11960_v41 = vld [vmem:[#allocation32_spill] sm:$0xff]  ;;  %v11961_v49 = vld [vmem:[#allocation33_spill] sm:$0xff]  ;;  %v3985_v46 = vmul.f32 %v11890_v24, %v8605_v13 }
 0x481   : > { %v3103_v33 = vmul.f32 1.0614054, %v8597_v23  ;;  %v2634_v22 = vadd.f32 %v2618_v58, %v2558_v36  ;;  %v4509_v17 = vmul.f32 %v4493_v44, %v3374_v7  ;;  %v3949_v12 = vmul.f32 %v11959_v3, %v8431_v29  ;;  %v8615_v19 = vld [vmem:[#allocation2 + $0x102] sm:$0xff]  ;;  %v8617_v52 = vld [vmem:[#allocation2 + $0x110] sm:$0xff] }
 0x482   : > { %v1963_v18 = vmul.f32 %v11960_v41, %v8595_v47  ;;  %v1999_v5 = vmul.f32 %v11961_v49, %v11888_v9  ;;  %11962 = vst [vmem:[#allocation44_spill] sm:$0xff] %v8615_v19  ;;  %v3893_v58 = vadd.f32 %v3877_v15, %v3857_v51  ;;  %11963 = vst [vmem:[#allocation87_spill] sm:$0xff] %v8617_v52  ;;  %v11964_v7 = vld [vmem:[#allocation35_spill] sm:$0xff]  ;;  %5776 = vpow2.f32 %v3282_v45  ;;  %v11965_v15 = vld [vmem:[#allocation52_spill] sm:$0xff] }
 0x483   : > { %v3119_v62 = vadd.f32 -1.4531521, %v3103_v33  ;;  %v2670_v36 = vadd.f32 %v2654_v38, %v2634_v22  ;;  %v1943_v32 = vadd.f32 %v1927_v54, %v1891_v53  ;;  %5527 = vmatprep.mubr.msk.f32.mxu0 %vm704_vm0, %v4509_v17  ;;  %5559 = vmatprep.mubr.msk.f32.mxu1 %vm704_vm0, %v4509_v17  ;;  %v4328_v44 = vadd.f32 %v4312_v42, %v4292_v6  ;;  %v11966_v22 = vld [vmem:[#allocation126_spill] sm:$0xff]  ;;  %v11967_v54 = vld [vmem:[#allocation65_spill] sm:$0xff]  ;;  %v11968_v6 = vld [vmem:[#allocation36_spill] sm:$0xff] }
 0x484   : > { %v2035_v3 = vmul.f32 %v11964_v7, %v8439_v28  ;;  %v3929_v49 = vadd.f32 %v3913_v35, %v3893_v58  ;;  %v4384_v53 = vmul.f32 %v11966_v22, %v11965_v15  ;;  %v2798_v51 = vmul.f32 %v11967_v54, %v8615_v19  ;;  %v8632_v24 = vld [vmem:[#allocation3 + $0x192] sm:$0xff]  ;;  %v11970_v35 = vld [vmem:[#allocation109_spill] sm:$0xff] }
 0x485   : > { %v3135_v9 = vmul.f32 %v8597_v23, %v3119_v62  ;;  %v2706_v33 = vadd.f32 %v2690_v1, %v2670_v36  ;;  %v1979_v38 = vadd.f32 %v1963_v18, %v1943_v32  ;;  %v2071_v42 = vmul.f32 %v11968_v6, %v8617_v52  ;;  %11969 = vst [vmem:[#allocation74_spill] sm:$0xff] %v8632_v24  ;;  %v11971_v18 = vld [vmem:[#allocation68_spill] sm:$0xff]  ;;  %v11972_v62 = vld [vmem:[#allocation34_spill] sm:$0xff]  ;;  %v11974_v32 = vld [vmem:[#allocation37_spill] sm:$0xff] }
 0x486   : > { %v3965_v7 = vadd.f32 %v3949_v12, %v3929_v49  ;;  %v4364_v1 = vadd.f32 %v8570_v50, %v4328_v44  ;;  %v2834_v45 = vmul.f32 %v11971_v18, %v11970_v35  ;;  %v11973_v36 = vld [vmem:[#allocation94_spill] sm:$0xff]  ;;  %v2107_v15 = vmul.f32 %v11974_v32, %v11899_v11  ;;  %v11977_v50 = vld [vmem:[#allocation125_spill] sm:$0xff]  ;;  %v11979_v44 = vld [vmem:[#allocation127_spill] sm:$0xff] }
 0x487   : > { %v3151_v17 = vadd.f32 1.4214138, %v3135_v9  ;;  %v2742_v13 = vadd.f32 %v2726_v31, %v2706_v33  ;;  %v2015_v28 = vadd.f32 %v1999_v5, %v1979_v38  ;;  %v4021_v58 = vmul.f32 %v11973_v36, %v11972_v62  ;;  %v8642_v6 = vld [vmem:[#allocation2 + $0x1a2] sm:$0xff]  ;;  %v8644_v31 = vld [vmem:[#allocation2 + $0x1b0] sm:$0xff] }
 0x488   : > { %11975 = vst [vmem:[#allocation130_spill] sm:$0xff] %v8642_v6  ;;  %v4001_v52 = vadd.f32 %v3985_v46, %v3965_v7  ;;  %11976 = vst [vmem:[#allocation124_spill] sm:$0xff] %v8644_v31  ;;  %vm2991_vm6 = vcmp.lt.f32.partialorder %v8507_v20, 0.0  ;;  %v11978_v12 = vld [vmem:[#allocation38_spill] sm:$0xff]  ;;  %v4456_v33 = vmul.f32 %v11979_v44, %v8632_v24  ;;  %v11980_v38 = vld [vmem:[#allocation131_spill] sm:$0xff]  ;;  %v2179_v18 = vmul.f32 %v11903_v25, %v8644_v31 }
 0x489   : > { %v3167_v41 = vmul.f32 %v8597_v23, %v3151_v17  ;;  %v2778_v9 = vadd.f32 %v2762_v26, %v2742_v13  ;;  %v2051_v5 = vadd.f32 %v2035_v3, %v2015_v28  ;;  %v4420_v49 = vmul.f32 %v11978_v12, %v11977_v50  ;;  %v11981_v35 = vld [vmem:[#allocation82_spill] sm:$0xff]  ;;  %v11984_v7 = vld [vmem:[#allocation96_spill] sm:$0xff]  ;;  %v11994_v31 = vld [vmem:[#allocation135_spill] sm:$0xff] }
 0x48a   : > { %v2870_v11 = vmul.f32 %v11981_v35, %v11980_v38  ;;  %v8653_v32 = vld [vmem:[#allocation3 + $0x1a1] sm:$0xff]  ;;  %v2143_v13 = vmul.f32 %v11900_v30, %v8468_v2  ;;  %v4400_v28 = vadd.f32 %v4384_v53, %v4364_v1  ;;  %v4057_v36 = vmul.f32 %v11984_v7, %v8460_v10  ;;  %v8664_v38 = vld [vmem:[#allocation3 + $0x70] sm:$0xff] }
 0x48b   : > { %v3183_v62 = vadd.f32 -0.28449672, %v3167_v41  ;;  %v2814_v17 = vadd.f32 %v2798_v51, %v2778_v9  ;;  %11982 = vst [vmem:[#allocation79_spill] sm:$0xff] %v8653_v32  ;;  %v2087_v26 = vadd.f32 %v2071_v42, %v2051_v5  ;;  %v11983_v3 = vld [vmem:[#allocation86_spill] sm:$0xff]  ;;  %v4037_v51 = vadd.f32 %v4021_v58, %v4001_v52 }
 0x48c   : > { %v2906_v46 = vmul.f32 %v11983_v3, %v8642_v6  ;;  %v2959_v42 = vmul.f32 0.5, %v8494_v59  ;;  %v3007_v53 = vsel %vm2991_vm6, -1.0, %v11866_v27  ;;  %v4093_v1 = vmul.f32 %v11901_v34, %v8653_v32  ;;  %v11985_v59 = vld [vmem:[#allocation102_spill] sm:$0xff]  ;;  %v11988_v34 = vld [vmem:[#allocation71_spill] sm:$0xff] }
 0x48d   : > { %v3199_v35 = vmul.f32 %v8597_v23, %v3183_v62  ;;  %v2850_v41 = vadd.f32 %v2834_v45, %v2814_v17  ;;  %v2123_v9 = vadd.f32 %v2107_v15, %v2087_v26  ;;  %v3442_v5 = vmul.f32 %v11912_v57, %v8277_v14  ;;  %v5777_v45 = vpop.eup %5776  ;;  %v8676_v15 = vld [vmem:[#allocation3 + $0x62] sm:$0xff]  ;;  %v11993_v57 = vld [vmem:[#allocation72_spill] sm:$0xff] }
 0x48e   : > { %v2255_v52 = vmul.f32 %v11907_v8, %v11909_v21  ;;  %v4436_v58 = vadd.f32 %v4420_v49, %v4400_v28  ;;  %v4169_v20 = vmul.f32 %v11985_v59, %v8287_v40  ;;  %v11986_v17 = vld [vmem:[#allocation133_spill] sm:$0xff]  ;;  %v11987_v26 = vld [vmem:[#allocation70_spill] sm:$0xff]  ;;  %v3514_v32 = vmul.f32 %v11988_v34, %v8664_v38  ;;  %v11989_v21 = vld [vmem:[#allocation104_spill] sm:$0xff] }
 0x48f   : > { %v3215_v25 = vadd.f32 0.2548296, %v3199_v35  ;;  %v2886_v7 = vadd.f32 %v2870_v11, %v2850_v41  ;;  %v2159_v62 = vadd.f32 %v2143_v13, %v2123_v9  ;;  %v3478_v30 = vmul.f32 %v11987_v26, %v11986_v17  ;;  %v8685_v41 = vld [vmem:[#allocation2 + $0x71] sm:$0xff]  ;;  %v11991_v9 = vld [vmem:[#allocation42_spill] sm:$0xff]  ;;  %v11992_v59 = vld [vmem:[#allocation129_spill] sm:$0xff] }
 0x490   : > { %v4073_v11 = vadd.f32 %v4057_v36, %v4037_v51  ;;  %v4205_v49 = vmul.f32 %v11989_v21, %v8524_v37  ;;  %v11990_v28 = vld [vmem:[#allocation108_spill] sm:$0xff]  ;;  %v3550_v26 = vmul.f32 %v11993_v57, %v11992_v59  ;;  %v8702_v36 = vld [vmem:[#allocation3 + $0x102] sm:$0xff]  ;;  %v4472_v59 = vadd.f32 %v4456_v33, %v4436_v58  ;;  %v12000_v33 = vld [vmem:[#allocation119_spill] sm:$0xff] }
 0x491   : > { %v3231_v14 = vmul.f32 %v8597_v23, %v3215_v25  ;;  %v2922_v35 = vadd.f32 %v2906_v46, %v2886_v7  ;;  %v2195_v13 = vadd.f32 %v2179_v18, %v2159_v62  ;;  %v2291_v8 = vmul.f32 %v11991_v9, %v11990_v28  ;;  %v8700_v18 = vld [vmem:[#allocation3 + $0x110] sm:$0xff]  ;;  %11996 = vst [vmem:[#allocation52_spill] sm:$0xff] %v8702_v36 }
 0x492   : > { %v3494_v40 = vadd.f32 %v3478_v30, %v3442_v5  ;;  %v8698_v25 = vmul.f32 %v11921_v43, %v8676_v15  ;;  %11995 = vst [vmem:[#allocation136_spill] sm:$0xff] %v8700_v18  ;;  %v8706_v46 = vmul.f32 %v11929_v4, %v11933_v63  ;;  %v11997_v30 = vld [vmem:[#allocation43_spill] sm:$0xff]  ;;  %v3622_v63 = vmul.f32 %v11854_v16, %v8700_v18 }
 0x493   : > { %v3311_v17 = vmul.f32 %v5777_v45, %v3231_v14  ;;  %v8694_v34 = vadd.f32 %v11994_v31, %v2922_v35  ;;  %v2271_v23 = vadd.f32 %v2255_v52, %v2195_v13  ;;  %v2327_v7 = vmul.f32 %v11997_v30, %v8685_v41  ;;  %v11998_v5 = vld [vmem:[#allocation75_spill] sm:$0xff]  ;;  %v11999_v13 = vld [vmem:[#allocation46_spill] sm:$0xff] }
 0x494   : > { %v3530_v51 = vadd.f32 %v3514_v32, %v3494_v40  ;;  %v3586_v62 = vmul.f32 %v11998_v5, %v8522_v56  ;;  %v4109_v52 = vadd.f32 %v4093_v1, %v4073_v11  ;;  %v2363_v31 = vmul.f32 %v11999_v13, %v8292_v48  ;;  %v12002_v48 = vld [vmem:[#allocation85_spill] sm:$0xff] }
 0x495   : > { %v3327_v45 = vsub.f32 1.0, %v3311_v17  ;;  %v8713_v14 = vmul.f32 0.70710677, %v8694_v34  ;;  %v2307_v35 = vadd.f32 %v2291_v8, %v2271_v23  ;;  %v8724_v17 = vmul.f32 %v11934_v61, %v8553_v55  ;;  %v8730_v8 = vld [vmem:[#allocation2 + $0x111] sm:$0xff]  ;;  %v12004_v23 = vld [vmem:[#allocation134_spill] sm:$0xff] }
 0x496   : > { %v3566_v43 = vadd.f32 %v3550_v26, %v3530_v51  ;;  %v8728_v58 = vmul.f32 %v12000_v33, %v8702_v36  ;;  %12001 = vst [vmem:[#allocation109_spill] sm:$0xff] %v8730_v8  ;;  %v12003_v26 = vld [vmem:[#allocation47_spill] sm:$0xff]  ;;  %v8739_v61 = vld [vmem:[%s11735_s11] ss:$0 sm:$0xff]  ;;  %v4185_v36 = vadd.f32 %v4169_v20, %v4109_v52  ;;  %v8757_v20 = vmul.f32 %v11978_v12, %v8632_v24 }
 0x497   : > { %v3343_v4 = vmul.f32 %v3327_v45, %v3007_v53  ;;  %v8720_v32 = vand.u32 2147483647, %v8713_v14  ;;  %v2343_v1 = vadd.f32 %v2327_v7, %v2307_v35  ;;  %v2399_v11 = vmul.f32 %v12003_v26, %v12002_v48  ;;  %v12005_v53 = vld [vmem:[#allocation77_spill] sm:$0xff]  ;;  %12006 = vst [vmem:[#allocation34_spill] sm:$0xff] %v8739_v61  ;;  %v8743_v55 = vld [vmem:[#allocation3 + $0x1b0] sm:$0xff]  ;;  %v12011_v26 = vld [vmem:[#allocation78_spill] sm:$0xff] }
 0x498   : > { %v3602_v40 = vadd.f32 %v3586_v62, %v3566_v43  ;;  %v3658_v51 = vmul.f32 %v12005_v53, %v12004_v23  ;;  %v4494_v13 = vadd.f32 %v8739_v61, %v4472_v59  ;;  %12007 = vst [vmem:[#allocation125_spill] sm:$0xff] %v8743_v55  ;;  %v8745_v7 = vld [vmem:[#allocation3 + $0x1a2] sm:$0xff]  ;;  %v8753_v59 = vmul.f32 %v11966_v22, %v11977_v50  ;;  %v8759_v52 = vld [vmem:[#allocation2 + $0x1b1] sm:$0xff] }
 0x499   : > { %v3359_v45 = vadd.f32 1.0, %v3343_v4  ;;  %v3040_v33 = vmul.f32 0.3275911, %v8720_v32  ;;  %12008 = vst [vmem:[#allocation108_spill] sm:$0xff] %v8745_v7  ;;  %v2379_v35 = vadd.f32 %v2363_v31, %v2343_v1  ;;  %v12009_v43 = vld [vmem:[#allocation49_spill] sm:$0xff]  ;;  %12012 = vst [vmem:[#allocation129_spill] sm:$0xff] %v8759_v52  ;;  %v8767_v50 = vmul.f32 %v11979_v44, %v8745_v7 }
 0x49a   : > { %v2435_v62 = vmul.f32 %v12009_v43, %v8730_v8  ;;  %v3638_v23 = vadd.f32 %v3622_v63, %v3602_v40  ;;  %v12010_v4 = vld [vmem:[#allocation53_spill] sm:$0xff]  ;;  %v12013_v1 = vld [vmem:[#allocation128_spill] sm:$0xff]  ;;  %v12014_v61 = vld [vmem:[#allocation50_spill] sm:$0xff]  ;;  %vm2992_vm7 = vcmp.lt.f32.partialorder %v8713_v14, 0.0 }
 0x49b   : > { %v3694_v53 = vmul.f32 %v12011_v26, %v12010_v4  ;;  %v3375_v48 = vmul.f32 %v3359_v45, %v2959_v42  ;;  %v3056_v16 = vadd.f32 1.0, %v3040_v33  ;;  %v2415_v31 = vadd.f32 %v2399_v11, %v2379_v35  ;;  %v12015_v40 = vld [vmem:[#allocation80_spill] sm:$0xff]  ;;  %v12017_v22 = vld [vmem:[#allocation51_spill] sm:$0xff] }
 0x49c   : > { %v2471_v43 = vmul.f32 %v12014_v61, %v12013_v1  ;;  %v3674_v63 = vadd.f32 %v3658_v51, %v3638_v23  ;;  %v3730_v26 = vmul.f32 %v12015_v40, %v8743_v55  ;;  %v4221_v33 = vadd.f32 %v4205_v49, %v4185_v36  ;;  %v8769_v45 = vld [vmem:[#allocation2 + $0x72] sm:$0xff]  ;;  %v12020_v23 = vld [vmem:[#allocation81_spill] sm:$0xff] }
 0x49d   : > { %v4510_v42 = vmul.f32 %v4494_v13, %v3375_v48  ;;  %5778 = vrcp.f32 %v3056_v16  ;;  %12016 = vst [vmem:[#allocation134_spill] sm:$0xff] %v8769_v45  ;;  %v2451_v12 = vadd.f32 %v2435_v62, %v2415_v31  ;;  %v2507_v11 = vmul.f32 %v12017_v22, %v8555_v39  ;;  %v8773_v24 = vld [vmem:[#allocation3 + $0x71] sm:$0xff]  ;;  %v12021_v16 = vld [vmem:[#allocation54_spill] sm:$0xff] }
 0x49e   : > { %v3710_v35 = vadd.f32 %v3694_v53, %v3674_v63  ;;  %12018 = vst [vmem:[#allocation53_spill] sm:$0xff] %v8773_v24  ;;  %v12019_v51 = vld [vmem:[#allocation48_spill] sm:$0xff]  ;;  %v2543_v49 = vmul.f32 %v12021_v16, %v8759_v52  ;;  %v12022_v36 = vld [vmem:[#allocation103_spill] sm:$0xff]  ;;  %v12024_v62 = vld [vmem:[#allocation90_spill] sm:$0xff]  ;;  %v3248_v16 = vsub.f32 0.0, %v8720_v32  ;;  %v4257_v52 = vadd.f32 %v8698_v25, %v4221_v33 }
 0x49f   : > { %v3806_v1 = vmul.f32 %v12020_v23, %v12019_v51  ;;  %5528 = vmatmul.mubr.msk.f32.gmra.mrb[2].mxu0 %vm704_vm0, %v4510_v42  ;;  %5560 = vmatmul.mubr.msk.f32.gmra.mrb[2].mxu1 %vm704_vm0, %v4510_v42  ;;  %v12023_v13 = vld [vmem:[#allocation55_spill] sm:$0xff]  ;;  %v12025_v31 = vld [vmem:[#allocation58_spill] sm:$0xff]  ;;  %v2487_v22 = vadd.f32 %v2471_v43, %v2451_v12  ;;  %v12027_v63 = vld [vmem:[#allocation61_spill] sm:$0xff] }
 0x4a0   : > { %v2619_v48 = vmul.f32 %v12023_v13, %v12022_v36  ;;  %v2655_v44 = vmul.f32 %v12025_v31, %v12024_v62  ;;  %v8785_v53 = vld [vmem:[#allocation2 + $0x112] sm:$0xff]  ;;  %v2691_v61 = vmul.f32 %v12027_v63, %v8769_v45  ;;  %v3746_v51 = vadd.f32 %v3730_v26, %v3710_v35  ;;  %v8791_v42 = vld [vmem:[#allocation2 + $0x80] sm:$0xff]  ;;  %v12034_v63 = vld [vmem:[#allocation30_spill] sm:$0xff] }
 0x4a1   : > { %12026 = vst [vmem:[#allocation128_spill] sm:$0xff] %v8785_v53  ;;  %v12028_v23 = vld [vmem:[#allocation107_spill] sm:$0xff]  ;;  %12030 = vst [vmem:[#allocation48_spill] sm:$0xff] %v8791_v42  ;;  %v12031_v36 = vld [vmem:[#allocation132_spill] sm:$0xff]  ;;  %v2523_v31 = vadd.f32 %v2507_v11, %v2487_v22  ;;  %v1892_v26 = vmul.f32 %v12034_v63, %v11957_v60  ;;  %v1928_v35 = vmul.f32 %v11958_v0, %v8595_v47 }
 0x4a2   : > { %v12029_v39 = vld [vmem:[#allocation83_spill] sm:$0xff]  ;;  %v12033_v12 = vld [vmem:[#allocation88_spill] sm:$0xff]  ;;  %v3822_v62 = vadd.f32 %v3806_v1, %v3746_v51  ;;  %v2799_v25 = vmul.f32 %v11967_v54, %v8785_v53  ;;  %v12036_v33 = vld [vmem:[#allocation89_spill] sm:$0xff]  ;;  %v4293_v54 = vadd.f32 %v8706_v46, %v4257_v52 }
 0x4a3   : > { %v3842_v7 = vmul.f32 %v12029_v39, %v12028_v23  ;;  %v12032_v13 = vld [vmem:[#allocation63_spill] sm:$0xff]  ;;  %v3878_v43 = vmul.f32 %v12033_v12, %v8773_v24  ;;  %v12035_v45 = vld [vmem:[#allocation64_spill] sm:$0xff]  ;;  %v2559_v22 = vadd.f32 %v2543_v49, %v2523_v31  ;;  %v8813_v60 = vld [vmem:[#allocation2 + $0x120] sm:$0xff]  ;;  %v1944_v51 = vadd.f32 %v1928_v35, %v1892_v26 }
 0x4a4   : > { %v2727_v40 = vmul.f32 %v12032_v13, %v12031_v36  ;;  %v2763_v39 = vmul.f32 %v12035_v45, %v8615_v19  ;;  %v3914_v36 = vmul.f32 %v12036_v33, %v8431_v29  ;;  %v12037_v13 = vld [vmem:[#allocation32_spill] sm:$0xff]  ;;  %12039 = vst [vmem:[#allocation132_spill] sm:$0xff] %v8813_v60  ;;  %v12041_v63 = vld [vmem:[#allocation33_spill] sm:$0xff]  ;;  %v3264_v45 = vmul.f32 %v3248_v16, %v8720_v32  ;;  %v12042_v53 = vld [vmem:[#allocation131_spill] sm:$0xff] }
 0x4a5   : > { %v1964_v12 = vmul.f32 %v12037_v13, %v8791_v42  ;;  %v8811_v11 = vld [vmem:[#allocation3 + $0x111] sm:$0xff]  ;;  %v3858_v1 = vadd.f32 %v3842_v7, %v3822_v62  ;;  %v12044_v33 = vld [vmem:[#allocation113_spill] sm:$0xff]  ;;  %v2635_v49 = vadd.f32 %v2619_v48, %v2559_v22 }
 0x4a6   : > { %12038 = vst [vmem:[#allocation103_spill] sm:$0xff] %v8811_v11  ;;  %v12040_v0 = vld [vmem:[#allocation60_spill] sm:$0xff]  ;;  %v12045_v24 = vld [vmem:[#allocation91_spill] sm:$0xff] }
 0x4a7   : > { %v2000_v47 = vmul.f32 %v12041_v63, %v12040_v0  ;;  %v12043_v19 = vld [vmem:[#allocation68_spill] sm:$0xff]  ;;  %v3950_v13 = vmul.f32 %v12045_v24, %v12044_v33  ;;  %v3894_v31 = vadd.f32 %v3878_v43, %v3858_v1  ;;  %v1980_v42 = vadd.f32 %v1964_v12, %v1944_v51  ;;  %v12046_v7 = vld [vmem:[#allocation87_spill] sm:$0xff]  ;;  %v8825_v26 = vpop.eup %5778  ;;  %v12048_v0 = vld [vmem:[#allocation82_spill] sm:$0xff] }
 0x4a8   : > { %v2835_v29 = vmul.f32 %v12043_v19, %v12042_v53  ;;  %v12047_v62 = vld [vmem:[#allocation35_spill] sm:$0xff]  ;;  %v2871_v32 = vmul.f32 %v12048_v0, %v8642_v6  ;;  %v12049_v46 = vld [vmem:[#allocation92_spill] sm:$0xff]  ;;  %v3104_v48 = vmul.f32 1.0614054, %v8825_v26  ;;  %v2671_v12 = vadd.f32 %v2655_v44, %v2635_v49  ;;  %v12052_v0 = vld [vmem:[#allocation37_spill] sm:$0xff] }
 0x4a9   : > { %v2036_v23 = vmul.f32 %v12047_v62, %v12046_v7  ;;  %v3986_v52 = vmul.f32 %v12049_v46, %v8811_v11  ;;  %v12050_v16 = vld [vmem:[#allocation36_spill] sm:$0xff]  ;;  %v3930_v35 = vadd.f32 %v3914_v36, %v3894_v31  ;;  %v2016_v22 = vadd.f32 %v2000_v47, %v1980_v42  ;;  %v12051_v62 = vld [vmem:[#allocation94_spill] sm:$0xff]  ;;  %v12054_v44 = vld [vmem:[#allocation39_spill] sm:$0xff] }
 0x4aa   : > { %v2072_v53 = vmul.f32 %v12050_v16, %v8813_v60  ;;  %v8835_v43 = vld [vmem:[#allocation2 + $0x1b2] sm:$0xff]  ;;  %v3284_v1 = vmul.f32 1.442695, %v3264_v45  ;;  %v4329_v51 = vadd.f32 %v8724_v17, %v4293_v54  ;;  %v4022_v19 = vmul.f32 %v12051_v62, %v8460_v10  ;;  %v8842_v16 = vld [vmem:[#allocation2 + $0x1c0] sm:$0xff] }
 0x4ab   : > { %v2108_v6 = vmul.f32 %v12052_v0, %v8468_v2  ;;  %v3120_v46 = vadd.f32 -1.4531521, %v3104_v48  ;;  %v2707_v63 = vadd.f32 %v2691_v61, %v2671_v12  ;;  %v3966_v7 = vadd.f32 %v3950_v13, %v3930_v35  ;;  %v12053_v54 = vld [vmem:[#allocation124_spill] sm:$0xff]  ;;  %v12055_v42 = vld [vmem:[#allocation79_spill] sm:$0xff] }
 0x4ac   : > { %v2052_v60 = vadd.f32 %v2036_v23, %v2016_v22  ;;  %v8845_v24 = vmul.f32 0.5, %v8694_v34  ;;  %v8850_v47 = vsel %vm2992_vm7, -1.0, %v11866_v27  ;;  %v2907_v10 = vmul.f32 %v11983_v3, %v8835_v43  ;;  %v8857_v45 = vld [vmem:[#allocation3 + $0x1b1] sm:$0xff]  ;;  %v8859_v34 = vld [vmem:[#allocation3 + $0x80] sm:$0xff] }
 0x4ad   : > { %v2144_v2 = vmul.f32 %v12054_v44, %v12053_v54  ;;  %v3136_v61 = vmul.f32 %v8825_v26, %v3120_v46  ;;  %v2743_v17 = vadd.f32 %v2727_v40, %v2707_v63  ;;  %v4002_v23 = vadd.f32 %v3986_v52, %v3966_v7  ;;  %v12056_v36 = vld [vmem:[#allocation96_spill] sm:$0xff]  ;;  %v12058_v40 = vld [vmem:[#allocation99_spill] sm:$0xff]  ;;  %v12059_v7 = vld [vmem:[#allocation133_spill] sm:$0xff] }
 0x4ae   : > { %v2088_v13 = vadd.f32 %v2072_v53, %v2052_v60  ;;  %5780 = vpow2.f32 %v3284_v1  ;;  %v4365_v14 = vadd.f32 %v8728_v58, %v4329_v51  ;;  %v4058_v49 = vmul.f32 %v12056_v36, %v12055_v42  ;;  %v12057_v31 = vld [vmem:[#allocation40_spill] sm:$0xff]  ;;  %v12060_v60 = vld [vmem:[#allocation67_spill] sm:$0xff]  ;;  %v12061_v53 = vld [vmem:[#allocation70_spill] sm:$0xff] }
 0x4af   : > { %v2180_v48 = vmul.f32 %v12057_v31, %v8842_v16  ;;  %v3152_v12 = vadd.f32 1.4214138, %v3136_v61  ;;  %v2779_v35 = vadd.f32 %v2763_v39, %v2743_v17  ;;  %v4038_v22 = vadd.f32 %v4022_v19, %v4002_v23  ;;  %v12062_v58 = vld [vmem:[#allocation71_spill] sm:$0xff]  ;;  %v12063_v39 = vld [vmem:[#allocation41_spill] sm:$0xff] }
 0x4b0   : > { %v2124_v46 = vadd.f32 %v2108_v6, %v2088_v13  ;;  %v4094_v63 = vmul.f32 %v12058_v40, %v8857_v45  ;;  %v3443_v52 = vmul.f32 %v12060_v60, %v12059_v7  ;;  %v3479_v1 = vmul.f32 %v12061_v53, %v8664_v38  ;;  %v8878_v61 = vld [vmem:[#allocation2 + $0x81] sm:$0xff] }
 0x4b1   : > { %v3515_v51 = vmul.f32 %v12062_v58, %v8859_v34  ;;  %v3168_v27 = vmul.f32 %v8825_v26, %v3152_v12  ;;  %v2815_v44 = vadd.f32 %v2799_v25, %v2779_v35  ;;  %v2256_v19 = vmul.f32 %v12063_v39, %v11990_v28  ;;  %v8884_v12 = vld [vmem:[#allocation3 + $0x72] sm:$0xff]  ;;  %v12065_v28 = vld [vmem:[#allocation102_spill] sm:$0xff] }
 0x4b2   : > { %v2160_v31 = vadd.f32 %v2144_v2, %v2124_v46  ;;  %v4401_v6 = vadd.f32 %v8753_v59, %v4365_v14  ;;  %v2292_v17 = vmul.f32 %v11991_v9, %v8685_v41  ;;  %v3495_v23 = vadd.f32 %v3479_v1, %v3443_v52  ;;  %v8886_v2 = vld [vmem:[#allocation3 + $0x120] sm:$0xff] }
 0x4b3   : > { %v3551_v13 = vmul.f32 %v11993_v57, %v8522_v56  ;;  %v3184_v7 = vadd.f32 -0.28449672, %v3168_v27  ;;  %v2851_v58 = vadd.f32 %v2835_v29, %v2815_v44  ;;  %v4074_v53 = vadd.f32 %v4058_v49, %v4038_v22  ;;  %12064 = vst [vmem:[#allocation60_spill] sm:$0xff] %v8886_v2  ;;  %v12067_v22 = vld [vmem:[#allocation76_spill] sm:$0xff]  ;;  %v12071_v57 = vld [vmem:[#allocation85_spill] sm:$0xff] }
 0x4b4   : > { %v2196_v25 = vadd.f32 %v2180_v48, %v2160_v31  ;;  %v4170_v59 = vmul.f32 %v12065_v28, %v8524_v37  ;;  %v4206_v14 = vmul.f32 %v11989_v21, %v8676_v15  ;;  %v3531_v35 = vadd.f32 %v3515_v51, %v3495_v23  ;;  %v12066_v31 = vld [vmem:[#allocation106_spill] sm:$0xff] }
 0x4b5   : > { %v3587_v46 = vmul.f32 %v11998_v5, %v8700_v18  ;;  %v3200_v56 = vmul.f32 %v8825_v26, %v3184_v7  ;;  %v2887_v27 = vadd.f32 %v2871_v32, %v2851_v58  ;;  %v2328_v44 = vmul.f32 %v11997_v30, %v8878_v61  ;;  %v8902_v5 = vld [vmem:[#allocation3 + $0x112] sm:$0xff] }
 0x4b6   : > { %v2272_v29 = vadd.f32 %v2256_v19, %v2196_v25  ;;  %v4437_v49 = vadd.f32 %v8757_v20, %v4401_v6  ;;  %v4242_v48 = vmul.f32 %v12066_v31, %v8884_v12  ;;  %v3567_v37 = vadd.f32 %v3551_v13, %v3531_v35  ;;  %12068 = vst [vmem:[#allocation131_spill] sm:$0xff] %v8902_v5  ;;  %v12069_v58 = vld [vmem:[#allocation59_spill] sm:$0xff]  ;;  %v12070_v19 = vld [vmem:[#allocation114_spill] sm:$0xff]  ;;  %v12073_v13 = vld [vmem:[#allocation77_spill] sm:$0xff] }
 0x4b7   : > { %v3623_v52 = vmul.f32 %v12067_v22, %v8886_v2  ;;  %v3216_v1 = vadd.f32 0.2548296, %v3200_v56  ;;  %v2923_v51 = vadd.f32 %v2907_v10, %v2887_v27  ;;  %v4110_v23 = vadd.f32 %v4094_v63, %v4074_v53  ;;  %v12072_v20 = vld [vmem:[#allocation46_spill] sm:$0xff]  ;;  %v12074_v56 = vld [vmem:[#allocation135_spill] sm:$0xff]  ;;  %v12075_v63 = vld [vmem:[#allocation52_spill] sm:$0xff] }
 0x4b8   : > { %v2308_v7 = vadd.f32 %v2292_v17, %v2272_v29  ;;  %v5781_v32 = vpop.eup %5780  ;;  %v8906_v25 = vmul.f32 %v12070_v19, %v12069_v58  ;;  %v2364_v6 = vmul.f32 %v12072_v20, %v12071_v57  ;;  %v3603_v18 = vadd.f32 %v3587_v46, %v3567_v37  ;;  %v12076_v53 = vld [vmem:[#allocation116_spill] sm:$0xff]  ;;  %v8920_v27 = vld [vmem:[#allocation2 + $0x121] sm:$0xff]  ;;  %v12079_v57 = vld [vmem:[#allocation119_spill] sm:$0xff] }
 0x4b9   : > { %v3659_v35 = vmul.f32 %v12073_v13, %v12010_v4  ;;  %v3232_v22 = vmul.f32 %v8825_v26, %v3216_v1  ;;  %v8914_v10 = vadd.f32 %v12074_v56, %v2923_v51  ;;  %v8918_v17 = vmul.f32 %v12076_v53, %v12075_v63  ;;  %12077 = vst [vmem:[#allocation113_spill] sm:$0xff] %v8920_v27  ;;  %v8922_v58 = vld [vmem:[#allocation3 + $0x1c0] sm:$0xff]  ;;  %v12080_v4 = vld [vmem:[#allocation47_spill] sm:$0xff]  ;;  %v12081_v1 = vld [vmem:[#allocation78_spill] sm:$0xff] }
 0x4ba   : > { %v2344_v29 = vadd.f32 %v2328_v44, %v2308_v7  ;;  %12078 = vst [vmem:[#allocation124_spill] sm:$0xff] %v8922_v58  ;;  %v8926_v46 = vmul.f32 %v12079_v57, %v8902_v5  ;;  %v2400_v37 = vmul.f32 %v12080_v4, %v8730_v8  ;;  %v3639_v26 = vadd.f32 %v3623_v52, %v3603_v18  ;;  %v8936_v7 = vld [vmem:[#allocation3 + $0x1b2] sm:$0xff]  ;;  %v12083_v57 = vld [vmem:[#allocation49_spill] sm:$0xff] }
 0x4bb   : > { %v3695_v51 = vmul.f32 %v12081_v1, %v8743_v55  ;;  %v3312_v13 = vmul.f32 %v5781_v32, %v3232_v22  ;;  %v4473_v56 = vadd.f32 %v8767_v50, %v4437_v49  ;;  %v8934_v2 = vmul.f32 0.70710677, %v8914_v10  ;;  %12082 = vst [vmem:[#allocation79_spill] sm:$0xff] %v8936_v7  ;;  %v12084_v4 = vld [vmem:[#allocation80_spill] sm:$0xff]  ;;  %v12085_v22 = vld [vmem:[#allocation74_spill] sm:$0xff]  ;;  %v12091_v55 = vld [vmem:[#allocation93_spill] sm:$0xff] }
 0x4bc   : > { %v4186_v44 = vadd.f32 %v4170_v59, %v4110_v23  ;;  %v2380_v20 = vadd.f32 %v2364_v6, %v2344_v29  ;;  %v2436_v30 = vmul.f32 %v12083_v57, %v8920_v27  ;;  %v3675_v53 = vadd.f32 %v3659_v35, %v3639_v26  ;;  %v12086_v50 = vld [vmem:[#allocation126_spill] sm:$0xff]  ;;  %v12087_v32 = vld [vmem:[#allocation108_spill] sm:$0xff] }
 0x4bd   : > { %v3731_v18 = vmul.f32 %v12084_v4, %v8922_v58  ;;  %v3328_v52 = vsub.f32 1.0, %v3312_v13  ;;  %v8943_v1 = vand.u32 2147483647, %v8934_v2  ;;  %v8947_v49 = vmul.f32 %v12086_v50, %v12085_v22  ;;  %v12088_v59 = vld [vmem:[#allocation38_spill] sm:$0xff]  ;;  %v12093_v4 = vld [vmem:[#allocation107_spill] sm:$0xff]  ;;  %v12094_v13 = vld [vmem:[#allocation81_spill] sm:$0xff] }
 0x4be   : > { %v8951_v23 = vmul.f32 %v12088_v59, %v12087_v32  ;;  %v8953_v6 = vld [vmem:[#allocation2 + $0x1c1] sm:$0xff]  ;;  %v2416_v29 = vadd.f32 %v2400_v37, %v2380_v20  ;;  %v3711_v57 = vadd.f32 %v3695_v51, %v3675_v53  ;;  %v3807_v58 = vmul.f32 %v12094_v13, %v12093_v4  ;;  %v12095_v50 = vld [vmem:[#allocation127_spill] sm:$0xff] }
 0x4bf   : > { %12090 = vst [vmem:[#allocation59_spill] sm:$0xff] %v8953_v6  ;;  %v12092_v35 = vld [vmem:[#allocation50_spill] sm:$0xff]  ;;  %v3344_v27 = vmul.f32 %v3328_v52, %v8850_v47  ;;  %v3041_v8 = vmul.f32 0.3275911, %v8943_v1  ;;  %v4222_v22 = vadd.f32 %v4206_v14, %v4186_v44  ;;  %v8963_v5 = vmul.f32 %v12095_v50, %v8936_v7  ;;  %v12098_v20 = vld [vmem:[#allocation129_spill] sm:$0xff]  ;;  %v12099_v37 = vld [vmem:[#allocation51_spill] sm:$0xff] }
 0x4c0   : > { %12089 = vst [vmem:[#allocation133_spill] sm:$0xff] %v8951_v23  ;;  %v2472_v26 = vmul.f32 %v12092_v35, %v12091_v55  ;;  %v8965_v59 = vld [vmem:[#allocation3 + $0x81] sm:$0xff]  ;;  %v2452_v32 = vadd.f32 %v2436_v30, %v2416_v29  ;;  %v2508_v23 = vmul.f32 %v12099_v37, %v12098_v20  ;;  %v3747_v55 = vadd.f32 %v3731_v18, %v3711_v57  ;;  %v12101_v51 = vld [vmem:[#allocation83_spill] sm:$0xff]  ;;  %v12107_v37 = vld [vmem:[#allocation88_spill] sm:$0xff] }
 0x4c1   : > { %12096 = vst [vmem:[#allocation85_spill] sm:$0xff] %v8963_v5  ;;  %12097 = vst [vmem:[#allocation52_spill] sm:$0xff] %v8965_v59  ;;  %v12100_v53 = vld [vmem:[#allocation53_spill] sm:$0xff]  ;;  %v3360_v4 = vadd.f32 1.0, %v3344_v27  ;;  %v12102_v13 = vld [vmem:[#allocation34_spill] sm:$0xff]  ;;  %v3057_v52 = vadd.f32 1.0, %v3041_v8  ;;  %v3879_v57 = vmul.f32 %v12107_v37, %v8965_v59  ;;  %v4258_v27 = vadd.f32 %v4242_v48, %v4222_v22 }
 0x4c2   : > { %v3843_v35 = vmul.f32 %v12101_v51, %v12100_v53  ;;  %v4495_v47 = vadd.f32 %v12102_v13, %v4473_v56  ;;  %v12103_v14 = vld [vmem:[#allocation54_spill] sm:$0xff]  ;;  %v2488_v19 = vadd.f32 %v2472_v26, %v2452_v32  ;;  %v12106_v5 = vld [vmem:[#allocation55_spill] sm:$0xff]  ;;  %v3823_v29 = vadd.f32 %v3807_v58, %v3747_v55  ;;  %v12110_v32 = vld [vmem:[#allocation89_spill] sm:$0xff] }
 0x4c3   : > { %v2544_v44 = vmul.f32 %v12103_v14, %v8953_v6  ;;  %v8974_v50 = vld [vmem:[#allocation2 + $0x82] sm:$0xff]  ;;  %v3376_v18 = vmul.f32 %v3360_v4, %v8845_v24  ;;  %5782 = vrcp.f32 %v3057_v52  ;;  %v1851_v53 = vld [vmem:[#allocation2 + $0x90] sm:$0xff]  ;;  %v3915_v26 = vmul.f32 %v12110_v32, %v12044_v33  ;;  %v12114_v59 = vld [vmem:[#allocation44_spill] sm:$0xff] }
 0x4c4   : > { %12104 = vst [vmem:[#allocation74_spill] sm:$0xff] %v8974_v50  ;;  %v12105_v7 = vld [vmem:[#allocation90_spill] sm:$0xff]  ;;  %v2524_v13 = vadd.f32 %v2508_v23, %v2488_v19  ;;  %v3859_v14 = vadd.f32 %v3843_v35, %v3823_v29  ;;  %v12111_v6 = vld [vmem:[#allocation95_spill] sm:$0xff]  ;;  %v12113_v55 = vld [vmem:[#allocation61_spill] sm:$0xff]  ;;  %vm2993_vm8 = vcmp.lt.f32.partialorder %v8934_v2, 0.0  ;;  %v2293_v2 = vmul.f32 %v11991_v9, %v8878_v61 }
 0x4c5   : > { %v2620_v30 = vmul.f32 %v12106_v5, %v12105_v7  ;;  %v12108_v51 = vld [vmem:[#allocation134_spill] sm:$0xff]  ;;  %v4511_v58 = vmul.f32 %v4495_v47, %v3376_v18  ;;  %v2692_v37 = vmul.f32 %v12113_v55, %v8974_v50  ;;  %v12115_v24 = vld [vmem:[#allocation63_spill] sm:$0xff]  ;;  %v12117_v22 = vld [vmem:[#allocation48_spill] sm:$0xff]  ;;  %v4294_v18 = vadd.f32 %v8906_v25, %v4258_v27 }
 0x4c6   : > { %v12109_v56 = vld [vmem:[#allocation58_spill] sm:$0xff]  ;;  %v2728_v4 = vmul.f32 %v12115_v24, %v12114_v59  ;;  %v12118_v52 = vld [vmem:[#allocation31_spill] sm:$0xff]  ;;  %v2560_v19 = vadd.f32 %v2544_v44, %v2524_v13  ;;  %v3895_v35 = vadd.f32 %v3879_v57, %v3859_v14  ;;  %v3249_v59 = vsub.f32 0.0, %v8943_v1  ;;  %v12125_v14 = vld [vmem:[#allocation64_spill] sm:$0xff] }
 0x4c7   : > { %v2656_v8 = vmul.f32 %v12109_v56, %v12108_v51  ;;  %v12112_v20 = vld [vmem:[#allocation30_spill] sm:$0xff]  ;;  %v1929_v56 = vmul.f32 %v12118_v52, %v12117_v22  ;;  %v12120_v33 = vld [vmem:[#allocation91_spill] sm:$0xff]  ;;  %5530 = vmatprep.mubr.msk.f32.mxu0 %vm704_vm0, %v4511_v58  ;;  %5562 = vmatprep.mubr.msk.f32.mxu1 %vm704_vm0, %v4511_v58  ;;  %v12123_v22 = vld [vmem:[#allocation33_spill] sm:$0xff] }
 0x4c8   : > { %v1893_v7 = vmul.f32 %v12112_v20, %v12111_v6  ;;  %v8991_v48 = vld [vmem:[#allocation3 + $0x121] sm:$0xff]  ;;  %v3951_v29 = vmul.f32 %v12120_v33, %v8811_v11  ;;  %v12121_v6 = vld [vmem:[#allocation32_spill] sm:$0xff]  ;;  %v12122_v32 = vld [vmem:[#allocation87_spill] sm:$0xff]  ;;  %v2636_v44 = vadd.f32 %v2620_v30, %v2560_v19  ;;  %v3931_v24 = vadd.f32 %v3915_v26, %v3895_v35 }
 0x4c9   : > { %12116 = vst [vmem:[#allocation93_spill] sm:$0xff] %v8991_v48  ;;  %v8995_v23 = vld [vmem:[#allocation2 + $0x122] sm:$0xff]  ;;  %v1965_v47 = vmul.f32 %v12121_v6, %v1851_v53  ;;  %v2001_v13 = vmul.f32 %v12123_v22, %v12122_v32  ;;  %v12124_v52 = vld [vmem:[#allocation128_spill] sm:$0xff]  ;;  %v9010_v11 = vld [vmem:[#allocation2 + $0x130] sm:$0xff] }
 0x4ca   : > { %12119 = vst [vmem:[#allocation107_spill] sm:$0xff] %v8995_v23  ;;  %v1945_v20 = vadd.f32 %v1929_v56, %v1893_v7  ;;  %v2764_v57 = vmul.f32 %v12125_v14, %v12124_v52  ;;  %v12126_v33 = vld [vmem:[#allocation92_spill] sm:$0xff]  ;;  %v9012_v55 = vld [vmem:[#allocation2 + $0x1c2] sm:$0xff]  ;;  %v12131_v30 = vld [vmem:[#allocation35_spill] sm:$0xff]  ;;  %v2672_v22 = vadd.f32 %v2656_v8, %v2636_v44  ;;  %v3265_v52 = vmul.f32 %v3249_v59, %v8943_v1 }
 0x4cb   : > { %v3987_v53 = vmul.f32 %v12126_v33, %v8991_v48  ;;  %v12127_v58 = vld [vmem:[#allocation65_spill] sm:$0xff]  ;;  %v12128_v25 = vld [vmem:[#allocation130_spill] sm:$0xff]  ;;  %v12129_v27 = vld [vmem:[#allocation68_spill] sm:$0xff]  ;;  %v3967_v33 = vadd.f32 %v3951_v29, %v3931_v24  ;;  %v4023_v48 = vmul.f32 %v12051_v62, %v12055_v42  ;;  %v2908_v8 = vmul.f32 %v11983_v3, %v9012_v55 }
 0x4cc   : > { %v2800_v50 = vmul.f32 %v12127_v58, %v8995_v23  ;;  %v2836_v56 = vmul.f32 %v12129_v27, %v12128_v25  ;;  %v1981_v7 = vadd.f32 %v1965_v47, %v1945_v20  ;;  %v12130_v32 = vld [vmem:[#allocation132_spill] sm:$0xff]  ;;  %v12132_v26 = vld [vmem:[#allocation82_spill] sm:$0xff]  ;;  %v4330_v58 = vadd.f32 %v8918_v17, %v4294_v18 }
 0x4cd   : > { %v2037_v19 = vmul.f32 %v12131_v30, %v12130_v32  ;;  %v2872_v35 = vmul.f32 %v12132_v26, %v8835_v43  ;;  %v9022_v14 = vld [vmem:[#allocation3 + $0x1c1] sm:$0xff]  ;;  %v12133_v20 = vld [vmem:[#allocation36_spill] sm:$0xff]  ;;  %v2708_v25 = vadd.f32 %v2692_v37, %v2672_v22  ;;  %v4003_v44 = vadd.f32 %v3987_v53, %v3967_v33  ;;  %v9034_v24 = vpop.eup %5782  ;;  %v9046_v22 = vld [vmem:[#allocation2 + $0x1d0] sm:$0xff] }
 0x4ce   : > { %v2017_v23 = vadd.f32 %v2001_v13, %v1981_v7  ;;  %v2073_v47 = vmul.f32 %v12133_v20, %v9010_v11  ;;  %v4059_v32 = vmul.f32 %v12056_v36, %v8857_v45  ;;  %v4095_v42 = vmul.f32 %v12058_v40, %v9022_v14  ;;  %v9044_v18 = vld [vmem:[#allocation3 + $0x82] sm:$0xff] }
 0x4cf   : > { %v4171_v17 = vmul.f32 %v12065_v28, %v8676_v15  ;;  %v2109_v29 = vmul.f32 %v12052_v0, %v12053_v54  ;;  %v3105_v37 = vmul.f32 1.0614054, %v9034_v24  ;;  %v2744_v33 = vadd.f32 %v2728_v4, %v2708_v25  ;;  %v12134_v15 = vld [vmem:[#allocation39_spill] sm:$0xff] }
 0x4d0   : > { %v2053_v1 = vadd.f32 %v2037_v19, %v2017_v23  ;;  %v4039_v59 = vadd.f32 %v4023_v48, %v4003_v44  ;;  %v3286_v13 = vmul.f32 1.442695, %v3265_v52  ;;  %v4366_v53 = vadd.f32 %v8926_v46, %v4330_v58  ;;  %v12135_v52 = vld [vmem:[#allocation40_spill] sm:$0xff]  ;;  %v3402_v44 = vld [vmem:[#allocation3 + $0x90] sm:$0xff] }
 0x4d1   : > { %v2145_v23 = vmul.f32 %v12134_v15, %v8842_v16  ;;  %v9052_v19 = vmul.f32 0.5, %v8914_v10  ;;  %v3121_v54 = vadd.f32 -1.4531521, %v3105_v37  ;;  %v2780_v0 = vadd.f32 %v2764_v57, %v2744_v33 }
 0x4d2   : > { %v2089_v7 = vadd.f32 %v2073_v47, %v2053_v1  ;;  %v4075_v30 = vadd.f32 %v4059_v32, %v4039_v59  ;;  %v4207_v4 = vmul.f32 %v11989_v21, %v8884_v12  ;;  %v4243_v48 = vmul.f32 %v12066_v31, %v9044_v18 }
 0x4d3   : > { %v2181_v46 = vmul.f32 %v12135_v52, %v9046_v22  ;;  %v12136_v58 = vmov 1.0   ;;  %v3137_v10 = vmul.f32 %v9034_v24, %v3121_v54  ;;  %v2816_v47 = vadd.f32 %v2800_v50, %v2780_v0  ;;  %v12138_v50 = vld [vmem:[#allocation70_spill] sm:$0xff] }
 0x4d4   : > { %v2125_v25 = vadd.f32 %v2109_v29, %v2089_v7  ;;  %v9063_v16 = vsel %vm2993_vm8, -1.0, %v12136_v58  ;;  %v4111_v57 = vadd.f32 %v4095_v42, %v4075_v30  ;;  %5784 = vpow2.f32 %v3286_v13  ;;  %v2215_v7 = vld [vmem:[#allocation2 + $0x91] sm:$0xff]  ;;  %v9071_v58 = vld [vmem:[#allocation3 + $0x122] sm:$0xff] }
 0x4d5   : > { %v4402_v32 = vadd.f32 %v8947_v49, %v4366_v53  ;;  %v2257_v29 = vmul.f32 %v12063_v39, %v8685_v41  ;;  %v3153_v37 = vadd.f32 1.4214138, %v3137_v10  ;;  %v2852_v33 = vadd.f32 %v2836_v56, %v2816_v47  ;;  %12137 = vst [vmem:[#allocation90_spill] sm:$0xff] %v9071_v58  ;;  %v12139_v30 = vld [vmem:[#allocation71_spill] sm:$0xff]  ;;  %v12140_v56 = vld [vmem:[#allocation114_spill] sm:$0xff] }
 0x4d6   : > { %v2161_v1 = vadd.f32 %v2145_v23, %v2125_v25  ;;  %v4187_v59 = vadd.f32 %v4171_v17, %v4111_v57  ;;  %v3444_v0 = vmul.f32 %v12060_v60, %v8664_v38  ;;  %v3480_v49 = vmul.f32 %v12138_v50, %v8859_v34  ;;  %v12141_v53 = vld [vmem:[#allocation131_spill] sm:$0xff]  ;;  %v12142_v23 = vld [vmem:[#allocation116_spill] sm:$0xff]  ;;  %v12146_v60 = vld [vmem:[#allocation133_spill] sm:$0xff] }
 0x4d7   : > { %v3516_v42 = vmul.f32 %v12139_v30, %v3402_v44  ;;  %v3169_v41 = vmul.f32 %v9034_v24, %v3153_v37  ;;  %v2888_v13 = vadd.f32 %v2872_v35, %v2852_v33  ;;  %v4279_v17 = vmul.f32 %v12140_v56, %v12075_v63  ;;  %v12144_v38 = vld [vmem:[#allocation136_spill] sm:$0xff]  ;;  %v12147_v35 = vld [vmem:[#allocation119_spill] sm:$0xff]  ;;  %v12149_v30 = vld [vmem:[#allocation109_spill] sm:$0xff] }
 0x4d8   : > { %v2197_v54 = vadd.f32 %v2181_v46, %v2161_v1  ;;  %v9083_v61 = vmul.f32 %v12142_v23, %v12141_v53  ;;  %v12143_v46 = vld [vmem:[#allocation43_spill] sm:$0xff]  ;;  %v3496_v47 = vadd.f32 %v3480_v49, %v3444_v0  ;;  %v12145_v57 = vld [vmem:[#allocation72_spill] sm:$0xff]  ;;  %v4438_v44 = vadd.f32 %v12146_v60, %v4402_v32  ;;  %v12150_v50 = vld [vmem:[#allocation46_spill] sm:$0xff] }
 0x4d9   : > { %v2329_v10 = vmul.f32 %v12143_v46, %v2215_v7  ;;  %v3552_v1 = vmul.f32 %v12145_v57, %v12144_v38  ;;  %v3185_v34 = vadd.f32 -0.28449672, %v3169_v41  ;;  %v2924_v39 = vadd.f32 %v2908_v8, %v2888_v13  ;;  %v9093_v63 = vld [vmem:[#allocation3 + $0x130] sm:$0xff]  ;;  %v12151_v7 = vld [vmem:[#allocation60_spill] sm:$0xff]  ;;  %v12156_v32 = vld [vmem:[#allocation126_spill] sm:$0xff] }
 0x4da   : > { %v2273_v25 = vadd.f32 %v2257_v29, %v2197_v54  ;;  %v9091_v37 = vmul.f32 %v12147_v35, %v9071_v58  ;;  %12148 = vst [vmem:[#allocation134_spill] sm:$0xff] %v9093_v63  ;;  %v2365_v29 = vmul.f32 %v12150_v50, %v12149_v30  ;;  %v3532_v54 = vadd.f32 %v3516_v42, %v3496_v47  ;;  %v12152_v0 = vld [vmem:[#allocation75_spill] sm:$0xff]  ;;  %v12155_v8 = vld [vmem:[#allocation108_spill] sm:$0xff]  ;;  %v9107_v58 = vld [vmem:[#allocation3 + $0x1c2] sm:$0xff] }
 0x4db   : > { %v3588_v49 = vmul.f32 %v12152_v0, %v12151_v7  ;;  %v3201_v38 = vmul.f32 %v9034_v24, %v3185_v34  ;;  %v12153_v41 = vld [vmem:[#allocation135_spill] sm:$0xff]  ;;  %v4223_v60 = vadd.f32 %v4207_v4, %v4187_v59  ;;  %v9105_v13 = vmul.f32 %v12156_v32, %v12155_v8  ;;  %12157 = vst [vmem:[#allocation44_spill] sm:$0xff] %v9107_v58  ;;  %v12160_v7 = vld [vmem:[#allocation76_spill] sm:$0xff]  ;;  %v12161_v0 = vld [vmem:[#allocation85_spill] sm:$0xff] }
 0x4dc   : > { %v2309_v33 = vadd.f32 %v2293_v2, %v2273_v25  ;;  %v9101_v57 = vadd.f32 %v12153_v41, %v2924_v39  ;;  %v2225_v23 = vld [vmem:[#allocation2 + $0x131] sm:$0xff]  ;;  %v12158_v25 = vld [vmem:[#allocation113_spill] sm:$0xff]  ;;  %v3568_v47 = vadd.f32 %v3552_v1, %v3532_v54  ;;  %v3624_v50 = vmul.f32 %v12160_v7, %v9093_v63  ;;  %v12163_v41 = vld [vmem:[#allocation38_spill] sm:$0xff] }
 0x4dd   : > { %v12159_v30 = vld [vmem:[#allocation47_spill] sm:$0xff]  ;;  %v3217_v34 = vadd.f32 0.2548296, %v3201_v38  ;;  %v4474_v39 = vadd.f32 %v12161_v0, %v4438_v44  ;;  %v12166_v1 = vld [vmem:[#allocation77_spill] sm:$0xff]  ;;  %v4259_v44 = vadd.f32 %v4243_v48, %v4223_v60  ;;  %v9139_v48 = vmul.f32 %v12121_v6, %v9010_v11 }
 0x4de   : > { %12154 = vst [vmem:[#allocation95_spill] sm:$0xff] %v9101_v57  ;;  %v2345_v2 = vadd.f32 %v2329_v10, %v2309_v33  ;;  %v2401_v42 = vmul.f32 %v12159_v30, %v12158_v25  ;;  %v9115_v4 = vmul.f32 0.70710677, %v9101_v57  ;;  %v12162_v59 = vld [vmem:[#allocation79_spill] sm:$0xff]  ;;  %v5785_v9 = vpop.eup %5784  ;;  %v12164_v10 = vld [vmem:[#allocation49_spill] sm:$0xff]  ;;  %v3604_v53 = vadd.f32 %v3588_v49, %v3568_v47  ;;  %v12172_v49 = vld [vmem:[#allocation124_spill] sm:$0xff] }
 0x4df   : > { %v9119_v8 = vmul.f32 %v12163_v41, %v12162_v59  ;;  %v2437_v33 = vmul.f32 %v12164_v10, %v2225_v23  ;;  %v12165_v25 = vld [vmem:[#allocation125_spill] sm:$0xff]  ;;  %v3233_v63 = vmul.f32 %v9034_v24, %v3217_v34  ;;  %v12167_v0 = vld [vmem:[#allocation127_spill] sm:$0xff]  ;;  %v12173_v47 = vld [vmem:[#allocation78_spill] sm:$0xff]  ;;  %12175 = vst [vmem:[#allocation130_spill] sm:$0xff] %v9139_v48 }
 0x4e0   : > { %v2381_v56 = vadd.f32 %v2365_v29, %v2345_v2  ;;  %v3660_v54 = vmul.f32 %v12166_v1, %v12165_v25  ;;  %v3026_v38 = vand.u32 2147483647, %v9115_v4  ;;  %v9128_v7 = vmul.f32 %v12167_v0, %v9107_v58  ;;  %v9130_v30 = vld [vmem:[#allocation3 + $0x1d0] sm:$0xff]  ;;  %v12170_v57 = vld [vmem:[#allocation129_spill] sm:$0xff]  ;;  %v12171_v29 = vld [vmem:[#allocation50_spill] sm:$0xff] }
 0x4e1   : > { %12169 = vst [vmem:[#allocation87_spill] sm:$0xff] %v9130_v30  ;;  %v2473_v2 = vmul.f32 %v12171_v29, %v12170_v57  ;;  %v3640_v52 = vadd.f32 %v3624_v50, %v3604_v53  ;;  %v3696_v15 = vmul.f32 %v12173_v47, %v12172_v49  ;;  %v3313_v25 = vmul.f32 %v5785_v9, %v3233_v63  ;;  %v12174_v1 = vld [vmem:[#allocation34_spill] sm:$0xff]  ;;  %v2235_v60 = vld [vmem:[#allocation2 + $0x1d1] sm:$0xff]  ;;  %v12181_v47 = vld [vmem:[#allocation53_spill] sm:$0xff] }
 0x4e2   : > { %12168 = vst [vmem:[#allocation48_spill] sm:$0xff] %v9128_v7  ;;  %v2417_v59 = vadd.f32 %v2401_v42, %v2381_v56  ;;  %v4496_v24 = vadd.f32 %v12174_v1, %v4474_v39  ;;  %v3042_v34 = vmul.f32 0.3275911, %v3026_v38  ;;  %v12176_v0 = vld [vmem:[#allocation59_spill] sm:$0xff]  ;;  %v12178_v57 = vld [vmem:[#allocation80_spill] sm:$0xff]  ;;  %v4295_v49 = vadd.f32 %v4279_v17, %v4259_v44  ;;  %v12180_v39 = vld [vmem:[#allocation54_spill] sm:$0xff] }
 0x4e3   : > { %v12177_v7 = vld [vmem:[#allocation51_spill] sm:$0xff]  ;;  %v3676_v42 = vadd.f32 %v3660_v54, %v3640_v52  ;;  %v3732_v50 = vmul.f32 %v12178_v57, %v9130_v30  ;;  %v3329_v53 = vsub.f32 1.0, %v3313_v25  ;;  %v9147_v9 = vmul.f32 %v12133_v20, %v9046_v22 }
 0x4e4   : > { %v2453_v58 = vadd.f32 %v2437_v33, %v2417_v59  ;;  %v2509_v56 = vmul.f32 %v12177_v7, %v12176_v0  ;;  %v3058_v29 = vadd.f32 1.0, %v3042_v34  ;;  %v2545_v11 = vmul.f32 %v12180_v39, %v2235_v60  ;;  %v12182_v59 = vld [vmem:[#allocation81_spill] sm:$0xff]  ;;  %v2579_v17 = vld [vmem:[#allocation2 + $0x92] sm:$0xff] }
 0x4e5   : > { %12179 = vst [vmem:[#allocation132_spill] sm:$0xff] %v9147_v9  ;;  %v3712_v48 = vadd.f32 %v3696_v15, %v3676_v42  ;;  %v3808_v33 = vmul.f32 %v12182_v59, %v12181_v47  ;;  %v3345_v0 = vmul.f32 %v3329_v53, %v9063_v16  ;;  %v9154_v52 = vmul.f32 %v12143_v46, %v2225_v23  ;;  %v3766_v44 = vld [vmem:[#allocation3 + $0x91] sm:$0xff]  ;;  %v12187_v23 = vld [vmem:[#allocation74_spill] sm:$0xff] }
 0x4e6   : > { %v2489_v63 = vadd.f32 %v2473_v2, %v2453_v58  ;;  %5786 = vrcp.f32 %v3058_v29  ;;  %v9157_v54 = vmul.f32 %v12164_v10, %v2235_v60  ;;  %v2589_v25 = vld [vmem:[#allocation2 + $0x132] sm:$0xff]  ;;  %v2621_v58 = vmul.f32 %v12106_v5, %v12108_v51  ;;  %v12188_v53 = vld [vmem:[#allocation58_spill] sm:$0xff] }
 0x4e7   : > { %12183 = vst [vmem:[#allocation136_spill] sm:$0xff] %v9154_v52  ;;  %v3748_v15 = vadd.f32 %v3732_v50, %v3712_v48  ;;  %v12185_v2 = vld [vmem:[#allocation52_spill] sm:$0xff]  ;;  %v12186_v34 = vld [vmem:[#allocation83_spill] sm:$0xff]  ;;  %v3361_v42 = vadd.f32 1.0, %v3345_v0  ;;  %v3250_v16 = vsub.f32 0.0, %v3026_v38  ;;  %v4331_v29 = vadd.f32 %v9083_v61, %v4295_v49 }
 0x4e8   : > { %12184 = vst [vmem:[#allocation133_spill] sm:$0xff] %v9157_v54  ;;  %v2525_v22 = vadd.f32 %v2509_v56, %v2489_v63  ;;  %v3844_v47 = vmul.f32 %v12186_v34, %v12185_v2  ;;  %v2657_v52 = vmul.f32 %v12188_v53, %v12187_v23  ;;  %v12189_v54 = vld [vmem:[#allocation61_spill] sm:$0xff]  ;;  %v12190_v56 = vld [vmem:[#allocation88_spill] sm:$0xff]  ;;  %v12192_v48 = vld [vmem:[#allocation63_spill] sm:$0xff]  ;;  %vm2994_vm9 = vcmp.lt.f32.partialorder %v9115_v4, 0.0 }
 0x4e9   : > { %v2693_v9 = vmul.f32 %v12189_v54, %v2579_v17  ;;  %v3824_v59 = vadd.f32 %v3808_v33, %v3748_v15  ;;  %v3880_v63 = vmul.f32 %v12190_v56, %v3766_v44  ;;  %v3377_v30 = vmul.f32 %v3361_v42, %v9052_v19  ;;  %v12191_v51 = vld [vmem:[#allocation128_spill] sm:$0xff]  ;;  %v12193_v5 = vld [vmem:[#allocation107_spill] sm:$0xff]  ;;  %v12195_v34 = vld [vmem:[#allocation65_spill] sm:$0xff] }
 0x4ea   : > { %v2561_v60 = vadd.f32 %v2545_v11, %v2525_v22  ;;  %v2729_v50 = vmul.f32 %v12192_v48, %v12191_v51  ;;  %v12194_v2 = vld [vmem:[#allocation64_spill] sm:$0xff]  ;;  %v2801_v57 = vmul.f32 %v12195_v34, %v2589_v25  ;;  %v2837_v11 = vmul.f32 %v12129_v27, %v8835_v43  ;;  %v12196_v17 = vld [vmem:[#allocation103_spill] sm:$0xff]  ;;  %v12197_v33 = vld [vmem:[#allocation89_spill] sm:$0xff] }
 0x4eb   : > { %v2765_v0 = vmul.f32 %v12194_v2, %v12193_v5  ;;  %v2599_v61 = vld [vmem:[#allocation2 + $0x1d2] sm:$0xff]  ;;  %v3860_v22 = vadd.f32 %v3844_v47, %v3824_v59  ;;  %v3916_v15 = vmul.f32 %v12197_v33, %v12196_v17  ;;  %v2600_v44 = vld [vmem:[#allocation2 + $0x1e2] sm:$0xff]  ;;  %v4512_v23 = vmul.f32 %v4496_v24, %v3377_v30 }
 0x4ec   : > { %v2637_v49 = vadd.f32 %v2621_v58, %v2561_v60  ;;  %v3266_v19 = vmul.f32 %v3250_v16, %v3026_v38  ;;  %v4367_v42 = vadd.f32 %v9091_v37, %v4331_v29  ;;  %v9181_v51 = vmul.f32 %v12132_v26, %v9012_v55  ;;  %v9183_v5 = vld [vmem:[#allocation3 + $0x131] sm:$0xff]  ;;  %v12199_v60 = vld [vmem:[#allocation93_spill] sm:$0xff] }
 0x4ed   : > { %12198 = vst [vmem:[#allocation109_spill] sm:$0xff] %v9183_v5  ;;  %v3896_v58 = vadd.f32 %v3880_v63, %v3860_v22  ;;  %v12200_v48 = vld [vmem:[#allocation91_spill] sm:$0xff]  ;;  %v12201_v47 = vld [vmem:[#allocation84_spill] sm:$0xff]  ;;  %5531 = vmatmul.mubr.msk.f32.gmra.mrb[4].mxu0 %vm704_vm0, %v4512_v23  ;;  %5563 = vmatmul.mubr.msk.f32.gmra.mrb[4].mxu1 %vm704_vm0, %v4512_v23  ;;  %v9194_v37 = vmul.f32 %v11983_v3, %v2599_v61  ;;  %v9196_v55 = vld [vmem:[#allocation2 + $0x162] sm:$0xff] }
 0x4ee   : > { %v2673_v25 = vadd.f32 %v2657_v52, %v2637_v49  ;;  %v3952_v43 = vmul.f32 %v12200_v48, %v12199_v60  ;;  %v9187_v59 = vld [vmem:[#allocation2 + $0x1f2] sm:$0xff]  ;;  %v2802_v30 = vmul.f32 %v9196_v55, %v12195_v34  ;;  %v2838_v38 = vmul.f32 %v12129_v27, %v2600_v44  ;;  %v9203_v63 = vld [vmem:[#allocation2 + $0x202] sm:$0xff] }
 0x4ef   : > { %v12202_v17 = vld [vmem:[#allocation112_spill] sm:$0xff]  ;;  %v3932_v52 = vadd.f32 %v3916_v15, %v3896_v58  ;;  %12204 = vst [vmem:[#allocation60_spill] sm:$0xff] %v9203_v63  ;;  %v12205_v49 = vld [vmem:[#allocation118_spill] sm:$0xff]  ;;  %v3288_v61 = vmul.f32 1.442695, %v3266_v19  ;;  %v2874_v48 = vmul.f32 %v12132_v26, %v9187_v59  ;;  %v4024_v58 = vmul.f32 %v12051_v62, %v8857_v45  ;;  %v9219_v19 = vld [vmem:[#allocation2 + $0xc0] sm:$0xff] }
 0x4f0   : > { %v2782_v33 = vadd.f32 %v12202_v17, %v12201_v47  ;;  %v2709_v24 = vadd.f32 %v2693_v9, %v2673_v25  ;;  %v12203_v16 = vld [vmem:[#allocation92_spill] sm:$0xff]  ;;  %v12206_v22 = vld [vmem:[#allocation62_spill] sm:$0xff]  ;;  %v9207_v60 = vpop.eup %5786  ;;  %v4403_v47 = vadd.f32 %v9105_v13, %v4367_v42  ;;  %v12208_v13 = vld [vmem:[#allocation31_spill] sm:$0xff]  ;;  %v4060_v45 = vmul.f32 %v12056_v36, %v9022_v14 }
 0x4f1   : > { %v3988_v29 = vmul.f32 %v12203_v16, %v9183_v5  ;;  %v4333_v23 = vadd.f32 %v12206_v22, %v12205_v49  ;;  %v3106_v9 = vmul.f32 1.0614054, %v9207_v60  ;;  %v9213_v44 = vld [vmem:[#allocation3 + $0x1d1] sm:$0xff]  ;;  %v3968_v25 = vadd.f32 %v3952_v43, %v3932_v52  ;;  %v12210_v22 = vld [vmem:[#allocation97_spill] sm:$0xff]  ;;  %v12228_v36 = vld [vmem:[#allocation42_spill] sm:$0xff] }
 0x4f2   : > { %v2818_v17 = vadd.f32 %v2802_v30, %v2782_v33  ;;  %v2745_v15 = vadd.f32 %v2729_v50, %v2709_v24  ;;  %12207 = vst [vmem:[#allocation135_spill] sm:$0xff] %v9213_v44  ;;  %v2910_v49 = vmul.f32 %v11983_v3, %v9203_v63  ;;  %v1931_v33 = vmul.f32 %v9219_v19, %v12208_v13  ;;  %v9223_v42 = vld [vmem:[#allocation2 + $0xd0] sm:$0xff]  ;;  %v4151_v26 = vld [vmem:[#allocation3 + $0x1e2] sm:$0xff] }
 0x4f3   : > { %12209 = vst [vmem:[#allocation108_spill] sm:$0xff] %v9223_v42  ;;  %v1967_v50 = vmul.f32 %v9223_v42, %v12121_v6  ;;  %v3122_v30 = vadd.f32 -1.4531521, %v3106_v9  ;;  %v4004_v43 = vadd.f32 %v3988_v29, %v3968_v25  ;;  %5788 = vpow2.f32 %v3288_v61  ;;  %v9233_v63 = vld [vmem:[#allocation3 + $0x162] sm:$0xff] }
 0x4f4   : > { %v2854_v5 = vadd.f32 %v2838_v38, %v2818_v17  ;;  %v2781_v24 = vadd.f32 %v2765_v0, %v2745_v15  ;;  %v4096_v38 = vmul.f32 %v12058_v40, %v9213_v44  ;;  %v1947_v17 = vadd.f32 %v1931_v33, %v12210_v22  ;;  %12211 = vst [vmem:[#allocation113_spill] sm:$0xff] %v9233_v63  ;;  %v9239_v9 = vld [vmem:[#allocation2 + $0x160] sm:$0xff]  ;;  %v4130_v33 = vld [vmem:[#allocation3 + $0x92] sm:$0xff] }
 0x4f5   : > { %v3138_v62 = vmul.f32 %v9207_v60, %v3122_v30  ;;  %v4040_v3 = vadd.f32 %v4024_v58, %v4004_v43  ;;  %v4353_v0 = vmul.f32 %v9233_v63, %v12147_v35  ;;  %v4172_v14 = vmul.f32 %v12065_v28, %v8884_v12  ;;  %v9248_v30 = vld [vmem:[%s11626_s14] ss:$0 sm:$0xff]  ;;  %v9255_v43 = vld [vmem:[#allocation2 + $0x170] sm:$0xff]  ;;  %v9300_v40 = vld [vmem:[#allocation2 + $0xc1] sm:$0xff] }
 0x4f6   : > { %v2890_v52 = vadd.f32 %v2874_v48, %v2854_v5  ;;  %v2817_v16 = vadd.f32 %v2801_v57, %v2781_v24  ;;  %v1983_v61 = vadd.f32 %v1967_v50, %v1947_v17  ;;  %v12212_v48 = vld [vmem:[#allocation35_spill] sm:$0xff]  ;;  %v4208_v58 = vmul.f32 %v11989_v21, %v9044_v18  ;;  %12213 = vst [vmem:[#allocation85_spill] sm:$0xff] %v9248_v30  ;;  %v12214_v50 = vld [vmem:[#allocation98_spill] sm:$0xff] }
 0x4f7   : > { %v2039_v5 = vmul.f32 %v9239_v9, %v12212_v48  ;;  %v3154_v15 = vadd.f32 1.4214138, %v3138_v62  ;;  %v4076_v57 = vadd.f32 %v4060_v45, %v4040_v3  ;;  %12215 = vst [vmem:[#allocation125_spill] sm:$0xff] %v9255_v43  ;;  %v2075_v3 = vmul.f32 %v9255_v43, %v12133_v20 }
 0x4f8   : > { %v2926_v29 = vadd.f32 %v2910_v49, %v2890_v52  ;;  %v2853_v25 = vadd.f32 %v2837_v11, %v2817_v16  ;;  %v4389_v49 = vmul.f32 %v12156_v32, %v4151_v26  ;;  %v2019_v24 = vadd.f32 %v12214_v50, %v1983_v61  ;;  %v9261_v16 = vld [vmem:[#allocation3 + $0x1f2] sm:$0xff] }
 0x4f9   : > { %v3170_v62 = vmul.f32 %v9207_v60, %v3154_v15  ;;  %v4112_v11 = vadd.f32 %v4096_v38, %v4076_v57  ;;  %12216 = vst [vmem:[#allocation129_spill] sm:$0xff] %v9261_v16  ;;  %v4369_v45 = vadd.f32 %v4353_v0, %v4333_v23  ;;  %v4439_v52 = vadd.f32 %v9119_v8, %v4403_v47  ;;  %v9270_v50 = vld [vmem:[#allocation2 + $0x210] sm:$0xff]  ;;  %v5835_v0 = vld [vmem:[#allocation2 + $0x200] sm:$0xff] }
 0x4fa   : > { %v9251_v12 = vadd.f32 %v9248_v30, %v2926_v29  ;;  %v2889_v18 = vadd.f32 %v9181_v51, %v2853_v25  ;;  %v2055_v22 = vadd.f32 %v2039_v5, %v2019_v24  ;;  %v4244_v15 = vmul.f32 %v12066_v31, %v4130_v33  ;;  %12217 = vst [vmem:[#allocation124_spill] sm:$0xff] %v9270_v50  ;;  %v12218_v8 = vld [vmem:[#allocation39_spill] sm:$0xff]  ;;  %v12220_v24 = vld [vmem:[#allocation48_spill] sm:$0xff] }
 0x4fb   : > { %v3186_v17 = vadd.f32 -0.28449672, %v3170_v62  ;;  %v4188_v61 = vadd.f32 %v4172_v14, %v4112_v11  ;;  %v4425_v23 = vmul.f32 %v12163_v41, %v9261_v16  ;;  %v2147_v47 = vmul.f32 %v5835_v0, %v12218_v8  ;;  %v9280_v14 = vld [vmem:[#allocation3 + $0x202] sm:$0xff]  ;;  %v12221_v11 = vld [vmem:[#allocation100_spill] sm:$0xff]  ;;  %v12223_v16 = vld [vmem:[#allocation95_spill] sm:$0xff] }
 0x4fc   : > { %v9266_v26 = vmul.f32 0.70710677, %v9251_v12  ;;  %v2925_v29 = vadd.f32 %v9194_v37, %v2889_v18  ;;  %v2091_v38 = vadd.f32 %v2075_v3, %v2055_v22  ;;  %12219 = vst [vmem:[#allocation34_spill] sm:$0xff] %v9280_v14  ;;  %v4405_v57 = vadd.f32 %v4389_v49, %v4369_v45  ;;  %v12222_v3 = vld [vmem:[#allocation40_spill] sm:$0xff]  ;;  %v12225_v49 = vld [vmem:[#allocation131_spill] sm:$0xff]  ;;  %v12226_v45 = vld [vmem:[#allocation114_spill] sm:$0xff] }
 0x4fd   : > { %v3202_v25 = vmul.f32 %v9207_v60, %v3186_v17  ;;  %v4224_v37 = vadd.f32 %v4208_v58, %v4188_v61  ;;  %v5789_v33 = vpop.eup %5788  ;;  %v4475_v62 = vadd.f32 %v12220_v24, %v4439_v52  ;;  %v2183_v22 = vmul.f32 %v12222_v3, %v9270_v50  ;;  %v12227_v24 = vld [vmem:[#allocation127_spill] sm:$0xff] }
 0x4fe   : > { %v3028_v51 = vand.u32 2147483647, %v9266_v26  ;;  %v9278_v5 = vadd.f32 %v9248_v30, %v2925_v29  ;;  %v2127_v28 = vadd.f32 %v12221_v11, %v2091_v38  ;;  %v2962_v0 = vmul.f32 0.5, %v12223_v16  ;;  %v4140_v31 = vld [vmem:[#allocation3 + $0x132] sm:$0xff] }
 0x4ff   : > { %v12224_v63 = vmov 1.0   ;;  %v3218_v29 = vadd.f32 0.2548296, %v3202_v25  ;;  %v4280_v61 = vmul.f32 %v12226_v45, %v12225_v49  ;;  %v4461_v38 = vmul.f32 %v12227_v24, %v9280_v14  ;;  %v4150_v14 = vld [vmem:[#allocation3 + $0x1d2] sm:$0xff] }
 0x500   : > { %v3044_v18 = vmul.f32 0.3275911, %v3028_v51  ;;  %v3010_v17 = vsel %vm2994_vm9, -1.0, %v12224_v63  ;;  %v9291_v58 = vmul.f32 0.70710677, %v9278_v5  ;;  %v2163_v11 = vadd.f32 %v2147_v47, %v2127_v28  ;;  %v12229_v28 = vld [vmem:[#allocation90_spill] sm:$0xff] }
 0x501   : > { %v3234_v44 = vmul.f32 %v9207_v60, %v3218_v29  ;;  %v4260_v21 = vadd.f32 %v4244_v15, %v4224_v37  ;;  %v4441_v4 = vadd.f32 %v4425_v23, %v4405_v57  ;;  %v4497_v25 = vadd.f32 %v12174_v1, %v4475_v62  ;;  %v12230_v47 = vld [vmem:[#allocation116_spill] sm:$0xff]  ;;  %v12231_v15 = vld [vmem:[#allocation79_spill] sm:$0xff]  ;;  %v12232_v37 = vld [vmem:[#allocation45_spill] sm:$0xff] }
 0x502   : > { %v3060_v52 = vadd.f32 1.0, %v3044_v18  ;;  %v3027_v16 = vand.u32 2147483647, %v9291_v58  ;;  %v2199_v30 = vadd.f32 %v2183_v22, %v2163_v11  ;;  %v2295_v18 = vmul.f32 %v9300_v40, %v12228_v36  ;;  %v9312_v62 = vld [vmem:[#allocation2 + $0xd1] sm:$0xff] }
 0x503   : > { %v3314_v49 = vmul.f32 %v5789_v33, %v3234_v44  ;;  %v4316_v60 = vmul.f32 %v12230_v47, %v12229_v28  ;;  %v3252_v29 = vsub.f32 0.0, %v3028_v51  ;;  %v4352_v3 = vmul.f32 %v12147_v35, %v4140_v31  ;;  %v12233_v36 = vld [vmem:[#allocation44_spill] sm:$0xff] }
 0x504   : > { %5790 = vrcp.f32 %v3060_v52  ;;  %v3043_v45 = vmul.f32 0.3275911, %v3027_v16  ;;  %v9309_v23 = vmul.f32 %v12156_v32, %v12231_v15  ;;  %v2275_v57 = vadd.f32 %v12232_v37, %v2199_v30  ;;  %v9323_v32 = vld [vmem:[#allocation2 + $0x161] sm:$0xff]  ;;  %v12234_v30 = vld [vmem:[#allocation47_spill] sm:$0xff] }
 0x505   : > { %v2331_v22 = vmul.f32 %v9312_v62, %v12143_v46  ;;  %v3330_v44 = vsub.f32 1.0, %v3314_v49  ;;  %v4296_v52 = vadd.f32 %v4280_v61, %v4260_v21  ;;  %v4477_v11 = vadd.f32 %v4461_v38, %v4441_v4  ;;  %v9328_v38 = vld [vmem:[#allocation3 + $0xc0] sm:$0xff] }
 0x506   : > { %v3059_v33 = vadd.f32 1.0, %v3043_v45  ;;  %v9318_v28 = vmul.f32 %v12163_v41, %v12233_v36  ;;  %v9321_v31 = vmul.f32 %v12227_v24, %v4150_v14  ;;  %v2311_v15 = vadd.f32 %v2295_v18, %v2275_v57  ;;  %v12235_v36 = vld [vmem:[#allocation70_spill] sm:$0xff]  ;;  %v9332_v14 = vld [vmem:[#allocation3 + $0xd0] sm:$0xff] }
 0x507   : > { %v2403_v37 = vmul.f32 %v9323_v32, %v12234_v30  ;;  %v3346_v35 = vmul.f32 %v3330_v44, %v3010_v17  ;;  %vm2996_vm10 = vcmp.lt.f32.partialorder %v9266_v26, 0.0  ;;  %v3268_v45 = vmul.f32 %v3252_v29, %v3028_v51  ;;  %v12236_v18 = vld [vmem:[#allocation71_spill] sm:$0xff]  ;;  %v12238_v29 = vld [vmem:[#allocation105_spill] sm:$0xff] }
 0x508   : > { %5792 = vrcp.f32 %v3059_v33  ;;  %v3251_v21 = vsub.f32 0.0, %v3027_v16  ;;  %v2347_v61 = vadd.f32 %v2331_v22, %v2311_v15  ;;  %v3482_v4 = vmul.f32 %v9328_v38, %v12235_v36  ;;  %v9342_v51 = vld [vmem:[#allocation2 + $0x211] sm:$0xff]  ;;  %v5842_v41 = vld [vmem:[#allocation2 + $0x201] sm:$0xff] }
 0x509   : > { %v3518_v49 = vmul.f32 %v9332_v14, %v12236_v18  ;;  %v3362_v57 = vadd.f32 1.0, %v3346_v35  ;;  %v4332_v24 = vadd.f32 %v4316_v60, %v4296_v52  ;;  %v9337_v17 = vmul.f32 0.5, %v9251_v12  ;;  %12237 = vst [vmem:[#allocation59_spill] sm:$0xff] %v9342_v51  ;;  %v9345_v33 = vld [vmem:[#allocation2 + $0x171] sm:$0xff]  ;;  %v12240_v35 = vld [vmem:[#allocation66_spill] sm:$0xff] }
 0x50a   : > { %v9340_v44 = vadd.f32 %v12174_v1, %v4477_v11  ;;  %v2383_v22 = vadd.f32 %v12238_v29, %v2347_v61  ;;  %12239 = vst [vmem:[#allocation53_spill] sm:$0xff] %v9345_v33  ;;  %v2439_v15 = vmul.f32 %v9345_v33, %v12164_v10  ;;  %v2511_v47 = vmul.f32 %v5842_v41, %v12177_v7  ;;  %v9359_v10 = vld [vmem:[#allocation3 + $0x160] sm:$0xff]  ;;  %v12241_v33 = vld [vmem:[#allocation75_spill] sm:$0xff] }
 0x50b   : > { %v3498_v60 = vadd.f32 %v3482_v4, %v12240_v35  ;;  %v3378_v52 = vmul.f32 %v3362_v57, %v2962_v0  ;;  %vm2995_vm11 = vcmp.lt.f32.partialorder %v9291_v58, 0.0  ;;  %v9355_v1 = vsel %vm2996_vm10, -1.0, %v12224_v63  ;;  %v12242_v7 = vld [vmem:[#allocation29_spill] sm:$0xff] }
 0x50c   : > { %v3292_v12 = vmul.f32 1.442695, %v3268_v45  ;;  %v3267_v61 = vmul.f32 %v3251_v21, %v3027_v16  ;;  %v2419_v29 = vadd.f32 %v2403_v37, %v2383_v22  ;;  %v3590_v41 = vmul.f32 %v9359_v10, %v12241_v33  ;;  %v9370_v37 = vld [vmem:[#allocation3 + $0x170] sm:$0xff]  ;;  %v12243_v21 = vld [vmem:[#allocation76_spill] sm:$0xff] }
 0x50d   : > { %v3534_v30 = vadd.f32 %v3518_v49, %v3498_v60  ;;  %v4513_v4 = vmul.f32 %v4497_v25, %v3378_v52  ;;  %v4368_v0 = vadd.f32 %v4352_v3, %v4332_v24  ;;  %v2547_v26 = vmul.f32 %v12180_v39, %v9342_v51  ;;  %v9390_v52 = vld [vmem:[#allocation3 + $0x210] sm:$0xff] }
 0x50e   : > { %v9357_v11 = vpop.eup %5790  ;;  %v9367_v35 = vmul.f32 0.5, %v9278_v5  ;;  %v2455_v45 = vadd.f32 %v2439_v15, %v2419_v29  ;;  %v3626_v49 = vmul.f32 %v9370_v37, %v12243_v21  ;;  %v9379_v3 = vsel %vm2995_vm11, -1.0, %v12224_v63  ;;  %v9381_v5 = vld [vmem:[#allocation2 + $0xc2] sm:$0xff]  ;;  %v9386_v15 = vld [vmem:[#allocation2 + $0xd2] sm:$0xff]  ;;  %12247 = vst [vmem:[#allocation128_spill] sm:$0xff] %v9390_v52 }
 0x50f   : > { %v3108_v57 = vmul.f32 1.0614054, %v9357_v11  ;;  %v3570_v16 = vadd.f32 %v12242_v7, %v3534_v30  ;;  %5533 = vmatprep.mubr.msk.f32.mxu0 %vm704_vm0, %v4513_v4  ;;  %5565 = vmatprep.mubr.msk.f32.mxu1 %vm704_vm0, %v4513_v4  ;;  %5794 = vpow2.f32 %v3292_v12  ;;  %12244 = vst [vmem:[#allocation52_spill] sm:$0xff] %v9381_v5  ;;  %v2659_v7 = vmul.f32 %v9381_v5, %v12188_v53  ;;  %v12245_v30 = vld [vmem:[#allocation56_spill] sm:$0xff]  ;;  %v12248_v63 = vld [vmem:[#allocation78_spill] sm:$0xff]  ;;  %v12253_v51 = vld [vmem:[#allocation115_spill] sm:$0xff] }
 0x510   : > { %v3290_v25 = vmul.f32 1.442695, %v3267_v61  ;;  %v2491_v22 = vadd.f32 %v12245_v30, %v2455_v45  ;;  %12246 = vst [vmem:[#allocation74_spill] sm:$0xff] %v9386_v15  ;;  %v2695_v60 = vmul.f32 %v9386_v15, %v12189_v54  ;;  %v4404_v12 = vadd.f32 %v9309_v23, %v4368_v0  ;;  %v12249_v61 = vld [vmem:[#allocation30_spill] sm:$0xff]  ;;  %v9404_v23 = vld [vmem:[#allocation2 + $0xe0] sm:$0xff] }
 0x511   : > { %v3124_v24 = vadd.f32 -1.4531521, %v3108_v57  ;;  %v3606_v58 = vadd.f32 %v3590_v41, %v3570_v16  ;;  %v5847_v57 = vld [vmem:[#allocation3 + $0x200] sm:$0xff]  ;;  %v1896_v45 = vmul.f32 %v9219_v19, %v12249_v61  ;;  %v1932_v54 = vmul.f32 %v9223_v42, %v12208_v13  ;;  %v12250_v16 = vld [vmem:[#allocation80_spill] sm:$0xff]  ;;  %12251 = vst [vmem:[#allocation107_spill] sm:$0xff] %v9404_v23 }
 0x512   : > { %v9392_v29 = vpop.eup %5792  ;;  %v3698_v53 = vmul.f32 %v5847_v57, %v12248_v63  ;;  %v2527_v5 = vadd.f32 %v2511_v47, %v2491_v22  ;;  %v3734_v15 = vmul.f32 %v12250_v16, %v9390_v52  ;;  %v1968_v0 = vmul.f32 %v9404_v23, %v12121_v6  ;;  %v12254_v6 = vld [vmem:[#allocation110_spill] sm:$0xff] }
 0x513   : > { %v3140_v4 = vmul.f32 %v9357_v11, %v3124_v24  ;;  %v3107_v30 = vmul.f32 1.0614054, %v9392_v29  ;;  %v3642_v39 = vadd.f32 %v3626_v49, %v3606_v58  ;;  %v12252_v24 = vld [vmem:[#allocation33_spill] sm:$0xff]  ;;  %v1948_v49 = vadd.f32 %v1932_v54, %v1896_v45  ;;  %v12255_v54 = vld [vmem:[#allocation83_spill] sm:$0xff] }
 0x514   : > { %v2004_v57 = vmul.f32 %v9239_v9, %v12252_v24  ;;  %v2563_v61 = vadd.f32 %v2547_v26, %v2527_v5  ;;  %5796 = vpow2.f32 %v3290_v25  ;;  %v2767_v58 = vmul.f32 %v9196_v55, %v12194_v2  ;;  %v9423_v25 = vld [vmem:[#allocation2 + $0x180] sm:$0xff] }
 0x515   : > { %v3156_v41 = vadd.f32 1.4214138, %v3140_v4  ;;  %v3123_v19 = vadd.f32 -1.4531521, %v3107_v30  ;;  %v3678_v47 = vadd.f32 %v12253_v51, %v3642_v39  ;;  %v2040_v4 = vmul.f32 %v9255_v43, %v12212_v48  ;;  %v9419_v39 = vld [vmem:[#allocation3 + $0xc1] sm:$0xff]  ;;  %12256 = vst [vmem:[#allocation103_spill] sm:$0xff] %v9423_v25 }
 0x516   : > { %v2639_v23 = vadd.f32 %v12254_v6, %v2563_v61  ;;  %v1984_v9 = vadd.f32 %v1968_v0, %v1948_v49  ;;  %v4440_v26 = vadd.f32 %v9318_v28, %v4404_v12  ;;  %v3846_v51 = vmul.f32 %v9419_v39, %v12255_v54  ;;  %v9428_v61 = vld [vmem:[#allocation2 + $0x172] sm:$0xff] }
 0x517   : > { %v3172_v22 = vmul.f32 %v9357_v11, %v3156_v41  ;;  %v3139_v13 = vmul.f32 %v9392_v29, %v3123_v19  ;;  %v3714_v42 = vadd.f32 %v3698_v53, %v3678_v47  ;;  %v2076_v45 = vmul.f32 %v9423_v25, %v12133_v20  ;;  %12257 = vst [vmem:[#allocation93_spill] sm:$0xff] %v9428_v61  ;;  %v9434_v0 = vld [vmem:[#allocation3 + $0xd1] sm:$0xff] }
 0x518   : > { %v2675_v41 = vadd.f32 %v2659_v7, %v2639_v23  ;;  %v2020_v48 = vadd.f32 %v2004_v57, %v1984_v9  ;;  %v2803_v28 = vmul.f32 %v9428_v61, %v12195_v34  ;;  %v2839_v12 = vmul.f32 %v12129_v27, %v9187_v59  ;;  %12258 = vst [vmem:[#allocation84_spill] sm:$0xff] %v9434_v0  ;;  %v9442_v57 = vld [vmem:[#allocation2 + $0x220] sm:$0xff]  ;;  %v12263_v59 = vld [vmem:[#allocation82_spill] sm:$0xff]  ;;  %v12264_v43 = vld [vmem:[#allocation111_spill] sm:$0xff] }
 0x519   : > { %v3188_v5 = vadd.f32 -0.28449672, %v3172_v22  ;;  %v3155_v30 = vadd.f32 1.4214138, %v3139_v13  ;;  %v3750_v19 = vadd.f32 %v3734_v15, %v3714_v42  ;;  %v5795_v6 = vpop.eup %5794  ;;  %v3882_v47 = vmul.f32 %v9434_v0, %v12190_v56  ;;  %v9439_v42 = vld [vmem:[#allocation2 + $0x212] sm:$0xff]  ;;  %12261 = vst [vmem:[#allocation118_spill] sm:$0xff] %v9442_v57 }
 0x51a   : > { %12259 = vst [vmem:[#allocation112_spill] sm:$0xff] %v9439_v42  ;;  %v2711_v7 = vadd.f32 %v2695_v60, %v2675_v41  ;;  %v12260_v15 = vld [vmem:[#allocation120_spill] sm:$0xff]  ;;  %v2056_v49 = vadd.f32 %v2040_v4, %v2020_v48  ;;  %v4476_v22 = vadd.f32 %v9321_v31, %v4440_v26  ;;  %v2148_v25 = vmul.f32 %v12218_v8, %v9270_v50  ;;  %v12265_v41 = vld [vmem:[#allocation86_spill] sm:$0xff]  ;;  %v12266_v31 = vld [vmem:[#allocation91_spill] sm:$0xff] }
 0x51b   : > { %v3204_v53 = vmul.f32 %v9357_v11, %v3188_v5  ;;  %v3171_v13 = vmul.f32 %v9392_v29, %v3155_v30  ;;  %v3826_v23 = vadd.f32 %v12260_v15, %v3750_v19  ;;  %v12262_v5 = vld [vmem:[#allocation60_spill] sm:$0xff]  ;;  %v2911_v19 = vmul.f32 %v12265_v41, %v9439_v42  ;;  %v9453_v48 = vld [vmem:[#allocation3 + $0x161] sm:$0xff] }
 0x51c   : > { %v2875_v20 = vmul.f32 %v12263_v59, %v12262_v5  ;;  %v2747_v30 = vadd.f32 %v12264_v43, %v2711_v7  ;;  %v2092_v34 = vadd.f32 %v2076_v45, %v2056_v49  ;;  %v3954_v4 = vmul.f32 %v9453_v48, %v12266_v31  ;;  %v12267_v26 = vld [vmem:[#allocation40_spill] sm:$0xff]  ;;  %v12268_v43 = vld [vmem:[#allocation101_spill] sm:$0xff] }
 0x51d   : > { %v3220_v9 = vadd.f32 0.2548296, %v3204_v53  ;;  %v3187_v27 = vadd.f32 -0.28449672, %v3171_v13  ;;  %v3862_v24 = vadd.f32 %v3846_v51, %v3826_v23  ;;  %v2184_v53 = vmul.f32 %v12267_v26, %v9442_v57  ;;  %v9469_v49 = vld [vmem:[#allocation3 + $0x171] sm:$0xff]  ;;  %v5856_v50 = vld [vmem:[#allocation3 + $0x201] sm:$0xff] }
 0x51e   : > { %v2783_v13 = vadd.f32 %v2767_v58, %v2747_v30  ;;  %v2128_v51 = vadd.f32 %v12268_v43, %v2092_v34  ;;  %v5797_v45 = vpop.eup %5796  ;;  %12270 = vst [vmem:[#allocation97_spill] sm:$0xff] %v9469_v49  ;;  %v12274_v41 = vld [vmem:[#allocation96_spill] sm:$0xff] }
 0x51f   : > { %v3236_v60 = vmul.f32 %v9357_v11, %v3220_v9  ;;  %v3203_v15 = vmul.f32 %v9392_v29, %v3187_v27  ;;  %v3898_v8 = vadd.f32 %v3882_v47, %v3862_v24  ;;  %v9464_v11 = vld [vmem:[%s11735_s11] ss:$0 sm:$0xff]  ;;  %v12271_v9 = vld [vmem:[#allocation92_spill] sm:$0xff]  ;;  %v4062_v59 = vmul.f32 %v5856_v50, %v12274_v41 }
 0x520   : > { %12269 = vst [vmem:[#allocation62_spill] sm:$0xff] %v9464_v11  ;;  %v9467_v7 = vadd.f32 %v9464_v11, %v4476_v22  ;;  %v3990_v26 = vmul.f32 %v9469_v49, %v12271_v9  ;;  %v12272_v27 = vld [vmem:[#allocation41_spill] sm:$0xff]  ;;  %v2819_v34 = vadd.f32 %v2803_v28, %v2783_v13  ;;  %v2164_v43 = vadd.f32 %v2148_v25, %v2128_v51  ;;  %v12275_v22 = vld [vmem:[#allocation42_spill] sm:$0xff]  ;;  %v9482_v31 = vld [vmem:[#allocation3 + $0x211] sm:$0xff] }
 0x521   : > { %v3316_v23 = vmul.f32 %v5795_v6, %v3236_v60  ;;  %v2260_v24 = vmul.f32 %v9300_v40, %v12272_v27  ;;  %v3219_v58 = vadd.f32 0.2548296, %v3203_v15  ;;  %v12273_v47 = vld [vmem:[#allocation121_spill] sm:$0xff]  ;;  %v2296_v6 = vmul.f32 %v9312_v62, %v12275_v22  ;;  %v12276_v60 = vld [vmem:[#allocation67_spill] sm:$0xff] }
 0x522   : > { %v3934_v30 = vadd.f32 %v12273_v47, %v3898_v8  ;;  %v3447_v11 = vmul.f32 %v9328_v38, %v12276_v60  ;;  %v2855_v49 = vadd.f32 %v2839_v12, %v2819_v34  ;;  %v2200_v28 = vadd.f32 %v2184_v53, %v2164_v43  ;;  %v9485_v25 = vld [vmem:[#allocation2 + $0xe1] sm:$0xff] }
 0x523   : > { %v3332_v57 = vsub.f32 1.0, %v3316_v23  ;;  %v3235_v42 = vmul.f32 %v9392_v29, %v3219_v58  ;;  %12277 = vst [vmem:[#allocation98_spill] sm:$0xff] %v9485_v25  ;;  %v2332_v50 = vmul.f32 %v9485_v25, %v12143_v46  ;;  %v3483_v15 = vmul.f32 %v9332_v14, %v12235_v36  ;;  %v9491_v13 = vld [vmem:[#allocation3 + $0xe0] sm:$0xff]  ;;  %v12280_v58 = vld [vmem:[#allocation72_spill] sm:$0xff]  ;;  %v12281_v43 = vld [vmem:[#allocation122_spill] sm:$0xff] }
 0x524   : > { %v3970_v40 = vadd.f32 %v3954_v4, %v3934_v30  ;;  %12278 = vst [vmem:[#allocation48_spill] sm:$0xff] %v9491_v13  ;;  %v3519_v38 = vmul.f32 %v9491_v13, %v12236_v18  ;;  %v2891_v12 = vadd.f32 %v2875_v20, %v2855_v49  ;;  %v2276_v4 = vadd.f32 %v2260_v24, %v2200_v28  ;;  %v12282_v13 = vld [vmem:[#allocation46_spill] sm:$0xff] }
 0x525   : > { %v3348_v8 = vmul.f32 %v3332_v57, %v9355_v1  ;;  %v3315_v29 = vmul.f32 %v5797_v45, %v3235_v42  ;;  %v12279_v1 = vld [vmem:[#allocation99_spill] sm:$0xff]  ;;  %v3499_v23 = vadd.f32 %v3483_v15, %v3447_v11  ;;  %v3555_v34 = vmul.f32 %v9359_v10, %v12280_v58  ;;  %v12283_v11 = vld [vmem:[#allocation85_spill] sm:$0xff] }
 0x526   : > { %v4006_v51 = vadd.f32 %v3990_v26, %v3970_v40  ;;  %v4098_v57 = vmul.f32 %v12279_v1, %v9482_v31  ;;  %v2927_v30 = vadd.f32 %v2911_v19, %v2891_v12  ;;  %v2312_v25 = vadd.f32 %v2296_v6, %v2276_v4  ;;  %v12284_v40 = vld [vmem:[#allocation47_spill] sm:$0xff]  ;;  %v12285_v6 = vld [vmem:[#allocation53_spill] sm:$0xff] }
 0x527   : > { %v3364_v53 = vadd.f32 1.0, %v3348_v8  ;;  %v3331_v47 = vsub.f32 1.0, %v3315_v29  ;;  %v2368_v20 = vmul.f32 %v9323_v32, %v12282_v13  ;;  %v3535_v42 = vadd.f32 %v3519_v38, %v3499_v23  ;;  %v9512_v8 = vld [vmem:[#allocation3 + $0x180] sm:$0xff] }
 0x528   : > { %v4042_v46 = vadd.f32 %v12281_v43, %v4006_v51  ;;  %v3591_v26 = vmul.f32 %v9370_v37, %v12241_v33  ;;  %v9507_v49 = vadd.f32 %v12283_v11, %v2927_v30  ;;  %v2348_v24 = vadd.f32 %v2332_v50, %v2312_v25  ;;  %12286 = vst [vmem:[#allocation100_spill] sm:$0xff] %v9512_v8  ;;  %v9519_v29 = vld [vmem:[#allocation3 + $0xc2] sm:$0xff] }
 0x529   : > { %v3380_v22 = vmul.f32 %v3364_v53, %v9337_v17  ;;  %v3347_v45 = vmul.f32 %v3331_v47, %v9379_v3  ;;  %v2404_v28 = vmul.f32 %v12285_v6, %v12284_v40  ;;  %v3571_v17 = vadd.f32 %v3555_v34, %v3535_v42  ;;  %v9527_v50 = vld [vmem:[#allocation2 + $0x181] sm:$0xff]  ;;  %v9536_v47 = vld [vmem:[#allocation3 + $0xd2] sm:$0xff] }
 0x52a   : > { %v4078_v10 = vadd.f32 %v4062_v59, %v4042_v46  ;;  %v3627_v32 = vmul.f32 %v9512_v8, %v12243_v21  ;;  %v9517_v38 = vmul.f32 0.70710677, %v9507_v49  ;;  %v12287_v46 = vld [vmem:[#allocation104_spill] sm:$0xff]  ;;  %v2384_v25 = vadd.f32 %v2368_v20, %v2348_v24  ;;  %12290 = vst [vmem:[#allocation131_spill] sm:$0xff] %v9527_v50  ;;  %v12291_v12 = vld [vmem:[#allocation49_spill] sm:$0xff]  ;;  %v12293_v30 = vld [vmem:[#allocation106_spill] sm:$0xff] }
 0x52b   : > { %v4515_v19 = vmul.f32 %v9340_v44, %v3380_v22  ;;  %v3363_v15 = vadd.f32 1.0, %v3347_v45  ;;  %v4210_v59 = vmul.f32 %v9519_v29, %v12287_v46  ;;  %v12288_v44 = vld [vmem:[#allocation134_spill] sm:$0xff]  ;;  %v2440_v51 = vmul.f32 %v9527_v50, %v12291_v12  ;;  %v12292_v23 = vld [vmem:[#allocation69_spill] sm:$0xff]  ;;  %v12295_v20 = vld [vmem:[#allocation87_spill] sm:$0xff] }
 0x52c   : > { %v4114_v3 = vadd.f32 %v4098_v57, %v4078_v10  ;;  %v9525_v22 = vmul.f32 %v12236_v18, %v12288_v44  ;;  %v3607_v4 = vadd.f32 %v3591_v26, %v3571_v17  ;;  %v9533_v57 = vand.u32 2147483647, %v9517_v38  ;;  %v9540_v42 = vld [vmem:[#allocation3 + $0x220] sm:$0xff]  ;;  %v12300_v12 = vld [vmem:[#allocation59_spill] sm:$0xff] }
 0x52d   : > { %v3379_v53 = vmul.f32 %v3363_v15, %v9367_v35  ;;  %v4246_v43 = vmul.f32 %v9536_v47, %v12293_v30  ;;  %12294 = vst [vmem:[#allocation90_spill] sm:$0xff] %v9540_v42  ;;  %v9544_v45 = vmul.f32 %v12243_v21, %v12295_v20  ;;  %v9546_v10 = vld [vmem:[#allocation2 + $0x221] sm:$0xff]  ;;  %v2420_v26 = vadd.f32 %v2404_v28, %v2384_v25  ;;  %v12301_v20 = vld [vmem:[#allocation51_spill] sm:$0xff] }
 0x52e   : > { %12289 = vst [vmem:[#allocation95_spill] sm:$0xff] %v9525_v22  ;;  %v4190_v34 = vadd.f32 %v12292_v23, %v4114_v3  ;;  %12297 = vst [vmem:[#allocation45_spill] sm:$0xff] %v9546_v10  ;;  %v3643_v35 = vadd.f32 %v3627_v32, %v3607_v4  ;;  %v3699_v24 = vmul.f32 %v12248_v63, %v9390_v52  ;;  %v12298_v17 = vld [vmem:[#allocation109_spill] sm:$0xff]  ;;  %v3045_v44 = vmul.f32 0.3275911, %v9533_v57  ;;  %v12303_v32 = vld [vmem:[#allocation135_spill] sm:$0xff] }
 0x52f   : > { %12296 = vst [vmem:[#allocation79_spill] sm:$0xff] %v9544_v45  ;;  %v9552_v15 = vmul.f32 %v12190_v56, %v12298_v17  ;;  %v4514_v3 = vmul.f32 %v9467_v7, %v3379_v53  ;;  %v2456_v22 = vadd.f32 %v2440_v51, %v2420_v26  ;;  %v2512_v45 = vmul.f32 %v12301_v20, %v12300_v12  ;;  %v12302_v50 = vld [vmem:[#allocation117_spill] sm:$0xff]  ;;  %v12314_v20 = vld [vmem:[#allocation55_spill] sm:$0xff] }
 0x530   : > { %v4226_v23 = vadd.f32 %v4210_v59, %v4190_v34  ;;  %v3679_v40 = vadd.f32 %v12302_v50, %v3643_v35  ;;  %v3735_v28 = vmul.f32 %v12250_v16, %v9540_v42  ;;  %v9563_v25 = vmul.f32 %v12271_v9, %v12303_v32  ;;  %v12305_v59 = vld [vmem:[#allocation54_spill] sm:$0xff]  ;;  %v9571_v50 = vld [vmem:[#allocation3 + $0x212] sm:$0xff]  ;;  %v12307_v53 = vld [vmem:[#allocation57_spill] sm:$0xff] }
 0x531   : > { %12299 = vst [vmem:[#allocation44_spill] sm:$0xff] %v9552_v15  ;;  %5534 = vmatmul.mubr.msk.f32.gmra.mrb[6].mxu0 %vm704_vm0, %v4514_v3  ;;  %5566 = vmatmul.mubr.msk.f32.gmra.mrb[6].mxu1 %vm704_vm0, %v4514_v3  ;;  %v3061_v7 = vadd.f32 1.0, %v3045_v44  ;;  %v2548_v51 = vmul.f32 %v12305_v59, %v9546_v10  ;;  %12306 = vst [vmem:[#allocation66_spill] sm:$0xff] %v9571_v50  ;;  %v2492_v34 = vadd.f32 %v12307_v53, %v2456_v22  ;;  %v12308_v35 = vld [vmem:[#allocation81_spill] sm:$0xff]  ;;  %v12310_v44 = vld [vmem:[#allocation116_spill] sm:$0xff] }
 0x532   : > { %12304 = vst [vmem:[#allocation105_spill] sm:$0xff] %v9563_v25  ;;  %v4262_v4 = vadd.f32 %v4246_v43, %v4226_v23  ;;  %5536 = vmatprep.mubr.msk.f32.mxu0 %vm704_vm0, %v4515_v19  ;;  %5568 = vmatprep.mubr.msk.f32.mxu1 %vm704_vm0, %v4515_v19  ;;  %v3715_v26 = vadd.f32 %v3699_v24, %v3679_v40  ;;  %v12309_v32 = vld [vmem:[#allocation73_spill] sm:$0xff]  ;;  %v9579_v25 = vld [vmem:[#allocation3 + $0x172] sm:$0xff]  ;;  %v12318_v53 = vld [vmem:[#allocation34_spill] sm:$0xff]  ;;  %vm2997_vm12 = vcmp.lt.f32.partialorder %v9517_v38, 0.0  ;;  %v9651_v38 = vmul.f32 0.5, %v9507_v49 }
 0x533   : > { %v3811_v17 = vmul.f32 %v9419_v39, %v12308_v35  ;;  %5798 = vrcp.f32 %v3061_v7  ;;  %v12311_v43 = vld [vmem:[#allocation113_spill] sm:$0xff]  ;;  %12312 = vst [vmem:[#allocation29_spill] sm:$0xff] %v9579_v25  ;;  %v12313_v15 = vld [vmem:[#allocation119_spill] sm:$0xff]  ;;  %v2528_v19 = vadd.f32 %v2512_v45, %v2492_v34  ;;  %v12315_v10 = vld [vmem:[#allocation52_spill] sm:$0xff]  ;;  %v3847_v39 = vmul.f32 %v9434_v0, %v12255_v54 }
 0x534   : > { %v4298_v3 = vadd.f32 %v12309_v32, %v4262_v4  ;;  %v4318_v23 = vmul.f32 %v12311_v43, %v12310_v44  ;;  %v9583_v59 = vmul.f32 %v9579_v25, %v12313_v15  ;;  %v2624_v22 = vmul.f32 %v12315_v10, %v12314_v20  ;;  %v12316_v24 = vld [vmem:[#allocation129_spill] sm:$0xff]  ;;  %v12317_v7 = vld [vmem:[#allocation126_spill] sm:$0xff]  ;;  %v12320_v16 = vld [vmem:[#allocation127_spill] sm:$0xff] }
 0x535   : > { %v3751_v40 = vadd.f32 %v3735_v28, %v3715_v26  ;;  %v9591_v4 = vmul.f32 %v12317_v7, %v12316_v24  ;;  %v12319_v32 = vld [vmem:[#allocation38_spill] sm:$0xff]  ;;  %v9599_v12 = vmul.f32 %v12320_v16, %v9571_v50  ;;  %v2564_v10 = vadd.f32 %v2548_v51, %v2528_v19  ;;  %v12325_v26 = vld [vmem:[#allocation61_spill] sm:$0xff]  ;;  %v12327_v42 = vld [vmem:[#allocation63_spill] sm:$0xff] }
 0x536   : > { %v9595_v35 = vmul.f32 %v12319_v32, %v12318_v53  ;;  %v12322_v45 = vld [vmem:[#allocation58_spill] sm:$0xff]  ;;  %v3253_v32 = vsub.f32 0.0, %v9533_v57  ;;  %v2732_v16 = vmul.f32 %v9196_v55, %v12327_v42  ;;  %v12330_v51 = vld [vmem:[#allocation31_spill] sm:$0xff]  ;;  %v12336_v42 = vld [vmem:[#allocation65_spill] sm:$0xff] }
 0x537   : > { %12321 = vst [vmem:[#allocation56_spill] sm:$0xff] %v9599_v12  ;;  %v12323_v34 = vld [vmem:[#allocation74_spill] sm:$0xff]  ;;  %v3827_v20 = vadd.f32 %v3811_v17, %v3751_v40  ;;  %v12329_v12 = vld [vmem:[#allocation108_spill] sm:$0xff]  ;;  %v12331_v19 = vld [vmem:[#allocation107_spill] sm:$0xff]  ;;  %v2640_v7 = vadd.f32 %v2624_v22, %v2564_v10 }
 0x538   : > { %v2660_v63 = vmul.f32 %v12323_v34, %v12322_v45  ;;  %v9603_v28 = vld [vmem:[#allocation2 + $0xe2] sm:$0xff]  ;;  %v1933_v34 = vmul.f32 %v12331_v19, %v12330_v51  ;;  %v9620_v40 = vld [vmem:[#allocation2 + $0xf0] sm:$0xff]  ;;  %v12340_v10 = vld [vmem:[#allocation68_spill] sm:$0xff] }
 0x539   : > { %12324 = vst [vmem:[#allocation115_spill] sm:$0xff] %v9603_v28  ;;  %v2696_v54 = vmul.f32 %v9603_v28, %v12325_v26  ;;  %v9607_v24 = vld [vmem:[#allocation3 + $0xe1] sm:$0xff]  ;;  %v3863_v53 = vadd.f32 %v3847_v39, %v3827_v20  ;;  %12333 = vst [vmem:[#allocation120_spill] sm:$0xff] %v9620_v40  ;;  %v12334_v28 = vld [vmem:[#allocation32_spill] sm:$0xff]  ;;  %v2840_v19 = vmul.f32 %v12340_v10, %v12262_v5 }
 0x53a   : > { %12326 = vst [vmem:[#allocation110_spill] sm:$0xff] %v9607_v24  ;;  %v3883_v0 = vmul.f32 %v9607_v24, %v12190_v56  ;;  %v12328_v50 = vld [vmem:[#allocation30_spill] sm:$0xff]  ;;  %v12332_v26 = vld [vmem:[#allocation89_spill] sm:$0xff]  ;;  %v1969_v56 = vmul.f32 %v9620_v40, %v12334_v28  ;;  %v2768_v24 = vmul.f32 %v9428_v61, %v12194_v2  ;;  %v12341_v28 = vld [vmem:[#allocation91_spill] sm:$0xff]  ;;  %v3269_v2 = vmul.f32 %v3253_v32, %v9533_v57 }
 0x53b   : > { %v1897_v45 = vmul.f32 %v12329_v12, %v12328_v50  ;;  %v3919_v17 = vmul.f32 %v9453_v48, %v12332_v26  ;;  %v9626_v55 = vld [vmem:[#allocation2 + $0x182] sm:$0xff]  ;;  %v2676_v48 = vadd.f32 %v2660_v63, %v2640_v7 }
 0x53c   : > { %12335 = vst [vmem:[#allocation60_spill] sm:$0xff] %v9626_v55  ;;  %v2804_v12 = vmul.f32 %v9626_v55, %v12336_v42  ;;  %v12337_v51 = vld [vmem:[#allocation33_spill] sm:$0xff]  ;;  %v3899_v26 = vadd.f32 %v3883_v0, %v3863_v53  ;;  %v12343_v42 = vld [vmem:[#allocation35_spill] sm:$0xff]  ;;  %v3294_v49 = vmul.f32 1.442695, %v3269_v2 }
 0x53d   : > { %v1949_v50 = vadd.f32 %v1933_v34, %v1897_v45  ;;  %v12338_v22 = vld [vmem:[#allocation125_spill] sm:$0xff]  ;;  %v12344_v45 = vld [vmem:[#allocation103_spill] sm:$0xff]  ;;  %v2712_v55 = vadd.f32 %v2696_v54, %v2676_v48  ;;  %v9648_v5 = vpop.eup %5798  ;;  %v12350_v54 = vld [vmem:[#allocation36_spill] sm:$0xff] }
 0x53e   : > { %v2005_v20 = vmul.f32 %v12338_v22, %v12337_v51  ;;  %v9632_v39 = vld [vmem:[#allocation2 + $0x222] sm:$0xff]  ;;  %v2041_v34 = vmul.f32 %v12344_v45, %v12343_v42  ;;  %v12345_v22 = vld [vmem:[#allocation112_spill] sm:$0xff]  ;;  %v3935_v63 = vadd.f32 %v3919_v17, %v3899_v26  ;;  %v9655_v53 = vld [vmem:[#allocation2 + $0x190] sm:$0xff]  ;;  %v12351_v26 = vmov 1.0  }
 0x53f   : > { %12339 = vst [vmem:[#allocation111_spill] sm:$0xff] %v9632_v39  ;;  %v12342_v40 = vld [vmem:[#allocation97_spill] sm:$0xff]  ;;  %v1985_v61 = vadd.f32 %v1969_v56, %v1949_v50  ;;  %v12346_v51 = vld [vmem:[#allocation82_spill] sm:$0xff]  ;;  %12349 = vst [vmem:[#allocation121_spill] sm:$0xff] %v9655_v53  ;;  %v2077_v32 = vmul.f32 %v9655_v53, %v12350_v54  ;;  %v9660_v17 = vsel %vm2997_vm12, -1.0, %v12351_v26  ;;  %v2748_v42 = vadd.f32 %v2732_v16, %v2712_v55 }
 0x540   : > { %v3955_v52 = vmul.f32 %v12342_v40, %v12341_v28  ;;  %v2876_v15 = vmul.f32 %v12346_v51, %v12345_v22  ;;  %v9644_v7 = vld [vmem:[#allocation3 + $0x181] sm:$0xff]  ;;  %v3109_v48 = vmul.f32 1.0614054, %v9648_v5  ;;  %v4063_v45 = vmul.f32 %v12274_v41, %v9482_v31  ;;  %v9669_v26 = vld [vmem:[#allocation2 + $0x230] sm:$0xff] }
 0x541   : > { %12347 = vst [vmem:[#allocation101_spill] sm:$0xff] %v9644_v7  ;;  %v3991_v0 = vmul.f32 %v9644_v7, %v12271_v9  ;;  %v12348_v56 = vld [vmem:[#allocation86_spill] sm:$0xff]  ;;  %v2021_v50 = vadd.f32 %v2005_v20, %v1985_v61  ;;  %v12352_v61 = vld [vmem:[#allocation124_spill] sm:$0xff]  ;;  %v12353_v20 = vld [vmem:[#allocation37_spill] sm:$0xff]  ;;  %v4334_v28 = vadd.f32 %v4318_v23, %v4298_v3  ;;  %v2784_v54 = vadd.f32 %v2768_v24, %v2748_v42 }
 0x542   : > { %v2912_v57 = vmul.f32 %v12348_v56, %v9632_v39  ;;  %v9663_v9 = vld [vmem:[#allocation3 + $0x221] sm:$0xff]  ;;  %v3971_v51 = vadd.f32 %v3955_v52, %v3935_v63  ;;  %v2113_v39 = vmul.f32 %v12353_v20, %v12352_v61  ;;  %v3125_v7 = vadd.f32 -1.4531521, %v3109_v48  ;;  %v12356_v40 = vld [vmem:[#allocation39_spill] sm:$0xff]  ;;  %v12358_v24 = vld [vmem:[#allocation40_spill] sm:$0xff] }
 0x543   : > { %v2057_v56 = vadd.f32 %v2041_v34, %v2021_v50  ;;  %v4099_v16 = vmul.f32 %v12279_v1, %v9663_v9  ;;  %v12354_v55 = vld [vmem:[#allocation102_spill] sm:$0xff]  ;;  %v2820_v50 = vadd.f32 %v2804_v12, %v2784_v54  ;;  %v12357_v61 = vld [vmem:[#allocation123_spill] sm:$0xff]  ;;  %v4211_v42 = vmul.f32 %v9536_v47, %v12287_v46 }
 0x544   : > { %v4007_v53 = vadd.f32 %v3991_v0, %v3971_v51  ;;  %v4175_v52 = vmul.f32 %v9519_v29, %v12354_v55  ;;  %v12355_v63 = vld [vmem:[#allocation118_spill] sm:$0xff]  ;;  %v3141_v34 = vmul.f32 %v9648_v5, %v3125_v7  ;;  %5800 = vpow2.f32 %v3294_v49  ;;  %v12359_v49 = vld [vmem:[#allocation48_spill] sm:$0xff] }
 0x545   : > { %v2093_v2 = vadd.f32 %v2077_v32, %v2057_v56  ;;  %v2149_v41 = vmul.f32 %v12356_v40, %v12355_v63  ;;  %v9681_v3 = vld [vmem:[#allocation3 + $0xe2] sm:$0xff]  ;;  %v2185_v51 = vmul.f32 %v12358_v24, %v9669_v26  ;;  %v4370_v7 = vadd.f32 %v9583_v59, %v4334_v28  ;;  %v9697_v24 = vld [vmem:[#allocation3 + $0xf0] sm:$0xff] }
 0x546   : > { %v4043_v48 = vadd.f32 %v12357_v61, %v4007_v53  ;;  %v9685_v23 = vmul.f32 %v9681_v3, %v12293_v30  ;;  %v3157_v0 = vadd.f32 1.4214138, %v3141_v34  ;;  %v2856_v12 = vadd.f32 %v2840_v19, %v2820_v50  ;;  %v12361_v19 = vld [vmem:[#allocation98_spill] sm:$0xff] }
 0x547   : > { %v2129_v29 = vadd.f32 %v2113_v39, %v2093_v2  ;;  %v2261_v54 = vmul.f32 %v9312_v62, %v12272_v27  ;;  %v3448_v32 = vmul.f32 %v9332_v14, %v12276_v60  ;;  %v3484_v61 = vmul.f32 %v12359_v49, %v12235_v36 }
 0x548   : > { %v4079_v56 = vadd.f32 %v4063_v45, %v4043_v48  ;;  %v3173_v39 = vmul.f32 %v9648_v5, %v3157_v0  ;;  %v2892_v2 = vadd.f32 %v2876_v15, %v2856_v12  ;;  %v3520_v59 = vmul.f32 %v9697_v24, %v12236_v18  ;;  %v9708_v0 = vld [vmem:[#allocation2 + $0xf1] sm:$0xff] }
 0x549   : > { %v2165_v53 = vadd.f32 %v2149_v41, %v2129_v29  ;;  %v12360_v41 = vld [vmem:[#allocation42_spill] sm:$0xff]  ;;  %v3500_v62 = vadd.f32 %v3484_v61, %v3448_v32  ;;  %v3556_v14 = vmul.f32 %v9370_v37, %v12280_v58  ;;  %v4406_v50 = vadd.f32 %v9591_v4, %v4370_v7  ;;  %12363 = vst [vmem:[#allocation122_spill] sm:$0xff] %v9708_v0  ;;  %v12364_v12 = vld [vmem:[#allocation43_spill] sm:$0xff] }
 0x54a   : > { %v4115_v30 = vadd.f32 %v4099_v16, %v4079_v56  ;;  %v2297_v45 = vmul.f32 %v12361_v19, %v12360_v41  ;;  %v3189_v34 = vadd.f32 -0.28449672, %v3173_v39  ;;  %v2928_v48 = vadd.f32 %v2912_v57, %v2892_v2  ;;  %v12362_v29 = vld [vmem:[#allocation114_spill] sm:$0xff]  ;;  %v9724_v61 = vld [vmem:[#allocation3 + $0x190] sm:$0xff] }
 0x54b   : > { %v2201_v28 = vadd.f32 %v2185_v51, %v2165_v53  ;;  %v4283_v15 = vmul.f32 %v12311_v43, %v12362_v29  ;;  %v2333_v51 = vmul.f32 %v9708_v0, %v12364_v12  ;;  %v3536_v56 = vadd.f32 %v3520_v59, %v3500_v62  ;;  %12365 = vst [vmem:[#allocation53_spill] sm:$0xff] %v9724_v61  ;;  %v9766_v12 = vld [vmem:[#allocation2 + $0x231] sm:$0xff] }
 0x54c   : > { %v3592_v53 = vmul.f32 %v9512_v8, %v12241_v33  ;;  %v3205_v32 = vmul.f32 %v9648_v5, %v3189_v34  ;;  %v9716_v37 = vadd.f32 %v12283_v11, %v2928_v48  ;;  %v4191_v4 = vadd.f32 %v4175_v52, %v4115_v30  ;;  %v9732_v30 = vld [vmem:[#allocation3 + $0x182] sm:$0xff]  ;;  %v12367_v52 = vld [vmem:[#allocation119_spill] sm:$0xff]  ;;  %12383 = vst [vmem:[#allocation117_spill] sm:$0xff] %v9766_v12  ;;  %v12391_v8 = vld [vmem:[#allocation84_spill] sm:$0xff] }
 0x54d   : > { %v2277_v16 = vadd.f32 %v2261_v54, %v2201_v28  ;;  %v9720_v57 = vmul.f32 %v9579_v25, %v12310_v44  ;;  %v2369_v7 = vmul.f32 %v12285_v6, %v12282_v13  ;;  %v3572_v54 = vadd.f32 %v3556_v14, %v3536_v56  ;;  %12366 = vst [vmem:[#allocation134_spill] sm:$0xff] %v9732_v30  ;;  %v12368_v14 = vld [vmem:[#allocation47_spill] sm:$0xff]  ;;  %v12370_v56 = vld [vmem:[#allocation128_spill] sm:$0xff]  ;;  %v12372_v44 = vld [vmem:[#allocation34_spill] sm:$0xff] }
 0x54e   : > { %v3628_v39 = vmul.f32 %v9724_v61, %v12243_v21  ;;  %v3221_v2 = vadd.f32 0.2548296, %v3205_v32  ;;  %v4442_v59 = vadd.f32 %v9595_v35, %v4406_v50  ;;  %v9730_v28 = vmul.f32 0.70710677, %v9716_v37  ;;  %v5801_v62 = vpop.eup %5800  ;;  %v12369_v34 = vld [vmem:[#allocation131_spill] sm:$0xff]  ;;  %v12371_v21 = vld [vmem:[#allocation77_spill] sm:$0xff] }
 0x54f   : > { %v2313_v43 = vadd.f32 %v2297_v45, %v2277_v16  ;;  %v9736_v45 = vmul.f32 %v9732_v30, %v12367_v52  ;;  %v2405_v48 = vmul.f32 %v12369_v34, %v12368_v14  ;;  %v3608_v16 = vadd.f32 %v3592_v53, %v3572_v54  ;;  %v12373_v11 = vld [vmem:[#allocation126_spill] sm:$0xff]  ;;  %v9750_v52 = vld [vmem:[#allocation3 + $0x230] sm:$0xff]  ;;  %v12377_v53 = vld [vmem:[#allocation49_spill] sm:$0xff] }
 0x550   : > { %v3664_v32 = vmul.f32 %v12371_v21, %v12370_v56  ;;  %v3237_v35 = vmul.f32 %v9648_v5, %v3221_v2  ;;  %v9744_v50 = vand.u32 2147483647, %v9730_v28  ;;  %v4227_v13 = vadd.f32 %v4211_v42, %v4191_v4  ;;  %12374 = vst [vmem:[#allocation69_spill] sm:$0xff] %v9750_v52  ;;  %v9754_v14 = vld [vmem:[#allocation2 + $0x191] sm:$0xff]  ;;  %v12378_v5 = vld [vmem:[#allocation90_spill] sm:$0xff] }
 0x551   : > { %v2349_v6 = vadd.f32 %v2333_v51, %v2313_v43  ;;  %v9748_v61 = vmul.f32 %v12373_v11, %v12372_v44  ;;  %v9752_v51 = vld [vmem:[#allocation3 + $0x222] sm:$0xff]  ;;  %12376 = vst [vmem:[#allocation109_spill] sm:$0xff] %v9754_v14  ;;  %v2441_v54 = vmul.f32 %v9754_v14, %v12377_v53  ;;  %v3644_v56 = vadd.f32 %v3628_v39, %v3608_v16  ;;  %v12380_v42 = vld [vmem:[#allocation56_spill] sm:$0xff] }
 0x552   : > { %12375 = vst [vmem:[#allocation87_spill] sm:$0xff] %v9752_v51  ;;  %v12379_v2 = vld [vmem:[#allocation78_spill] sm:$0xff]  ;;  %v3317_v34 = vmul.f32 %v5801_v62, %v3237_v35  ;;  %v4478_v4 = vadd.f32 %v12380_v42, %v4442_v59  ;;  %v3046_v44 = vmul.f32 0.3275911, %v9744_v50  ;;  %v12386_v39 = vld [vmem:[#allocation80_spill] sm:$0xff]  ;;  %v4263_v59 = vadd.f32 %v9685_v23, %v4227_v13  ;;  %v12387_v35 = vld [vmem:[#allocation127_spill] sm:$0xff] }
 0x553   : > { %v2385_v43 = vadd.f32 %v2369_v7, %v2349_v6  ;;  %v3700_v21 = vmul.f32 %v12379_v2, %v12378_v5  ;;  %v12381_v11 = vld [vmem:[#allocation66_spill] sm:$0xff]  ;;  %v12384_v6 = vld [vmem:[#allocation59_spill] sm:$0xff]  ;;  %v3680_v53 = vadd.f32 %v3664_v32, %v3644_v56  ;;  %v3736_v16 = vmul.f32 %v12386_v39, %v9750_v52 }
 0x554   : > { %v12382_v30 = vld [vmem:[#allocation38_spill] sm:$0xff]  ;;  %v3333_v2 = vsub.f32 1.0, %v3317_v34  ;;  %v3062_v62 = vadd.f32 1.0, %v3046_v44  ;;  %v9775_v42 = vmul.f32 %v12387_v35, %v9752_v51  ;;  %v12389_v5 = vld [vmem:[#allocation51_spill] sm:$0xff]  ;;  %vm2998_vm13 = vcmp.lt.f32.partialorder %v9730_v28, 0.0  ;;  %v12435_v28 = vld [vmem:[#allocation40_spill] sm:$0xff] }
 0x555   : > { %v9764_v33 = vmul.f32 %v12382_v30, %v12381_v11  ;;  %v2421_v7 = vadd.f32 %v2405_v48, %v2385_v43  ;;  %v12385_v25 = vld [vmem:[#allocation50_spill] sm:$0xff]  ;;  %v12388_v11 = vld [vmem:[#allocation45_spill] sm:$0xff]  ;;  %v3716_v48 = vadd.f32 %v3700_v21, %v3680_v53  ;;  %v12394_v44 = vld [vmem:[#allocation55_spill] sm:$0xff]  ;;  %v4299_v53 = vadd.f32 %v4283_v15, %v4263_v59 }
 0x556   : > { %v2477_v29 = vmul.f32 %v12385_v25, %v12384_v6  ;;  %v2513_v14 = vmul.f32 %v12389_v5, %v12388_v11  ;;  %v12390_v43 = vld [vmem:[#allocation81_spill] sm:$0xff]  ;;  %v3349_v32 = vmul.f32 %v3333_v2, %v9660_v17  ;;  %v12392_v56 = vld [vmem:[#allocation62_spill] sm:$0xff]  ;;  %5802 = vrcp.f32 %v3062_v62  ;;  %v9791_v17 = vld [vmem:[#allocation2 + $0xf2] sm:$0xff] }
 0x557   : > { %v2457_v30 = vadd.f32 %v2441_v54, %v2421_v7  ;;  %v3812_v6 = vmul.f32 %v12391_v8, %v12390_v43  ;;  %v4500_v39 = vadd.f32 %v12392_v56, %v4478_v4  ;;  %v12393_v34 = vld [vmem:[#allocation54_spill] sm:$0xff]  ;;  %v3752_v54 = vadd.f32 %v3736_v16, %v3716_v48  ;;  %v12396_v7 = vld [vmem:[#allocation83_spill] sm:$0xff]  ;;  %12400 = vst [vmem:[#allocation135_spill] sm:$0xff] %v9791_v17  ;;  %v12401_v2 = vld [vmem:[#allocation61_spill] sm:$0xff] }
 0x558   : > { %v2549_v13 = vmul.f32 %v12393_v34, %v9766_v12  ;;  %v12395_v35 = vld [vmem:[#allocation74_spill] sm:$0xff]  ;;  %v3365_v21 = vadd.f32 1.0, %v3349_v32  ;;  %v12399_v8 = vld [vmem:[#allocation115_spill] sm:$0xff]  ;;  %v2697_v4 = vmul.f32 %v9791_v17, %v12401_v2  ;;  %v12405_v16 = vld [vmem:[#allocation88_spill] sm:$0xff]  ;;  %v3254_v59 = vsub.f32 0.0, %v9744_v50 }
 0x559   : > { %v2493_v23 = vadd.f32 %v2477_v29, %v2457_v30  ;;  %v2625_v51 = vmul.f32 %v12395_v35, %v12394_v44  ;;  %v12397_v25 = vld [vmem:[#allocation110_spill] sm:$0xff]  ;;  %v12402_v34 = vld [vmem:[#allocation63_spill] sm:$0xff]  ;;  %v12403_v29 = vld [vmem:[#allocation93_spill] sm:$0xff]  ;;  %v3828_v56 = vadd.f32 %v3812_v6, %v3752_v54  ;;  %v9811_v6 = vmul.f32 %v12340_v10, %v12345_v22 }
 0x55a   : > { %v3848_v5 = vmul.f32 %v12397_v25, %v12396_v7  ;;  %v12398_v11 = vld [vmem:[#allocation58_spill] sm:$0xff]  ;;  %v2733_v30 = vmul.f32 %v12403_v29, %v12402_v34  ;;  %v9797_v35 = vld [vmem:[#allocation3 + $0xf1] sm:$0xff]  ;;  %v3381_v15 = vmul.f32 %v3365_v21, %v9651_v38  ;;  %v12409_v2 = vld [vmem:[#allocation65_spill] sm:$0xff]  ;;  %v4335_v21 = vadd.f32 %v9720_v57, %v4299_v53 }
 0x55b   : > { %v2661_v43 = vmul.f32 %v12399_v8, %v12398_v11  ;;  %v2529_v62 = vadd.f32 %v2513_v14, %v2493_v23  ;;  %12404 = vst [vmem:[#allocation57_spill] sm:$0xff] %v9797_v35  ;;  %v3884_v48 = vmul.f32 %v9797_v35, %v12405_v16  ;;  %v12406_v32 = vld [vmem:[#allocation64_spill] sm:$0xff]  ;;  %v12410_v29 = vld [vmem:[#allocation89_spill] sm:$0xff]  ;;  %v12412_v17 = vld [vmem:[#allocation30_spill] sm:$0xff]  ;;  %v3270_v57 = vmul.f32 %v3254_v59, %v9744_v50 }
 0x55c   : > { %v12407_v11 = vld [vmem:[#allocation60_spill] sm:$0xff]  ;;  %v3864_v54 = vadd.f32 %v3848_v5, %v3828_v56  ;;  %v12411_v16 = vld [vmem:[#allocation97_spill] sm:$0xff]  ;;  %v4516_v38 = vmul.f32 %v4500_v39, %v3381_v15  ;;  %v12413_v35 = vld [vmem:[#allocation107_spill] sm:$0xff] }
 0x55d   : > { %v2769_v8 = vmul.f32 %v12407_v11, %v12406_v32  ;;  %v9805_v44 = vld [vmem:[#allocation2 + $0x192] sm:$0xff]  ;;  %v2565_v23 = vadd.f32 %v2549_v13, %v2529_v62  ;;  %v3920_v34 = vmul.f32 %v12411_v16, %v12410_v29  ;;  %v1898_v32 = vmul.f32 %v12413_v35, %v12412_v17  ;;  %v12418_v22 = vld [vmem:[#allocation101_spill] sm:$0xff]  ;;  %v12427_v50 = vld [vmem:[#allocation86_spill] sm:$0xff] }
 0x55e   : > { %12408 = vst [vmem:[#allocation73_spill] sm:$0xff] %v9805_v44  ;;  %v2805_v14 = vmul.f32 %v9805_v44, %v12409_v2  ;;  %v12414_v11 = vld [vmem:[#allocation31_spill] sm:$0xff]  ;;  %v12415_v7 = vld [vmem:[#allocation120_spill] sm:$0xff]  ;;  %v3900_v62 = vadd.f32 %v3884_v48, %v3864_v54  ;;  %v9824_v5 = vld [vmem:[#allocation2 + $0x100] sm:$0xff]  ;;  %5537 = vmatmul.mubr.msk.f32.gmra.mrb[8].mxu0 %vm704_vm0, %v4516_v38  ;;  %5569 = vmatmul.mubr.msk.f32.gmra.mrb[8].mxu1 %vm704_vm0, %v4516_v38 }
 0x55f   : > { %v1934_v25 = vmul.f32 %v12415_v7, %v12414_v11  ;;  %v9820_v12 = vld [vmem:[#allocation2 + $0x232] sm:$0xff]  ;;  %v2641_v13 = vadd.f32 %v2625_v51, %v2565_v23  ;;  %12419 = vst [vmem:[#allocation52_spill] sm:$0xff] %v9824_v5  ;;  %v12421_v35 = vld [vmem:[#allocation33_spill] sm:$0xff]  ;;  %v12424_v23 = vld [vmem:[#allocation82_spill] sm:$0xff]  ;;  %v4371_v38 = vadd.f32 %v9736_v45, %v4335_v21 }
 0x560   : > { %12416 = vst [vmem:[#allocation113_spill] sm:$0xff] %v9820_v12  ;;  %v12417_v2 = vld [vmem:[#allocation91_spill] sm:$0xff]  ;;  %v12420_v56 = vld [vmem:[#allocation32_spill] sm:$0xff]  ;;  %v9852_v21 = vld [vmem:[#allocation2 + $0x1a0] sm:$0xff] }
 0x561   : > { %v3956_v10 = vmul.f32 %v12418_v22, %v12417_v2  ;;  %v1970_v39 = vmul.f32 %v9824_v5, %v12420_v56  ;;  %v1950_v53 = vadd.f32 %v1934_v25, %v1898_v32  ;;  %v12422_v16 = vld [vmem:[#allocation103_spill] sm:$0xff]  ;;  %v2677_v51 = vadd.f32 %v2661_v43, %v2641_v13  ;;  %v12426_v7 = vld [vmem:[#allocation92_spill] sm:$0xff]  ;;  %v9839_v5 = vpop.eup %5802  ;;  %12431 = vst [vmem:[#allocation108_spill] sm:$0xff] %v9852_v21 }
 0x562   : > { %v2006_v15 = vmul.f32 %v12422_v16, %v12421_v35  ;;  %v12423_v48 = vld [vmem:[#allocation111_spill] sm:$0xff]  ;;  %v3936_v2 = vadd.f32 %v3920_v34, %v3900_v62  ;;  %v2913_v25 = vmul.f32 %v12427_v50, %v9820_v12  ;;  %v12429_v16 = vld [vmem:[#allocation121_spill] sm:$0xff]  ;;  %v3110_v13 = vmul.f32 1.0614054, %v9839_v5  ;;  %v12430_v62 = vld [vmem:[#allocation94_spill] sm:$0xff] }
 0x563   : > { %v2877_v54 = vmul.f32 %v12424_v23, %v12423_v48  ;;  %v9835_v11 = vld [vmem:[#allocation3 + $0x191] sm:$0xff]  ;;  %v1986_v59 = vadd.f32 %v1970_v39, %v1950_v53  ;;  %v2713_v23 = vadd.f32 %v2697_v4, %v2677_v51  ;;  %v4028_v48 = vmul.f32 %v12430_v62, %v9482_v31 }
 0x564   : > { %12425 = vst [vmem:[#allocation129_spill] sm:$0xff] %v9835_v11  ;;  %v3992_v56 = vmul.f32 %v9835_v11, %v12426_v7  ;;  %v12428_v32 = vld [vmem:[#allocation35_spill] sm:$0xff]  ;;  %v3972_v34 = vadd.f32 %v3956_v10, %v3936_v2  ;;  %v3296_v7 = vmul.f32 1.442695, %v3270_v57  ;;  %v12432_v50 = vld [vmem:[#allocation36_spill] sm:$0xff]  ;;  %v9859_v2 = vmul.f32 0.5, %v9716_v37 }
 0x565   : > { %v2042_v43 = vmul.f32 %v12429_v16, %v12428_v32  ;;  %v9850_v35 = vld [vmem:[#allocation3 + $0x231] sm:$0xff]  ;;  %v2022_v45 = vadd.f32 %v2006_v15, %v1986_v59  ;;  %v2078_v39 = vmul.f32 %v9852_v21, %v12432_v50  ;;  %v3126_v53 = vadd.f32 -1.4531521, %v3110_v13 }
 0x566   : > { %v2749_v32 = vadd.f32 %v2733_v30, %v2713_v23  ;;  %v4008_v12 = vadd.f32 %v3992_v56, %v3972_v34  ;;  %v12433_v4 = vld [vmem:[#allocation96_spill] sm:$0xff]  ;;  %v4407_v31 = vadd.f32 %v9748_v61, %v4371_v38  ;;  %v2114_v15 = vmul.f32 %v12353_v20, %v12355_v63  ;;  %v9867_v56 = vld [vmem:[#allocation2 + $0x240] sm:$0xff] }
 0x567   : > { %v4064_v10 = vmul.f32 %v12433_v4, %v9663_v9  ;;  %v2058_v57 = vadd.f32 %v2042_v43, %v2022_v45  ;;  %v3142_v51 = vmul.f32 %v9839_v5, %v3126_v53  ;;  %v4100_v30 = vmul.f32 %v12279_v1, %v9850_v35  ;;  %v9891_v53 = vld [vmem:[#allocation3 + $0x100] sm:$0xff] }
 0x568   : > { %v2785_v59 = vadd.f32 %v2769_v8, %v2749_v32  ;;  %v4044_v62 = vadd.f32 %v4028_v48, %v4008_v12  ;;  %v12434_v23 = vmov 1.0   ;;  %5804 = vpow2.f32 %v3296_v7  ;;  %12436 = vst [vmem:[#allocation125_spill] sm:$0xff] %v9891_v53 }
 0x569   : > { %v9872_v37 = vsel %vm2998_vm13, -1.0, %v12434_v23  ;;  %v2094_v61 = vadd.f32 %v2078_v39, %v2058_v57  ;;  %v2150_v38 = vmul.f32 %v12356_v40, %v9669_v26  ;;  %v3158_v63 = vadd.f32 1.4214138, %v3142_v51  ;;  %v12437_v51 = vld [vmem:[#allocation106_spill] sm:$0xff] }
 0x56a   : > { %v2821_v43 = vadd.f32 %v2805_v14, %v2785_v59  ;;  %v4080_v13 = vadd.f32 %v4064_v10, %v4044_v62  ;;  %v4176_v12 = vmul.f32 %v9536_v47, %v12354_v55  ;;  %v4443_v8 = vadd.f32 %v9764_v33, %v4407_v31 }
 0x56b   : > { %v4212_v48 = vmul.f32 %v9681_v3, %v12287_v46  ;;  %v2130_v32 = vadd.f32 %v2114_v15, %v2094_v61  ;;  %v2186_v34 = vmul.f32 %v12435_v28, %v9867_v56  ;;  %v3174_v7 = vmul.f32 %v9839_v5, %v3158_v63  ;;  %v12438_v61 = vld [vmem:[#allocation100_spill] sm:$0xff] }
 0x56c   : > { %v2857_v45 = vadd.f32 %v9811_v6, %v2821_v43  ;;  %v4116_v39 = vadd.f32 %v4100_v30, %v4080_v13  ;;  %v3449_v14 = vmul.f32 %v12359_v49, %v12276_v60  ;;  %v2262_v47 = vmul.f32 %v12361_v19, %v12272_v27  ;;  %v9895_v6 = vld [vmem:[#allocation3 + $0xf2] sm:$0xff] }
 0x56d   : > { %v2166_v62 = vadd.f32 %v2150_v38, %v2130_v32  ;;  %v3485_v33 = vmul.f32 %v9697_v24, %v12235_v36  ;;  %v3521_v10 = vmul.f32 %v9891_v53, %v12236_v18  ;;  %v3190_v31 = vadd.f32 -0.28449672, %v3174_v7  ;;  %v12439_v32 = vld [vmem:[#allocation114_spill] sm:$0xff]  ;;  %v12443_v27 = vld [vmem:[#allocation75_spill] sm:$0xff]  ;;  %v9919_v18 = vld [vmem:[#allocation3 + $0x1a0] sm:$0xff] }
 0x56e   : > { %v2893_v57 = vadd.f32 %v2877_v54, %v2857_v45  ;;  %v4192_v15 = vadd.f32 %v4176_v12, %v4116_v39  ;;  %v4248_v49 = vmul.f32 %v9895_v6, %v12437_v51  ;;  %v2298_v19 = vmul.f32 %v9708_v0, %v12360_v41  ;;  %v12440_v54 = vld [vmem:[#allocation29_spill] sm:$0xff]  ;;  %v12442_v39 = vld [vmem:[#allocation43_spill] sm:$0xff]  ;;  %12450 = vst [vmem:[#allocation124_spill] sm:$0xff] %v9919_v18 }
 0x56f   : > { %v2202_v59 = vadd.f32 %v2186_v34, %v2166_v62  ;;  %v3501_v30 = vadd.f32 %v3485_v33, %v3449_v14  ;;  %v3557_v38 = vmul.f32 %v12438_v61, %v12280_v58  ;;  %v3206_v63 = vmul.f32 %v9839_v5, %v3190_v31  ;;  %v9906_v45 = vld [vmem:[#allocation2 + $0x101] sm:$0xff] }
 0x570   : > { %v2929_v43 = vadd.f32 %v2913_v25, %v2893_v57  ;;  %v4228_v13 = vadd.f32 %v4212_v48, %v4192_v15  ;;  %v4284_v12 = vmul.f32 %v12440_v54, %v12439_v32  ;;  %12441 = vst [vmem:[#allocation112_spill] sm:$0xff] %v9906_v45  ;;  %v2334_v34 = vmul.f32 %v9906_v45, %v12442_v39  ;;  %v12444_v41 = vld [vmem:[#allocation53_spill] sm:$0xff]  ;;  %v12446_v25 = vld [vmem:[#allocation116_spill] sm:$0xff]  ;;  %v12447_v48 = vld [vmem:[#allocation134_spill] sm:$0xff] }
 0x571   : > { %v2278_v7 = vadd.f32 %v2262_v47, %v2202_v59  ;;  %v3537_v62 = vadd.f32 %v3521_v10, %v3501_v30  ;;  %v3593_v14 = vmul.f32 %v12444_v41, %v12443_v27  ;;  %v3222_v33 = vadd.f32 0.2548296, %v3206_v63  ;;  %v12445_v0 = vld [vmem:[#allocation85_spill] sm:$0xff]  ;;  %v12448_v47 = vld [vmem:[#allocation46_spill] sm:$0xff]  ;;  %v12449_v59 = vld [vmem:[#allocation131_spill] sm:$0xff] }
 0x572   : > { %v9913_v61 = vadd.f32 %v12445_v0, %v2929_v43  ;;  %v4264_v31 = vadd.f32 %v4248_v49, %v4228_v13  ;;  %v4320_v57 = vmul.f32 %v12447_v48, %v12446_v25  ;;  %v5805_v15 = vpop.eup %5804  ;;  %v2370_v58 = vmul.f32 %v12449_v59, %v12448_v47  ;;  %v12451_v10 = vld [vmem:[#allocation76_spill] sm:$0xff]  ;;  %v12453_v13 = vld [vmem:[#allocation119_spill] sm:$0xff]  ;;  %v12455_v59 = vld [vmem:[#allocation109_spill] sm:$0xff] }
 0x573   : > { %v2314_v54 = vadd.f32 %v2298_v19, %v2278_v7  ;;  %v3573_v32 = vadd.f32 %v3557_v38, %v3537_v62  ;;  %v3629_v30 = vmul.f32 %v9919_v18, %v12451_v10  ;;  %v3238_v63 = vmul.f32 %v9839_v5, %v3222_v33  ;;  %v9927_v43 = vld [vmem:[#allocation3 + $0x192] sm:$0xff]  ;;  %v12456_v47 = vld [vmem:[#allocation90_spill] sm:$0xff]  ;;  %v12457_v27 = vld [vmem:[#allocation77_spill] sm:$0xff] }
 0x574   : > { %v9925_v0 = vmul.f32 0.70710677, %v9913_v61  ;;  %v4300_v49 = vadd.f32 %v4284_v12, %v4264_v31  ;;  %12452 = vst [vmem:[#allocation37_spill] sm:$0xff] %v9927_v43  ;;  %v4356_v19 = vmul.f32 %v9927_v43, %v12453_v13  ;;  %v12454_v39 = vld [vmem:[#allocation47_spill] sm:$0xff]  ;;  %v3665_v25 = vmul.f32 %v12457_v27, %v12456_v47  ;;  %v12458_v18 = vld [vmem:[#allocation66_spill] sm:$0xff]  ;;  %v9940_v41 = vld [vmem:[#allocation3 + $0x240] sm:$0xff] }
 0x575   : > { %v2350_v7 = vadd.f32 %v2334_v34, %v2314_v54  ;;  %v2406_v38 = vmul.f32 %v12455_v59, %v12454_v39  ;;  %v3609_v62 = vadd.f32 %v3593_v14, %v3573_v32  ;;  %v3318_v10 = vmul.f32 %v5805_v15, %v3238_v63  ;;  %v12459_v12 = vld [vmem:[#allocation126_spill] sm:$0xff]  ;;  %12460 = vst [vmem:[#allocation118_spill] sm:$0xff] %v9940_v41  ;;  %v12462_v34 = vld [vmem:[#allocation49_spill] sm:$0xff]  ;;  %v9950_v39 = vld [vmem:[#allocation3 + $0x232] sm:$0xff] }
 0x576   : > { %v9936_v5 = vand.u32 2147483647, %v9925_v0  ;;  %v4336_v33 = vadd.f32 %v4320_v57, %v4300_v49  ;;  %v4392_v31 = vmul.f32 %v12459_v12, %v12458_v18  ;;  %v9942_v13 = vld [vmem:[#allocation2 + $0x1a1] sm:$0xff]  ;;  %v4479_v63 = vadd.f32 %v9775_v42, %v4443_v8  ;;  %12464 = vst [vmem:[#allocation123_spill] sm:$0xff] %v9950_v39  ;;  %v12467_v12 = vld [vmem:[#allocation80_spill] sm:$0xff] }
 0x577   : > { %v2386_v45 = vadd.f32 %v2370_v58, %v2350_v7  ;;  %12461 = vst [vmem:[#allocation39_spill] sm:$0xff] %v9942_v13  ;;  %v2442_v54 = vmul.f32 %v9942_v13, %v12462_v34  ;;  %v3645_v32 = vadd.f32 %v3629_v30, %v3609_v62  ;;  %v12463_v14 = vld [vmem:[#allocation78_spill] sm:$0xff]  ;;  %v3334_v15 = vsub.f32 1.0, %v3318_v10  ;;  %v12465_v27 = vld [vmem:[#allocation45_spill] sm:$0xff]  ;;  %v12468_v10 = vld [vmem:[#allocation87_spill] sm:$0xff] }
 0x578   : > { %v3701_v47 = vmul.f32 %v12463_v14, %v9750_v52  ;;  %v3047_v57 = vmul.f32 0.3275911, %v9936_v5  ;;  %v4372_v49 = vadd.f32 %v4356_v19, %v4336_v33  ;;  %v12466_v58 = vld [vmem:[#allocation50_spill] sm:$0xff]  ;;  %v3737_v34 = vmul.f32 %v12467_v12, %v9940_v41  ;;  %v12479_v52 = vld [vmem:[#allocation57_spill] sm:$0xff] }
 0x579   : > { %v2422_v18 = vadd.f32 %v2406_v38, %v2386_v45  ;;  %v2478_v7 = vmul.f32 %v12466_v58, %v12465_v27  ;;  %v3681_v59 = vadd.f32 %v3665_v25, %v3645_v32  ;;  %v3350_v30 = vmul.f32 %v3334_v15, %v9872_v37  ;;  %v12469_v42 = vld [vmem:[#allocation38_spill] sm:$0xff]  ;;  %v12471_v45 = vld [vmem:[#allocation117_spill] sm:$0xff]  ;;  %v12472_v38 = vld [vmem:[#allocation51_spill] sm:$0xff] }
 0x57a   : > { %v3063_v62 = vadd.f32 1.0, %v3047_v57  ;;  %v9957_v14 = vadd.f32 %v4392_v31, %v4372_v49  ;;  %v9961_v8 = vmul.f32 %v12469_v42, %v12468_v10  ;;  %v9963_v19 = vld [vmem:[#allocation2 + $0x241] sm:$0xff]  ;;  %v2514_v13 = vmul.f32 %v12472_v38, %v12471_v45  ;;  %v12476_v31 = vld [vmem:[#allocation127_spill] sm:$0xff] }
 0x57b   : > { %12470 = vst [vmem:[#allocation48_spill] sm:$0xff] %v9963_v19  ;;  %v2458_v33 = vadd.f32 %v2442_v54, %v2422_v18  ;;  %v3717_v27 = vadd.f32 %v3701_v47, %v3681_v59  ;;  %v12473_v25 = vld [vmem:[#allocation81_spill] sm:$0xff]  ;;  %v12474_v32 = vld [vmem:[#allocation110_spill] sm:$0xff]  ;;  %v3366_v12 = vadd.f32 1.0, %v3350_v30  ;;  %v9972_v15 = vmul.f32 %v12476_v31, %v9950_v39  ;;  %v12478_v18 = vld [vmem:[#allocation83_spill] sm:$0xff] }
 0x57c   : > { %v3813_v58 = vmul.f32 %v12474_v32, %v12473_v25  ;;  %v12475_v41 = vld [vmem:[#allocation62_spill] sm:$0xff]  ;;  %5806 = vrcp.f32 %v3063_v62  ;;  %v3849_v38 = vmul.f32 %v12479_v52, %v12478_v18  ;;  %v12480_v47 = vld [vmem:[#allocation55_spill] sm:$0xff]  ;;  %v12485_v31 = vld [vmem:[#allocation61_spill] sm:$0xff]  ;;  %vm2999_vm14 = vcmp.lt.f32.partialorder %v9925_v0, 0.0 }
 0x57d   : > { %v4501_v37 = vadd.f32 %v12475_v41, %v4479_v63  ;;  %v2494_v57 = vadd.f32 %v2478_v7, %v2458_v33  ;;  %v12477_v49 = vld [vmem:[#allocation54_spill] sm:$0xff]  ;;  %v3753_v54 = vadd.f32 %v3737_v34, %v3717_v27  ;;  %v3382_v59 = vmul.f32 %v3366_v12, %v9859_v2  ;;  %v12481_v32 = vld [vmem:[#allocation115_spill] sm:$0xff]  ;;  %v12489_v18 = vld [vmem:[#allocation88_spill] sm:$0xff] }
 0x57e   : > { %v2550_v42 = vmul.f32 %v12477_v49, %v9963_v19  ;;  %v2626_v30 = vmul.f32 %v12481_v32, %v12480_v47  ;;  %v12482_v25 = vld [vmem:[#allocation58_spill] sm:$0xff]  ;;  %v12483_v63 = vld [vmem:[#allocation135_spill] sm:$0xff]  ;;  %v12487_v49 = vld [vmem:[#allocation60_spill] sm:$0xff]  ;;  %v3255_v32 = vsub.f32 0.0, %v9936_v5  ;;  %v4444_v0 = vadd.f32 %v9961_v8, %v9957_v14 }
 0x57f   : > { %v2662_v62 = vmul.f32 %v12483_v63, %v12482_v25  ;;  %v9983_v45 = vld [vmem:[#allocation2 + $0x102] sm:$0xff]  ;;  %v2530_v33 = vadd.f32 %v2514_v13, %v2494_v57  ;;  %v12486_v39 = vld [vmem:[#allocation63_spill] sm:$0xff]  ;;  %v3829_v27 = vadd.f32 %v3813_v58, %v3753_v54  ;;  %v4517_v12 = vmul.f32 %v4501_v37, %v3382_v59  ;;  %v12490_v52 = vld [vmem:[#allocation64_spill] sm:$0xff] }
 0x580   : > { %12484 = vst [vmem:[#allocation98_spill] sm:$0xff] %v9983_v45  ;;  %v2698_v7 = vmul.f32 %v9983_v45, %v12485_v31  ;;  %v2734_v34 = vmul.f32 %v12487_v49, %v12486_v39  ;;  %v9989_v19 = vld [vmem:[#allocation3 + $0x101] sm:$0xff]  ;;  %v2770_v25 = vmul.f32 %v9805_v44, %v12490_v52  ;;  %v3921_v63 = vmul.f32 %v12418_v22, %v12410_v29  ;;  %v12491_v57 = vld [vmem:[#allocation120_spill] sm:$0xff]  ;;  %v12492_v58 = vld [vmem:[#allocation31_spill] sm:$0xff] }
 0x581   : > { %12488 = vst [vmem:[#allocation128_spill] sm:$0xff] %v9989_v19  ;;  %v3885_v2 = vmul.f32 %v9989_v19, %v12489_v18  ;;  %v2566_v31 = vadd.f32 %v2550_v42, %v2530_v33  ;;  %v3865_v13 = vadd.f32 %v3849_v38, %v3829_v27  ;;  %v1899_v49 = vmul.f32 %v12491_v57, %v12412_v17  ;;  %v12493_v54 = vld [vmem:[#allocation52_spill] sm:$0xff]  ;;  %v10004_v37 = vld [vmem:[#allocation2 + $0x1a2] sm:$0xff]  ;;  %v12496_v52 = vld [vmem:[#allocation91_spill] sm:$0xff] }
 0x582   : > { %v1935_v39 = vmul.f32 %v12493_v54, %v12492_v58  ;;  %5539 = vmatprep.mubr.msk.f32.mxu0 %vm704_vm0, %v4517_v12  ;;  %5571 = vmatprep.mubr.msk.f32.mxu1 %vm704_vm0, %v4517_v12  ;;  %12494 = vst [vmem:[#allocation34_spill] sm:$0xff] %v10004_v37  ;;  %v12495_v59 = vld [vmem:[#allocation65_spill] sm:$0xff]  ;;  %v3957_v22 = vmul.f32 %v9835_v11, %v12496_v52  ;;  %v10010_v42 = vld [vmem:[#allocation2 + $0x110] sm:$0xff]  ;;  %v12498_v38 = vld [vmem:[#allocation32_spill] sm:$0xff] }
 0x583   : > { %v2806_v18 = vmul.f32 %v10004_v37, %v12495_v59  ;;  %12497 = vst [vmem:[#allocation56_spill] sm:$0xff] %v10010_v42  ;;  %v1971_v33 = vmul.f32 %v10010_v42, %v12498_v38  ;;  %v10014_v27 = vld [vmem:[#allocation2 + $0x242] sm:$0xff]  ;;  %v2642_v57 = vadd.f32 %v2626_v30, %v2566_v31  ;;  %v3901_v58 = vadd.f32 %v3885_v2, %v3865_v13  ;;  %v12500_v44 = vld [vmem:[#allocation111_spill] sm:$0xff]  ;;  %v12501_v59 = vld [vmem:[#allocation68_spill] sm:$0xff] }
 0x584   : > { %v1951_v54 = vadd.f32 %v1935_v39, %v1899_v49  ;;  %v12499_v17 = vld [vmem:[#allocation33_spill] sm:$0xff]  ;;  %v3271_v29 = vmul.f32 %v3255_v32, %v9936_v5  ;;  %v2842_v37 = vmul.f32 %v12501_v59, %v12500_v44  ;;  %v12503_v52 = vld [vmem:[#allocation82_spill] sm:$0xff]  ;;  %v12504_v47 = vld [vmem:[#allocation92_spill] sm:$0xff]  ;;  %v3486_v14 = vmul.f32 %v9891_v53, %v12235_v36 }
 0x585   : > { %v2007_v12 = vmul.f32 %v12429_v16, %v12499_v17  ;;  %v12502_v19 = vld [vmem:[#allocation113_spill] sm:$0xff]  ;;  %v2678_v42 = vadd.f32 %v2662_v62, %v2642_v57  ;;  %v3937_v31 = vadd.f32 %v3921_v63, %v3901_v58  ;;  %v12505_v39 = vld [vmem:[#allocation35_spill] sm:$0xff]  ;;  %v12506_v44 = vld [vmem:[#allocation86_spill] sm:$0xff] }
 0x586   : > { %v2878_v11 = vmul.f32 %v12503_v52, %v12502_v19  ;;  %v10023_v45 = vld [vmem:[#allocation3 + $0x1a1] sm:$0xff]  ;;  %v1987_v30 = vadd.f32 %v1971_v33, %v1951_v54  ;;  %v2043_v2 = vmul.f32 %v9852_v21, %v12505_v39  ;;  %v10029_v16 = vpop.eup %5806  ;;  %v2914_v5 = vmul.f32 %v12506_v44, %v10014_v27  ;;  %v10036_v49 = vld [vmem:[#allocation2 + $0x1b0] sm:$0xff] }
 0x587   : > { %v3993_v38 = vmul.f32 %v10023_v45, %v12504_v47  ;;  %v12507_v32 = vld [vmem:[#allocation94_spill] sm:$0xff]  ;;  %12508 = vst [vmem:[#allocation59_spill] sm:$0xff] %v10036_v49  ;;  %v2079_v62 = vmul.f32 %v10036_v49, %v12432_v50  ;;  %v3111_v63 = vmul.f32 1.0614054, %v10029_v16  ;;  %v2714_v58 = vadd.f32 %v2698_v7, %v2678_v42  ;;  %v10050_v49 = vld [vmem:[#allocation2 + $0x250] sm:$0xff]  ;;  %v12517_v36 = vld [vmem:[#allocation53_spill] sm:$0xff] }
 0x588   : > { %v4029_v13 = vmul.f32 %v12507_v32, %v9663_v9  ;;  %v10041_v54 = vld [vmem:[#allocation3 + $0x241] sm:$0xff]  ;;  %v3973_v33 = vadd.f32 %v3957_v22, %v3937_v31  ;;  %v2023_v57 = vadd.f32 %v2007_v12, %v1987_v30  ;;  %v10044_v39 = vmul.f32 0.5, %v9913_v61  ;;  %v10080_v8 = vld [vmem:[#allocation3 + $0x110] sm:$0xff] }
 0x589   : > { %v3298_v47 = vmul.f32 1.442695, %v3271_v29  ;;  %v4065_v21 = vmul.f32 %v12433_v4, %v9850_v35  ;;  %v2115_v9 = vmul.f32 %v12353_v20, %v9669_v26  ;;  %v3127_v32 = vadd.f32 -1.4531521, %v3111_v63  ;;  %12509 = vst [vmem:[#allocation84_spill] sm:$0xff] %v10080_v8 }
 0x58a   : > { %v2750_v17 = vadd.f32 %v2734_v34, %v2714_v58  ;;  %v4009_v50 = vadd.f32 %v3993_v38, %v3973_v33  ;;  %v2059_v7 = vadd.f32 %v2043_v2, %v2023_v57  ;;  %v10055_v22 = vsel %vm2999_vm14, -1.0, %v12434_v23  ;;  %v10070_v33 = vld [vmem:[#allocation3 + $0x102] sm:$0xff] }
 0x58b   : > { %v4101_v29 = vmul.f32 %v12279_v1, %v10041_v54  ;;  %v4177_v61 = vmul.f32 %v9681_v3, %v12354_v55  ;;  %v2151_v26 = vmul.f32 %v12356_v40, %v9867_v56  ;;  %v3143_v34 = vmul.f32 %v10029_v16, %v3127_v32 }
 0x58c   : > { %v2786_v42 = vadd.f32 %v2770_v25, %v2750_v17  ;;  %v4045_v38 = vadd.f32 %v4029_v13, %v4009_v50  ;;  %v2095_v12 = vadd.f32 %v2079_v62, %v2059_v7  ;;  %5808 = vpow2.f32 %v3298_v47  ;;  %v12510_v25 = vld [vmem:[#allocation71_spill] sm:$0xff]  ;;  %v12511_v13 = vld [vmem:[#allocation41_spill] sm:$0xff]  ;;  %v12512_v62 = vld [vmem:[#allocation122_spill] sm:$0xff] }
 0x58d   : > { %v4213_v31 = vmul.f32 %v9895_v6, %v12287_v46  ;;  %v2187_v30 = vmul.f32 %v12435_v28, %v10050_v49  ;;  %v3159_v2 = vadd.f32 1.4214138, %v3143_v34  ;;  %v10074_v17 = vmul.f32 %v10070_v33, %v12437_v51  ;;  %v12515_v34 = vld [vmem:[#allocation112_spill] sm:$0xff] }
 0x58e   : > { %v2822_v3 = vadd.f32 %v2806_v18, %v2786_v42  ;;  %v4081_v63 = vadd.f32 %v4065_v21, %v4045_v38  ;;  %v2131_v58 = vadd.f32 %v2115_v9, %v2095_v12  ;;  %v3450_v50 = vmul.f32 %v9697_v24, %v12276_v60  ;;  %v12513_v9 = vld [vmem:[#allocation114_spill] sm:$0xff]  ;;  %v12516_v12 = vld [vmem:[#allocation72_spill] sm:$0xff] }
 0x58f   : > { %v3522_v47 = vmul.f32 %v10080_v8, %v12510_v25  ;;  %v3175_v21 = vmul.f32 %v10029_v16, %v3159_v2  ;;  %v2263_v57 = vmul.f32 %v12512_v62, %v12511_v13  ;;  %v10089_v7 = vmul.f32 %v12447_v48, %v12513_v9  ;;  %v12514_v24 = vld [vmem:[#allocation42_spill] sm:$0xff]  ;;  %v12519_v48 = vld [vmem:[#allocation75_spill] sm:$0xff]  ;;  %v12520_v62 = vld [vmem:[#allocation124_spill] sm:$0xff] }
 0x590   : > { %v2858_v18 = vadd.f32 %v2842_v37, %v2822_v3  ;;  %v2167_v32 = vadd.f32 %v2151_v26, %v2131_v58  ;;  %v2299_v42 = vmul.f32 %v12515_v34, %v12514_v24  ;;  %v3502_v38 = vadd.f32 %v3486_v14, %v3450_v50  ;;  %v12518_v26 = vld [vmem:[#allocation116_spill] sm:$0xff]  ;;  %v10103_v14 = vld [vmem:[#allocation3 + $0x1a2] sm:$0xff] }
 0x591   : > { %v3558_v53 = vmul.f32 %v12517_v36, %v12516_v12  ;;  %v3191_v60 = vadd.f32 -0.28449672, %v3175_v21  ;;  %v4117_v8 = vadd.f32 %v4101_v29, %v4081_v63  ;;  %v4480_v37 = vadd.f32 %v9972_v15, %v4444_v0  ;;  %12521 = vst [vmem:[#allocation74_spill] sm:$0xff] %v10103_v14  ;;  %v12522_v36 = vld [vmem:[#allocation119_spill] sm:$0xff]  ;;  %v12524_v15 = vld [vmem:[#allocation126_spill] sm:$0xff] }
 0x592   : > { %v2894_v25 = vadd.f32 %v2878_v11, %v2858_v18  ;;  %v2203_v2 = vadd.f32 %v2187_v30, %v2167_v32  ;;  %v10098_v3 = vmul.f32 %v9927_v43, %v12518_v26  ;;  %v3538_v58 = vadd.f32 %v3522_v47, %v3502_v38  ;;  %v10109_v30 = vld [vmem:[#allocation3 + $0x242] sm:$0xff]  ;;  %v10115_v63 = vld [vmem:[#allocation2 + $0x111] sm:$0xff] }
 0x593   : > { %v3594_v9 = vmul.f32 %v12520_v62, %v12519_v48  ;;  %v3207_v24 = vmul.f32 %v10029_v16, %v3191_v60  ;;  %v10107_v11 = vmul.f32 %v10103_v14, %v12522_v36  ;;  %12523 = vst [vmem:[#allocation93_spill] sm:$0xff] %v10109_v30  ;;  %v10113_v0 = vmul.f32 %v12524_v15, %v12468_v10  ;;  %v12526_v47 = vld [vmem:[#allocation43_spill] sm:$0xff]  ;;  %v12548_v43 = vld [vmem:[#allocation50_spill] sm:$0xff] }
 0x594   : > { %v2930_v50 = vadd.f32 %v2914_v5, %v2894_v25  ;;  %v2279_v29 = vadd.f32 %v2263_v57, %v2203_v2  ;;  %12525 = vst [vmem:[#allocation97_spill] sm:$0xff] %v10115_v63  ;;  %v2335_v21 = vmul.f32 %v10115_v63, %v12526_v47  ;;  %v3574_v60 = vadd.f32 %v3558_v53, %v3538_v58  ;;  %v10119_v5 = vld [vmem:[#allocation3 + $0x1b0] sm:$0xff]  ;;  %v12528_v25 = vld [vmem:[#allocation76_spill] sm:$0xff]  ;;  %v10126_v57 = vld [vmem:[%s11626_s14] ss:$0 sm:$0xff] }
 0x595   : > { %12527 = vst [vmem:[#allocation107_spill] sm:$0xff] %v10119_v5  ;;  %v3630_v18 = vmul.f32 %v10119_v5, %v12528_v25  ;;  %v3223_v32 = vadd.f32 0.2548296, %v3207_v24  ;;  %12529 = vst [vmem:[#allocation101_spill] sm:$0xff] %v10126_v57  ;;  %v4193_v38 = vadd.f32 %v4177_v61, %v4117_v8  ;;  %v4502_v36 = vadd.f32 %v12475_v41, %v4480_v37  ;;  %v12530_v53 = vld [vmem:[#allocation46_spill] sm:$0xff]  ;;  %v12531_v58 = vld [vmem:[#allocation109_spill] sm:$0xff] }
 0x596   : > { %v10129_v10 = vadd.f32 %v10126_v57, %v2930_v50  ;;  %v2315_v2 = vadd.f32 %v2299_v42, %v2279_v29  ;;  %v5809_v15 = vpop.eup %5808  ;;  %v2371_v47 = vmul.f32 %v12531_v58, %v12530_v53  ;;  %v3610_v48 = vadd.f32 %v3594_v9, %v3574_v60  ;;  %v12532_v63 = vld [vmem:[#allocation69_spill] sm:$0xff]  ;;  %v12534_v26 = vld [vmem:[#allocation123_spill] sm:$0xff]  ;;  %v12535_v50 = vld [vmem:[#allocation38_spill] sm:$0xff] }
 0x597   : > { %v12533_v25 = vld [vmem:[#allocation77_spill] sm:$0xff]  ;;  %v3239_v5 = vmul.f32 %v10029_v16, %v3223_v32  ;;  %v10142_v57 = vmul.f32 %v12535_v50, %v12534_v26  ;;  %v12537_v61 = vld [vmem:[#allocation127_spill] sm:$0xff]  ;;  %v12543_v60 = vld [vmem:[#allocation118_spill] sm:$0xff]  ;;  %v4229_v53 = vadd.f32 %v4213_v31, %v4193_v38 }
 0x598   : > { %v3666_v24 = vmul.f32 %v12533_v25, %v12532_v63  ;;  %v10138_v14 = vmul.f32 0.70710677, %v10129_v10  ;;  %v10146_v8 = vmul.f32 %v12537_v61, %v10109_v30  ;;  %v10148_v41 = vld [vmem:[#allocation3 + $0x250] sm:$0xff]  ;;  %v2351_v9 = vadd.f32 %v2335_v21, %v2315_v2  ;;  %v12544_v32 = vld [vmem:[#allocation78_spill] sm:$0xff]  ;;  %v12546_v61 = vld [vmem:[#allocation49_spill] sm:$0xff] }
 0x599   : > { %12536 = vst [vmem:[#allocation103_spill] sm:$0xff] %v10142_v57  ;;  %12539 = vst [vmem:[#allocation100_spill] sm:$0xff] %v10148_v41  ;;  %v10150_v42 = vld [vmem:[#allocation2 + $0x251] sm:$0xff]  ;;  %v3646_v16 = vadd.f32 %v3630_v18, %v3610_v48  ;;  %v3702_v58 = vmul.f32 %v12544_v32, %v12543_v60  ;;  %v3319_v25 = vmul.f32 %v5809_v15, %v3239_v5  ;;  %v12547_v57 = vld [vmem:[#allocation117_spill] sm:$0xff] }
 0x59a   : > { %12538 = vst [vmem:[#allocation121_spill] sm:$0xff] %v10146_v8  ;;  %12540 = vst [vmem:[#allocation29_spill] sm:$0xff] %v10150_v42  ;;  %v12541_v37 = vld [vmem:[#allocation47_spill] sm:$0xff]  ;;  %v3032_v50 = vand.u32 2147483647, %v10138_v14  ;;  %v2387_v8 = vadd.f32 %v2371_v47, %v2351_v9  ;;  %v2479_v21 = vmul.f32 %v12548_v43, %v12547_v57  ;;  %v12550_v32 = vld [vmem:[#allocation48_spill] sm:$0xff] }
 0x59b   : > { %v12542_v29 = vld [vmem:[#allocation39_spill] sm:$0xff]  ;;  %v3682_v2 = vadd.f32 %v3666_v24, %v3646_v16  ;;  %v3335_v18 = vsub.f32 1.0, %v3319_v25  ;;  %v12552_v31 = vld [vmem:[#allocation54_spill] sm:$0xff]  ;;  %v12555_v9 = vld [vmem:[#allocation81_spill] sm:$0xff]  ;;  %v4265_v25 = vadd.f32 %v10074_v17, %v4229_v53  ;;  %vm3000_vm15 = vcmp.lt.f32.partialorder %v10138_v14, 0.0 }
 0x59c   : > { %v2407_v63 = vmul.f32 %v12542_v29, %v12541_v37  ;;  %v10157_v26 = vld [vmem:[#allocation2 + $0x1b1] sm:$0xff]  ;;  %v3048_v29 = vmul.f32 0.3275911, %v3032_v50  ;;  %v2551_v38 = vmul.f32 %v12552_v31, %v10150_v42  ;;  %v12557_v43 = vld [vmem:[#allocation58_spill] sm:$0xff]  ;;  %v12560_v31 = vld [vmem:[#allocation61_spill] sm:$0xff] }
 0x59d   : > { %12545 = vst [vmem:[#allocation85_spill] sm:$0xff] %v10157_v26  ;;  %v2443_v30 = vmul.f32 %v10157_v26, %v12546_v61  ;;  %v12549_v37 = vld [vmem:[#allocation80_spill] sm:$0xff]  ;;  %v12551_v15 = vld [vmem:[#allocation51_spill] sm:$0xff]  ;;  %v3718_v47 = vadd.f32 %v3702_v58, %v3682_v2  ;;  %v12556_v26 = vld [vmem:[#allocation57_spill] sm:$0xff]  ;;  %v3351_v24 = vmul.f32 %v3335_v18, %v10055_v22 }
 0x59e   : > { %v3738_v48 = vmul.f32 %v12549_v37, %v10148_v41  ;;  %v2515_v5 = vmul.f32 %v12551_v15, %v12550_v32  ;;  %v2423_v60 = vadd.f32 %v2407_v63, %v2387_v8  ;;  %v12553_v62 = vld [vmem:[#allocation55_spill] sm:$0xff]  ;;  %v3814_v57 = vmul.f32 %v12556_v26, %v12555_v9  ;;  %v12558_v37 = vld [vmem:[#allocation98_spill] sm:$0xff]  ;;  %v12562_v58 = vld [vmem:[#allocation128_spill] sm:$0xff] }
 0x59f   : > { %v12554_v12 = vld [vmem:[#allocation135_spill] sm:$0xff]  ;;  %v3064_v16 = vadd.f32 1.0, %v3048_v29  ;;  %v2663_v41 = vmul.f32 %v12558_v37, %v12557_v43  ;;  %v12564_v22 = vld [vmem:[#allocation73_spill] sm:$0xff]  ;;  %v12565_v18 = vld [vmem:[#allocation64_spill] sm:$0xff] }
 0x5a0   : > { %v2627_v61 = vmul.f32 %v12554_v12, %v12553_v62  ;;  %v2459_v15 = vadd.f32 %v2443_v30, %v2423_v60  ;;  %v10177_v32 = vld [vmem:[#allocation2 + $0x112] sm:$0xff]  ;;  %v3754_v63 = vadd.f32 %v3738_v48, %v3718_v47  ;;  %v3367_v62 = vadd.f32 1.0, %v3351_v24  ;;  %v12566_v17 = vld [vmem:[#allocation34_spill] sm:$0xff]  ;;  %v12568_v60 = vld [vmem:[#allocation65_spill] sm:$0xff] }
 0x5a1   : > { %12559 = vst [vmem:[#allocation134_spill] sm:$0xff] %v10177_v32  ;;  %v2699_v8 = vmul.f32 %v10177_v32, %v12560_v31  ;;  %v12561_v12 = vld [vmem:[#allocation83_spill] sm:$0xff]  ;;  %5810 = vrcp.f32 %v3064_v16  ;;  %v10187_v53 = vmul.f32 %v12566_v17, %v12565_v18  ;;  %v12570_v31 = vld [vmem:[#allocation88_spill] sm:$0xff]  ;;  %v12573_v18 = vld [vmem:[#allocation129_spill] sm:$0xff] }
 0x5a2   : > { %v3850_v2 = vmul.f32 %v12562_v58, %v12561_v12  ;;  %v12563_v26 = vld [vmem:[#allocation63_spill] sm:$0xff]  ;;  %v2495_v43 = vadd.f32 %v2479_v21, %v2459_v15  ;;  %v3830_v48 = vadd.f32 %v3814_v57, %v3754_v63  ;;  %v3383_v16 = vmul.f32 %v3367_v62, %v10044_v39  ;;  %v12572_v15 = vld [vmem:[#allocation89_spill] sm:$0xff]  ;;  %v12574_v17 = vld [vmem:[#allocation30_spill] sm:$0xff] }
 0x5a3   : > { %v2735_v29 = vmul.f32 %v12564_v22, %v12563_v26  ;;  %v10189_v30 = vld [vmem:[#allocation2 + $0x1b2] sm:$0xff]  ;;  %v4301_v22 = vadd.f32 %v10089_v7, %v4265_v25  ;;  %v10205_v21 = vmul.f32 %v12501_v59, %v12502_v19  ;;  %v10213_v39 = vmul.f32 %v12503_v52, %v10014_v27 }
 0x5a4   : > { %12567 = vst [vmem:[#allocation131_spill] sm:$0xff] %v10189_v30  ;;  %v10193_v37 = vmul.f32 %v10189_v30, %v12568_v60  ;;  %v10195_v47 = vld [vmem:[#allocation3 + $0x111] sm:$0xff]  ;;  %v3922_v60 = vmul.f32 %v12573_v18, %v12572_v15  ;;  %v3256_v30 = vsub.f32 0.0, %v3032_v50  ;;  %v2531_v57 = vadd.f32 %v2515_v5, %v2495_v43 }
 0x5a5   : > { %12569 = vst [vmem:[#allocation90_spill] sm:$0xff] %v10195_v47  ;;  %v3886_v24 = vmul.f32 %v10195_v47, %v12570_v31  ;;  %v10201_v26 = vld [vmem:[#allocation2 + $0x252] sm:$0xff]  ;;  %v3866_v63 = vadd.f32 %v3850_v2, %v3830_v48  ;;  %v4518_v31 = vmul.f32 %v4502_v36, %v3383_v16  ;;  %v10217_v47 = vld [vmem:[#allocation2 + $0x120] sm:$0xff]  ;;  %v4337_v2 = vadd.f32 %v10098_v3, %v4301_v22 }
 0x5a6   : > { %12571 = vst [vmem:[#allocation66_spill] sm:$0xff] %v10201_v26  ;;  %v12575_v32 = vld [vmem:[#allocation52_spill] sm:$0xff]  ;;  %v12576_v7 = vld [vmem:[#allocation31_spill] sm:$0xff]  ;;  %12578 = vst [vmem:[#allocation45_spill] sm:$0xff] %v10217_v47  ;;  %v2567_v18 = vadd.f32 %v2551_v38, %v2531_v57  ;;  %v10223_v43 = vmul.f32 %v12506_v44, %v10201_v26 }
 0x5a7   : > { %v1900_v12 = vmul.f32 %v12575_v32, %v12574_v17  ;;  %v12577_v62 = vld [vmem:[#allocation56_spill] sm:$0xff]  ;;  %v3902_v5 = vadd.f32 %v3886_v24, %v3866_v63  ;;  %v12580_v32 = vld [vmem:[#allocation91_spill] sm:$0xff]  ;;  %5540 = vmatmul.mubr.msk.f32.gmra.mrb[10].mxu0 %vm704_vm0, %v4518_v31  ;;  %5572 = vmatmul.mubr.msk.f32.gmra.mrb[10].mxu1 %vm704_vm0, %v4518_v31  ;;  %v12581_v16 = vld [vmem:[#allocation33_spill] sm:$0xff] }
 0x5a8   : > { %v1936_v25 = vmul.f32 %v12577_v62, %v12576_v7  ;;  %v12579_v19 = vld [vmem:[#allocation32_spill] sm:$0xff]  ;;  %v3958_v36 = vmul.f32 %v10023_v45, %v12580_v32  ;;  %v2643_v38 = vadd.f32 %v2627_v61, %v2567_v18  ;;  %v12584_v31 = vld [vmem:[#allocation94_spill] sm:$0xff]  ;;  %v12585_v22 = vld [vmem:[#allocation35_spill] sm:$0xff]  ;;  %v4373_v18 = vadd.f32 %v10107_v11, %v4337_v2 }
 0x5a9   : > { %v1972_v59 = vmul.f32 %v10217_v47, %v12579_v19  ;;  %v12582_v52 = vld [vmem:[#allocation108_spill] sm:$0xff]  ;;  %v3272_v19 = vmul.f32 %v3256_v30, %v3032_v50  ;;  %v3938_v44 = vadd.f32 %v3922_v60, %v3902_v5  ;;  %v10239_v47 = vmul.f32 0.5, %v10129_v10 }
 0x5aa   : > { %v1952_v48 = vadd.f32 %v1936_v25, %v1900_v12  ;;  %v2008_v7 = vmul.f32 %v12582_v52, %v12581_v16  ;;  %v10232_v57 = vld [vmem:[#allocation3 + $0x251] sm:$0xff]  ;;  %v4030_v3 = vmul.f32 %v12584_v31, %v9850_v35  ;;  %v2679_v50 = vadd.f32 %v2663_v41, %v2643_v38  ;;  %v10253_v35 = vld [vmem:[#allocation2 + $0x1c0] sm:$0xff] }
 0x5ab   : > { %v10234_v26 = vld [vmem:[#allocation3 + $0x1b1] sm:$0xff]  ;;  %v3974_v61 = vadd.f32 %v3958_v36, %v3938_v44  ;;  %v4066_v30 = vmul.f32 %v12433_v4, %v10041_v54  ;;  %v10248_v60 = vpop.eup %5810  ;;  %v4102_v10 = vmul.f32 %v12279_v1, %v10232_v57  ;;  %v3300_v41 = vmul.f32 1.442695, %v3272_v19  ;;  %v10269_v19 = vld [vmem:[#allocation2 + $0x260] sm:$0xff] }
 0x5ac   : > { %v12583_v24 = vld [vmem:[#allocation92_spill] sm:$0xff]  ;;  %v1988_v12 = vadd.f32 %v1972_v59, %v1952_v48  ;;  %v12586_v25 = vld [vmem:[#allocation59_spill] sm:$0xff]  ;;  %v3112_v14 = vmul.f32 1.0614054, %v10248_v60  ;;  %v2715_v44 = vadd.f32 %v2699_v8, %v2679_v50  ;;  %v10259_v38 = vsel %vm3000_vm15, -1.0, %v12434_v23 }
 0x5ad   : > { %v3994_v63 = vmul.f32 %v10234_v26, %v12583_v24  ;;  %v2044_v52 = vmul.f32 %v12586_v25, %v12585_v22  ;;  %v12587_v59 = vld [vmem:[#allocation36_spill] sm:$0xff]  ;;  %v4178_v11 = vmul.f32 %v9895_v6, %v12354_v55  ;;  %v4409_v8 = vadd.f32 %v10113_v0, %v4373_v18  ;;  %v12589_v18 = vld [vmem:[#allocation67_spill] sm:$0xff] }
 0x5ae   : > { %v2024_v5 = vadd.f32 %v2008_v7, %v1988_v12  ;;  %v2080_v48 = vmul.f32 %v10253_v35, %v12587_v59  ;;  %v2116_v7 = vmul.f32 %v12353_v20, %v9867_v56  ;;  %v3128_v12 = vadd.f32 -1.4531521, %v3112_v14 }
 0x5af   : > { %v4010_v36 = vadd.f32 %v3994_v63, %v3974_v61  ;;  %v2751_v1 = vadd.f32 %v2735_v29, %v2715_v44  ;;  %v10267_v59 = vmul.f32 %v10070_v33, %v12287_v46  ;;  %v10272_v63 = vld [vmem:[#allocation3 + $0x112] sm:$0xff]  ;;  %v2152_v56 = vmul.f32 %v12356_v40, %v10050_v49  ;;  %v12591_v44 = vld [vmem:[#allocation70_spill] sm:$0xff] }
 0x5b0   : > { %v2060_v2 = vadd.f32 %v2044_v52, %v2024_v5  ;;  %12588 = vst [vmem:[#allocation87_spill] sm:$0xff] %v10272_v63  ;;  %v10276_v6 = vmul.f32 %v10272_v63, %v12437_v51  ;;  %v3144_v29 = vmul.f32 %v10248_v60, %v3128_v12  ;;  %5812 = vpow2.f32 %v3300_v41  ;;  %v12590_v5 = vld [vmem:[#allocation125_spill] sm:$0xff] }
 0x5b1   : > { %v4046_v4 = vadd.f32 %v4030_v3, %v4010_v36  ;;  %v2787_v3 = vadd.f32 %v10187_v53, %v2751_v1  ;;  %v2188_v0 = vmul.f32 %v12435_v28, %v10269_v19  ;;  %v3451_v14 = vmul.f32 %v12590_v5, %v12589_v18  ;;  %v12592_v36 = vld [vmem:[#allocation84_spill] sm:$0xff]  ;;  %v10293_v1 = vld [vmem:[#allocation3 + $0x120] sm:$0xff] }
 0x5b2   : > { %v2096_v52 = vadd.f32 %v2080_v48, %v2060_v2  ;;  %v3487_v23 = vmul.f32 %v12592_v36, %v12591_v44  ;;  %v10288_v48 = vpop.f32.mrb[0].mxu0  ;;  %v10290_v2 = vpop.f32.mrb[0].mxu1  ;;  %v3160_v51 = vadd.f32 1.4214138, %v3144_v29  ;;  %12595 = vst [vmem:[#allocation115_spill] sm:$0xff] %v10293_v1  ;;  %v2264_v5 = vmul.f32 %v12515_v34, %v12511_v13  ;;  %v12599_v28 = vld [vmem:[#allocation72_spill] sm:$0xff] }
 0x5b3   : > { %v4082_v50 = vadd.f32 %v4066_v30, %v4046_v4  ;;  %12593 = vst [vmem:[#allocation110_spill] sm:$0xff] %v10288_v48  ;;  %12594 = vst [vmem:[#allocation62_spill] sm:$0xff] %v10290_v2  ;;  %v2823_v41 = vadd.f32 %v10193_v37, %v2787_v3  ;;  %v12596_v4 = vld [vmem:[#allocation71_spill] sm:$0xff]  ;;  %v10297_v30 = vpop.f32.mrb[1].mxu0  ;;  %v12600_v2 = vld [vmem:[#allocation124_spill] sm:$0xff] }
 0x5b4   : > { %v2132_v61 = vadd.f32 %v2116_v7, %v2096_v52  ;;  %v3523_v53 = vmul.f32 %v10293_v1, %v12596_v4  ;;  %12597 = vst [vmem:[#allocation60_spill] sm:$0xff] %v10297_v30  ;;  %v10299_v7 = vpop.f32.mrb[1].mxu1  ;;  %v3503_v48 = vadd.f32 %v3487_v23, %v3451_v14  ;;  %v3559_v29 = vmul.f32 %v12600_v2, %v12599_v28  ;;  %v10305_v44 = vpop.f32.mrb[2].mxu0  ;;  %v12604_v4 = vld [vmem:[#allocation37_spill] sm:$0xff]  ;;  %v12609_v2 = vld [vmem:[#allocation42_spill] sm:$0xff]  ;;  %v12612_v28 = vld [vmem:[#allocation107_spill] sm:$0xff] }
 0x5b5   : > { %v4118_v12 = vadd.f32 %v4102_v10, %v4082_v50  ;;  %12598 = vst [vmem:[#allocation120_spill] sm:$0xff] %v10299_v7  ;;  %12601 = vst [vmem:[#allocation111_spill] sm:$0xff] %v10305_v44  ;;  %v10307_v37 = vpop.f32.mrb[2].mxu1  ;;  %v3176_v10 = vmul.f32 %v10248_v60, %v3160_v51  ;;  %v2859_v3 = vadd.f32 %v10205_v21, %v2823_v41  ;;  %v12603_v50 = vld [vmem:[#allocation114_spill] sm:$0xff]  ;;  %v10319_v23 = vpop.f32.mrb[3].mxu0  ;;  %v12610_v44 = vld [vmem:[#allocation97_spill] sm:$0xff] }
 0x5b6   : > { %v2168_v52 = vadd.f32 %v2152_v56, %v2132_v61  ;;  %12602 = vst [vmem:[#allocation113_spill] sm:$0xff] %v10307_v37  ;;  %v10313_v30 = vmul.f32 %v12604_v4, %v12603_v50  ;;  %v12605_v56 = vld [vmem:[#allocation116_spill] sm:$0xff]  ;;  %v12606_v61 = vld [vmem:[#allocation74_spill] sm:$0xff]  ;;  %12607 = vst [vmem:[#allocation122_spill] sm:$0xff] %v10319_v23  ;;  %v10321_v34 = vpop.f32.mrb[3].mxu1  ;;  %v2300_v37 = vmul.f32 %v12610_v44, %v12609_v2 }
 0x5b7   : > { %v10317_v7 = vmul.f32 %v12606_v61, %v12605_v56  ;;  %12608 = vst [vmem:[#allocation112_spill] sm:$0xff] %v10321_v34  ;;  %v3539_v13 = vadd.f32 %v3523_v53, %v3503_v48  ;;  %v12611_v51 = vld [vmem:[#allocation75_spill] sm:$0xff]  ;;  %v3192_v41 = vadd.f32 -0.28449672, %v3176_v10  ;;  %v2895_v50 = vadd.f32 %v10213_v39, %v2859_v3  ;;  %v10329_v61 = vld [vmem:[#allocation2 + $0x121] sm:$0xff]  ;;  %v12617_v2 = vld [vmem:[#allocation76_spill] sm:$0xff] }
 0x5b8   : > { %v2204_v14 = vadd.f32 %v2188_v0, %v2168_v52  ;;  %v3595_v21 = vmul.f32 %v12612_v28, %v12611_v51  ;;  %v12613_v1 = vld [vmem:[#allocation103_spill] sm:$0xff]  ;;  %v4194_v36 = vadd.f32 %v4178_v11, %v4118_v12  ;;  %12614 = vst [vmem:[#allocation53_spill] sm:$0xff] %v10329_v61  ;;  %v10333_v52 = vld [vmem:[#allocation3 + $0x1c0] sm:$0xff]  ;;  %v12623_v3 = vld [vmem:[#allocation46_spill] sm:$0xff] }
 0x5b9   : > { %v4445_v4 = vadd.f32 %v12613_v1, %v4409_v8  ;;  %v12615_v23 = vld [vmem:[#allocation43_spill] sm:$0xff]  ;;  %v3575_v0 = vadd.f32 %v3559_v29, %v3539_v13  ;;  %12616 = vst [vmem:[#allocation109_spill] sm:$0xff] %v10333_v52  ;;  %v3631_v48 = vmul.f32 %v10333_v52, %v12617_v2  ;;  %v3208_v53 = vmul.f32 %v10248_v60, %v3192_v41  ;;  %v12621_v1 = vld [vmem:[#allocation126_spill] sm:$0xff]  ;;  %v12627_v51 = vld [vmem:[#allocation121_spill] sm:$0xff] }
 0x5ba   : > { %v2280_v56 = vadd.f32 %v2264_v5, %v2204_v14  ;;  %v2336_v34 = vmul.f32 %v10329_v61, %v12615_v23  ;;  %v2931_v10 = vadd.f32 %v10223_v43, %v2895_v50  ;;  %v10339_v8 = vld [vmem:[#allocation3 + $0x1b2] sm:$0xff]  ;;  %v12625_v41 = vld [vmem:[#allocation118_spill] sm:$0xff]  ;;  %v12626_v61 = vld [vmem:[#allocation77_spill] sm:$0xff]  ;;  %v5813_v50 = vpop.eup %5812 }
 0x5bb   : > { %12618 = vst [vmem:[#allocation69_spill] sm:$0xff] %v10339_v8  ;;  %v12619_v39 = vld [vmem:[#allocation119_spill] sm:$0xff]  ;;  %v3611_v2 = vadd.f32 %v3595_v21, %v3575_v0  ;;  %v3667_v43 = vmul.f32 %v12626_v61, %v12625_v41  ;;  %v3224_v52 = vadd.f32 0.2548296, %v3208_v53  ;;  %v4481_v44 = vadd.f32 %v12627_v51, %v4445_v4  ;;  %v12632_v21 = vld [vmem:[#allocation100_spill] sm:$0xff]  ;;  %v12633_v0 = vld [vmem:[#allocation78_spill] sm:$0xff] }
 0x5bc   : > { %v10343_v11 = vmul.f32 %v10339_v8, %v12619_v39  ;;  %v12620_v12 = vld [vmem:[#allocation123_spill] sm:$0xff]  ;;  %v2316_v29 = vadd.f32 %v2300_v37, %v2280_v56  ;;  %v12628_v39 = vld [vmem:[#allocation101_spill] sm:$0xff]  ;;  %v12635_v4 = vld [vmem:[#allocation38_spill] sm:$0xff] }
 0x5bd   : > { %v10347_v5 = vmul.f32 %v12621_v1, %v12620_v12  ;;  %v10349_v13 = vld [vmem:[#allocation3 + $0x252] sm:$0xff]  ;;  %v10357_v8 = vadd.f32 %v12628_v39, %v2931_v10  ;;  %v4230_v12 = vadd.f32 %v10267_v59, %v4194_v36  ;;  %v10360_v1 = vld [vmem:[#allocation3 + $0x260] sm:$0xff]  ;;  %v3240_v41 = vmul.f32 %v10248_v60, %v3224_v52 }
 0x5be   : > { %12622 = vst [vmem:[#allocation117_spill] sm:$0xff] %v10349_v13  ;;  %v12624_v23 = vld [vmem:[#allocation39_spill] sm:$0xff]  ;;  %12629 = vst [vmem:[#allocation135_spill] sm:$0xff] %v10360_v1  ;;  %v2352_v28 = vadd.f32 %v2336_v34, %v2316_v29  ;;  %v12631_v56 = vld [vmem:[#allocation85_spill] sm:$0xff] }
 0x5bf   : > { %v2372_v14 = vmul.f32 %v12624_v23, %v12623_v3  ;;  %v12630_v37 = vld [vmem:[#allocation47_spill] sm:$0xff]  ;;  %v3647_v23 = vadd.f32 %v3631_v48, %v3611_v2  ;;  %v3703_v3 = vmul.f32 %v12633_v0, %v12632_v21  ;;  %v10368_v53 = vmul.f32 0.70710677, %v10357_v8  ;;  %v12634_v51 = vld [vmem:[#allocation93_spill] sm:$0xff]  ;;  %v12640_v52 = vld [vmem:[#allocation80_spill] sm:$0xff] }
 0x5c0   : > { %v2408_v18 = vmul.f32 %v12631_v56, %v12630_v37  ;;  %v10372_v10 = vmul.f32 %v12635_v4, %v12634_v51  ;;  %v12636_v59 = vld [vmem:[#allocation127_spill] sm:$0xff]  ;;  %v10378_v34 = vld [vmem:[#allocation2 + $0x261] sm:$0xff]  ;;  %v3739_v56 = vmul.f32 %v12640_v52, %v10360_v1  ;;  %v3320_v39 = vmul.f32 %v5813_v50, %v3240_v41  ;;  %v10389_v4 = vld [vmem:[%s11735_s11] ss:$0 sm:$0xff] }
 0x5c1   : > { %v10376_v36 = vmul.f32 %v12636_v59, %v10349_v13  ;;  %v2388_v29 = vadd.f32 %v2372_v14, %v2352_v28  ;;  %v10380_v48 = vld [vmem:[#allocation2 + $0x1c1] sm:$0xff]  ;;  %v3683_v60 = vadd.f32 %v3667_v43, %v3647_v23  ;;  %12641 = vst [vmem:[#allocation73_spill] sm:$0xff] %v10389_v4  ;;  %v4503_v59 = vadd.f32 %v10389_v4, %v4481_v44  ;;  %v12642_v51 = vld [vmem:[#allocation48_spill] sm:$0xff]  ;;  %v12644_v52 = vld [vmem:[#allocation51_spill] sm:$0xff] }
 0x5c2   : > { %12638 = vst [vmem:[#allocation128_spill] sm:$0xff] %v10380_v48  ;;  %v12639_v2 = vld [vmem:[#allocation49_spill] sm:$0xff]  ;;  %v10393_v13 = vand.u32 2147483647, %v10368_v53  ;;  %v4266_v28 = vadd.f32 %v10276_v6, %v4230_v12  ;;  %v3815_v50 = vmul.f32 %v12562_v58, %v12555_v9  ;;  %v3336_v41 = vsub.f32 1.0, %v3320_v39  ;;  %v12645_v44 = vld [vmem:[#allocation54_spill] sm:$0xff] }
 0x5c3   : > { %12637 = vst [vmem:[#allocation57_spill] sm:$0xff] %v10376_v36  ;;  %v2444_v37 = vmul.f32 %v10380_v48, %v12639_v2  ;;  %v2424_v14 = vadd.f32 %v2408_v18, %v2388_v29  ;;  %v12643_v2 = vld [vmem:[#allocation50_spill] sm:$0xff]  ;;  %v3719_v23 = vadd.f32 %v3703_v3, %v3683_v60  ;;  %v2516_v0 = vmul.f32 %v12644_v52, %v10150_v42  ;;  %v12646_v36 = vld [vmem:[#allocation55_spill] sm:$0xff] }
 0x5c4   : > { %v2480_v43 = vmul.f32 %v12643_v2, %v12642_v51  ;;  %v3049_v48 = vmul.f32 0.3275911, %v10393_v13  ;;  %v2552_v4 = vmul.f32 %v12645_v44, %v10378_v34  ;;  %v12647_v6 = vld [vmem:[#allocation98_spill] sm:$0xff]  ;;  %v12648_v29 = vld [vmem:[#allocation83_spill] sm:$0xff]  ;;  %v3352_v60 = vmul.f32 %v3336_v41, %v10259_v38  ;;  %v12652_v44 = vld [vmem:[#allocation61_spill] sm:$0xff] }
 0x5c5   : > { %v2460_v1 = vadd.f32 %v2444_v37, %v2424_v14  ;;  %v2628_v18 = vmul.f32 %v12647_v6, %v12646_v36  ;;  %v3755_v12 = vadd.f32 %v3739_v56, %v3719_v23  ;;  %v12649_v51 = vld [vmem:[#allocation90_spill] sm:$0xff]  ;;  %v4302_v39 = vadd.f32 %v10313_v30, %v4266_v28  ;;  %v12653_v56 = vld [vmem:[#allocation88_spill] sm:$0xff]  ;;  %v12654_v38 = vld [vmem:[#allocation63_spill] sm:$0xff] }
 0x5c6   : > { %v3851_v3 = vmul.f32 %v12649_v51, %v12648_v29  ;;  %v3065_v58 = vadd.f32 1.0, %v3049_v48  ;;  %v12650_v2 = vld [vmem:[#allocation58_spill] sm:$0xff]  ;;  %v3368_v36 = vadd.f32 1.0, %v3352_v60  ;;  %v12656_v28 = vld [vmem:[#allocation64_spill] sm:$0xff]  ;;  %v12657_v41 = vld [vmem:[#allocation131_spill] sm:$0xff]  ;;  %vm3001_vm1 = vcmp.lt.f32.partialorder %v10368_v53, 0.0 }
 0x5c7   : > { %v12651_v9 = vld [vmem:[#allocation134_spill] sm:$0xff]  ;;  %v2496_v52 = vadd.f32 %v2480_v43, %v2460_v1  ;;  %v3831_v14 = vadd.f32 %v3815_v50, %v3755_v12  ;;  %v3923_v12 = vmul.f32 %v10023_v45, %v12572_v15  ;;  %v12663_v45 = vld [vmem:[#allocation45_spill] sm:$0xff]  ;;  %v12693_v53 = vld [vmem:[#allocation119_spill] sm:$0xff] }
 0x5c8   : > { %v2664_v61 = vmul.f32 %v12651_v9, %v12650_v2  ;;  %v10413_v42 = vld [vmem:[#allocation2 + $0x122] sm:$0xff]  ;;  %5814 = vrcp.f32 %v3065_v58  ;;  %v2772_v2 = vmul.f32 %v12657_v41, %v12656_v28  ;;  %v3384_v60 = vmul.f32 %v3368_v36, %v10239_v47 }
 0x5c9   : > { %v2700_v37 = vmul.f32 %v10413_v42, %v12652_v44  ;;  %v10417_v6 = vld [vmem:[#allocation3 + $0x121] sm:$0xff]  ;;  %v2532_v1 = vadd.f32 %v2516_v0, %v2496_v52  ;;  %v3867_v50 = vadd.f32 %v3851_v3, %v3831_v14  ;;  %v4338_v58 = vadd.f32 %v10317_v7, %v4302_v39  ;;  %v12662_v14 = vld [vmem:[#allocation31_spill] sm:$0xff] }
 0x5ca   : > { %v3887_v23 = vmul.f32 %v10417_v6, %v12653_v56  ;;  %v12655_v48 = vld [vmem:[#allocation34_spill] sm:$0xff]  ;;  %v12659_v9 = vld [vmem:[#allocation65_spill] sm:$0xff]  ;;  %v12660_v56 = vld [vmem:[#allocation68_spill] sm:$0xff]  ;;  %v3959_v0 = vmul.f32 %v10234_v26, %v12580_v32  ;;  %v1901_v3 = vmul.f32 %v12577_v62, %v12574_v17  ;;  %v4519_v47 = vmul.f32 %v4503_v59, %v3384_v60  ;;  %v10460_v59 = vpop.f32.mrb[4].mxu0  ;;  %v10462_v60 = vpop.f32.mrb[4].mxu1 }
 0x5cb   : > { %v2736_v30 = vmul.f32 %v12655_v48, %v12654_v38  ;;  %v10425_v43 = vld [vmem:[#allocation2 + $0x1c2] sm:$0xff]  ;;  %v10437_v48 = vmul.f32 %v12660_v56, %v10014_v27  ;;  %v2568_v52 = vadd.f32 %v2552_v4, %v2532_v1  ;;  %v3257_v7 = vsub.f32 0.0, %v10393_v13 }
 0x5cc   : > { %12658 = vst [vmem:[#allocation89_spill] sm:$0xff] %v10425_v43  ;;  %v10429_v44 = vmul.f32 %v10425_v43, %v12659_v9  ;;  %v10441_v28 = vld [vmem:[#allocation2 + $0x262] sm:$0xff]  ;;  %v3903_v9 = vadd.f32 %v3887_v23, %v3867_v50  ;;  %v1937_v43 = vmul.f32 %v12663_v45, %v12662_v14  ;;  %v2009_v62 = vmul.f32 %v12586_v25, %v12581_v16  ;;  %v10475_v16 = vpop.f32.mrb[5].mxu1 }
 0x5cd   : > { %12661 = vst [vmem:[#allocation129_spill] sm:$0xff] %v10441_v28  ;;  %v12664_v36 = vld [vmem:[#allocation66_spill] sm:$0xff]  ;;  %v2644_v1 = vadd.f32 %v2628_v18, %v2568_v52  ;;  %5542 = vmatprep.mubr.msk.f32.mxu0 %vm704_vm0, %v4519_v47  ;;  %5574 = vmatprep.mubr.msk.f32.mxu1 %vm704_vm0, %v4519_v47  ;;  %v4374_v14 = vadd.f32 %v10343_v11, %v4338_v58  ;;  %v10481_v11 = vmul.f32 0.5, %v10357_v8  ;;  %v12668_v47 = vld [vmem:[#allocation96_spill] sm:$0xff] }
 0x5ce   : > { %v12665_v39 = vld [vmem:[#allocation82_spill] sm:$0xff]  ;;  %v3939_v50 = vadd.f32 %v3923_v12, %v3903_v9  ;;  %v1953_v17 = vadd.f32 %v1937_v43, %v1901_v3  ;;  %v4031_v9 = vmul.f32 %v12584_v31, %v10041_v54  ;;  %v10473_v43 = vpop.f32.mrb[5].mxu0  ;;  %v2045_v45 = vmul.f32 %v10253_v35, %v12585_v22  ;;  %v12669_v54 = vld [vmem:[#allocation99_spill] sm:$0xff] }
 0x5cf   : > { %v10450_v27 = vmul.f32 %v12665_v39, %v12664_v36  ;;  %v10452_v56 = vld [vmem:[#allocation3 + $0x1c1] sm:$0xff]  ;;  %v2680_v25 = vadd.f32 %v2664_v61, %v2644_v1  ;;  %v3273_v58 = vmul.f32 %v3257_v7, %v10393_v13  ;;  %v4179_v61 = vmul.f32 %v10070_v33, %v12354_v55 }
 0x5d0   : > { %v3995_v4 = vmul.f32 %v10452_v56, %v12583_v24  ;;  %v10456_v23 = vld [vmem:[#allocation3 + $0x261] sm:$0xff]  ;;  %v3975_v12 = vadd.f32 %v3959_v0, %v3939_v50  ;;  %v4410_v22 = vadd.f32 %v10347_v5, %v4374_v14  ;;  %v4215_v35 = vmul.f32 %v10272_v63, %v12287_v46  ;;  %v12673_v14 = vld [vmem:[#allocation115_spill] sm:$0xff] }
 0x5d1   : > { %v12666_v24 = vld [vmem:[#allocation86_spill] sm:$0xff]  ;;  %v4103_v39 = vmul.f32 %v12669_v54, %v10456_v23  ;;  %v2117_v8 = vmul.f32 %v12353_v20, %v10050_v49  ;;  %v3302_v33 = vmul.f32 1.442695, %v3273_v58  ;;  %v12674_v20 = vld [vmem:[#allocation132_spill] sm:$0xff] }
 0x5d2   : > { %v10469_v18 = vmul.f32 %v12666_v24, %v10441_v28  ;;  %v12667_v52 = vld [vmem:[#allocation130_spill] sm:$0xff]  ;;  %v4067_v24 = vmul.f32 %v12668_v47, %v10232_v57  ;;  %v2716_v28 = vadd.f32 %v2700_v37, %v2680_v25  ;;  %v4011_v36 = vadd.f32 %v3995_v4, %v3975_v12  ;;  %v10490_v1 = vpop.eup %5814  ;;  %v1881_v4 = vld [vmem:[#allocation2 + $0x270] sm:$0xff]  ;;  %v12671_v25 = vld [vmem:[#allocation84_spill] sm:$0xff] }
 0x5d3   : > { %v1989_v3 = vadd.f32 %v12667_v52, %v1953_v17  ;;  %v3113_v13 = vmul.f32 1.0614054, %v10490_v1  ;;  %v2153_v17 = vmul.f32 %v12356_v40, %v10269_v19  ;;  %v12672_v5 = vld [vmem:[#allocation70_spill] sm:$0xff]  ;;  %v12677_v40 = vld [vmem:[#allocation72_spill] sm:$0xff]  ;;  %v12678_v19 = vld [vmem:[#allocation107_spill] sm:$0xff]  ;;  %5816 = vpow2.f32 %v3302_v33 }
 0x5d4   : > { %v2752_v37 = vadd.f32 %v2736_v30, %v2716_v28  ;;  %v4047_v7 = vadd.f32 %v4031_v9, %v4011_v36  ;;  %v3488_v52 = vmul.f32 %v12673_v14, %v12672_v5  ;;  %v10506_v55 = vld [vmem:[#allocation3 + $0x122] sm:$0xff]  ;;  %v12676_v36 = vld [vmem:[#allocation40_spill] sm:$0xff]  ;;  %v3560_v58 = vmul.f32 %v12678_v19, %v12677_v40  ;;  %v12682_v5 = vld [vmem:[#allocation75_spill] sm:$0xff] }
 0x5d5   : > { %v2025_v0 = vadd.f32 %v2009_v62, %v1989_v3  ;;  %v12670_v62 = vld [vmem:[#allocation67_spill] sm:$0xff]  ;;  %v3129_v3 = vadd.f32 -1.4531521, %v3113_v13  ;;  %v12675_v30 = vld [vmem:[#allocation106_spill] sm:$0xff]  ;;  %v2189_v9 = vmul.f32 %v12676_v36, %v1881_v4  ;;  %v12683_v14 = vld [vmem:[#allocation109_spill] sm:$0xff] }
 0x5d6   : > { %v3452_v12 = vmul.f32 %v12671_v25, %v12670_v62  ;;  %v2788_v46 = vadd.f32 %v2772_v2, %v2752_v37  ;;  %v4083_v63 = vadd.f32 %v4067_v24, %v4047_v7  ;;  %v4251_v28 = vmul.f32 %v10506_v55, %v12675_v30  ;;  %v12679_v24 = vld [vmem:[#allocation41_spill] sm:$0xff]  ;;  %v12684_v40 = vld [vmem:[#allocation114_spill] sm:$0xff] }
 0x5d7   : > { %v2061_v50 = vadd.f32 %v2045_v45, %v2025_v0  ;;  %v3145_v0 = vmul.f32 %v10490_v1, %v3129_v3  ;;  %v12680_v37 = vld [vmem:[#allocation97_spill] sm:$0xff]  ;;  %v4446_v3 = vadd.f32 %v10372_v10, %v4410_v22 }
 0x5d8   : > { %v3504_v45 = vadd.f32 %v3488_v52, %v3452_v12  ;;  %v2824_v62 = vadd.f32 %v10429_v44, %v2788_v46  ;;  %v4119_v13 = vadd.f32 %v4103_v39, %v4083_v63  ;;  %v2265_v7 = vmul.f32 %v12680_v37, %v12679_v24  ;;  %v12685_v46 = vld [vmem:[#allocation74_spill] sm:$0xff]  ;;  %v12687_v39 = vld [vmem:[#allocation53_spill] sm:$0xff] }
 0x5d9   : > { %v2097_v49 = vadd.f32 %v12674_v20, %v2061_v50  ;;  %v12681_v50 = vld [vmem:[#allocation95_spill] sm:$0xff]  ;;  %v3596_v20 = vmul.f32 %v12683_v14, %v12682_v5  ;;  %v3161_v4 = vadd.f32 1.4214138, %v3145_v0  ;;  %v4287_v63 = vmul.f32 %v12685_v46, %v12684_v40  ;;  %v12686_v44 = vld [vmem:[#allocation42_spill] sm:$0xff]  ;;  %v12699_v46 = vld [vmem:[#allocation93_spill] sm:$0xff] }
 0x5da   : > { %v3540_v25 = vadd.f32 %v12681_v50, %v3504_v45  ;;  %v2860_v12 = vadd.f32 %v10437_v48, %v2824_v62  ;;  %v4195_v52 = vadd.f32 %v4179_v61, %v4119_v13  ;;  %v12688_v0 = vmov 1.0   ;;  %v12689_v61 = vld [vmem:[#allocation116_spill] sm:$0xff]  ;;  %v12691_v62 = vld [vmem:[#allocation77_spill] sm:$0xff]  ;;  %v12694_v14 = vld [vmem:[#allocation79_spill] sm:$0xff] }
 0x5db   : > { %v2133_v2 = vadd.f32 %v2117_v8, %v2097_v49  ;;  %v2301_v8 = vmul.f32 %v12687_v39, %v12686_v44  ;;  %v3177_v49 = vmul.f32 %v10490_v1, %v3161_v4  ;;  %v3017_v48 = vsel %vm3001_vm1, -1.0, %v12688_v0  ;;  %v12700_v44 = vld [vmem:[#allocation126_spill] sm:$0xff] }
 0x5dc   : > { %v3576_v33 = vadd.f32 %v3560_v58, %v3540_v25  ;;  %v2896_v45 = vadd.f32 %v10450_v27, %v2860_v12  ;;  %v4231_v19 = vadd.f32 %v4215_v35, %v4195_v52  ;;  %v3668_v13 = vmul.f32 %v12691_v62, %v12632_v21  ;;  %v3432_v25 = vld [vmem:[#allocation3 + $0x270] sm:$0xff]  ;;  %v12692_v27 = vld [vmem:[#allocation57_spill] sm:$0xff]  ;;  %v12696_v12 = vld [vmem:[#allocation78_spill] sm:$0xff] }
 0x5dd   : > { %v2169_v36 = vadd.f32 %v2153_v17, %v2133_v2  ;;  %v12690_v17 = vld [vmem:[#allocation69_spill] sm:$0xff]  ;;  %v3193_v2 = vadd.f32 -0.28449672, %v3177_v49  ;;  %v10537_v35 = vadd.f32 %v12692_v27, %v4446_v3  ;;  %v4395_v39 = vmul.f32 %v12700_v44, %v12699_v46  ;;  %v5817_v27 = vpop.eup %5816 }
 0x5de   : > { %v4323_v10 = vmul.f32 %v12690_v17, %v12689_v61  ;;  %v3612_v22 = vadd.f32 %v3596_v20, %v3576_v33  ;;  %v2932_v58 = vadd.f32 %v10469_v18, %v2896_v45  ;;  %v4267_v37 = vadd.f32 %v4251_v28, %v4231_v19  ;;  %v12695_v20 = vld [vmem:[#allocation135_spill] sm:$0xff]  ;;  %v10553_v3 = vld [vmem:[%s12698_s21] ss:$0 sm:$0xff]  ;;  %v12701_v33 = vld [vmem:[#allocation46_spill] sm:$0xff] }
 0x5df   : > { %v2205_v24 = vadd.f32 %v2189_v9, %v2169_v36  ;;  %v10539_v9 = vld [vmem:[#allocation3 + $0x1c2] sm:$0xff]  ;;  %v3704_v52 = vmul.f32 %v12696_v12, %v12695_v20  ;;  %v3209_v21 = vmul.f32 %v10490_v1, %v3193_v2 }
 0x5e0   : > { %v4359_v5 = vmul.f32 %v10539_v9, %v12693_v53  ;;  %v3648_v4 = vadd.f32 %v12694_v14, %v3612_v22  ;;  %v12697_v36 = vld [vmem:[#allocation101_spill] sm:$0xff]  ;;  %v4303_v28 = vadd.f32 %v4287_v63, %v4267_v37  ;;  %v12707_v14 = vld [vmem:[#allocation136_spill] sm:$0xff]  ;;  %v12709_v12 = vld [vmem:[#allocation110_spill] sm:$0xff] }
 0x5e1   : > { %v2281_v50 = vadd.f32 %v2265_v7, %v2205_v24  ;;  %v10548_v18 = vadd.f32 %v12697_v36, %v2932_v58  ;;  %v12702_v49 = vld [vmem:[#allocation85_spill] sm:$0xff]  ;;  %v12703_v24 = vld [vmem:[#allocation80_spill] sm:$0xff]  ;;  %v3225_v62 = vadd.f32 0.2548296, %v3209_v21  ;;  %v4654_v21 = vadd.f32 %v12709_v12, %v10553_v3 }
 0x5e2   : > { %v2373_v45 = vmul.f32 %v12702_v49, %v12701_v33  ;;  %v3684_v19 = vadd.f32 %v3668_v13, %v3648_v4  ;;  %v3740_v22 = vmul.f32 %v12703_v24, %v3432_v25  ;;  %v4339_v63 = vadd.f32 %v4323_v10, %v4303_v28  ;;  %v12705_v58 = vld [vmem:[#allocation128_spill] sm:$0xff]  ;;  %v12708_v4 = vld [vmem:[#allocation81_spill] sm:$0xff] }
 0x5e3   : > { %v2317_v7 = vadd.f32 %v2301_v8, %v2281_v50  ;;  %v10561_v2 = vmul.f32 0.70710677, %v10548_v18  ;;  %v12704_v8 = vld [vmem:[#allocation47_spill] sm:$0xff]  ;;  %v10568_v50 = vld [vmem:[%s12706_s7] ss:$0 sm:$0xff]  ;;  %v3816_v25 = vmul.f32 %v12649_v51, %v12708_v4  ;;  %v3241_v10 = vmul.f32 %v10490_v1, %v3225_v62  ;;  %4728 = vst.msk [vmem:[%s7103_s3 + $0x8] sm:$0xff] %vm891_vm2, %v4654_v21  ;;  %s10754_s7 = scalar_lea.hbm %s12747_s15, %s5275_s6 }
 0x5e4   : > { %v2409_v37 = vmul.f32 %v12705_v58, %v12704_v8  ;;  %v3720_v13 = vadd.f32 %v3704_v52, %v3684_v19  ;;  %v4375_v46 = vadd.f32 %v4359_v5, %v4339_v63  ;;  %v12710_v51 = vld [vmem:[#allocation62_spill] sm:$0xff]  ;;  %v12711_v62 = vld [vmem:[#allocation29_spill] sm:$0xff]  ;;  %v12714_v58 = vld [vmem:[#allocation120_spill] sm:$0xff]  ;;  %v3924_v4 = vmul.f32 %v10234_v26, %v12572_v15 }
 0x5e5   : > { %v2353_v20 = vadd.f32 %v12707_v14, %v2317_v7  ;;  %v10577_v28 = vand.u32 2147483647, %v10561_v2  ;;  %v3852_v7 = vmul.f32 %v10417_v6, %v12648_v29  ;;  %v4826_v52 = vadd.f32 %v12710_v51, %v10568_v50  ;;  %v12712_v5 = vld [vmem:[#allocation50_spill] sm:$0xff]  ;;  %v12713_v29 = vld [vmem:[#allocation60_spill] sm:$0xff]  ;;  %v12717_v21 = vld [vmem:[#allocation111_spill] sm:$0xff] }
 0x5e6   : > { %v3756_v49 = vadd.f32 %v3740_v22, %v3720_v13  ;;  %v3321_v19 = vmul.f32 %v5817_v27, %v3241_v10  ;;  %v10586_v24 = vadd.f32 %v4395_v39, %v4375_v46  ;;  %v2481_v63 = vmul.f32 %v12712_v5, %v12711_v62  ;;  %v12715_v39 = vld [vmem:[#allocation51_spill] sm:$0xff]  ;;  %v12718_v46 = vld [vmem:[#allocation113_spill] sm:$0xff] }
 0x5e7   : > { %v2389_v33 = vadd.f32 %v2373_v45, %v2353_v20  ;;  %v3050_v1 = vmul.f32 0.3275911, %v10577_v28  ;;  %v2245_v45 = vld [vmem:[#allocation2 + $0x271] sm:$0xff]  ;;  %4901 = vst.msk [vmem:[%s6979_s0 + $0x8] sm:$0xff] %vm4899_vm3, %v4826_v52  ;;  %v4649_v6 = vadd.f32 %v10553_v3, %v12713_v29  ;;  %v4821_v27 = vadd.f32 %v10568_v50, %v12714_v58 }
 0x5e8   : > { %v3832_v8 = vadd.f32 %v3816_v25, %v3756_v49  ;;  %v3337_v14 = vsub.f32 1.0, %v3321_v19  ;;  %v2517_v13 = vmul.f32 %v12715_v39, %v10378_v34  ;;  %v4664_v10 = vadd.f32 %v12717_v21, %v10553_v3  ;;  %v12719_v34 = vld [vmem:[#allocation54_spill] sm:$0xff]  ;;  %v12728_v21 = vld [vmem:[#allocation105_spill] sm:$0xff] }
 0x5e9   : > { %v2425_v22 = vadd.f32 %v2409_v37, %v2389_v33  ;;  %v3066_v20 = vadd.f32 1.0, %v3050_v1  ;;  %v12716_v37 = vld [vmem:[#allocation133_spill] sm:$0xff]  ;;  %4727 = vst.msk [vmem:[%s7103_s3] sm:$0xff] %vm891_vm2, %v4649_v6  ;;  %v4836_v33 = vadd.f32 %v12718_v46, %v10568_v50  ;;  %v2553_v51 = vmul.f32 %v12719_v34, %v2245_v45  ;;  %v12721_v19 = vld [vmem:[#allocation122_spill] sm:$0xff] }
 0x5ea   : > { %v3868_v12 = vadd.f32 %v3852_v7, %v3832_v8  ;;  %4900 = vst.msk [vmem:[%s6979_s0] sm:$0xff] %vm4899_vm3, %v4821_v27  ;;  %v3353_v49 = vmul.f32 %v3337_v14, %v3017_v48  ;;  %v3960_v26 = vmul.f32 %v10452_v56, %v12580_v32  ;;  %v12720_v7 = vld [vmem:[#allocation44_spill] sm:$0xff]  ;;  %v4659_v1 = vadd.f32 %v10553_v3, %v12721_v19  ;;  %v12723_v45 = vld [vmem:[#allocation73_spill] sm:$0xff]  ;;  %v12724_v8 = vld [vmem:[#allocation55_spill] sm:$0xff] }
 0x5eb   : > { %v2461_v25 = vadd.f32 %v12716_v37, %v2425_v22  ;;  %5818 = vrcp.f32 %v3066_v20  ;;  %4730 = vst.msk [vmem:[%s7103_s3 + $0x18] sm:$0xff] %vm891_vm2, %v4664_v10  ;;  %v12722_v48 = vld [vmem:[#allocation112_spill] sm:$0xff]  ;;  %v4504_v22 = vadd.f32 %v12723_v45, %v10537_v35  ;;  %v12725_v32 = vld [vmem:[#allocation134_spill] sm:$0xff]  ;;  %v4846_v58 = vadd.f32 %v10462_v60, %v10568_v50  ;;  %v12732_v19 = vld [vmem:[#allocation87_spill] sm:$0xff] }
 0x5ec   : > { %v3904_v52 = vadd.f32 %v12720_v7, %v3868_v12  ;;  %4903 = vst.msk [vmem:[%s6979_s0 + $0x18] sm:$0xff] %vm4899_vm3, %v4836_v33  ;;  %v4831_v62 = vadd.f32 %v10568_v50, %v12722_v48  ;;  %v3369_v5 = vadd.f32 1.0, %v3353_v49  ;;  %v2629_v56 = vmul.f32 %v12725_v32, %v12724_v8  ;;  %v12726_v39 = vld [vmem:[#allocation58_spill] sm:$0xff]  ;;  %v5920_v37 = vld [vmem:[#allocation2 + $0x132] sm:$0xff] }
 0x5ed   : > { %v2497_v15 = vadd.f32 %v2481_v63, %v2461_v25  ;;  %v4674_v63 = vadd.f32 %v10460_v59, %v10553_v3  ;;  %4729 = vst.msk [vmem:[%s7103_s3 + $0x10] sm:$0xff] %vm891_vm2, %v4659_v1  ;;  %v4669_v35 = vadd.f32 %v10553_v3, %v10473_v43  ;;  %v3258_v14 = vsub.f32 0.0, %v10577_v28  ;;  %v12727_v25 = vld [vmem:[#allocation61_spill] sm:$0xff]  ;;  %v5921_v48 = vld [vmem:[#allocation2 + $0x1d2] sm:$0xff] }
 0x5ee   : > { %v3940_v6 = vadd.f32 %v3924_v4, %v3904_v52  ;;  %4902 = vst.msk [vmem:[%s6979_s0 + $0x10] sm:$0xff] %vm4899_vm3, %v4831_v62  ;;  %v3385_v27 = vmul.f32 %v3369_v5, %v10481_v11  ;;  %v4841_v59 = vadd.f32 %v10568_v50, %v10475_v16  ;;  %v4032_v60 = vmul.f32 %v12584_v31, %v10232_v57  ;;  %v3796_v11 = vld [vmem:[#allocation3 + $0x271] sm:$0xff]  ;;  %v12733_v62 = vld [vmem:[#allocation65_spill] sm:$0xff] }
 0x5ef   : > { %v2533_v29 = vadd.f32 %v2517_v13, %v2497_v15  ;;  %4732 = vst.msk [vmem:[%s7103_s3 + $0x28] sm:$0xff] %vm891_vm2, %v4674_v63  ;;  %v2665_v13 = vmul.f32 %v10413_v42, %v12726_v39  ;;  %4731 = vst.msk [vmem:[%s7103_s3 + $0x20] sm:$0xff] %vm891_vm2, %v4669_v35  ;;  %v2701_v12 = vmul.f32 %v5920_v37, %v12727_v25  ;;  %v5922_v32 = vld [vmem:[#allocation3 + $0x132] sm:$0xff]  ;;  %vm3002_vm4 = vcmp.lt.f32.partialorder %v10561_v2, 0.0 }
 0x5f0   : > { %v3976_v4 = vadd.f32 %v3960_v26, %v3940_v6  ;;  %4905 = vst.msk [vmem:[%s6979_s0 + $0x28] sm:$0xff] %vm4899_vm3, %v4846_v58  ;;  %v4520_v43 = vmul.f32 %v4504_v22, %v3385_v27  ;;  %4904 = vst.msk [vmem:[%s6979_s0 + $0x20] sm:$0xff] %vm4899_vm3, %v4841_v59  ;;  %v4068_v42 = vmul.f32 %v12668_v47, %v10456_v23  ;;  %v12730_v26 = vld [vmem:[#allocation89_spill] sm:$0xff]  ;;  %v12731_v47 = vld [vmem:[#allocation102_spill] sm:$0xff] }
 0x5f1   : > { %v2569_v20 = vadd.f32 %v2553_v51, %v2533_v29  ;;  %v3274_v57 = vmul.f32 %v3258_v14, %v10577_v28  ;;  %v2737_v46 = vmul.f32 %v12657_v41, %v12654_v38  ;;  %v4104_v49 = vmul.f32 %v12669_v54, %v3796_v11  ;;  %v12729_v51 = vld [vmem:[#allocation64_spill] sm:$0xff]  ;;  %v12735_v58 = vld [vmem:[#allocation66_spill] sm:$0xff]  ;;  %v12737_v59 = vld [vmem:[#allocation129_spill] sm:$0xff] }
 0x5f2   : > { %v4012_v10 = vadd.f32 %v12728_v21, %v3976_v4  ;;  %5543 = vmatmul.mubr.msk.f32.gmra.mrb[12].mxu0 %vm704_vm0, %v4520_v43  ;;  %5575 = vmatmul.mubr.msk.f32.gmra.mrb[12].mxu1 %vm704_vm0, %v4520_v43  ;;  %v2773_v15 = vmul.f32 %v12730_v26, %v12729_v51  ;;  %v4180_v1 = vmul.f32 %v12732_v19, %v12731_v47  ;;  %v12734_v41 = vld [vmem:[#allocation104_spill] sm:$0xff]  ;;  %v12739_v43 = vld [vmem:[#allocation86_spill] sm:$0xff] }
 0x5f3   : > { %v2645_v16 = vadd.f32 %v2629_v56, %v2569_v20  ;;  %v2809_v28 = vmul.f32 %v5921_v48, %v12733_v62  ;;  %v3304_v5 = vmul.f32 1.442695, %v3274_v57  ;;  %v4216_v54 = vmul.f32 %v10506_v55, %v12734_v41  ;;  %v2609_v29 = vld [vmem:[#allocation2 + $0x272] sm:$0xff]  ;;  %v12738_v20 = vld [vmem:[#allocation82_spill] sm:$0xff] }
 0x5f4   : > { %v4048_v33 = vadd.f32 %v4032_v60, %v4012_v10  ;;  %v4252_v56 = vmul.f32 %v5922_v32, %v12675_v30  ;;  %v12736_v35 = vld [vmem:[#allocation68_spill] sm:$0xff]  ;;  %v2881_v39 = vmul.f32 %v12738_v20, %v12737_v59  ;;  %v4288_v55 = vmul.f32 %v12690_v17, %v12684_v40  ;;  %v4159_v51 = vld [vmem:[#allocation3 + $0x262] sm:$0xff] }
 0x5f5   : > { %v2681_v31 = vadd.f32 %v2665_v13, %v2645_v16  ;;  %v5819_v34 = vpop.eup %5818  ;;  %v2845_v27 = vmul.f32 %v12736_v35, %v12735_v58  ;;  %5820 = vpow2.f32 %v3304_v5  ;;  %v2917_v11 = vmul.f32 %v12739_v43, %v2609_v29  ;;  %v5923_v16 = vld [vmem:[#allocation3 + $0x1d2] sm:$0xff] }
 0x5f6   : > { %v3114_v7 = vmul.f32 1.0614054, %v5819_v34  ;;  %v4084_v23 = vadd.f32 %v4068_v42, %v4048_v33  ;;  %v4360_v21 = vmul.f32 %v5923_v16, %v12693_v53  ;;  %v12742_v53 = vld [vmem:[#allocation127_spill] sm:$0xff] }
 0x5f7   : > { %v2717_v52 = vadd.f32 %v2701_v12, %v2681_v31  ;;  %v4324_v12 = vmul.f32 %v10539_v9, %v12689_v61  ;;  %v12740_v31 = vld [vmem:[#allocation117_spill] sm:$0xff] }
 0x5f8   : > { %v3130_v22 = vadd.f32 -1.4531521, %v3114_v7  ;;  %v4120_v38 = vadd.f32 %v4104_v49, %v4084_v23  ;;  %v4396_v26 = vmul.f32 %v12700_v44, %v12740_v31 }
 0x5f9   : > { %v2753_v8 = vadd.f32 %v2737_v46, %v2717_v52  ;;  %v12741_v46 = vld [vmem:[#allocation38_spill] sm:$0xff]  ;;  %v4467_v52 = vmul.f32 %v12742_v53, %v4159_v51 }
 0x5fa   : > { %v3146_v63 = vmul.f32 %v5819_v34, %v3130_v22  ;;  %v4196_v14 = vadd.f32 %v4180_v1, %v4120_v38  ;;  %v4431_v33 = vmul.f32 %v12741_v46, %v12740_v31 }
 0x5fb   : > { %v2789_v6 = vadd.f32 %v2773_v15, %v2753_v8 }
 0x5fc   : > { %v3162_v13 = vadd.f32 1.4214138, %v3146_v63  ;;  %v4232_v60 = vadd.f32 %v4216_v54, %v4196_v14  ;;  %v4447_v47 = vadd.f32 %v4431_v33, %v10586_v24 }
 0x5fd   : > { %v2825_v4 = vadd.f32 %v2809_v28, %v2789_v6  ;;  %v3018_v28 = vsel %vm3002_vm4, -1.0, %v12688_v0 }
 0x5fe   : > { %v3178_v30 = vmul.f32 %v5819_v34, %v3162_v13  ;;  %v4268_v25 = vadd.f32 %v4252_v56, %v4232_v60  ;;  %v4483_v44 = vadd.f32 %v4467_v52, %v4447_v47 }
 0x5ff   : > { %v2861_v37 = vadd.f32 %v2845_v27, %v2825_v4  ;;  %v5821_v9 = vpop.eup %5820 }
 0x600   : > { %v3194_v10 = vadd.f32 -0.28449672, %v3178_v30  ;;  %v4304_v57 = vadd.f32 %v4288_v55, %v4268_v25  ;;  %v4505_v2 = vadd.f32 %v12723_v45, %v4483_v44  ;;  %v4160_v30 = vld [vmem:[#allocation3 + $0x272] sm:$0xff] }
 0x601   : > { %v2897_v42 = vadd.f32 %v2881_v39, %v2861_v37 }
 0x602   : > { %v3210_v49 = vmul.f32 %v5819_v34, %v3194_v10  ;;  %v4340_v17 = vadd.f32 %v4324_v12, %v4304_v57 }
 0x603   : > { %v2933_v40 = vadd.f32 %v2917_v11, %v2897_v42  ;;  %v4432_v11 = vmul.f32 %v12741_v46, %v4159_v51 }
 0x604   : > { %v3226_v15 = vadd.f32 0.2548296, %v3210_v49  ;;  %v4376_v61 = vadd.f32 %v4360_v21, %v4340_v17  ;;  %v5567_v54 = vpop.f32.mrb[6].mxu1  ;;  %v4468_v21 = vmul.f32 %v12742_v53, %v4160_v30 }
 0x605   : > { %v2955_v7 = vadd.f32 %v12697_v36, %v2933_v40  ;;  %v2970_v36 = vmul.f32 0.5, %v10548_v18  ;;  %v4856_v29 = vadd.f32 %v5567_v54, %v10568_v50  ;;  %v4850_v6 = vpop.f32.mrb[7].mxu1 }
 0x606   : > { %v3242_v23 = vmul.f32 %v5819_v34, %v3226_v15  ;;  %v4412_v1 = vadd.f32 %v4396_v26, %v4376_v61  ;;  %v5535_v34 = vpop.f32.mrb[6].mxu0  ;;  %v4851_v35 = vadd.f32 %v10568_v50, %v4850_v6 }
 0x607   : > { %v2987_v19 = vmul.f32 0.70710677, %v2955_v7  ;;  %v4684_v63 = vadd.f32 %v5535_v34, %v10553_v3  ;;  %v4678_v18 = vpop.f32.mrb[7].mxu0  ;;  %4907 = vst.msk [vmem:[%s6979_s0 + $0x38] sm:$0xff] %vm4899_vm3, %v4856_v29  ;;  %v2971_v33 = vmul.f32 0.5, %v2955_v7 }
 0x608   : > { %v3322_v48 = vmul.f32 %v5821_v9, %v3242_v23  ;;  %v4679_v58 = vadd.f32 %v10553_v3, %v4678_v18  ;;  %4906 = vst.msk [vmem:[%s6979_s0 + $0x30] sm:$0xff] %vm4899_vm3, %v4851_v35  ;;  %v4448_v16 = vadd.f32 %v4432_v11, %v4412_v1 }
 0x609   : > { %v3035_v62 = vand.u32 2147483647, %v2987_v19  ;;  %4734 = vst.msk [vmem:[%s7103_s3 + $0x38] sm:$0xff] %vm891_vm2, %v4684_v63  ;;  %vm3003_vm5 = vcmp.lt.f32.partialorder %v2987_v19, 0.0 }
 0x60a   : > { %v3338_v5 = vsub.f32 1.0, %v3322_v48  ;;  %4733 = vst.msk [vmem:[%s7103_s3 + $0x30] sm:$0xff] %vm891_vm2, %v4679_v58  ;;  %v3019_v42 = vsel %vm3003_vm5, -1.0, %v12688_v0  ;;  %v4484_v31 = vadd.f32 %v4468_v21, %v4448_v16 }
 0x60b   : > { %v3051_v22 = vmul.f32 0.3275911, %v3035_v62  ;;  %v3259_v56 = vsub.f32 0.0, %v3035_v62 }
 0x60c   : > { %v3354_v8 = vmul.f32 %v3338_v5, %v3018_v28  ;;  %v4506_v46 = vadd.f32 %v12723_v45, %v4484_v31 }
 0x60d   : > { %v3067_v38 = vadd.f32 1.0, %v3051_v22  ;;  %v3275_v27 = vmul.f32 %v3259_v56, %v3035_v62 }
 0x60e   : > { %v3370_v41 = vadd.f32 1.0, %v3354_v8 }
 0x60f   : > { %5822 = vrcp.f32 %v3067_v38  ;;  %v3306_v20 = vmul.f32 1.442695, %v3275_v27 }
 0x610   : > { %v3386_v24 = vmul.f32 %v3370_v41, %v2970_v36 }
 0x611   : > { %5824 = vpow2.f32 %v3306_v20 }
 0x612   : > { %v4521_v32 = vmul.f32 %v4505_v2, %v3386_v24 }
 0x614   : > { %5545 = vmatprep.mubr.msk.f32.mxu0 %vm704_vm0, %v4521_v32  ;;  %5577 = vmatprep.mubr.msk.f32.mxu1 %vm704_vm0, %v4521_v32 }
 0x619   : > { %v5823_v14 = vpop.eup %5822 }
 0x61a   : > { %v3115_v59 = vmul.f32 1.0614054, %v5823_v14 }
 0x61b   : > { %v5825_v25 = vpop.eup %5824 }
 0x61c   : > { %v3131_v39 = vadd.f32 -1.4531521, %v3115_v59 }
 0x61e   : > { %v3147_v13 = vmul.f32 %v5823_v14, %v3131_v39 }
 0x620   : > { %v3163_v4 = vadd.f32 1.4214138, %v3147_v13 }
 0x622   : > { %v3179_v60 = vmul.f32 %v5823_v14, %v3163_v4 }
 0x624   : > { %v3195_v55 = vadd.f32 -0.28449672, %v3179_v60 }
 0x626   : > { %v3211_v43 = vmul.f32 %v5823_v14, %v3195_v55 }
 0x628   : > { %v3227_v37 = vadd.f32 0.2548296, %v3211_v43 }
 0x62a   : > { %v3243_v12 = vmul.f32 %v5823_v14, %v3227_v37 }
 0x62c   : > { %v3323_v10 = vmul.f32 %v5825_v25, %v3243_v12 }
 0x62e   : > { %v3339_v57 = vsub.f32 1.0, %v3323_v10 }
 0x630   : > { %v3355_v49 = vmul.f32 %v3339_v57, %v3019_v42 }
 0x631   : > { %v5538_v26 = vpop.f32.mrb[8].mxu0  ;;  %v5570_v15 = vpop.f32.mrb[8].mxu1 }
 0x632   : > { %v3371_v40 = vadd.f32 1.0, %v3355_v49  ;;  %v4694_v0 = vadd.f32 %v5538_v26, %v10553_v3  ;;  %v4866_v7 = vadd.f32 %v5570_v15, %v10568_v50  ;;  %v4688_v61 = vpop.f32.mrb[9].mxu0  ;;  %v4860_v9 = vpop.f32.mrb[9].mxu1 }
 0x633   : > { %v4689_v53 = vadd.f32 %v10553_v3, %v4688_v61  ;;  %v4861_v45 = vadd.f32 %v10568_v50, %v4860_v9 }
 0x634   : > { %v3387_v51 = vmul.f32 %v3371_v40, %v2971_v33  ;;  %4736 = vst.msk [vmem:[%s7103_s3 + $0x48] sm:$0xff] %vm891_vm2, %v4694_v0 }
 0x635   : > { %4909 = vst.msk [vmem:[%s6979_s0 + $0x48] sm:$0xff] %vm4899_vm3, %v4866_v7  ;;  %4908 = vst.msk [vmem:[%s6979_s0 + $0x40] sm:$0xff] %vm4899_vm3, %v4861_v45 }
 0x636   : > { %v4522_v17 = vmul.f32 %v4506_v46, %v3387_v51  ;;  %4735 = vst.msk [vmem:[%s7103_s3 + $0x40] sm:$0xff] %vm891_vm2, %v4689_v53 }
 0x638   : > { %5546 = vmatmul.mubr.msk.f32.gmra.mrb[14].mxu0 %vm704_vm0, %v4522_v17  ;;  %5578 = vmatmul.mubr.msk.f32.gmra.mrb[14].mxu1 %vm704_vm0, %v4522_v17 }
 0x67a   : > { %v5541_v52 = vpop.f32.mrb[10].mxu0  ;;  %v5573_v23 = vpop.f32.mrb[10].mxu1 }
 0x67b   : > { %v4704_v47 = vadd.f32 %v5541_v52, %v10553_v3  ;;  %v4876_v19 = vadd.f32 %v5573_v23, %v10568_v50  ;;  %v4698_v1 = vpop.f32.mrb[11].mxu0  ;;  %v4870_v48 = vpop.f32.mrb[11].mxu1 }
 0x67c   : > { %v4699_v62 = vadd.f32 %v10553_v3, %v4698_v1  ;;  %v4871_v28 = vadd.f32 %v10568_v50, %v4870_v48 }
 0x67d   : > { %4738 = vst.msk [vmem:[%s7103_s3 + $0x58] sm:$0xff] %vm891_vm2, %v4704_v47 }
 0x67e   : > { %4911 = vst.msk [vmem:[%s6979_s0 + $0x58] sm:$0xff] %vm4899_vm3, %v4876_v19  ;;  %4910 = vst.msk [vmem:[%s6979_s0 + $0x50] sm:$0xff] %vm4899_vm3, %v4871_v28 }
 0x67f   : > { %4737 = vst.msk [vmem:[%s7103_s3 + $0x50] sm:$0xff] %vm891_vm2, %v4699_v62 }
 0x6c5   : > { %v5544_v5 = vpop.f32.mrb[12].mxu0  ;;  %v5576_v44 = vpop.f32.mrb[12].mxu1 }
 0x6c6   : > { %v4714_v22 = vadd.f32 %v5544_v5, %v10553_v3  ;;  %v4886_v36 = vadd.f32 %v5576_v44, %v10568_v50  ;;  %v4708_v8 = vpop.f32.mrb[13].mxu0  ;;  %v4880_v38 = vpop.f32.mrb[13].mxu1 }
 0x6c7   : > { %v4709_v41 = vadd.f32 %v10553_v3, %v4708_v8  ;;  %v4881_v2 = vadd.f32 %v10568_v50, %v4880_v38 }
 0x6c8   : > { %4740 = vst.msk [vmem:[%s7103_s3 + $0x68] sm:$0xff] %vm891_vm2, %v4714_v22 }
 0x6c9   : > { %4913 = vst.msk [vmem:[%s6979_s0 + $0x68] sm:$0xff] %vm4899_vm3, %v4886_v36  ;;  %4912 = vst.msk [vmem:[%s6979_s0 + $0x60] sm:$0xff] %vm4899_vm3, %v4881_v2 }
 0x6ca   : > { %4739 = vst.msk [vmem:[%s7103_s3 + $0x60] sm:$0xff] %vm891_vm2, %v4709_v41 }
 0x70b   : > { %v5547_v24 = vpop.f32.mrb[14].mxu0  ;;  %v5579_v34 = vpop.f32.mrb[14].mxu1 }
 0x70c   : > { %v4724_v54 = vadd.f32 %v5547_v24, %v10553_v3  ;;  %v4896_v32 = vadd.f32 %v5579_v34, %v10568_v50  ;;  %v4718_v56 = vpop.f32.mrb[15].mxu0  ;;  %v4890_v63 = vpop.f32.mrb[15].mxu1 }
 0x70d   : > { %v4719_v29 = vadd.f32 %v10553_v3, %v4718_v56  ;;  %v4891_v18 = vadd.f32 %v10568_v50, %v4890_v63 }
 0x70e   : > { %4742 = vst.msk [vmem:[%s7103_s3 + $0x78] sm:$0xff] %vm891_vm2, %v4724_v54 }
 0x70f   : > { %4915 = vst.msk [vmem:[%s6979_s0 + $0x78] sm:$0xff] %vm4899_vm3, %v4896_v32  ;;  %4914 = vst.msk [vmem:[%s6979_s0 + $0x70] sm:$0xff] %vm4899_vm3, %v4891_v18 }
 0x710   : > { %4741 = vst.msk [vmem:[%s7103_s3 + $0x70] sm:$0xff] %vm891_vm2, %v4719_v29 }
 0x711   : > { %6027 = shalt.err (!%p6024_p3)
}
 0x712   : > { %s6028_s16 = scalar_lea.hbm %s10754_s7, 2048  ;;  %s6032_s6 = scalar_lea.hbm %s12747_s15, 8192 }
 0x713   : > { %p6029_p10 = scmp.ne.s32.totalorder %s10754_s7, %s6028_s16  ;;  %p6033_p1 = scmp.lt.u32.totalorder %s10754_s7, %s12747_s15 }
 0x714   : > { %p6034_p11 = scmp.lt.u32.totalorder %s6032_s6, %s6028_s16  ;;  %p6036_p4 = scmp.lt.u32.totalorder %s6028_s16, %s10754_s7 }
 0x715   : > { %p6030_p5 = pnand %p6029_p10, %p12748_p0 }
 0x716   : > { %p6035_p12 = por %p6034_p11, %p6033_p1 }
 0x717   : > { %p6031_p2 = pneg %p6030_p5 }
 0x718   : > { %p6037_p6 = por %p6036_p4, %p6035_p12 }
 0x71a   : > { %p6038_p8 = pnand %p6037_p6, %p6031_p2 }
 0x71c   : > { %6041 = shalt.err (!%p6038_p8)
}
 0x71d   : > { %s6178_s30 = smov 128   ;;  %s6179_s24 = smov 8  }
 0x71e   : > { %5626 = dma.vmem_to_hbm [thread:$0]  (%p12748_p0), %s10756_s25, 2048, %s10754_s7, %s10770_s27, %s6178_s30, %s6178_s30, %s6179_s24  }
 0x71f PF: > { %s12749_s28 = sld [smem:[#allocation15_spill]]  ;;  %s12750_s18 = sld [smem:[#allocation25_spill]] }
 0x720   : > { %p5643_p9 = scmp.ge.s32.totalorder %s6168_s19, 2 }
 0x725   : > { %s4962_s17 = sand.u32 1, %s12749_s28   ;;  %p12751_p13 = scmp.ne.s32.totalorder %s12750_s18, 0 }
 0x726   : > { %s4963_s16 = scalar_lea.sflag [#allocation6], %s4962_s17 }
 0x727   : > { %p5639_p7 = pnand %p5643_p9, %p12751_p13 }
 0x729   : > { %6111 = dma.done.wait (!%p5639_p7), %s4963_s16, 2048  }
 0x72a   : > { %6113 = vsyncadd (!%p5639_p7), %s4963_s16, 4294965248  ;;  %s36_s19 = sadd.s32 1, %s6168_s19   ;;  %s12753_s24 = sld [smem:[#allocation16_spill]] }
 0x72b   : > { %p10799_p3 = scmp.ge.s32.totalorder %s36_s19, 6   ;;  %s12754_s27 = sld [smem:[#allocation17_spill]] }
 0x72c   : > { %s12755_s20 = sld [smem:[#allocation28_spill]]  ;;  %s12756_s30 = sld [smem:[#allocation20_spill]] }
 0x72d   : > { %s12757_s7 = sld [smem:[#allocation21_spill]]  ;;  %s12758_s17 = sld [smem:[#allocation22_spill]] }
 0x72e   : > { %s12759_s18 = sld [smem:[#allocation26_spill]]  ;;  %s12761_s21 = smov %s6120_s22 }
 0x72f   : > { %s12762_s22 = smov %s6124_s23  ;;  %s12763_s23 = smov %s6560_s8 }
 0x730   : > { %s12764_s25 = smov %s6136_s26  ;;  %s12765_s26 = smov %s6484_s9 }
 0x731   : > { %s12766_s28 = smov %s6148_s29  ;;  %35 = sbr.rel (!%p10799_p3) target bundleno = 29 (0x1d), region = 175 }
 0x732   : > { %s12767_s29 = smov %s12755_s20 }
 0x733   : > { %s12768_s0 = smov %s12757_s7 }
 0x738   :  { %4981 = vsyncpa [#allocation5], 1 }
 0x739   :  { %4983 = vsyncpa [#allocation5 + $0x1], 1 }
 0x73a   :  { %4984 = vsyncpa [#allocation8], 1 }
 0x73b   :  { %4986 = vsyncpa [#allocation8 + $0x1], 1 }
 0x73c   :  { %4987 = vsyncpa [#allocation6], 1 }
 0x73d   :  { %4989 = vsyncpa [#allocation6 + $0x1], 1 }

</bundles_post_ra>
